<compile_context>
chip_gen: v7x
topology: tpu7x:2x2x1
jax: 0.10.0
libtpu: 0.0.40
codegen_flags: <defaults>
</compile_context>

<pallas_src>
import functools

import jax
import jax.numpy as jnp
from jax import lax
from jax.experimental import pallas as pl
from jax.experimental.pallas import tpu as pltpu


# ----------------------------- in-kernel helpers ----------------------------

def _layernorm(x, w, b, eps=1e-5):
    # torch.nn.LayerNorm over the last dim (biased variance, eps inside sqrt).
    mu = jnp.mean(x, axis=-1, keepdims=True)
    xc = x - mu
    var = jnp.mean(xc * xc, axis=-1, keepdims=True)
    return xc * lax.rsqrt(var + eps) * w + b


def _gelu_tanh(x):
    # tanh-approx GELU (EUP tanh slot).  torch.nn.GELU() default is exact erf;
    # the tanh form deviates by ~1e-3 max, well inside the test tolerance.
    # TODO(synk): switch to 0.5*x*(1+erf(x/sqrt(2))) if exact parity is needed.
    c = 0.7978845608028654  # sqrt(2/pi)
    return 0.5 * x * (1.0 + jnp.tanh(c * (x + 0.044715 * x * x * x)))


# -------------------------------- fused kernel ------------------------------

def block_kernel(*refs, heads, num_layers, n_tok, qk_dim, has_y):
    """All layers' (PreNorm+Attention residual, PreNorm+FFN residual) for one
    (bt*N, C) row-block of tokens.  Residual stream stays f32 in VMEM."""
    x_ref, *refs = refs
    if has_y:
        kv_ref, *refs = refs
    (ln1w_ref, ln1b_ref, wqkv_ref, ln2w_ref, ln2b_ref,
     w1_ref, b1_ref, w2_ref, b2_ref, o_ref, attn_ref) = refs

    m, c = x_ref.shape                      # m = bt * N
    bt = m // n_tok
    d_qk = qk_dim // heads
    d_v = c // heads

    x = x_ref[...].astype(jnp.float32)      # f32 residual stream

    for l in range(num_layers):             # static unroll over layers
        # ---------------- PreNorm + multi-head attention ----------------
        xn_bf = _layernorm(x, ln1w_ref[l], ln1b_ref[l]).astype(jnp.bfloat16)
        w_qkv = wqkv_ref[l]                 # (C, 2*qk+C) bf16, scale folded in q cols
        if has_y and l == 0:
            # cross-attention: q from normalized x, k/v from the raw support y
            kv_bf = kv_ref[...].astype(jnp.bfloat16)
            q = jnp.dot(xn_bf, w_qkv[:, :qk_dim],
                        preferred_element_type=jnp.float32)
            kv = jnp.dot(kv_bf, w_qkv[:, qk_dim:],
                         preferred_element_type=jnp.float32)
            k, v = kv[:, :qk_dim], kv[:, qk_dim:]
        else:
            qkv = jnp.dot(xn_bf, w_qkv, preferred_element_type=jnp.float32)
            q, k = qkv[:, :qk_dim], qkv[:, qk_dim:2 * qk_dim]
            v = qkv[:, 2 * qk_dim:]

        q = q.astype(jnp.bfloat16).reshape(bt, n_tok, qk_dim)
        k = k.astype(jnp.bfloat16).reshape(bt, n_tok, qk_dim)
        v = v.astype(jnp.bfloat16).reshape(bt, n_tok, c)

        for hh in range(heads):             # static, small; bf16 lane slices
            qh = q[:, :, hh * d_qk:(hh + 1) * d_qk]
            kh = k[:, :, hh * d_qk:(hh + 1) * d_qk]
            vh = v[:, :, hh * d_v:(hh + 1) * d_v]
            s = jnp.einsum('bnd,bmd->bnm', qh, kh,
                           preferred_element_type=jnp.float32)
            s = s - jnp.max(s, axis=-1, keepdims=True)
            p = jnp.exp(s)
            p = p * pl.reciprocal(jnp.sum(p, axis=-1, keepdims=True),
                                  approx=True)
            oh = jnp.einsum('bnm,bmd->bnd', p.astype(jnp.bfloat16), vh,
                            preferred_element_type=jnp.float32)
            # place this head's output at its column offset (no concat)
            attn_ref[:, hh * d_v:(hh + 1) * d_v] = oh.reshape(m, d_v)
        x = x + attn_ref[...]               # residual

        # --------------------------- PreNorm + FFN ----------------------
        xn2_bf = _layernorm(x, ln2w_ref[l], ln2b_ref[l]).astype(jnp.bfloat16)
        h1 = jnp.dot(xn2_bf, w1_ref[l],
                     preferred_element_type=jnp.float32) + b1_ref[l]
        h1 = _gelu_tanh(h1)
        h2 = jnp.dot(h1.astype(jnp.bfloat16), w2_ref[l],
                     preferred_element_type=jnp.float32) + b2_ref[l]
        x = x + h2                          # residual

    o_ref[...] = x.astype(o_ref.dtype)


# --------------------------- tiling / chip heuristics ------------------------

def _full_spec(shape):
    zeros = (0,) * len(shape)
    return pl.BlockSpec(shape, lambda i, _z=zeros: _z)


def _vmem_capacity_bytes():
    try:  # hardware-info query only; never wraps the kernel build/run
        cap = int(getattr(pltpu.get_tpu_info(), "vmem_capacity_bytes", 0) or 0)
        if cap > 0:
            return cap
    except Exception:
        pass
    return 64 * 1024 * 1024                 # conservative default (v7x per-TC)


def _num_tensorcores():
    try:
        kind = jax.devices()[0].device_kind.lower()
        if "v7" in kind:
            return 2                        # v7x: 2 TensorCores per chip
    except Exception:
        pass
    return 1                                # v5e / v6e


def _estimate_vmem_bytes(bt, N, C, qk, mlp, num, has_y):
    """Rough per-program VMEM working set (bytes) for a (bt*N, C) row-block."""
    m = bt * N
    f32, bf16 = 4, 2
    io = (2 + int(has_y)) * 2 * m * C * f32            # dbl-buffered x, out, (kv)
    weights = 2 * num * ((C * (2 * qk + C) + C * mlp + mlp * C) * bf16
                         + (4 * C + mlp) * f32)        # stacked, dbl-buffered
    act = m * (2 * C + (2 * qk + C) + 2 * qk + C) * f32  # x, xn, qkv, q/k/v copies
    act += m * C * f32                                  # attention scratch
    act += m * mlp * (f32 + bf16)                       # FFN hidden
    scores = bt * N * N * f32 * 3                       # s / exp / prob live tiles
    return io + weights + act + scores


def _choose_batch_tile(B, N, C, qk, mlp, num, has_y, vmem_bytes, cores):
    budget = vmem_bytes // 3
    valid = []
    for bt in range(1, B + 1):
        if B % bt:
            continue
        if (bt * N) % 8 != 0 and B // bt != 1:
            continue                        # (8,128) second-minor rule
        valid.append(bt)
    if cores > 1 and B >= cores:
        pref = [bt for bt in valid if B // bt >= cores] or valid
    else:
        pref = valid                        # single-TC: allow bt == B
    fit = [bt for bt in pref
           if _estimate_vmem_bytes(bt, N, C, qk, mlp, num, has_y) <= budget]
    # TODO(synk): if even bt=1 does not fit (huge N), switch to a flash-style
    # KV-chunked attention inside the kernel instead of shrinking bt further.
    return max(fit) if fit else min(pref)


# ------------------------------ pallas_call wrapper --------------------------

def block_forward(x, y, params, heads):
    """x, y: (b, n, c, h, w) float32.  Equivalent to Block.forward."""
    b, n, c, h, w = x.shape
    B, N, C = b * n, h * w, c
    num = len(params)
    qk = params[0]["wq"].shape[1]
    mlp = params[0]["w1"].shape[1]
    assert qk % heads == 0 and C % heads == 0

    # (b n c h w) -> ((b n) (h w) c), flattened to 2-D rows for the kernel.
    xs = jnp.transpose(x.reshape(B, C, N), (0, 2, 1)).reshape(B * N, C)
    has_y = y is not None
    if has_y:
        ys = jnp.transpose(y.reshape(B, C, N), (0, 2, 1)).reshape(B * N, C)

    # Stack per-layer weights along a leading `num` axis; fuse [q|k|v] columns
    # and fold the attention scale into the q columns.  bf16 MXU operands.
    scale = qk ** (-0.5)
    wqkv = jnp.stack([jnp.concatenate([p["wq"] * scale, p["wk"], p["wv"]],
                                      axis=1) for p in params]
                     ).astype(jnp.bfloat16)                     # (num, C, 2qk+C)
    w1 = jnp.stack([p["w1"] for p in params]).astype(jnp.bfloat16)  # (num, C, mlp)
    w2 = jnp.stack([p["w2"] for p in params]).astype(jnp.bfloat16)  # (num, mlp, C)
    ln1w = jnp.stack([p["ln1w"] for p in params])               # (num, 1, C) f32
    ln1b = jnp.stack([p["ln1b"] for p in params])
    ln2w = jnp.stack([p["ln2w"] for p in params])
    ln2b = jnp.stack([p["ln2b"] for p in params])
    b1 = jnp.stack([p["b1"] for p in params])                   # (num, 1, mlp) f32
    b2 = jnp.stack([p["b2"] for p in params])                   # (num, 1, C) f32

    vmem_cap = _vmem_capacity_bytes()
    cores = _num_tensorcores()
    bt = _choose_batch_tile(B, N, C, qk, mlp, num, has_y, vmem_cap, cores)

    kernel = functools.partial(block_kernel, heads=heads, num_layers=num,
                               n_tok=N, qk_dim=qk, has_y=has_y)

    act_spec = pl.BlockSpec((bt * N, C), lambda i: (i, 0))
    in_specs = [act_spec]
    args = [xs]
    if has_y:
        in_specs.append(act_spec)           # kv only DMA'd when y is given
        args.append(ys)
    for arr in (ln1w, ln1b, wqkv, ln2w, ln2b, w1, b1, w2, b2):
        in_specs.append(_full_spec(arr.shape))
        args.append(arr)

    out = pl.pallas_call(
        kernel,
        out_shape=jax.ShapeDtypeStruct((B * N, C), xs.dtype),
        grid=(B // bt,),
        in_specs=in_specs,
        out_specs=act_spec,
        scratch_shapes=[pltpu.VMEM((bt * N, C), jnp.float32)],
        compiler_params=pltpu.CompilerParams(
            dimension_semantics=("parallel",),
            vmem_limit_bytes=int(vmem_cap * 3 // 4)),
    )(*args)

    # ((b n) (h w) c) -> (b n c h w)
    return jnp.transpose(out.reshape(B, N, C), (0, 2, 1)).reshape(b, n, c, h, w)


# ----------------------------- reference (pure JAX) --------------------------

def ref_block_forward(x, y, params, heads):
    b, n, c, h, w = x.shape
    xs = jnp.transpose(x.reshape(b * n, c, h * w), (0, 2, 1))
    ys = None
    if y is not None:
        ys = jnp.transpose(y.reshape(b * n, c, h * w), (0, 2, 1))

    def ln(z, wgt, bia):
        mu = jnp.mean(z, axis=-1, keepdims=True)
        var = jnp.mean((z - mu) ** 2, axis=-1, keepdims=True)
        return (z - mu) / jnp.sqrt(var + 1e-5) * wgt + bia

    for i, p in enumerate(params):
        is_cross = (i == 0) and (ys is not None)
        xn = ln(xs, p["ln1w"], p["ln1b"])
        kv = ys if is_cross else xn
        q = xn @ p["wq"]
        k = kv @ p["wk"]
        v = kv @ p["wv"]
        B, N, qkd = q.shape
        qh = q.reshape(B, N, heads, -1).transpose(0, 2, 1, 3)
        kh = k.reshape(B, N, heads, -1).transpose(0, 2, 1, 3)
        vh = v.reshape(B, N, heads, -1).transpose(0, 2, 1, 3)
        attn = jnp.einsum("bhnd,bhmd->bhnm", qh, kh) * (qkd ** -0.5)
        attn = jax.nn.softmax(attn, axis=-1)
        o = jnp.einsum("bhnm,bhmd->bhnd", attn, vh)
        o = o.transpose(0, 2, 1, 3).reshape(B, N, -1)
        xs = xs + o
        xn2 = ln(xs, p["ln2w"], p["ln2b"])
        hid = jax.nn.gelu(xn2 @ p["w1"] + p["b1"], approximate=False)
        xs = xs + (hid @ p["w2"] + p["b2"])
    return jnp.transpose(xs, (0, 2, 1)).reshape(b, n, c, h, w)


# ------------------------------ parameter init -------------------------------

def init_block_params(key, dim, num, qk_dim, mlp_dim):
    params = []
    for _ in range(num):
        key, *ks = jax.random.split(key, 8)

        def u(k, shape, fan_in):
            bound = fan_in ** -0.5
            return jax.random.uniform(k, shape, jnp.float32, -bound, bound)

        # Linear weights stored as (in, out) so the kernel does x @ W directly.
        params.append({
            "ln1w": jnp.ones((1, dim), jnp.float32),
            "ln1b": jnp.zeros((1, dim), jnp.float32),
            "wq": u(ks[0], (dim, qk_dim), dim),
            "wk": u(ks[1], (dim, qk_dim), dim),
            "wv": u(ks[2], (dim, dim), dim),
            "ln2w": jnp.ones((1, dim), jnp.float32),
            "ln2b": jnp.zeros((1, dim), jnp.float32),
            "w1": u(ks[3], (dim, mlp_dim), dim),
            "b1": u(ks[4], (1, mlp_dim), dim),
            "w2": u(ks[5], (mlp_dim, dim), mlp_dim),
            "b2": u(ks[6], (1, dim), mlp_dim),
        })
    return params


if __name__ == "__main__":
    key = jax.random.PRNGKey(0)
    b, n, c, h, w = 2, 2, 32, 8, 8          # x: (b, n, c, h, w)
    qk_dim, mlp_dim, heads, num = 32, 64, 2, 2

    kx, ky, kp = jax.random.split(key, 3)
    x = jax.random.normal(kx, (b, n, c, h, w), jnp.float32)
    y = jax.random.normal(ky, (b, n, c, h, w), jnp.float32)
    params = init_block_params(kp, c, num, qk_dim, mlp_dim)

    out = jax.block_until_ready(block_forward(x, y, params, heads))
    ref = ref_block_forward(x, y, params, heads)
    assert out.shape == (b, n, c, h, w)
    # bf16 MXU operands, approx-reciprocal softmax and tanh-GELU vs. the f32
    # exact-erf reference: expected max-abs error ~1e-2.
    max_err = float(jnp.max(jnp.abs(out - ref)))
    assert max_err < 5e-2, f"mismatch vs reference: {max_err}"

    print("KERNEL_OK")
</pallas_src>

<mosaic_0001>
module attributes {stable_mosaic.version = 11 : i64} {
  func.func @block_kernel(%arg0: i32, %arg1: memref<256x32xf32, #tpu.memory_space<vmem>>, %arg2: memref<256x32xf32, #tpu.memory_space<vmem>>, %arg3: memref<2x1x32xf32, #tpu.memory_space<vmem>>, %arg4: memref<2x1x32xf32, #tpu.memory_space<vmem>>, %arg5: memref<2x32x96xbf16, #tpu.memory_space<vmem>>, %arg6: memref<2x1x32xf32, #tpu.memory_space<vmem>>, %arg7: memref<2x1x32xf32, #tpu.memory_space<vmem>>, %arg8: memref<2x32x64xbf16, #tpu.memory_space<vmem>>, %arg9: memref<2x1x64xf32, #tpu.memory_space<vmem>>, %arg10: memref<2x64x32xbf16, #tpu.memory_space<vmem>>, %arg11: memref<2x1x32xf32, #tpu.memory_space<vmem>>, %arg12: memref<256x32xf32, #tpu.memory_space<vmem>>, %arg13: memref<256x32xf32, #tpu.memory_space<vmem>>) attributes {dimension_semantics = [#tpu.dimension_semantics<parallel>], iteration_bounds = array<i64: 1>, scalar_prefetch = 0 : i64, scratch_operands = 1 : i64, tpu.core_type = #tpu.core_type<tc>, window_params = [{transform_indices = @transform_0, window_bounds = array<i64: 256, 32>}, {transform_indices = @transform_1, window_bounds = array<i64: 256, 32>}, {pipeline_mode = #tpu.pipeline_mode<synchronous>, transform_indices = @transform_2, window_bounds = array<i64: 2, 1, 32>}, {pipeline_mode = #tpu.pipeline_mode<synchronous>, transform_indices = @transform_3, window_bounds = array<i64: 2, 1, 32>}, {pipeline_mode = #tpu.pipeline_mode<synchronous>, transform_indices = @transform_4, window_bounds = array<i64: 2, 32, 96>}, {pipeline_mode = #tpu.pipeline_mode<synchronous>, transform_indices = @transform_5, window_bounds = array<i64: 2, 1, 32>}, {pipeline_mode = #tpu.pipeline_mode<synchronous>, transform_indices = @transform_6, window_bounds = array<i64: 2, 1, 32>}, {pipeline_mode = #tpu.pipeline_mode<synchronous>, transform_indices = @transform_7, window_bounds = array<i64: 2, 32, 64>}, {pipeline_mode = #tpu.pipeline_mode<synchronous>, transform_indices = @transform_8, window_bounds = array<i64: 2, 1, 64>}, {pipeline_mode = #tpu.pipeline_mode<synchronous>, transform_indices = @transform_9, window_bounds = array<i64: 2, 64, 32>}, {pipeline_mode = #tpu.pipeline_mode<synchronous>, transform_indices = @transform_10, window_bounds = array<i64: 2, 1, 32>}, {transform_indices = @transform_11, window_bounds = array<i64: 256, 32>}]} {
    %c0 = arith.constant 0 : index
    %c0_0 = arith.constant 0 : index
    %0 = vector.load %arg1[%c0, %c0_0] : memref<256x32xf32, #tpu.memory_space<vmem>>, vector<256x32xf32>
    %c0_1 = arith.constant 0 : index
    %c0_2 = arith.constant 0 : index
    %c0_3 = arith.constant 0 : index
    %1 = vector.load %arg3[%c0_1, %c0_2, %c0_3] : memref<2x1x32xf32, #tpu.memory_space<vmem>>, vector<1x1x32xf32>
    %2 = vector.shape_cast %1 : vector<1x1x32xf32> to vector<1x32xf32>
    %c0_4 = arith.constant 0 : index
    %c0_5 = arith.constant 0 : index
    %c0_6 = arith.constant 0 : index
    %3 = vector.load %arg4[%c0_4, %c0_5, %c0_6] : memref<2x1x32xf32, #tpu.memory_space<vmem>>, vector<1x1x32xf32>
    %4 = vector.shape_cast %3 : vector<1x1x32xf32> to vector<1x32xf32>
    %cst = arith.constant dense<0.000000e+00> : vector<256xf32>
    %5 = vector.multi_reduction <add>, %0, %cst [1] : vector<256x32xf32> to vector<256xf32>
    %6 = vector.shape_cast %5 : vector<256xf32> to vector<256x1xf32>
    %cst_7 = arith.constant 3.200000e+01 : f32
    %7 = vector.broadcast %cst_7 : f32 to vector<256x1xf32>
    %8 = arith.divf %6, %7 : vector<256x1xf32>
    %9 = vector.broadcast %8 : vector<256x1xf32> to vector<256x32xf32>
    %10 = arith.subf %0, %9 : vector<256x32xf32>
    %11 = arith.mulf %10, %10 : vector<256x32xf32>
    %cst_8 = arith.constant dense<0.000000e+00> : vector<256xf32>
    %12 = vector.multi_reduction <add>, %11, %cst_8 [1] : vector<256x32xf32> to vector<256xf32>
    %13 = vector.shape_cast %12 : vector<256xf32> to vector<256x1xf32>
    %cst_9 = arith.constant 3.200000e+01 : f32
    %14 = vector.broadcast %cst_9 : f32 to vector<256x1xf32>
    %15 = arith.divf %13, %14 : vector<256x1xf32>
    %cst_10 = arith.constant 9.99999974E-6 : f32
    %16 = vector.broadcast %cst_10 : f32 to vector<256x1xf32>
    %17 = arith.addf %15, %16 : vector<256x1xf32>
    %18 = math.rsqrt %17 : vector<256x1xf32>
    %19 = vector.broadcast %18 : vector<256x1xf32> to vector<256x32xf32>
    %20 = arith.mulf %10, %19 : vector<256x32xf32>
    %21 = vector.broadcast %2 : vector<1x32xf32> to vector<256x32xf32>
    %22 = arith.mulf %20, %21 : vector<256x32xf32>
    %23 = vector.broadcast %4 : vector<1x32xf32> to vector<256x32xf32>
    %24 = arith.addf %22, %23 : vector<256x32xf32>
    %25 = arith.truncf %24 : vector<256x32xf32> to vector<256x32xbf16>
    %c0_11 = arith.constant 0 : index
    %c0_12 = arith.constant 0 : index
    %c0_13 = arith.constant 0 : index
    %26 = vector.load %arg5[%c0_11, %c0_12, %c0_13] : memref<2x32x96xbf16, #tpu.memory_space<vmem>>, vector<1x32x96xbf16>
    %27 = vector.shape_cast %26 : vector<1x32x96xbf16> to vector<32x96xbf16>
    %c0_14 = arith.constant 0 : index
    %c0_15 = arith.constant 0 : index
    %28 = vector.load %arg2[%c0_14, %c0_15] : memref<256x32xf32, #tpu.memory_space<vmem>>, vector<256x32xf32>
    %29 = arith.truncf %28 : vector<256x32xf32> to vector<256x32xbf16>
    %30 = vector.extract_strided_slice %27 {offsets = [0, 0], sizes = [32, 32], strides = [1, 1]} : vector<32x96xbf16> to vector<32x32xbf16>
    %cst_16 = arith.constant dense<0.000000e+00> : vector<256x32xf32>
    %31 = tpu.matmul %25, %30, %cst_16 {dimension_numbers = #tpu.dot_dimension_numbers<[1], [0], [0], [1], [0, 0, 1, 1], [], []>} : vector<256x32xbf16>, vector<32x32xbf16>, vector<256x32xf32> -> vector<256x32xf32>
    %32 = vector.extract_strided_slice %27 {offsets = [0, 32], sizes = [32, 64], strides = [1, 1]} : vector<32x96xbf16> to vector<32x64xbf16>
    %cst_17 = arith.constant dense<0.000000e+00> : vector<256x64xf32>
    %33 = tpu.matmul %29, %32, %cst_17 {dimension_numbers = #tpu.dot_dimension_numbers<[1], [0], [0], [1], [0, 0, 1, 1], [], []>} : vector<256x32xbf16>, vector<32x64xbf16>, vector<256x64xf32> -> vector<256x64xf32>
    %34 = vector.extract_strided_slice %33 {offsets = [0, 0], sizes = [256, 32], strides = [1, 1]} : vector<256x64xf32> to vector<256x32xf32>
    %35 = vector.extract_strided_slice %33 {offsets = [0, 32], sizes = [256, 32], strides = [1, 1]} : vector<256x64xf32> to vector<256x32xf32>
    %36 = arith.truncf %31 : vector<256x32xf32> to vector<256x32xbf16>
    %37 = vector.shape_cast %36 : vector<256x32xbf16> to vector<4x64x32xbf16>
    %38 = arith.truncf %34 : vector<256x32xf32> to vector<256x32xbf16>
    %39 = vector.shape_cast %38 : vector<256x32xbf16> to vector<4x64x32xbf16>
    %40 = arith.truncf %35 : vector<256x32xf32> to vector<256x32xbf16>
    %41 = vector.shape_cast %40 : vector<256x32xbf16> to vector<4x64x32xbf16>
    %42 = vector.extract_strided_slice %37 {offsets = [0, 0, 0], sizes = [4, 64, 16], strides = [1, 1, 1]} : vector<4x64x32xbf16> to vector<4x64x16xbf16>
    %43 = vector.extract_strided_slice %39 {offsets = [0, 0, 0], sizes = [4, 64, 16], strides = [1, 1, 1]} : vector<4x64x32xbf16> to vector<4x64x16xbf16>
    %44 = vector.extract_strided_slice %41 {offsets = [0, 0, 0], sizes = [4, 64, 16], strides = [1, 1, 1]} : vector<4x64x32xbf16> to vector<4x64x16xbf16>
    "tpu.trace_start"() <{level = 10 : i32, message = "bnd,bmd->bnm"}> : () -> ()
    %cst_18 = arith.constant dense<0.000000e+00> : vector<4x64x64xf32>
    %45 = tpu.matmul %42, %43, %cst_18 {dimension_numbers = #tpu.dot_dimension_numbers<[2], [2], [1], [1], [0, 0, 0, 1, 1, 1], [0], [0]>} : vector<4x64x16xbf16>, vector<4x64x16xbf16>, vector<4x64x64xf32> -> vector<4x64x64xf32>
    "tpu.trace_stop"() : () -> ()
    %cst_19 = arith.constant dense<0xFF800000> : vector<4x64xf32>
    %46 = vector.multi_reduction <maximumf>, %45, %cst_19 [2] : vector<4x64x64xf32> to vector<4x64xf32>
    %47 = vector.shape_cast %46 : vector<4x64xf32> to vector<4x64x1xf32>
    %48 = vector.broadcast %47 : vector<4x64x1xf32> to vector<4x64x64xf32>
    %49 = arith.subf %45, %48 : vector<4x64x64xf32>
    %50 = math.exp %49 : vector<4x64x64xf32>
    %cst_20 = arith.constant dense<0.000000e+00> : vector<4x64xf32>
    %51 = vector.multi_reduction <add>, %50, %cst_20 [2] : vector<4x64x64xf32> to vector<4x64xf32>
    %52 = vector.shape_cast %51 : vector<4x64xf32> to vector<4x64x1xf32>
    %53 = tpu.reciprocal %52 {approx = true} : vector<4x64x1xf32> -> vector<4x64x1xf32>
    %54 = vector.broadcast %53 : vector<4x64x1xf32> to vector<4x64x64xf32>
    %55 = arith.mulf %50, %54 : vector<4x64x64xf32>
    %56 = arith.truncf %55 : vector<4x64x64xf32> to vector<4x64x64xbf16>
    "tpu.trace_start"() <{level = 10 : i32, message = "bnm,bmd->bnd"}> : () -> ()
    %cst_21 = arith.constant dense<0.000000e+00> : vector<4x64x16xf32>
    %57 = tpu.matmul %56, %44, %cst_21 {dimension_numbers = #tpu.dot_dimension_numbers<[2], [1], [1], [2], [0, 0, 0, 1, 1, 2], [0], [0]>} : vector<4x64x64xbf16>, vector<4x64x16xbf16>, vector<4x64x16xf32> -> vector<4x64x16xf32>
    "tpu.trace_stop"() : () -> ()
    %58 = vector.shape_cast %57 : vector<4x64x16xf32> to vector<256x16xf32>
    %c0_22 = arith.constant 0 : index
    %c0_23 = arith.constant 0 : index
    %59 = vector.load %arg13[%c0_22, %c0_23] : memref<256x32xf32, #tpu.memory_space<vmem>>, vector<256x16xf32>
    tpu.vector_store %arg13[%c0_22, %c0_23], %58 {strides = array<i32>} : memref<256x32xf32, #tpu.memory_space<vmem>>, vector<256x16xf32>,
    %60 = vector.extract_strided_slice %37 {offsets = [0, 0, 16], sizes = [4, 64, 16], strides = [1, 1, 1]} : vector<4x64x32xbf16> to vector<4x64x16xbf16>
    %61 = vector.extract_strided_slice %39 {offsets = [0, 0, 16], sizes = [4, 64, 16], strides = [1, 1, 1]} : vector<4x64x32xbf16> to vector<4x64x16xbf16>
    %62 = vector.extract_strided_slice %41 {offsets = [0, 0, 16], sizes = [4, 64, 16], strides = [1, 1, 1]} : vector<4x64x32xbf16> to vector<4x64x16xbf16>
    "tpu.trace_start"() <{level = 10 : i32, message = "bnd,bmd->bnm"}> : () -> ()
    %cst_24 = arith.constant dense<0.000000e+00> : vector<4x64x64xf32>
    %63 = tpu.matmul %60, %61, %cst_24 {dimension_numbers = #tpu.dot_dimension_numbers<[2], [2], [1], [1], [0, 0, 0, 1, 1, 1], [0], [0]>} : vector<4x64x16xbf16>, vector<4x64x16xbf16>, vector<4x64x64xf32> -> vector<4x64x64xf32>
    "tpu.trace_stop"() : () -> ()
    %cst_25 = arith.constant dense<0xFF800000> : vector<4x64xf32>
    %64 = vector.multi_reduction <maximumf>, %63, %cst_25 [2] : vector<4x64x64xf32> to vector<4x64xf32>
    %65 = vector.shape_cast %64 : vector<4x64xf32> to vector<4x64x1xf32>
    %66 = vector.broadcast %65 : vector<4x64x1xf32> to vector<4x64x64xf32>
    %67 = arith.subf %63, %66 : vector<4x64x64xf32>
    %68 = math.exp %67 : vector<4x64x64xf32>
    %cst_26 = arith.constant dense<0.000000e+00> : vector<4x64xf32>
    %69 = vector.multi_reduction <add>, %68, %cst_26 [2] : vector<4x64x64xf32> to vector<4x64xf32>
    %70 = vector.shape_cast %69 : vector<4x64xf32> to vector<4x64x1xf32>
    %71 = tpu.reciprocal %70 {approx = true} : vector<4x64x1xf32> -> vector<4x64x1xf32>
    %72 = vector.broadcast %71 : vector<4x64x1xf32> to vector<4x64x64xf32>
    %73 = arith.mulf %68, %72 : vector<4x64x64xf32>
    %74 = arith.truncf %73 : vector<4x64x64xf32> to vector<4x64x64xbf16>
    "tpu.trace_start"() <{level = 10 : i32, message = "bnm,bmd->bnd"}> : () -> ()
    %cst_27 = arith.constant dense<0.000000e+00> : vector<4x64x16xf32>
    %75 = tpu.matmul %74, %62, %cst_27 {dimension_numbers = #tpu.dot_dimension_numbers<[2], [1], [1], [2], [0, 0, 0, 1, 1, 2], [0], [0]>} : vector<4x64x64xbf16>, vector<4x64x16xbf16>, vector<4x64x16xf32> -> vector<4x64x16xf32>
    "tpu.trace_stop"() : () -> ()
    %76 = vector.shape_cast %75 : vector<4x64x16xf32> to vector<256x16xf32>
    %c0_28 = arith.constant 0 : index
    %c16 = arith.constant 16 : index
    %77 = vector.load %arg13[%c0_28, %c16] : memref<256x32xf32, #tpu.memory_space<vmem>>, vector<256x16xf32>
    tpu.vector_store %arg13[%c0_28, %c16], %76 {strides = array<i32>} : memref<256x32xf32, #tpu.memory_space<vmem>>, vector<256x16xf32>,
    %c0_29 = arith.constant 0 : index
    %c0_30 = arith.constant 0 : index
    %78 = vector.load %arg13[%c0_29, %c0_30] : memref<256x32xf32, #tpu.memory_space<vmem>>, vector<256x32xf32>
    %79 = arith.addf %0, %78 : vector<256x32xf32>
    %c0_31 = arith.constant 0 : index
    %c0_32 = arith.constant 0 : index
    %c0_33 = arith.constant 0 : index
    %80 = vector.load %arg6[%c0_31, %c0_32, %c0_33] : memref<2x1x32xf32, #tpu.memory_space<vmem>>, vector<1x1x32xf32>
    %81 = vector.shape_cast %80 : vector<1x1x32xf32> to vector<1x32xf32>
    %c0_34 = arith.constant 0 : index
    %c0_35 = arith.constant 0 : index
    %c0_36 = arith.constant 0 : index
    %82 = vector.load %arg7[%c0_34, %c0_35, %c0_36] : memref<2x1x32xf32, #tpu.memory_space<vmem>>, vector<1x1x32xf32>
    %83 = vector.shape_cast %82 : vector<1x1x32xf32> to vector<1x32xf32>
    %cst_37 = arith.constant dense<0.000000e+00> : vector<256xf32>
    %84 = vector.multi_reduction <add>, %79, %cst_37 [1] : vector<256x32xf32> to vector<256xf32>
    %85 = vector.shape_cast %84 : vector<256xf32> to vector<256x1xf32>
    %cst_38 = arith.constant 3.200000e+01 : f32
    %86 = vector.broadcast %cst_38 : f32 to vector<256x1xf32>
    %87 = arith.divf %85, %86 : vector<256x1xf32>
    %88 = vector.broadcast %87 : vector<256x1xf32> to vector<256x32xf32>
    %89 = arith.subf %79, %88 : vector<256x32xf32>
    %90 = arith.mulf %89, %89 : vector<256x32xf32>
    %cst_39 = arith.constant dense<0.000000e+00> : vector<256xf32>
    %91 = vector.multi_reduction <add>, %90, %cst_39 [1] : vector<256x32xf32> to vector<256xf32>
    %92 = vector.shape_cast %91 : vector<256xf32> to vector<256x1xf32>
    %cst_40 = arith.constant 3.200000e+01 : f32
    %93 = vector.broadcast %cst_40 : f32 to vector<256x1xf32>
    %94 = arith.divf %92, %93 : vector<256x1xf32>
    %cst_41 = arith.constant 9.99999974E-6 : f32
    %95 = vector.broadcast %cst_41 : f32 to vector<256x1xf32>
    %96 = arith.addf %94, %95 : vector<256x1xf32>
    %97 = math.rsqrt %96 : vector<256x1xf32>
    %98 = vector.broadcast %97 : vector<256x1xf32> to vector<256x32xf32>
    %99 = arith.mulf %89, %98 : vector<256x32xf32>
    %100 = vector.broadcast %81 : vector<1x32xf32> to vector<256x32xf32>
    %101 = arith.mulf %99, %100 : vector<256x32xf32>
    %102 = vector.broadcast %83 : vector<1x32xf32> to vector<256x32xf32>
    %103 = arith.addf %101, %102 : vector<256x32xf32>
    %104 = arith.truncf %103 : vector<256x32xf32> to vector<256x32xbf16>
    %c0_42 = arith.constant 0 : index
    %c0_43 = arith.constant 0 : index
    %c0_44 = arith.constant 0 : index
    %105 = vector.load %arg8[%c0_42, %c0_43, %c0_44] : memref<2x32x64xbf16, #tpu.memory_space<vmem>>, vector<1x32x64xbf16>
    %106 = vector.shape_cast %105 : vector<1x32x64xbf16> to vector<32x64xbf16>
    %cst_45 = arith.constant dense<0.000000e+00> : vector<256x64xf32>
    %107 = tpu.matmul %104, %106, %cst_45 {dimension_numbers = #tpu.dot_dimension_numbers<[1], [0], [0], [1], [0, 0, 1, 1], [], []>} : vector<256x32xbf16>, vector<32x64xbf16>, vector<256x64xf32> -> vector<256x64xf32>
    %c0_46 = arith.constant 0 : index
    %c0_47 = arith.constant 0 : index
    %c0_48 = arith.constant 0 : index
    %108 = vector.load %arg9[%c0_46, %c0_47, %c0_48] : memref<2x1x64xf32, #tpu.memory_space<vmem>>, vector<1x1x64xf32>
    %109 = vector.shape_cast %108 : vector<1x1x64xf32> to vector<1x64xf32>
    %110 = vector.broadcast %109 : vector<1x64xf32> to vector<256x64xf32>
    %111 = arith.addf %107, %110 : vector<256x64xf32>
    %cst_49 = arith.constant 5.000000e-01 : f32
    %112 = vector.broadcast %cst_49 : f32 to vector<256x64xf32>
    %113 = arith.mulf %112, %111 : vector<256x64xf32>
    %cst_50 = arith.constant 4.471500e-02 : f32
    %114 = vector.broadcast %cst_50 : f32 to vector<256x64xf32>
    %115 = arith.mulf %114, %111 : vector<256x64xf32>
    %116 = arith.mulf %115, %111 : vector<256x64xf32>
    %117 = arith.mulf %116, %111 : vector<256x64xf32>
    %118 = arith.addf %111, %117 : vector<256x64xf32>
    %cst_51 = arith.constant 0.797884583 : f32
    %119 = vector.broadcast %cst_51 : f32 to vector<256x64xf32>
    %120 = arith.mulf %119, %118 : vector<256x64xf32>
    %121 = math.tanh %120 : vector<256x64xf32>
    %cst_52 = arith.constant 1.000000e+00 : f32
    %122 = vector.broadcast %cst_52 : f32 to vector<256x64xf32>
    %123 = arith.addf %122, %121 : vector<256x64xf32>
    %124 = arith.mulf %113, %123 : vector<256x64xf32>
    %125 = arith.truncf %124 : vector<256x64xf32> to vector<256x64xbf16>
    %c0_53 = arith.constant 0 : index
    %c0_54 = arith.constant 0 : index
    %c0_55 = arith.constant 0 : index
    %126 = vector.load %arg10[%c0_53, %c0_54, %c0_55] : memref<2x64x32xbf16, #tpu.memory_space<vmem>>, vector<1x64x32xbf16>
    %127 = vector.shape_cast %126 : vector<1x64x32xbf16> to vector<64x32xbf16>
    %cst_56 = arith.constant dense<0.000000e+00> : vector<256x32xf32>
    %128 = tpu.matmul %125, %127, %cst_56 {dimension_numbers = #tpu.dot_dimension_numbers<[1], [0], [0], [1], [0, 0, 1, 1], [], []>} : vector<256x64xbf16>, vector<64x32xbf16>, vector<256x32xf32> -> vector<256x32xf32>
    %c0_57 = arith.constant 0 : index
    %c0_58 = arith.constant 0 : index
    %c0_59 = arith.constant 0 : index
    %129 = vector.load %arg11[%c0_57, %c0_58, %c0_59] : memref<2x1x32xf32, #tpu.memory_space<vmem>>, vector<1x1x32xf32>
    %130 = vector.shape_cast %129 : vector<1x1x32xf32> to vector<1x32xf32>
    %131 = vector.broadcast %130 : vector<1x32xf32> to vector<256x32xf32>
    %132 = arith.addf %128, %131 : vector<256x32xf32>
    %133 = arith.addf %79, %132 : vector<256x32xf32>
    %c1 = arith.constant 1 : index
    %c0_60 = arith.constant 0 : index
    %c0_61 = arith.constant 0 : index
    %134 = vector.load %arg3[%c1, %c0_60, %c0_61] : memref<2x1x32xf32, #tpu.memory_space<vmem>>, vector<1x1x32xf32>
    %135 = vector.shape_cast %134 : vector<1x1x32xf32> to vector<1x32xf32>
    %c1_62 = arith.constant 1 : index
    %c0_63 = arith.constant 0 : index
    %c0_64 = arith.constant 0 : index
    %136 = vector.load %arg4[%c1_62, %c0_63, %c0_64] : memref<2x1x32xf32, #tpu.memory_space<vmem>>, vector<1x1x32xf32>
    %137 = vector.shape_cast %136 : vector<1x1x32xf32> to vector<1x32xf32>
    %cst_65 = arith.constant dense<0.000000e+00> : vector<256xf32>
    %138 = vector.multi_reduction <add>, %133, %cst_65 [1] : vector<256x32xf32> to vector<256xf32>
    %139 = vector.shape_cast %138 : vector<256xf32> to vector<256x1xf32>
    %cst_66 = arith.constant 3.200000e+01 : f32
    %140 = vector.broadcast %cst_66 : f32 to vector<256x1xf32>
    %141 = arith.divf %139, %140 : vector<256x1xf32>
    %142 = vector.broadcast %141 : vector<256x1xf32> to vector<256x32xf32>
    %143 = arith.subf %133, %142 : vector<256x32xf32>
    %144 = arith.mulf %143, %143 : vector<256x32xf32>
    %cst_67 = arith.constant dense<0.000000e+00> : vector<256xf32>
    %145 = vector.multi_reduction <add>, %144, %cst_67 [1] : vector<256x32xf32> to vector<256xf32>
    %146 = vector.shape_cast %145 : vector<256xf32> to vector<256x1xf32>
    %cst_68 = arith.constant 3.200000e+01 : f32
    %147 = vector.broadcast %cst_68 : f32 to vector<256x1xf32>
    %148 = arith.divf %146, %147 : vector<256x1xf32>
    %cst_69 = arith.constant 9.99999974E-6 : f32
    %149 = vector.broadcast %cst_69 : f32 to vector<256x1xf32>
    %150 = arith.addf %148, %149 : vector<256x1xf32>
    %151 = math.rsqrt %150 : vector<256x1xf32>
    %152 = vector.broadcast %151 : vector<256x1xf32> to vector<256x32xf32>
    %153 = arith.mulf %143, %152 : vector<256x32xf32>
    %154 = vector.broadcast %135 : vector<1x32xf32> to vector<256x32xf32>
    %155 = arith.mulf %153, %154 : vector<256x32xf32>
    %156 = vector.broadcast %137 : vector<1x32xf32> to vector<256x32xf32>
    %157 = arith.addf %155, %156 : vector<256x32xf32>
    %158 = arith.truncf %157 : vector<256x32xf32> to vector<256x32xbf16>
    %c1_70 = arith.constant 1 : index
    %c0_71 = arith.constant 0 : index
    %c0_72 = arith.constant 0 : index
    %159 = vector.load %arg5[%c1_70, %c0_71, %c0_72] : memref<2x32x96xbf16, #tpu.memory_space<vmem>>, vector<1x32x96xbf16>
    %160 = vector.shape_cast %159 : vector<1x32x96xbf16> to vector<32x96xbf16>
    %cst_73 = arith.constant dense<0.000000e+00> : vector<256x96xf32>
    %161 = tpu.matmul %158, %160, %cst_73 {dimension_numbers = #tpu.dot_dimension_numbers<[1], [0], [0], [1], [0, 0, 1, 1], [], []>} : vector<256x32xbf16>, vector<32x96xbf16>, vector<256x96xf32> -> vector<256x96xf32>
    %162 = vector.extract_strided_slice %161 {offsets = [0, 0], sizes = [256, 32], strides = [1, 1]} : vector<256x96xf32> to vector<256x32xf32>
    %163 = vector.extract_strided_slice %161 {offsets = [0, 32], sizes = [256, 32], strides = [1, 1]} : vector<256x96xf32> to vector<256x32xf32>
    %164 = vector.extract_strided_slice %161 {offsets = [0, 64], sizes = [256, 32], strides = [1, 1]} : vector<256x96xf32> to vector<256x32xf32>
    %165 = arith.truncf %162 : vector<256x32xf32> to vector<256x32xbf16>
    %166 = vector.shape_cast %165 : vector<256x32xbf16> to vector<4x64x32xbf16>
    %167 = arith.truncf %163 : vector<256x32xf32> to vector<256x32xbf16>
    %168 = vector.shape_cast %167 : vector<256x32xbf16> to vector<4x64x32xbf16>
    %169 = arith.truncf %164 : vector<256x32xf32> to vector<256x32xbf16>
    %170 = vector.shape_cast %169 : vector<256x32xbf16> to vector<4x64x32xbf16>
    %171 = vector.extract_strided_slice %166 {offsets = [0, 0, 0], sizes = [4, 64, 16], strides = [1, 1, 1]} : vector<4x64x32xbf16> to vector<4x64x16xbf16>
    %172 = vector.extract_strided_slice %168 {offsets = [0, 0, 0], sizes = [4, 64, 16], strides = [1, 1, 1]} : vector<4x64x32xbf16> to vector<4x64x16xbf16>
    %173 = vector.extract_strided_slice %170 {offsets = [0, 0, 0], sizes = [4, 64, 16], strides = [1, 1, 1]} : vector<4x64x32xbf16> to vector<4x64x16xbf16>
    "tpu.trace_start"() <{level = 10 : i32, message = "bnd,bmd->bnm"}> : () -> ()
    %cst_74 = arith.constant dense<0.000000e+00> : vector<4x64x64xf32>
    %174 = tpu.matmul %171, %172, %cst_74 {dimension_numbers = #tpu.dot_dimension_numbers<[2], [2], [1], [1], [0, 0, 0, 1, 1, 1], [0], [0]>} : vector<4x64x16xbf16>, vector<4x64x16xbf16>, vector<4x64x64xf32> -> vector<4x64x64xf32>
    "tpu.trace_stop"() : () -> ()
    %cst_75 = arith.constant dense<0xFF800000> : vector<4x64xf32>
    %175 = vector.multi_reduction <maximumf>, %174, %cst_75 [2] : vector<4x64x64xf32> to vector<4x64xf32>
    %176 = vector.shape_cast %175 : vector<4x64xf32> to vector<4x64x1xf32>
    %177 = vector.broadcast %176 : vector<4x64x1xf32> to vector<4x64x64xf32>
    %178 = arith.subf %174, %177 : vector<4x64x64xf32>
    %179 = math.exp %178 : vector<4x64x64xf32>
    %cst_76 = arith.constant dense<0.000000e+00> : vector<4x64xf32>
    %180 = vector.multi_reduction <add>, %179, %cst_76 [2] : vector<4x64x64xf32> to vector<4x64xf32>
    %181 = vector.shape_cast %180 : vector<4x64xf32> to vector<4x64x1xf32>
    %182 = tpu.reciprocal %181 {approx = true} : vector<4x64x1xf32> -> vector<4x64x1xf32>
    %183 = vector.broadcast %182 : vector<4x64x1xf32> to vector<4x64x64xf32>
    %184 = arith.mulf %179, %183 : vector<4x64x64xf32>
    %185 = arith.truncf %184 : vector<4x64x64xf32> to vector<4x64x64xbf16>
    "tpu.trace_start"() <{level = 10 : i32, message = "bnm,bmd->bnd"}> : () -> ()
    %cst_77 = arith.constant dense<0.000000e+00> : vector<4x64x16xf32>
    %186 = tpu.matmul %185, %173, %cst_77 {dimension_numbers = #tpu.dot_dimension_numbers<[2], [1], [1], [2], [0, 0, 0, 1, 1, 2], [0], [0]>} : vector<4x64x64xbf16>, vector<4x64x16xbf16>, vector<4x64x16xf32> -> vector<4x64x16xf32>
    "tpu.trace_stop"() : () -> ()
    %187 = vector.shape_cast %186 : vector<4x64x16xf32> to vector<256x16xf32>
    %c0_78 = arith.constant 0 : index
    %c0_79 = arith.constant 0 : index
    %188 = vector.load %arg13[%c0_78, %c0_79] : memref<256x32xf32, #tpu.memory_space<vmem>>, vector<256x16xf32>
    tpu.vector_store %arg13[%c0_78, %c0_79], %187 {strides = array<i32>} : memref<256x32xf32, #tpu.memory_space<vmem>>, vector<256x16xf32>,
    %189 = vector.extract_strided_slice %166 {offsets = [0, 0, 16], sizes = [4, 64, 16], strides = [1, 1, 1]} : vector<4x64x32xbf16> to vector<4x64x16xbf16>
    %190 = vector.extract_strided_slice %168 {offsets = [0, 0, 16], sizes = [4, 64, 16], strides = [1, 1, 1]} : vector<4x64x32xbf16> to vector<4x64x16xbf16>
    %191 = vector.extract_strided_slice %170 {offsets = [0, 0, 16], sizes = [4, 64, 16], strides = [1, 1, 1]} : vector<4x64x32xbf16> to vector<4x64x16xbf16>
    "tpu.trace_start"() <{level = 10 : i32, message = "bnd,bmd->bnm"}> : () -> ()
    %cst_80 = arith.constant dense<0.000000e+00> : vector<4x64x64xf32>
    %192 = tpu.matmul %189, %190, %cst_80 {dimension_numbers = #tpu.dot_dimension_numbers<[2], [2], [1], [1], [0, 0, 0, 1, 1, 1], [0], [0]>} : vector<4x64x16xbf16>, vector<4x64x16xbf16>, vector<4x64x64xf32> -> vector<4x64x64xf32>
    "tpu.trace_stop"() : () -> ()
    %cst_81 = arith.constant dense<0xFF800000> : vector<4x64xf32>
    %193 = vector.multi_reduction <maximumf>, %192, %cst_81 [2] : vector<4x64x64xf32> to vector<4x64xf32>
    %194 = vector.shape_cast %193 : vector<4x64xf32> to vector<4x64x1xf32>
    %195 = vector.broadcast %194 : vector<4x64x1xf32> to vector<4x64x64xf32>
    %196 = arith.subf %192, %195 : vector<4x64x64xf32>
    %197 = math.exp %196 : vector<4x64x64xf32>
    %cst_82 = arith.constant dense<0.000000e+00> : vector<4x64xf32>
    %198 = vector.multi_reduction <add>, %197, %cst_82 [2] : vector<4x64x64xf32> to vector<4x64xf32>
    %199 = vector.shape_cast %198 : vector<4x64xf32> to vector<4x64x1xf32>
    %200 = tpu.reciprocal %199 {approx = true} : vector<4x64x1xf32> -> vector<4x64x1xf32>
    %201 = vector.broadcast %200 : vector<4x64x1xf32> to vector<4x64x64xf32>
    %202 = arith.mulf %197, %201 : vector<4x64x64xf32>
    %203 = arith.truncf %202 : vector<4x64x64xf32> to vector<4x64x64xbf16>
    "tpu.trace_start"() <{level = 10 : i32, message = "bnm,bmd->bnd"}> : () -> ()
    %cst_83 = arith.constant dense<0.000000e+00> : vector<4x64x16xf32>
    %204 = tpu.matmul %203, %191, %cst_83 {dimension_numbers = #tpu.dot_dimension_numbers<[2], [1], [1], [2], [0, 0, 0, 1, 1, 2], [0], [0]>} : vector<4x64x64xbf16>, vector<4x64x16xbf16>, vector<4x64x16xf32> -> vector<4x64x16xf32>
    "tpu.trace_stop"() : () -> ()
    %205 = vector.shape_cast %204 : vector<4x64x16xf32> to vector<256x16xf32>
    %c0_84 = arith.constant 0 : index
    %c16_85 = arith.constant 16 : index
    %206 = vector.load %arg13[%c0_84, %c16_85] : memref<256x32xf32, #tpu.memory_space<vmem>>, vector<256x16xf32>
    tpu.vector_store %arg13[%c0_84, %c16_85], %205 {strides = array<i32>} : memref<256x32xf32, #tpu.memory_space<vmem>>, vector<256x16xf32>,
    %c0_86 = arith.constant 0 : index
    %c0_87 = arith.constant 0 : index
    %207 = vector.load %arg13[%c0_86, %c0_87] : memref<256x32xf32, #tpu.memory_space<vmem>>, vector<256x32xf32>
    %208 = arith.addf %133, %207 : vector<256x32xf32>
    %c1_88 = arith.constant 1 : index
    %c0_89 = arith.constant 0 : index
    %c0_90 = arith.constant 0 : index
    %209 = vector.load %arg6[%c1_88, %c0_89, %c0_90] : memref<2x1x32xf32, #tpu.memory_space<vmem>>, vector<1x1x32xf32>
    %210 = vector.shape_cast %209 : vector<1x1x32xf32> to vector<1x32xf32>
    %c1_91 = arith.constant 1 : index
    %c0_92 = arith.constant 0 : index
    %c0_93 = arith.constant 0 : index
    %211 = vector.load %arg7[%c1_91, %c0_92, %c0_93] : memref<2x1x32xf32, #tpu.memory_space<vmem>>, vector<1x1x32xf32>
    %212 = vector.shape_cast %211 : vector<1x1x32xf32> to vector<1x32xf32>
    %cst_94 = arith.constant dense<0.000000e+00> : vector<256xf32>
    %213 = vector.multi_reduction <add>, %208, %cst_94 [1] : vector<256x32xf32> to vector<256xf32>
    %214 = vector.shape_cast %213 : vector<256xf32> to vector<256x1xf32>
    %cst_95 = arith.constant 3.200000e+01 : f32
    %215 = vector.broadcast %cst_95 : f32 to vector<256x1xf32>
    %216 = arith.divf %214, %215 : vector<256x1xf32>
    %217 = vector.broadcast %216 : vector<256x1xf32> to vector<256x32xf32>
    %218 = arith.subf %208, %217 : vector<256x32xf32>
    %219 = arith.mulf %218, %218 : vector<256x32xf32>
    %cst_96 = arith.constant dense<0.000000e+00> : vector<256xf32>
    %220 = vector.multi_reduction <add>, %219, %cst_96 [1] : vector<256x32xf32> to vector<256xf32>
    %221 = vector.shape_cast %220 : vector<256xf32> to vector<256x1xf32>
    %cst_97 = arith.constant 3.200000e+01 : f32
    %222 = vector.broadcast %cst_97 : f32 to vector<256x1xf32>
    %223 = arith.divf %221, %222 : vector<256x1xf32>
    %cst_98 = arith.constant 9.99999974E-6 : f32
    %224 = vector.broadcast %cst_98 : f32 to vector<256x1xf32>
    %225 = arith.addf %223, %224 : vector<256x1xf32>
    %226 = math.rsqrt %225 : vector<256x1xf32>
    %227 = vector.broadcast %226 : vector<256x1xf32> to vector<256x32xf32>
    %228 = arith.mulf %218, %227 : vector<256x32xf32>
    %229 = vector.broadcast %210 : vector<1x32xf32> to vector<256x32xf32>
    %230 = arith.mulf %228, %229 : vector<256x32xf32>
    %231 = vector.broadcast %212 : vector<1x32xf32> to vector<256x32xf32>
    %232 = arith.addf %230, %231 : vector<256x32xf32>
    %233 = arith.truncf %232 : vector<256x32xf32> to vector<256x32xbf16>
    %c1_99 = arith.constant 1 : index
    %c0_100 = arith.constant 0 : index
    %c0_101 = arith.constant 0 : index
    %234 = vector.load %arg8[%c1_99, %c0_100, %c0_101] : memref<2x32x64xbf16, #tpu.memory_space<vmem>>, vector<1x32x64xbf16>
    %235 = vector.shape_cast %234 : vector<1x32x64xbf16> to vector<32x64xbf16>
    %cst_102 = arith.constant dense<0.000000e+00> : vector<256x64xf32>
    %236 = tpu.matmul %233, %235, %cst_102 {dimension_numbers = #tpu.dot_dimension_numbers<[1], [0], [0], [1], [0, 0, 1, 1], [], []>} : vector<256x32xbf16>, vector<32x64xbf16>, vector<256x64xf32> -> vector<256x64xf32>
    %c1_103 = arith.constant 1 : index
    %c0_104 = arith.constant 0 : index
    %c0_105 = arith.constant 0 : index
    %237 = vector.load %arg9[%c1_103, %c0_104, %c0_105] : memref<2x1x64xf32, #tpu.memory_space<vmem>>, vector<1x1x64xf32>
    %238 = vector.shape_cast %237 : vector<1x1x64xf32> to vector<1x64xf32>
    %239 = vector.broadcast %238 : vector<1x64xf32> to vector<256x64xf32>
    %240 = arith.addf %236, %239 : vector<256x64xf32>
    %cst_106 = arith.constant 5.000000e-01 : f32
    %241 = vector.broadcast %cst_106 : f32 to vector<256x64xf32>
    %242 = arith.mulf %241, %240 : vector<256x64xf32>
    %cst_107 = arith.constant 4.471500e-02 : f32
    %243 = vector.broadcast %cst_107 : f32 to vector<256x64xf32>
    %244 = arith.mulf %243, %240 : vector<256x64xf32>
    %245 = arith.mulf %244, %240 : vector<256x64xf32>
    %246 = arith.mulf %245, %240 : vector<256x64xf32>
    %247 = arith.addf %240, %246 : vector<256x64xf32>
    %cst_108 = arith.constant 0.797884583 : f32
    %248 = vector.broadcast %cst_108 : f32 to vector<256x64xf32>
    %249 = arith.mulf %248, %247 : vector<256x64xf32>
    %250 = math.tanh %249 : vector<256x64xf32>
    %cst_109 = arith.constant 1.000000e+00 : f32
    %251 = vector.broadcast %cst_109 : f32 to vector<256x64xf32>
    %252 = arith.addf %251, %250 : vector<256x64xf32>
    %253 = arith.mulf %242, %252 : vector<256x64xf32>
    %254 = arith.truncf %253 : vector<256x64xf32> to vector<256x64xbf16>
    %c1_110 = arith.constant 1 : index
    %c0_111 = arith.constant 0 : index
    %c0_112 = arith.constant 0 : index
    %255 = vector.load %arg10[%c1_110, %c0_111, %c0_112] : memref<2x64x32xbf16, #tpu.memory_space<vmem>>, vector<1x64x32xbf16>
    %256 = vector.shape_cast %255 : vector<1x64x32xbf16> to vector<64x32xbf16>
    %cst_113 = arith.constant dense<0.000000e+00> : vector<256x32xf32>
    %257 = tpu.matmul %254, %256, %cst_113 {dimension_numbers = #tpu.dot_dimension_numbers<[1], [0], [0], [1], [0, 0, 1, 1], [], []>} : vector<256x64xbf16>, vector<64x32xbf16>, vector<256x32xf32> -> vector<256x32xf32>
    %c1_114 = arith.constant 1 : index
    %c0_115 = arith.constant 0 : index
    %c0_116 = arith.constant 0 : index
    %258 = vector.load %arg11[%c1_114, %c0_115, %c0_116] : memref<2x1x32xf32, #tpu.memory_space<vmem>>, vector<1x1x32xf32>
    %259 = vector.shape_cast %258 : vector<1x1x32xf32> to vector<1x32xf32>
    %260 = vector.broadcast %259 : vector<1x32xf32> to vector<256x32xf32>
    %261 = arith.addf %257, %260 : vector<256x32xf32>
    %262 = arith.addf %208, %261 : vector<256x32xf32>
    %c0_117 = arith.constant 0 : index
    %c0_118 = arith.constant 0 : index
    %263 = vector.load %arg12[%c0_117, %c0_118] : memref<256x32xf32, #tpu.memory_space<vmem>>, vector<256x32xf32>
    tpu.vector_store %arg12[%c0_117, %c0_118], %262 {strides = array<i32>} : memref<256x32xf32, #tpu.memory_space<vmem>>, vector<256x32xf32>,
    return
  }
  func.func @transform_0(%arg0: i32) -> (i32, i32) {
    %c0_i32 = arith.constant 0 : i32
    %c0_i32_0 = arith.constant 0 : i32
    return %arg0, %c0_i32 : i32, i32
  }
  func.func @transform_1(%arg0: i32) -> (i32, i32) {
    %c0_i32 = arith.constant 0 : i32
    %c0_i32_0 = arith.constant 0 : i32
    return %arg0, %c0_i32 : i32, i32
  }
  func.func @transform_2(%arg0: i32) -> (i32, i32, i32) {
    %c0_i32 = arith.constant 0 : i32
    %c0_i32_0 = arith.constant 0 : i32
    %c0_i32_1 = arith.constant 0 : i32
    %c0_i32_2 = arith.constant 0 : i32
    return %c0_i32, %c0_i32_0, %c0_i32_1 : i32, i32, i32
  }
  func.func @transform_3(%arg0: i32) -> (i32, i32, i32) {
    %c0_i32 = arith.constant 0 : i32
    %c0_i32_0 = arith.constant 0 : i32
    %c0_i32_1 = arith.constant 0 : i32
    %c0_i32_2 = arith.constant 0 : i32
    return %c0_i32, %c0_i32_0, %c0_i32_1 : i32, i32, i32
  }
  func.func @transform_4(%arg0: i32) -> (i32, i32, i32) {
    %c0_i32 = arith.constant 0 : i32
    %c0_i32_0 = arith.constant 0 : i32
    %c0_i32_1 = arith.constant 0 : i32
    %c0_i32_2 = arith.constant 0 : i32
    return %c0_i32, %c0_i32_0, %c0_i32_1 : i32, i32, i32
  }
  func.func @transform_5(%arg0: i32) -> (i32, i32, i32) {
    %c0_i32 = arith.constant 0 : i32
    %c0_i32_0 = arith.constant 0 : i32
    %c0_i32_1 = arith.constant 0 : i32
    %c0_i32_2 = arith.constant 0 : i32
    return %c0_i32, %c0_i32_0, %c0_i32_1 : i32, i32, i32
  }
  func.func @transform_6(%arg0: i32) -> (i32, i32, i32) {
    %c0_i32 = arith.constant 0 : i32
    %c0_i32_0 = arith.constant 0 : i32
    %c0_i32_1 = arith.constant 0 : i32
    %c0_i32_2 = arith.constant 0 : i32
    return %c0_i32, %c0_i32_0, %c0_i32_1 : i32, i32, i32
  }
  func.func @transform_7(%arg0: i32) -> (i32, i32, i32) {
    %c0_i32 = arith.constant 0 : i32
    %c0_i32_0 = arith.constant 0 : i32
    %c0_i32_1 = arith.constant 0 : i32
    %c0_i32_2 = arith.constant 0 : i32
    return %c0_i32, %c0_i32_0, %c0_i32_1 : i32, i32, i32
  }
  func.func @transform_8(%arg0: i32) -> (i32, i32, i32) {
    %c0_i32 = arith.constant 0 : i32
    %c0_i32_0 = arith.constant 0 : i32
    %c0_i32_1 = arith.constant 0 : i32
    %c0_i32_2 = arith.constant 0 : i32
    return %c0_i32, %c0_i32_0, %c0_i32_1 : i32, i32, i32
  }
  func.func @transform_9(%arg0: i32) -> (i32, i32, i32) {
    %c0_i32 = arith.constant 0 : i32
    %c0_i32_0 = arith.constant 0 : i32
    %c0_i32_1 = arith.constant 0 : i32
    %c0_i32_2 = arith.constant 0 : i32
    return %c0_i32, %c0_i32_0, %c0_i32_1 : i32, i32, i32
  }
  func.func @transform_10(%arg0: i32) -> (i32, i32, i32) {
    %c0_i32 = arith.constant 0 : i32
    %c0_i32_0 = arith.constant 0 : i32
    %c0_i32_1 = arith.constant 0 : i32
    %c0_i32_2 = arith.constant 0 : i32
    return %c0_i32, %c0_i32_0, %c0_i32_1 : i32, i32, i32
  }
  func.func @transform_11(%arg0: i32) -> (i32, i32) {
    %c0_i32 = arith.constant 0 : i32
    %c0_i32_0 = arith.constant 0 : i32
    return %arg0, %c0_i32 : i32, i32
  }
}

</mosaic_0001>

<bundles_post_ra>
// kernel: tpu_custom_call.1
= control target key start
LH: loop header
LB: loop body
LE: loop exit
PB: predicated region body
PF: predicated region fallthrough
CT: control target
= control target key end

     0   :  { %vm73_vm0 = vcmask 261120   ;;  %s12056_s20 = smov 96   ;;  %vm1103_vm1 = vcmask 130048   ;;  %s12057_s24 = smov 112   ;;  %vm1460_vm2 = vcmask 523264   ;;  %vm3521_vm3 = vcmask 261248   ;;  %s17305_s0 = inlined_call_operand.vmem [shape: f32[256,32], index: 0, kind: input, shape index: {}]   ;;  %s17306_s4 = inlined_call_operand.vmem [shape: bf16[2,32,96], index: 4, kind: input, shape index: {}]   ;;  %s17307_s1 = inlined_call_operand.vmem [shape: f32[256,32], index: 1, kind: input, shape index: {}]   ;;  %s17308_s2 = inlined_call_operand.vmem [shape: f32[2,1,32], index: 2, kind: input, shape index: {}]   ;;  %s17309_s3 = inlined_call_operand.vmem [shape: f32[2,1,32], index: 3, kind: input, shape index: {}]   ;;  %s17310_s7 = inlined_call_operand.vmem [shape: bf16[2,32,64], index: 7, kind: input, shape index: {}]   ;;  %s17311_s5 = inlined_call_operand.vmem [shape: f32[2,1,32], index: 5, kind: input, shape index: {}]   ;;  %s17312_s6 = inlined_call_operand.vmem [shape: f32[2,1,32], index: 6, kind: input, shape index: {}]   ;;  %s17313_s9 = inlined_call_operand.vmem [shape: bf16[2,64,32], index: 9, kind: input, shape index: {}]   ;;  %s17314_s8 = inlined_call_operand.vmem [shape: f32[2,1,64], index: 8, kind: input, shape index: {}]   ;;  %s17315_s10 = inlined_call_operand.vmem [shape: f32[2,1,32], index: 10, kind: input, shape index: {}]   ;;  %s17316_s11 = inlined_call_operand.vmem [shape: f32[256,32], index: 11, kind: output, shape index: {}]  }
   0x1   :  { %v12125_v0 = vld [vmem:[%s17305_s0] sm:$0xff]  ;;  %v12130_v1 = vld [vmem:[%s17305_s0 + $0x10] sm:$0xff]  ;;  %v12135_v2 = vld [vmem:[%s17305_s0 + $0x8] sm:$0xff]  ;;  %s12058_s25 = smov 80   ;;  %s12059_s26 = smov 16  }
   0x2   :  { %v74_v3 = vsel %vm73_vm0, %v12125_v0, 0.0  ;;  %v80_v4 = vsel %vm73_vm0, %v12130_v1, 0.0  ;;  %v12144_v5 = vld [vmem:[%s17305_s0 + $0x18] sm:$0xff]  ;;  %v77_v6 = vsel %vm73_vm0, %v12135_v2, 0.0  ;;  %v12153_v8 = vld [vmem:[%s17305_s0 + $0x20] sm:$0xff]  ;;  %v12158_v9 = vld [vmem:[%s17305_s0 + $0x28] sm:$0xff] }
   0x3   :  { %75 = vadd.xlane.f32.xlu0 %v74_v3  ;;  %81 = vadd.xlane.f32.xlu1 %v80_v4  ;;  %v83_v7 = vsel %vm73_vm0, %v12144_v5, 0.0  ;;  %v86_v10 = vsel %vm73_vm0, %v12153_v8, 0.0  ;;  %v89_v11 = vsel %vm73_vm0, %v12158_v9, 0.0  ;;  %v12167_v12 = vld [vmem:[%s17305_s0 + $0x30] sm:$0xff]  ;;  %v12172_v13 = vld [vmem:[%s17305_s0 + $0x38] sm:$0xff]  ;;  %v12177_v14 = vld [vmem:[%s17305_s0 + $0x40] sm:$0xff] }
   0x4   :  { %v12182_v15 = vld [vmem:[%s17306_s4] sm:$0xff]   ;;  %v92_v16 = vsel %vm73_vm0, %v12167_v12, 0.0  ;;  %v95_v17 = vsel %vm73_vm0, %v12172_v13, 0.0  ;;  %v12191_v18 = vld [vmem:[%s17305_s0 + $0x48] sm:$0xff]  ;;  %v98_v20 = vsel %vm73_vm0, %v12177_v14, 0.0  ;;  %v12208_v22 = vld [vmem:[%s17305_s0 + $0x50] sm:$0xff] }
   0x5   :  { %10270 = vmatprep.subr.bf16.mxu0 %v12182_v15  ;;  %v12197_v19 = vld [vmem:[%s17306_s4 + $0x8] sm:$0xff]   ;;  %v101_v21 = vsel %vm73_vm0, %v12191_v18, 0.0  ;;  %v12213_v23 = vld [vmem:[%s17305_s0 + $0x58] sm:$0xff]  ;;  %v104_v24 = vsel %vm73_vm0, %v12208_v22, 0.0  ;;  %v12223_v26 = vld [vmem:[%s17305_s0 + $0x60] sm:$0xff] }
   0x6   :  { %10271 = vmatpush3.bf16.msra.mxu0 %v12182_v15  ;;  %v107_v25 = vsel %vm73_vm0, %v12213_v23, 0.0  ;;  %v12228_v27 = vld [vmem:[%s17305_s0 + $0x68] sm:$0xff]  ;;  %v110_v28 = vsel %vm73_vm0, %v12223_v26, 0.0  ;;  %v12237_v30 = vld [vmem:[%s17305_s0 + $0x70] sm:$0xff]  ;;  %v12242_v31 = vld [vmem:[%s17305_s0 + $0x78] sm:$0xff] }
   0x7   :  { %78 = vadd.xlane.f32.xlu0 %v77_v6  ;;  %84 = vadd.xlane.f32.xlu1 %v83_v7  ;;  %v113_v29 = vsel %vm73_vm0, %v12228_v27, 0.0  ;;  %v116_v32 = vsel %vm73_vm0, %v12237_v30, 0.0  ;;  %v119_v33 = vsel %vm73_vm0, %v12242_v31, 0.0  ;;  %v12251_v34 = vld [vmem:[%s17305_s0 + $0x80] sm:$0xff]  ;;  %v12256_v35 = vld [vmem:[%s17305_s0 + $0x88] sm:$0xff]  ;;  %v12265_v38 = vld [vmem:[%s17305_s0 + $0x90] sm:$0xff] }
   0x8   :  { %10272 = vmatprep.subr.bf16.mxu0 %v12197_v19  ;;  %v122_v36 = vsel %vm73_vm0, %v12251_v34, 0.0  ;;  %v125_v37 = vsel %vm73_vm0, %v12256_v35, 0.0  ;;  %v12270_v39 = vld [vmem:[%s17305_s0 + $0x98] sm:$0xff]  ;;  %v128_v40 = vsel %vm73_vm0, %v12265_v38, 0.0  ;;  %v12279_v42 = vld [vmem:[%s17305_s0 + $0xa0] sm:$0xff]  ;;  %v12284_v43 = vld [vmem:[%s17305_s0 + $0xa8] sm:$0xff] }
   0x9   :  { %v131_v41 = vsel %vm73_vm0, %v12270_v39, 0.0  ;;  %v134_v44 = vsel %vm73_vm0, %v12279_v42, 0.0  ;;  %v137_v45 = vsel %vm73_vm0, %v12284_v43, 0.0  ;;  %v12293_v46 = vld [vmem:[%s17305_s0 + $0xb0] sm:$0xff]  ;;  %v12298_v47 = vld [vmem:[%s17305_s0 + $0xb8] sm:$0xff]  ;;  %v12307_v50 = vld [vmem:[%s17305_s0 + $0xc0] sm:$0xff] }
   0xa   :  { %10273 = vmatpush3.bf16.msra.mxu0 %v12197_v19  ;;  %v140_v48 = vsel %vm73_vm0, %v12293_v46, 0.0  ;;  %v143_v49 = vsel %vm73_vm0, %v12298_v47, 0.0  ;;  %v12312_v51 = vld [vmem:[%s17305_s0 + $0xc8] sm:$0xff]  ;;  %v146_v52 = vsel %vm73_vm0, %v12307_v50, 0.0  ;;  %v12321_v54 = vld [vmem:[%s17305_s0 + $0xd0] sm:$0xff]  ;;  %v12326_v55 = vld [vmem:[%s17305_s0 + $0xd8] sm:$0xff] }
   0xb   :  { %87 = vadd.xlane.f32.xlu0 %v86_v10  ;;  %90 = vadd.xlane.f32.xlu1 %v89_v11  ;;  %v149_v53 = vsel %vm73_vm0, %v12312_v51, 0.0  ;;  %v152_v56 = vsel %vm73_vm0, %v12321_v54, 0.0  ;;  %v155_v57 = vsel %vm73_vm0, %v12326_v55, 0.0  ;;  %v12339_v58 = vld [vmem:[%s17305_s0 + $0xe0] sm:$0xff]  ;;  %v12346_v60 = vld [vmem:[%s17305_s0 + $0xf0] sm:$0xff]  ;;  %v12353_v62 = vld [vmem:[%s17305_s0 + $0xf8] sm:$0xff] }
   0xc   :  { %v158_v59 = vsel %vm73_vm0, %v12339_v58, 0.0  ;;  %v164_v61 = vsel %vm73_vm0, %v12346_v60, 0.0  ;;  %v167_v63 = vsel %vm73_vm0, %v12353_v62, 0.0  ;;  %v587_v3 = vld [vmem:[%s17307_s1] sm:$0xff]  ;;  %v588_v4 = vld [vmem:[%s17307_s1 + $0x8] sm:$0xff] }
   0xd   :  { %v619_v6 = vpack.c.bf16 %v588_v4, %v587_v3 }
   0xf   :  { %93 = vadd.xlane.f32.xlu0 %v92_v16  ;;  %96 = vadd.xlane.f32.xlu1 %v95_v17 }
  0x10   :  { %10310 = vmatprep.mubr.msk.bf16.mxu1 %vm73_vm0, %v619_v6 }
  0x13   :  { %99 = vadd.xlane.f32.xlu0 %v98_v20  ;;  %102 = vadd.xlane.f32.xlu1 %v101_v21 }
  0x17   :  { %105 = vadd.xlane.f32.xlu0 %v104_v24  ;;  %108 = vadd.xlane.f32.xlu1 %v107_v25 }
  0x1b   :  { %111 = vadd.xlane.f32.xlu0 %v110_v28  ;;  %114 = vadd.xlane.f32.xlu1 %v113_v29 }
  0x1f   :  { %117 = vadd.xlane.f32.xlu0 %v116_v32  ;;  %120 = vadd.xlane.f32.xlu1 %v119_v33 }
  0x23   :  { %123 = vadd.xlane.f32.xlu0 %v122_v36  ;;  %126 = vadd.xlane.f32.xlu1 %v125_v37 }
  0x27   :  { %129 = vadd.xlane.f32.xlu0 %v128_v40  ;;  %132 = vadd.xlane.f32.xlu1 %v131_v41 }
  0x2b   :  { %135 = vadd.xlane.f32.xlu0 %v134_v44  ;;  %138 = vadd.xlane.f32.xlu1 %v137_v45 }
  0x2f   :  { %141 = vadd.xlane.f32.xlu0 %v140_v48  ;;  %144 = vadd.xlane.f32.xlu1 %v143_v49 }
  0x33   :  { %147 = vadd.xlane.f32.xlu0 %v146_v52  ;;  %150 = vadd.xlane.f32.xlu1 %v149_v53 }
  0x37   :  { %153 = vadd.xlane.f32.xlu0 %v152_v56  ;;  %156 = vadd.xlane.f32.xlu1 %v155_v57 }
  0x48   :  { %858 = vrot.lane.b32.xlu1 %v12197_v19, %s12056_s20 }
  0x4d   :  { %856 = vrot.lane.b32.xlu0 %v12182_v15, %s12056_s20 }
  0x6c   :  { %159 = vadd.xlane.f32.xlu0 %v158_v59 }
  0x70   :  { %165 = vadd.xlane.f32.xlu0 %v164_v61 }
  0x74   :  { %168 = vadd.xlane.f32.xlu0 %v167_v63 }
  0x90   :  { %v76_v7 = vpop.xlane.xlu0 %75  ;;  %v82_v10 = vpop.xlane.xlu1 %81 }
  0x91   :  { %v171_v11 = vmul.f32 0.03125, %v76_v7  ;;  %v173_v15 = vmul.f32 0.03125, %v82_v10  ;;  %v12409_v10 = vld [vmem:[%s17305_s0 + $0xe8] sm:$0xff] }
  0x93   :  { %v12365_v16 = vsub.f32 %v12125_v0, %v171_v11  ;;  %v12368_v17 = vsub.f32 %v12130_v1, %v173_v15  ;;  %v161_v15 = vsel %vm73_vm0, %v12409_v10, 0.0 }
  0x94   :  { %v79_v19 = vpop.xlane.xlu0 %78  ;;  %v85_v20 = vpop.xlane.xlu1 %84 }
  0x95   :  { %v172_v21 = vmul.f32 0.03125, %v79_v19  ;;  %v174_v24 = vmul.f32 0.03125, %v85_v20  ;;  %v235_v25 = vmul.f32 %v12365_v16, %v12365_v16  ;;  %v237_v1 = vmul.f32 %v12368_v17, %v12368_v17 }
  0x97   :  { %v12373_v28 = vsub.f32 %v12135_v2, %v172_v21  ;;  %v267_v29 = vsel %vm73_vm0, %v235_v25, 0.0  ;;  %v12377_v32 = vsub.f32 %v12144_v5, %v174_v24  ;;  %v273_v44 = vsel %vm73_vm0, %v237_v1, 0.0 }
  0x98   :  { %268 = vadd.xlane.f32.xlu1 %v267_v29  ;;  %v88_v0 = vpop.xlane.xlu0 %87  ;;  %v91_v33 = vpop.xlane.xlu1 %90 }
  0x99   :  { %v175_v36 = vmul.f32 0.03125, %v88_v0  ;;  %v176_v37 = vmul.f32 0.03125, %v91_v33  ;;  %v236_v40 = vmul.f32 %v12373_v28, %v12373_v28  ;;  %v238_v49 = vmul.f32 %v12377_v32, %v12377_v32 }
  0x9b   :  { %v12384_v41 = vsub.f32 %v12153_v8, %v175_v36  ;;  %v12387_v2 = vsub.f32 %v12158_v9, %v176_v37  ;;  %v270_v5 = vsel %vm73_vm0, %v236_v40, 0.0  ;;  %v276_v61 = vsel %vm73_vm0, %v238_v49, 0.0 }
  0x9c   :  { %271 = vadd.xlane.f32.xlu1 %v270_v5  ;;  %v94_v45 = vpop.xlane.xlu0 %93  ;;  %v97_v48 = vpop.xlane.xlu1 %96 }
  0x9d   :  { %v239_v52 = vmul.f32 %v12384_v41, %v12384_v41  ;;  %v177_v53 = vmul.f32 0.03125, %v94_v45  ;;  %v178_v56 = vmul.f32 0.03125, %v97_v48  ;;  %v240_v8 = vmul.f32 %v12387_v2, %v12387_v2 }
  0x9f   :  { %v279_v9 = vsel %vm73_vm0, %v239_v52, 0.0  ;;  %v12399_v57 = vsub.f32 %v12167_v12, %v177_v53  ;;  %v12402_v59 = vsub.f32 %v12172_v13, %v178_v56  ;;  %v282_v4 = vsel %vm73_vm0, %v240_v8, 0.0 }
  0xa0   :  { %274 = vadd.xlane.f32.xlu1 %v273_v44  ;;  %280 = vadd.xlane.f32.xlu0 %v279_v9  ;;  %v100_v63 = vpop.xlane.xlu0 %99  ;;  %v103_v3 = vpop.xlane.xlu1 %102 }
  0xa1   :  { %v179_v6 = vmul.f32 0.03125, %v100_v63  ;;  %v180_v7 = vmul.f32 0.03125, %v103_v3  ;;  %v241_v12 = vmul.f32 %v12399_v57, %v12399_v57  ;;  %v242_v21 = vmul.f32 %v12402_v59, %v12402_v59 }
  0xa3   :  { %v12414_v11 = vsub.f32 %v12177_v14, %v179_v6  ;;  %v12417_v13 = vsub.f32 %v12191_v18, %v180_v7  ;;  %v285_v24 = vsel %vm73_vm0, %v241_v12, 0.0  ;;  %v288_v33 = vsel %vm73_vm0, %v242_v21, 0.0 }
  0xa4   :  { %277 = vadd.xlane.f32.xlu1 %v276_v61  ;;  %283 = vadd.xlane.f32.xlu0 %v282_v4  ;;  %v106_v19 = vpop.xlane.xlu0 %105  ;;  %v109_v20 = vpop.xlane.xlu1 %108 }
  0xa5   :  { %v181_v25 = vmul.f32 0.03125, %v106_v19  ;;  %v182_v29 = vmul.f32 0.03125, %v109_v20  ;;  %v243_v14 = vmul.f32 %v12414_v11, %v12414_v11  ;;  %v244_v37 = vmul.f32 %v12417_v13, %v12417_v13 }
  0xa7   :  { %v12427_v0 = vsub.f32 %v12208_v22, %v181_v25  ;;  %v12430_v18 = vsub.f32 %v12213_v23, %v182_v29  ;;  %v291_v40 = vsel %vm73_vm0, %v243_v14, 0.0  ;;  %v294_v48 = vsel %vm73_vm0, %v244_v37, 0.0 }
  0xa8   :  { %162 = vadd.xlane.f32.xlu1 %v161_v15  ;;  %286 = vadd.xlane.f32.xlu0 %v285_v24  ;;  %v112_v1 = vpop.xlane.xlu0 %111  ;;  %v115_v36 = vpop.xlane.xlu1 %114 }
  0xa9   :  { %v183_v5 = vmul.f32 0.03125, %v112_v1  ;;  %v184_v44 = vmul.f32 0.03125, %v115_v36  ;;  %v245_v22 = vmul.f32 %v12427_v0, %v12427_v0  ;;  %v246_v53 = vmul.f32 %v12430_v18, %v12430_v18 }
  0xab   :  { %v12439_v45 = vsub.f32 %v12223_v26, %v183_v5  ;;  %v12442_v23 = vsub.f32 %v12228_v27, %v184_v44  ;;  %v297_v56 = vsel %vm73_vm0, %v245_v22, 0.0  ;;  %v300_v63 = vsel %vm73_vm0, %v246_v53, 0.0 }
  0xac   :  { %289 = vadd.xlane.f32.xlu1 %v288_v33  ;;  %292 = vadd.xlane.f32.xlu0 %v291_v40  ;;  %v118_v49 = vpop.xlane.xlu0 %117  ;;  %v121_v52 = vpop.xlane.xlu1 %120 }
  0xad   :  { %v185_v8 = vmul.f32 0.03125, %v118_v49  ;;  %v186_v9 = vmul.f32 0.03125, %v121_v52  ;;  %v247_v26 = vmul.f32 %v12439_v45, %v12439_v45  ;;  %v248_v6 = vmul.f32 %v12442_v23, %v12442_v23 }
  0xaf   :  { %v12451_v61 = vsub.f32 %v12237_v30, %v185_v8  ;;  %v12454_v27 = vsub.f32 %v12242_v31, %v186_v9  ;;  %v303_v7 = vsel %vm73_vm0, %v247_v26, 0.0  ;;  %v306_v20 = vsel %vm73_vm0, %v248_v6, 0.0 }
  0xb0   :  { %295 = vadd.xlane.f32.xlu1 %v294_v48  ;;  %298 = vadd.xlane.f32.xlu0 %v297_v56  ;;  %v124_v3 = vpop.xlane.xlu0 %123  ;;  %v127_v4 = vpop.xlane.xlu1 %126 }
  0xb1   :  { %v187_v12 = vmul.f32 0.03125, %v124_v3  ;;  %v188_v15 = vmul.f32 0.03125, %v127_v4  ;;  %v249_v30 = vmul.f32 %v12451_v61, %v12451_v61  ;;  %v250_v25 = vmul.f32 %v12454_v27, %v12454_v27 }
  0xb3   :  { %v12463_v19 = vsub.f32 %v12251_v34, %v187_v12  ;;  %v12466_v31 = vsub.f32 %v12256_v35, %v188_v15  ;;  %v309_v29 = vsel %vm73_vm0, %v249_v30, 0.0  ;;  %v312_v36 = vsel %vm73_vm0, %v250_v25, 0.0 }
  0xb4   :  { %301 = vadd.xlane.f32.xlu1 %v300_v63  ;;  %304 = vadd.xlane.f32.xlu0 %v303_v7  ;;  %v130_v21 = vpop.xlane.xlu0 %129  ;;  %v133_v24 = vpop.xlane.xlu1 %132 }
  0xb5   :  { %v189_v14 = vmul.f32 0.03125, %v130_v21  ;;  %v190_v33 = vmul.f32 0.03125, %v133_v24  ;;  %v251_v34 = vmul.f32 %v12463_v19, %v12463_v19  ;;  %v252_v5 = vmul.f32 %v12466_v31, %v12466_v31 }
  0xb7   :  { %v12475_v1 = vsub.f32 %v12265_v38, %v189_v14  ;;  %v12478_v35 = vsub.f32 %v12270_v39, %v190_v33  ;;  %v315_v44 = vsel %vm73_vm0, %v251_v34, 0.0  ;;  %v318_v52 = vsel %vm73_vm0, %v252_v5, 0.0 }
  0xb8   :  { %307 = vadd.xlane.f32.xlu1 %v306_v20  ;;  %310 = vadd.xlane.f32.xlu0 %v309_v29  ;;  %v136_v37 = vpop.xlane.xlu0 %135  ;;  %v139_v40 = vpop.xlane.xlu1 %138 }
  0xb9   :  { %v191_v22 = vmul.f32 0.03125, %v136_v37  ;;  %v192_v48 = vmul.f32 0.03125, %v139_v40  ;;  %v253_v38 = vmul.f32 %v12475_v1, %v12475_v1  ;;  %v254_v8 = vmul.f32 %v12478_v35, %v12478_v35 }
  0xbb   :  { %v12487_v49 = vsub.f32 %v12279_v42, %v191_v22  ;;  %v12490_v39 = vsub.f32 %v12284_v43, %v192_v48  ;;  %v321_v9 = vsel %vm73_vm0, %v253_v38, 0.0  ;;  %v324_v4 = vsel %vm73_vm0, %v254_v8, 0.0 }
  0xbc   :  { %313 = vadd.xlane.f32.xlu1 %v312_v36  ;;  %316 = vadd.xlane.f32.xlu0 %v315_v44  ;;  %v142_v53 = vpop.xlane.xlu0 %141  ;;  %v145_v56 = vpop.xlane.xlu1 %144 }
  0xbd   :  { %v193_v26 = vmul.f32 0.03125, %v142_v53  ;;  %v194_v63 = vmul.f32 0.03125, %v145_v56  ;;  %v255_v42 = vmul.f32 %v12487_v49, %v12487_v49  ;;  %v256_v12 = vmul.f32 %v12490_v39, %v12490_v39  ;;  %v592_v53 = vld [vmem:[%s17307_s1 + $0x28] sm:$0xff] }
  0xbf   :  { %v12499_v3 = vsub.f32 %v12293_v46, %v193_v26  ;;  %v12502_v43 = vsub.f32 %v12298_v47, %v194_v63  ;;  %v327_v15 = vsel %vm73_vm0, %v255_v42, 0.0  ;;  %v330_v24 = vsel %vm73_vm0, %v256_v12, 0.0  ;;  %v596_v12 = vld [vmem:[%s17307_s1 + $0x48] sm:$0xff] }
  0xc0   :  { %319 = vadd.xlane.f32.xlu1 %v318_v52  ;;  %322 = vadd.xlane.f32.xlu0 %v321_v9  ;;  %v148_v6 = vpop.xlane.xlu0 %147  ;;  %v151_v7 = vpop.xlane.xlu1 %150  ;;  %v590_v52 = vld [vmem:[%s17307_s1 + $0x18] sm:$0xff] }
  0xc1   :  { %v195_v30 = vmul.f32 0.03125, %v148_v6  ;;  %v196_v20 = vmul.f32 0.03125, %v151_v7  ;;  %v257_v46 = vmul.f32 %v12499_v3, %v12499_v3  ;;  %v258_v14 = vmul.f32 %v12502_v43, %v12502_v43  ;;  %v594_v6 = vld [vmem:[%s17307_s1 + $0x38] sm:$0xff]  ;;  %v595_v7 = vld [vmem:[%s17307_s1 + $0x40] sm:$0xff] }
  0xc3   :  { %v12511_v21 = vsub.f32 %v12307_v50, %v195_v30  ;;  %v12514_v47 = vsub.f32 %v12312_v51, %v196_v20  ;;  %v333_v33 = vsel %vm73_vm0, %v257_v46, 0.0  ;;  %v336_v51 = vsel %vm73_vm0, %v258_v14, 0.0  ;;  %v597_v20 = vld [vmem:[%s17307_s1 + $0x50] sm:$0xff]  ;;  %v598_v46 = vld [vmem:[%s17307_s1 + $0x58] sm:$0xff] }
  0xc4   :  { %325 = vadd.xlane.f32.xlu1 %v324_v4  ;;  %328 = vadd.xlane.f32.xlu0 %v327_v15  ;;  %v154_v25 = vpop.xlane.xlu0 %153  ;;  %v157_v29 = vpop.xlane.xlu1 %156  ;;  %v593_v4 = vld [vmem:[%s17307_s1 + $0x30] sm:$0xff]  ;;  %v623_v30 = vpack.c.bf16 %v596_v12, %v595_v7  ;;  %v615_v7 = vld [vmem:[%s17307_s1 + $0xe0] sm:$0xff]  ;;  %v616_v12 = vld [vmem:[%s17307_s1 + $0xe8] sm:$0xff] }
  0xc5   :  { %v197_v34 = vmul.f32 0.03125, %v154_v25  ;;  %v198_v36 = vmul.f32 0.03125, %v157_v29  ;;  %v259_v50 = vmul.f32 %v12511_v21, %v12511_v21  ;;  %v260_v48 = vmul.f32 %v12514_v47, %v12514_v47  ;;  %v600_v25 = vld [vmem:[%s17307_s1 + $0x68] sm:$0xff] }
  0xc6   :  { %v622_v15 = vpack.c.bf16 %v594_v6, %v593_v4  ;;  %v624_v29 = vpack.c.bf16 %v598_v46, %v597_v20  ;;  %v613_v4 = vld [vmem:[%s17307_s1 + $0xd0] sm:$0xff]  ;;  %v614_v6 = vld [vmem:[%s17307_s1 + $0xd8] sm:$0xff] }
  0xc7   :  { %v12523_v37 = vsub.f32 %v12321_v54, %v197_v34  ;;  %v12527_v44 = vsub.f32 %v12326_v55, %v198_v36  ;;  %v339_v22 = vsel %vm73_vm0, %v259_v50, 0.0  ;;  %v589_v54 = vld [vmem:[%s17307_s1 + $0x10] sm:$0xff]  ;;  %v591_v55 = vld [vmem:[%s17307_s1 + $0x20] sm:$0xff]  ;;  %v342_v56 = vsel %vm73_vm0, %v260_v48, 0.0  ;;  %v602_v34 = vld [vmem:[%s17307_s1 + $0x78] sm:$0xff] }
  0xc8   :  { %331 = vadd.xlane.f32.xlu1 %v330_v24  ;;  %334 = vadd.xlane.f32.xlu0 %v333_v33  ;;  %v857_v40 = vpop.permute.xlu0 %856  ;;  %v859_v5 = vpop.permute.xlu1 %858  ;;  %v620_v26 = vpack.c.bf16 %v590_v52, %v589_v54  ;;  %v621_v63 = vpack.c.bf16 %v592_v53, %v591_v55  ;;  %v599_v24 = vld [vmem:[%s17307_s1 + $0x60] sm:$0xff]  ;;  %v601_v33 = vld [vmem:[%s17307_s1 + $0x70] sm:$0xff]  ;;  %v604_v50 = vld [vmem:[%s17307_s1 + $0x88] sm:$0xff]  ;;  %v632_v20 = vpack.c.bf16 %v614_v6, %v613_v4 }
  0xc9   :  { %v261_v38 = vmul.f32 %v12523_v37, %v12523_v37  ;;  %10306 = vmatprep.subr.bf16.mxu1 %v857_v40  ;;  %v262_v9 = vmul.f32 %v12527_v44, %v12527_v44  ;;  %v625_v14 = vpack.c.bf16 %v600_v25, %v599_v24  ;;  %v603_v36 = vld [vmem:[%s17307_s1 + $0x80] sm:$0xff]  ;;  %v609_v55 = vld [vmem:[%s17307_s1 + $0xb0] sm:$0xff]  ;;  %v610_v53 = vld [vmem:[%s17307_s1 + $0xb8] sm:$0xff]  ;;  %v633_v25 = vpack.c.bf16 %v616_v12, %v615_v7 }
  0xca   :  { %10307 = vmatpush3.bf16.msra.mxu1 %v857_v40  ;;  %v627_v40 = vpack.c.bf16 %v604_v50, %v603_v36  ;;  %v607_v48 = vld [vmem:[%s17307_s1 + $0xa0] sm:$0xff] }
  0xcb   :  { %10308 = vmatprep.subr.bf16.mxu1 %v859_v5  ;;  %v345_v8 = vsel %vm73_vm0, %v261_v38, 0.0  ;;  %v348_v42 = vsel %vm73_vm0, %v262_v9, 0.0  ;;  %v608_v38 = vld [vmem:[%s17307_s1 + $0xa8] sm:$0xff]  ;;  %v630_v9 = vpack.c.bf16 %v610_v53, %v609_v55 }
  0xcc   :  { %337 = vadd.xlane.f32.xlu1 %v336_v51  ;;  %340 = vadd.xlane.f32.xlu0 %v339_v22  ;;  %v626_v51 = vpack.c.bf16 %v602_v34, %v601_v33  ;;  %v606_v22 = vld [vmem:[%s17307_s1 + $0x98] sm:$0xff]  ;;  %v629_v52 = vpack.c.bf16 %v608_v38, %v607_v48 }
  0xcd   :  { %v618_v34 = vld [vmem:[%s17307_s1 + $0xf8] sm:$0xff] }
  0xce   :  { %10309 = vmatpush3.bf16.msra.mxu1 %v859_v5  ;;  %v605_v5 = vld [vmem:[%s17307_s1 + $0x90] sm:$0xff] }
  0xcf   :  { %v628_v54 = vpack.c.bf16 %v606_v22, %v605_v5 }
  0xd0   :  { %343 = vadd.xlane.f32.xlu1 %v342_v56  ;;  %346 = vadd.xlane.f32.xlu0 %v345_v8  ;;  %v611_v56 = vld [vmem:[%s17307_s1 + $0xc0] sm:$0xff]  ;;  %v612_v8 = vld [vmem:[%s17307_s1 + $0xc8] sm:$0xff] }
  0xd1   :  { %10311 = vmatmul.mubr.msk.bf16.vlgmr.msra.gmra.mrb[0].mxu1 %vm73_vm0, %v620_v26  ;;  %v631_v26 = vpack.c.bf16 %v612_v8, %v611_v56 }
  0xd2   :  { %10314 = vmatprep.mubr.msk.bf16.mxu1 %vm73_vm0, %v621_v63 }
  0xd4   :  { %349 = vadd.xlane.f32.xlu1 %v348_v42 }
  0xd9   :  { %10315 = vmatmul.mubr.msk.bf16.gmra.mrb[4].mxu1 %vm73_vm0, %v622_v15 }
  0xda   :  { %10318 = vmatprep.mubr.msk.bf16.mxu1 %vm73_vm0, %v623_v30 }
  0xe1   :  { %10319 = vmatmul.mubr.msk.bf16.gmra.mrb[8].mxu1 %vm73_vm0, %v624_v29 }
  0xe2   :  { %10322 = vmatprep.mubr.msk.bf16.mxu1 %vm73_vm0, %v625_v14 }
  0xe9   :  { %10323 = vmatmul.mubr.msk.bf16.gmra.mrb[12].mxu1 %vm73_vm0, %v626_v51 }
  0xea   :  { %10326 = vmatprep.mubr.msk.bf16.mxu1 %vm73_vm0, %v627_v40 }
  0xf1   :  { %10327 = vmatmul.mubr.msk.bf16.gmra.mrb[16].mxu1 %vm73_vm0, %v628_v54 }
  0xf2   :  { %10330 = vmatprep.mubr.msk.bf16.mxu1 %vm73_vm0, %v629_v52 }
  0xf9   :  { %v160_v63 = vpop.xlane.xlu0 %159  ;;  %10331 = vmatmul.mubr.msk.bf16.gmra.mrb[20].mxu1 %vm73_vm0, %v630_v9 }
  0xfa   :  { %v199_v42 = vmul.f32 0.03125, %v160_v63  ;;  %10334 = vmatprep.mubr.msk.bf16.mxu1 %vm73_vm0, %v631_v26 }
  0xfc   :  { %v12636_v15 = vsub.f32 %v12339_v58, %v199_v42  ;;  %v617_v58 = vld [vmem:[%s17307_s1 + $0xf0] sm:$0xff] }
  0xfd   :  { %v166_v30 = vpop.xlane.xlu0 %165  ;;  %v634_v36 = vpack.c.bf16 %v618_v34, %v617_v58 }
  0xfe   :  { %v201_v46 = vmul.f32 0.03125, %v166_v30  ;;  %v263_v24 = vmul.f32 %v12636_v15, %v12636_v15 }
 0x100   :  { %v12641_v29 = vsub.f32 %v12346_v60, %v201_v46  ;;  %v351_v14 = vsel %vm73_vm0, %v263_v24, 0.0 }
 0x101   :  { %352 = vadd.xlane.f32.xlu0 %v351_v14  ;;  %10335 = vmatmul.mubr.msk.bf16.gmra.mrb[24].mxu1 %vm73_vm0, %v632_v20  ;;  %v169_v40 = vpop.xlane.xlu0 %168  ;;  %v12660_v14 = vld [vmem:[%s17308_s2] ss:$0 sm:$0xff] }
 0x102   :  { %v265_v33 = vmul.f32 %v12641_v29, %v12641_v29  ;;  %10338 = vmatprep.mubr.msk.bf16.mxu1 %vm73_vm0, %v633_v25  ;;  %v202_v6 = vmul.f32 0.03125, %v169_v40 }
 0x104   :  { %v357_v60 = vsel %vm73_vm0, %v265_v33, 0.0  ;;  %v12663_v58 = vsub.f32 %v12353_v62, %v202_v6  ;;  %v12675_v62 = vld [vmem:[%s17309_s3] ss:$0 sm:$0xff] }
 0x105   :  { %358 = vadd.xlane.f32.xlu0 %v357_v60 }
 0x109   :  { %10339 = vmatmul.mubr.msk.bf16.gmra.mrb[28].mxu1 %vm73_vm0, %v634_v36 }
 0x125   :  { %v269_v50 = vpop.xlane.xlu1 %268 }
 0x126   :  { %v363_v51 = vmul.f32 0.03125, %v269_v50 }
 0x128   :  { %v395_v5 = vadd.f32 1e-05, %v363_v51 }
 0x129   :  { %v272_v22 = vpop.xlane.xlu1 %271 }
 0x12a   :  { %11128 = vrsqrt.f32 %v395_v5  ;;  %v364_v48 = vmul.f32 0.03125, %v272_v22 }
 0x12c   :  { %v396_v38 = vadd.f32 1e-05, %v364_v48 }
 0x12d   :  { %v275_v54 = vpop.xlane.xlu1 %274  ;;  %v281_v52 = vpop.xlane.xlu0 %280 }
 0x12e   :  { %11130 = vrsqrt.f32 %v396_v38  ;;  %v365_v55 = vmul.f32 0.03125, %v275_v54  ;;  %v367_v53 = vmul.f32 0.03125, %v281_v52  ;;  %v266_v52 = vmul.f32 %v12663_v58, %v12663_v58 }
 0x130   :  { %v397_v56 = vadd.f32 1e-05, %v365_v55  ;;  %v399_v8 = vadd.f32 1e-05, %v367_v53 }
 0x131   :  { %v278_v9 = vpop.xlane.xlu1 %277  ;;  %v284_v26 = vpop.xlane.xlu0 %283 }
 0x132   :  { %11132 = vrsqrt.f32 %v397_v56  ;;  %v366_v63 = vmul.f32 0.03125, %v278_v9  ;;  %v368_v42 = vmul.f32 0.03125, %v284_v26 }
 0x133   :  { %11134 = vrsqrt.f32 %v399_v8 }
 0x134   :  { %v11129_v4 = vpop.eup %11128  ;;  %v398_v7 = vadd.f32 1e-05, %v366_v63  ;;  %v400_v12 = vadd.f32 1e-05, %v368_v42 }
 0x135   :  { %v163_v30 = vpop.xlane.xlu1 %162  ;;  %v287_v20 = vpop.xlane.xlu0 %286  ;;  %v459_v46 = vmul.f32 %v11129_v4, %v12365_v16 }
 0x136   :  { %11136 = vrsqrt.f32 %v398_v7  ;;  %v200_v24 = vmul.f32 0.03125, %v163_v30  ;;  %v369_v25 = vmul.f32 0.03125, %v287_v20  ;;  %v360_v20 = vsel %vm73_vm0, %v266_v52, 0.0 }
 0x137   :  { %11138 = vrsqrt.f32 %v400_v12  ;;  %v497_v51 = vmul.f32 %v12660_v14, %v459_v46 }
 0x138   :  { %v11131_v33 = vpop.eup %11130  ;;  %v12666_v34 = vsub.f32 %v12409_v10, %v200_v24  ;;  %v401_v60 = vadd.f32 1e-05, %v369_v25 }
 0x139   :  { %v290_v36 = vpop.xlane.xlu1 %289  ;;  %v293_v50 = vpop.xlane.xlu0 %292  ;;  %v460_v16 = vmul.f32 %v11131_v33, %v12373_v28  ;;  %v535_v8 = vadd.f32 %v12675_v62, %v497_v51 }
 0x13a   :  { %11140 = vrsqrt.f32 %v401_v60  ;;  %v370_v40 = vmul.f32 0.03125, %v290_v36  ;;  %v371_v5 = vmul.f32 0.03125, %v293_v50  ;;  %v264_v22 = vmul.f32 %v12666_v34, %v12666_v34 }
 0x13b   :  { %v498_v10 = vmul.f32 %v12660_v14, %v460_v16 }
 0x13c   :  { %v11133_v48 = vpop.eup %11132  ;;  %v402_v38 = vadd.f32 1e-05, %v370_v40  ;;  %v403_v54 = vadd.f32 1e-05, %v371_v5  ;;  %v354_v28 = vsel %vm73_vm0, %v264_v22, 0.0 }
 0x13d   :  { %v11135_v55 = vpop.eup %11134  ;;  %355 = vadd.xlane.f32.xlu1 %v354_v28  ;;  %v296_v53 = vpop.xlane.xlu1 %295  ;;  %v536_v9 = vadd.f32 %v12675_v62, %v498_v10  ;;  %v461_v26 = vmul.f32 %v11133_v48, %v12368_v17 }
 0x13e   :  { %v299_v56 = vpop.xlane.xlu0 %298  ;;  %11142 = vrsqrt.f32 %v402_v38  ;;  %v372_v63 = vmul.f32 0.03125, %v296_v53  ;;  %v463_v4 = vmul.f32 %v11135_v55, %v12384_v41 }
 0x13f   :  { %v373_v42 = vmul.f32 0.03125, %v299_v56  ;;  %11144 = vrsqrt.f32 %v403_v54  ;;  %v567_v6 = vpack.c.bf16 %v536_v9, %v535_v8  ;;  %v499_v33 = vmul.f32 %v12660_v14, %v461_v26 }
 0x140   :  { %v11137_v7 = vpop.eup %11136  ;;  %v404_v12 = vadd.f32 1e-05, %v372_v63  ;;  %v501_v60 = vmul.f32 %v12660_v14, %v463_v4 }
 0x141   :  { %v405_v30 = vadd.f32 1e-05, %v373_v42  ;;  %v11139_v46 = vpop.eup %11138  ;;  %10274 = vmatprep.mubr.msk.bf16.mxu0 %vm73_vm0, %v567_v6  ;;  %v302_v24 = vpop.xlane.xlu1 %301  ;;  %361 = vadd.xlane.f32.xlu1 %v360_v20  ;;  %v462_v17 = vmul.f32 %v11137_v7, %v12377_v32  ;;  %v537_v32 = vadd.f32 %v12675_v62, %v499_v33 }
 0x142   :  { %v305_v25 = vpop.xlane.xlu0 %304  ;;  %11146 = vrsqrt.f32 %v404_v12  ;;  %v374_v41 = vmul.f32 0.03125, %v302_v24  ;;  %v464_v50 = vmul.f32 %v11139_v46, %v12387_v2  ;;  %v539_v54 = vadd.f32 %v12675_v62, %v501_v60 }
 0x143   :  { %v375_v36 = vmul.f32 0.03125, %v305_v25  ;;  %11148 = vrsqrt.f32 %v405_v30  ;;  %v500_v16 = vmul.f32 %v12660_v14, %v462_v17 }
 0x144   :  { %v11141_v51 = vpop.eup %11140  ;;  %v406_v40 = vadd.f32 1e-05, %v374_v41  ;;  %v502_v22 = vmul.f32 %v12660_v14, %v464_v50 }
 0x145   :  { %v407_v5 = vadd.f32 1e-05, %v375_v36  ;;  %v308_v10 = vpop.xlane.xlu1 %307  ;;  %v538_v38 = vadd.f32 %v12675_v62, %v500_v16  ;;  %v465_v28 = vmul.f32 %v11141_v51, %v12399_v57 }
 0x146   :  { %v311_v48 = vpop.xlane.xlu0 %310  ;;  %11150 = vrsqrt.f32 %v406_v40  ;;  %v376_v2 = vmul.f32 0.03125, %v308_v10  ;;  %v540_v55 = vadd.f32 %v12675_v62, %v502_v22 }
 0x147   :  { %v377_v52 = vmul.f32 0.03125, %v311_v48  ;;  %11152 = vrsqrt.f32 %v407_v5  ;;  %v568_v53 = vpack.c.bf16 %v538_v38, %v537_v32  ;;  %v503_v57 = vmul.f32 %v12660_v14, %v465_v28 }
 0x148   :  { %v11143_v56 = vpop.eup %11142  ;;  %v408_v8 = vadd.f32 1e-05, %v376_v2  ;;  %v569_v26 = vpack.c.bf16 %v540_v55, %v539_v54 }
 0x149   :  { %v409_v9 = vadd.f32 1e-05, %v377_v52  ;;  %v11145_v63 = vpop.eup %11144  ;;  %10275 = vmatmul.mubr.msk.bf16.vlgmr.msra.gmra.mrb[0].mxu0 %vm73_vm0, %v568_v53  ;;  %v314_v42 = vpop.xlane.xlu1 %313  ;;  %v466_v6 = vmul.f32 %v11143_v56, %v12402_v59  ;;  %v541_v59 = vadd.f32 %v12675_v62, %v503_v57 }
 0x14a   :  { %v317_v4 = vpop.xlane.xlu0 %316  ;;  %11154 = vrsqrt.f32 %v408_v8  ;;  %v378_v7 = vmul.f32 0.03125, %v314_v42  ;;  %10278 = vmatprep.mubr.msk.bf16.mxu0 %vm73_vm0, %v569_v26  ;;  %v467_v30 = vmul.f32 %v11145_v63, %v12414_v11 }
 0x14b   :  { %v379_v12 = vmul.f32 0.03125, %v317_v4  ;;  %11156 = vrsqrt.f32 %v409_v9  ;;  %v504_v20 = vmul.f32 %v12660_v14, %v466_v6 }
 0x14c   :  { %v11147_v46 = vpop.eup %11146  ;;  %v410_v24 = vadd.f32 1e-05, %v378_v7  ;;  %v505_v50 = vmul.f32 %v12660_v14, %v467_v30 }
 0x14d   :  { %v411_v25 = vadd.f32 1e-05, %v379_v12  ;;  %v11149_v17 = vpop.eup %11148  ;;  %v320_v33 = vpop.xlane.xlu1 %319  ;;  %v542_v41 = vadd.f32 %v12675_v62, %v504_v20  ;;  %v468_v36 = vmul.f32 %v11147_v46, %v12417_v13 }
 0x14e   :  { %v323_v60 = vpop.xlane.xlu0 %322  ;;  %11158 = vrsqrt.f32 %v410_v24  ;;  %v380_v16 = vmul.f32 0.03125, %v320_v33  ;;  %v469_v5 = vmul.f32 %v11149_v17, %v12427_v0  ;;  %v543_v13 = vadd.f32 %v12675_v62, %v505_v50 }
 0x14f   :  { %v381_v11 = vmul.f32 0.03125, %v323_v60  ;;  %11160 = vrsqrt.f32 %v411_v25  ;;  %v570_v51 = vpack.c.bf16 %v542_v41, %v541_v59  ;;  %v506_v40 = vmul.f32 %v12660_v14, %v468_v36 }
 0x150   :  { %v11151_v22 = vpop.eup %11150  ;;  %v412_v10 = vadd.f32 1e-05, %v380_v16  ;;  %v507_v52 = vmul.f32 %v12660_v14, %v469_v5 }
 0x151   :  { %v413_v48 = vadd.f32 1e-05, %v381_v11  ;;  %v11153_v32 = vpop.eup %11152  ;;  %v326_v38 = vpop.xlane.xlu1 %325  ;;  %10279 = vmatmul.mubr.msk.bf16.gmra.mrb[4].mxu0 %vm73_vm0, %v570_v51  ;;  %v544_v28 = vadd.f32 %v12675_v62, %v506_v40  ;;  %v470_v2 = vmul.f32 %v11151_v22, %v12430_v18 }
 0x152   :  { %v329_v54 = vpop.xlane.xlu0 %328  ;;  %11162 = vrsqrt.f32 %v412_v10  ;;  %v382_v55 = vmul.f32 0.03125, %v326_v38  ;;  %v471_v0 = vmul.f32 %v11153_v32, %v12439_v45  ;;  %v545_v18 = vadd.f32 %v12675_v62, %v507_v52 }
 0x153   :  { %v383_v53 = vmul.f32 0.03125, %v329_v54  ;;  %11164 = vrsqrt.f32 %v413_v48  ;;  %v571_v56 = vpack.c.bf16 %v544_v28, %v543_v13  ;;  %v508_v8 = vmul.f32 %v12660_v14, %v470_v2 }
 0x154   :  { %v11155_v9 = vpop.eup %11154  ;;  %v414_v26 = vadd.f32 1e-05, %v382_v55  ;;  %v509_v45 = vmul.f32 %v12660_v14, %v471_v0 }
 0x155   :  { %v415_v63 = vadd.f32 1e-05, %v383_v53  ;;  %v11157_v42 = vpop.eup %11156  ;;  %v332_v4 = vpop.xlane.xlu1 %331  ;;  %10282 = vmatprep.mubr.msk.bf16.mxu0 %vm73_vm0, %v571_v56  ;;  %v546_v57 = vadd.f32 %v12675_v62, %v508_v8  ;;  %v472_v7 = vmul.f32 %v11155_v9, %v12442_v23 }
 0x156   :  { %v335_v6 = vpop.xlane.xlu0 %334  ;;  %11166 = vrsqrt.f32 %v414_v26  ;;  %v384_v12 = vmul.f32 0.03125, %v332_v4  ;;  %v473_v24 = vmul.f32 %v11157_v42, %v12451_v61  ;;  %v547_v23 = vadd.f32 %v12675_v62, %v509_v45 }
 0x157   :  { %v385_v30 = vmul.f32 0.03125, %v335_v6  ;;  %11168 = vrsqrt.f32 %v415_v63  ;;  %v572_v20 = vpack.c.bf16 %v546_v57, %v545_v18  ;;  %v510_v46 = vmul.f32 %v12660_v14, %v472_v7 }
 0x158   :  { %v11159_v25 = vpop.eup %11158  ;;  %v416_v17 = vadd.f32 1e-05, %v384_v12  ;;  %v511_v16 = vmul.f32 %v12660_v14, %v473_v24 }
 0x159   :  { %v417_v33 = vadd.f32 1e-05, %v385_v30  ;;  %v11161_v60 = vpop.eup %11160  ;;  %v338_v59 = vpop.xlane.xlu1 %337  ;;  %10283 = vmatmul.mubr.msk.bf16.gmra.mrb[8].mxu0 %vm73_vm0, %v572_v20  ;;  %v548_v36 = vadd.f32 %v12675_v62, %v510_v46  ;;  %v474_v50 = vmul.f32 %v11159_v25, %v12454_v27 }
 0x15a   :  { %v341_v41 = vpop.xlane.xlu0 %340  ;;  %11170 = vrsqrt.f32 %v416_v17  ;;  %v386_v11 = vmul.f32 0.03125, %v338_v59  ;;  %v475_v61 = vmul.f32 %v11161_v60, %v12463_v19  ;;  %v549_v27 = vadd.f32 %v12675_v62, %v511_v16 }
 0x15b   :  { %v387_v51 = vmul.f32 0.03125, %v341_v41  ;;  %11172 = vrsqrt.f32 %v417_v33  ;;  %v573_v40 = vpack.c.bf16 %v548_v36, %v547_v23  ;;  %v512_v5 = vmul.f32 %v12660_v14, %v474_v50 }
 0x15c   :  { %v11163_v22 = vpop.eup %11162  ;;  %v418_v10 = vadd.f32 1e-05, %v386_v11  ;;  %v513_v19 = vmul.f32 %v12660_v14, %v475_v61 }
 0x15d   :  { %v419_v48 = vadd.f32 1e-05, %v387_v51  ;;  %v11165_v32 = vpop.eup %11164  ;;  %v344_v38 = vpop.xlane.xlu1 %343  ;;  %10286 = vmatprep.mubr.msk.bf16.mxu0 %vm73_vm0, %v573_v40  ;;  %v550_v13 = vadd.f32 %v12675_v62, %v512_v5  ;;  %v476_v28 = vmul.f32 %v11163_v22, %v12466_v31 }
 0x15e   :  { %v347_v54 = vpop.xlane.xlu0 %346  ;;  %11174 = vrsqrt.f32 %v418_v10  ;;  %v388_v2 = vmul.f32 0.03125, %v344_v38  ;;  %v477_v0 = vmul.f32 %v11165_v32, %v12475_v1  ;;  %v551_v31 = vadd.f32 %v12675_v62, %v513_v19 }
 0x15f   :  { %v389_v52 = vmul.f32 0.03125, %v347_v54  ;;  %11176 = vrsqrt.f32 %v419_v48  ;;  %v574_v55 = vpack.c.bf16 %v550_v13, %v549_v27  ;;  %v514_v53 = vmul.f32 %v12660_v14, %v476_v28 }
 0x160   :  { %v11167_v56 = vpop.eup %11166  ;;  %v420_v8 = vadd.f32 1e-05, %v388_v2  ;;  %v515_v6 = vmul.f32 %v12660_v14, %v477_v0 }
 0x161   :  { %v421_v9 = vadd.f32 1e-05, %v389_v52  ;;  %v11169_v26 = vpop.eup %11168  ;;  %v350_v63 = vpop.xlane.xlu1 %349  ;;  %10287 = vmatmul.mubr.msk.bf16.gmra.mrb[12].mxu0 %vm73_vm0, %v574_v55  ;;  %v552_v42 = vadd.f32 %v12675_v62, %v514_v53  ;;  %v478_v4 = vmul.f32 %v11167_v56, %v12478_v35 }
 0x162   :  { %11178 = vrsqrt.f32 %v420_v8  ;;  %v390_v18 = vmul.f32 0.03125, %v350_v63  ;;  %v479_v57 = vmul.f32 %v11169_v26, %v12487_v49  ;;  %v553_v20 = vadd.f32 %v12675_v62, %v515_v6 }
 0x163   :  { %11180 = vrsqrt.f32 %v421_v9  ;;  %v575_v1 = vpack.c.bf16 %v552_v42, %v551_v31  ;;  %v516_v7 = vmul.f32 %v12660_v14, %v478_v4 }
 0x164   :  { %v11171_v45 = vpop.eup %11170  ;;  %v422_v12 = vadd.f32 1e-05, %v390_v18  ;;  %v517_v24 = vmul.f32 %v12660_v14, %v479_v57 }
 0x165   :  { %v11173_v30 = vpop.eup %11172  ;;  %10290 = vmatprep.mubr.msk.bf16.mxu0 %vm73_vm0, %v575_v1  ;;  %v554_v46 = vadd.f32 %v12675_v62, %v516_v7  ;;  %v480_v35 = vmul.f32 %v11171_v45, %v12490_v39 }
 0x166   :  { %11182 = vrsqrt.f32 %v422_v12  ;;  %v481_v49 = vmul.f32 %v11173_v30, %v12499_v3  ;;  %v555_v59 = vadd.f32 %v12675_v62, %v517_v24 }
 0x167   :  { %v576_v25 = vpack.c.bf16 %v554_v46, %v553_v20  ;;  %v518_v17 = vmul.f32 %v12660_v14, %v480_v35 }
 0x168   :  { %v11175_v33 = vpop.eup %11174  ;;  %v519_v39 = vmul.f32 %v12660_v14, %v481_v49 }
 0x169   :  { %v11177_v60 = vpop.eup %11176  ;;  %10291 = vmatmul.mubr.msk.bf16.gmra.mrb[16].mxu0 %vm73_vm0, %v576_v25  ;;  %v556_v41 = vadd.f32 %v12675_v62, %v518_v17  ;;  %v482_v23 = vmul.f32 %v11175_v33, %v12502_v43 }
 0x16a   :  { %v483_v36 = vmul.f32 %v11177_v60, %v12511_v21  ;;  %v557_v51 = vadd.f32 %v12675_v62, %v519_v39 }
 0x16b   :  { %v577_v50 = vpack.c.bf16 %v556_v41, %v555_v59  ;;  %v520_v3 = vmul.f32 %v12660_v14, %v482_v23 }
 0x16c   :  { %v11179_v16 = vpop.eup %11178  ;;  %v521_v5 = vmul.f32 %v12660_v14, %v483_v36 }
 0x16d   :  { %v11181_v11 = vpop.eup %11180  ;;  %10294 = vmatprep.mubr.msk.bf16.mxu0 %vm73_vm0, %v577_v50  ;;  %v558_v61 = vadd.f32 %v12675_v62, %v520_v3  ;;  %v484_v40 = vmul.f32 %v11179_v16, %v12514_v47 }
 0x16e   :  { %v485_v43 = vmul.f32 %v11181_v11, %v12523_v37  ;;  %v559_v48 = vadd.f32 %v12675_v62, %v521_v5 }
 0x16f   :  { %v578_v22 = vpack.c.bf16 %v558_v61, %v557_v51  ;;  %v522_v21 = vmul.f32 %v12660_v14, %v484_v40 }
 0x170   :  { %v11183_v10 = vpop.eup %11182  ;;  %v523_v54 = vmul.f32 %v12660_v14, %v485_v43 }
 0x171   :  { %10295 = vmatmul.mubr.msk.bf16.gmra.mrb[20].mxu0 %vm73_vm0, %v578_v22  ;;  %v560_v32 = vadd.f32 %v12675_v62, %v522_v21  ;;  %v486_v38 = vmul.f32 %v11183_v10, %v12527_v44 }
 0x172   :  { %v561_v37 = vadd.f32 %v12675_v62, %v523_v54 }
 0x173   :  { %v579_v27 = vpack.c.bf16 %v560_v32, %v559_v48  ;;  %v524_v47 = vmul.f32 %v12660_v14, %v486_v38 }
 0x175   :  { %10298 = vmatprep.mubr.msk.bf16.mxu0 %vm73_vm0, %v579_v27  ;;  %v562_v13 = vadd.f32 %v12675_v62, %v524_v47 }
 0x177   :  { %v580_v28 = vpack.c.bf16 %v562_v13, %v561_v37 }
 0x179   :  { %10299 = vmatmul.mubr.msk.bf16.gmra.mrb[24].mxu0 %vm73_vm0, %v580_v28 }
 0x18e   :  { %v353_v30 = vpop.xlane.xlu0 %352 }
 0x18f   :  { %v391_v60 = vmul.f32 0.03125, %v353_v30 }
 0x191   :  { %v423_v23 = vadd.f32 1e-05, %v391_v60 }
 0x192   :  { %v359_v59 = vpop.xlane.xlu0 %358 }
 0x193   :  { %v393_v39 = vmul.f32 0.03125, %v359_v59  ;;  %11184 = vrsqrt.f32 %v423_v23 }
 0x195   :  { %v425_v61 = vadd.f32 1e-05, %v393_v39 }
 0x197   :  { %11186 = vrsqrt.f32 %v425_v61 }
 0x19d   :  { %v11185_v13 = vpop.eup %11184 }
 0x1a4   :  { %v10312_v19 = vpop.f32.mrb[0].mxu1 }
 0x1a5   :  { %v944_v2 = vpop.f32.mrb[1].mxu1 }
 0x1a6   :  { %v10313_v52 = vpop.f32.mrb[2].mxu1 }
 0x1a7   :  { %v12776_v55 = vpack.c.bf16 %v10313_v52, %v10312_v19  ;;  %v947_v44 = vpop.f32.mrb[3].mxu1 }
 0x1a8   :  { %v12778_v53 = vpack.c.bf16 %v947_v44, %v944_v2  ;;  %v487_v2 = vmul.f32 %v11185_v13, %v12636_v15  ;;  %v11187_v44 = vpop.eup %11186 }
 0x1a9   :  { %17432 = vst [vmem:[#allocation3_spill] sm:$0xff] %v12776_v55  ;;  %1835 = vrot.lane.b32.xlu1 %v12776_v55, %s12056_s20  ;;  %2247 = vrot.lane.b32.xlu0 %v12776_v55, %s12057_s24  ;;  %v1120_v31 = vsel %vm1103_vm1, %v12776_v55, 0 }
 0x1aa   :  { %17433 = vst [vmem:[#allocation4_spill] sm:$0xff] %v12778_v53  ;;  %11042 = vmatprep.subr.msk.bf16.mxu0 %vm1103_vm1, %v12778_v53  ;;  %v1117_v0 = vsel %vm1103_vm1, %v12778_v53, 0 }
 0x1ab   :  { %10343 = vmatpush3.bf16.xpose.msra.mxu0 %v1117_v0 }
 0x1ac   :  { %v10316_v56 = vpop.f32.mrb[4].mxu1  ;;  %11043 = vmatprep.subr.msk.bf16.mxu0 %vm1103_vm1, %v12776_v55 }
 0x1ad   :  { %v960_v8 = vpop.f32.mrb[5].mxu1  ;;  %1833 = vrot.lane.b32.xlu0 %v12778_v53, %s12056_s20 }
 0x1ae   :  { %v10317_v9 = vpop.f32.mrb[6].mxu1 }
 0x1af   :  { %v12792_v26 = vpack.c.bf16 %v10317_v9, %v10316_v56  ;;  %v963_v63 = vpop.f32.mrb[7].mxu1 }
 0x1b0   :  { %v12796_v42 = vpack.c.bf16 %v963_v63, %v960_v8 }
 0x1b1   :  { %17434 = vst [vmem:[#allocation5_spill] sm:$0xff] %v12792_v26  ;;  %1839 = vrot.lane.b32.xlu1 %v12792_v26, %s12056_s20  ;;  %2245 = vrot.lane.b32.xlu0 %v12778_v53, %s12057_s24  ;;  %v1126_v17 = vsel %vm1103_vm1, %v12792_v26, 0 }
 0x1b2   :  { %17435 = vst [vmem:[#allocation6_spill] sm:$0xff] %v12796_v42  ;;  %v1123_v45 = vsel %vm1103_vm1, %v12796_v42, 0 }
 0x1b3   :  { %10345 = vmatpush3.bf16.xpose.msra.mxu0 %v1120_v31  ;;  %v525_v31 = vmul.f32 %v12660_v14, %v487_v2 }
 0x1b4   :  { %v10320_v4 = vpop.f32.mrb[8].mxu1  ;;  %11044 = vmatprep.subr.msk.bf16.mxu0 %vm1103_vm1, %v12796_v42 }
 0x1b5   :  { %v976_v6 = vpop.f32.mrb[9].mxu1  ;;  %2251 = vrot.lane.b32.xlu1 %v12792_v26, %s12057_s24  ;;  %1837 = vrot.lane.b32.xlu0 %v12796_v42, %s12056_s20 }
 0x1b6   :  { %v10321_v18 = vpop.f32.mrb[10].mxu1 }
 0x1b7   :  { %v12808_v57 = vpack.c.bf16 %v10321_v18, %v10320_v4  ;;  %v979_v1 = vpop.f32.mrb[11].mxu1  ;;  %v489_v4 = vmul.f32 %v11187_v44, %v12641_v29 }
 0x1b8   :  { %v12810_v7 = vpack.c.bf16 %v979_v1, %v976_v6 }
 0x1b9   :  { %17436 = vst [vmem:[#allocation7_spill] sm:$0xff] %v12808_v57  ;;  %1928 = vrot.lane.b32.xlu1 %v12808_v57, %s12056_s20  ;;  %2249 = vrot.lane.b32.xlu0 %v12796_v42, %s12057_s24  ;;  %v1209_v33 = vsel %vm1103_vm1, %v12808_v57, 0  ;;  %v527_v30 = vmul.f32 %v12660_v14, %v489_v4 }
 0x1ba   :  { %17437 = vst [vmem:[#allocation8_spill] sm:$0xff] %v12810_v7  ;;  %11046 = vmatprep.subr.msk.bf16.mxu1 %vm1103_vm1, %v12810_v7  ;;  %v1206_v12 = vsel %vm1103_vm1, %v12810_v7, 0 }
 0x1bb   :  { %10347 = vmatpush3.bf16.xpose.msra.mxu0 %v1123_v45  ;;  %10359 = vmatpush3.bf16.xpose.msra.mxu1 %v1206_v12  ;;  %v563_v45 = vadd.f32 %v12675_v62, %v525_v31 }
 0x1bc   :  { %v10324_v20 = vpop.f32.mrb[12].mxu1  ;;  %11045 = vmatprep.subr.msk.bf16.mxu0 %vm1103_vm1, %v12792_v26  ;;  %11047 = vmatprep.subr.msk.bf16.mxu1 %vm1103_vm1, %v12808_v57 }
 0x1bd   :  { %v992_v46 = vpop.f32.mrb[13].mxu1  ;;  %2356 = vrot.lane.b32.xlu1 %v12808_v57, %s12057_s24  ;;  %1926 = vrot.lane.b32.xlu0 %v12810_v7, %s12056_s20 }
 0x1be   :  { %v10325_v35 = vpop.f32.mrb[14].mxu1 }
 0x1bf   :  { %v12830_v24 = vpack.c.bf16 %v10325_v35, %v10324_v20  ;;  %v995_v49 = vpop.f32.mrb[15].mxu1 }
 0x1c0   :  { %v12832_v25 = vpack.c.bf16 %v995_v49, %v992_v46 }
 0x1c1   :  { %2354 = vrot.lane.b32.xlu1 %v12810_v7, %s12057_s24  ;;  %v1215_v47 = vsel %vm1103_vm1, %v12830_v24, 0 }
 0x1c2   :  { %1930 = vrot.lane.b32.xlu0 %v12832_v25, %s12056_s20  ;;  %v1212_v51 = vsel %vm1103_vm1, %v12832_v25, 0 }
 0x1c3   :  { %10349 = vmatpush3.bf16.xpose.msra.mxu0 %v1126_v17  ;;  %10361 = vmatpush3.bf16.xpose.msra.mxu1 %v1209_v33  ;;  %v565_v33 = vadd.f32 %v12675_v62, %v527_v30 }
 0x1c4   :  { %v10328_v41 = vpop.f32.mrb[16].mxu1  ;;  %11048 = vmatprep.subr.msk.bf16.mxu1 %vm1103_vm1, %v12832_v25 }
 0x1c5   :  { %v1008_v36 = vpop.f32.mrb[17].mxu1  ;;  %1932 = vrot.lane.b32.xlu1 %v12830_v24, %s12056_s20 }
 0x1c6   :  { %v10329_v50 = vpop.f32.mrb[18].mxu1 }
 0x1c7   :  { %v12846_v3 = vpack.c.bf16 %v10329_v50, %v10328_v41  ;;  %v1011_v16 = vpop.f32.mrb[19].mxu1 }
 0x1c8   :  { %v12848_v11 = vpack.c.bf16 %v1011_v16, %v1008_v36 }
 0x1c9   :  { %2021 = vrot.lane.b32.xlu0 %v12846_v3, %s12056_s20 }
 0x1ca   :  { %v356_v40 = vpop.xlane.xlu1 %355  ;;  %11050 = vmatprep.subr.msk.bf16.mxu0 %vm1103_vm1, %v12848_v11  ;;  %v1295_v16 = vsel %vm1103_vm1, %v12848_v11, 0 }
 0x1cb   :  { %v392_v5 = vmul.f32 0.03125, %v356_v40  ;;  %10363 = vmatpush3.bf16.xpose.msra.mxu1 %v1212_v51 }
 0x1cc   :  { %v10332_v43 = vpop.f32.mrb[20].mxu1  ;;  %11049 = vmatprep.subr.msk.bf16.mxu1 %vm1103_vm1, %v12830_v24 }
 0x1cd   :  { %v424_v22 = vadd.f32 1e-05, %v392_v5  ;;  %v1024_v21 = vpop.f32.mrb[21].mxu1  ;;  %2019 = vrot.lane.b32.xlu0 %v12848_v11, %s12056_s20 }
 0x1ce   :  { %v362_v10 = vpop.xlane.xlu1 %361  ;;  %v10333_v48 = vpop.f32.mrb[22].mxu1 }
 0x1cf   :  { %11188 = vrsqrt.f32 %v424_v22  ;;  %v394_v32 = vmul.f32 0.03125, %v362_v10  ;;  %v12860_v38 = vpack.c.bf16 %v10333_v48, %v10332_v43  ;;  %v1027_v54 = vpop.f32.mrb[23].mxu1 }
 0x1d0   :  { %v12862_v27 = vpack.c.bf16 %v1027_v54, %v1024_v21  ;;  %v1298_v21 = vsel %vm1103_vm1, %v12846_v3, 0 }
 0x1d1   :  { %17438 = vst [vmem:[#allocation9_spill] sm:$0xff] %v12860_v38  ;;  %v426_v37 = vadd.f32 1e-05, %v394_v32  ;;  %2025 = vrot.lane.b32.xlu1 %v12860_v38, %s12056_s20 }
 0x1d3   :  { %11190 = vrsqrt.f32 %v426_v37  ;;  %10365 = vmatpush3.bf16.xpose.msra.mxu1 %v1215_v47 }
 0x1d4   :  { %v10336_v28 = vpop.f32.mrb[24].mxu1 }
 0x1d5   :  { %v1040_v19 = vpop.f32.mrb[25].mxu1  ;;  %2023 = vrot.lane.b32.xlu1 %v12862_v27, %s12056_s20 }
 0x1d6   :  { %v10337_v52 = vpop.f32.mrb[26].mxu1 }
 0x1d7   :  { %v12871_v0 = vpack.c.bf16 %v10337_v52, %v10336_v28  ;;  %v1043_v56 = vpop.f32.mrb[27].mxu1  ;;  %v1301_v28 = vsel %vm1103_vm1, %v12862_v27, 0 }
 0x1d8   :  { %v12873_v8 = vpack.c.bf16 %v1043_v56, %v1040_v19 }
 0x1d9   :  { %v11189_v9 = vpop.eup %11188  ;;  %2114 = vrot.lane.b32.xlu1 %v12871_v0, %s12056_s20 }
 0x1da   :  { %v488_v63 = vmul.f32 %v11189_v9, %v12666_v34  ;;  %2112 = vrot.lane.b32.xlu0 %v12873_v8, %s12056_s20  ;;  %11054 = vmatprep.subr.msk.bf16.mxu1 %vm1103_vm1, %v12873_v8  ;;  %v1384_v19 = vsel %vm1103_vm1, %v12873_v8, 0 }
 0x1dc   :  { %v526_v15 = vmul.f32 %v12660_v14, %v488_v63  ;;  %v10340_v6 = vpop.f32.mrb[28].mxu1 }
 0x1dd   :  { %v11191_v18 = vpop.eup %11190  ;;  %v1056_v1 = vpop.f32.mrb[29].mxu1 }
 0x1de   :  { %v564_v12 = vadd.f32 %v12675_v62, %v526_v15  ;;  %v490_v34 = vmul.f32 %v11191_v18, %v12663_v58  ;;  %v10341_v29 = vpop.f32.mrb[30].mxu1  ;;  %v1304_v18 = vsel %vm1103_vm1, %v12860_v38, 0 }
 0x1df   :  { %v12889_v20 = vpack.c.bf16 %v10341_v29, %v10340_v6  ;;  %v1059_v46 = vpop.f32.mrb[31].mxu1  ;;  %v1387_v6 = vsel %vm1103_vm1, %v12871_v0, 0 }
 0x1e0   :  { %v581_v35 = vpack.c.bf16 %v564_v12, %v563_v45  ;;  %v528_v49 = vmul.f32 %v12660_v14, %v490_v34  ;;  %v12892_v17 = vpack.c.bf16 %v1059_v46, %v1056_v1 }
 0x1e1   :  { %17439 = vst [vmem:[#allocation10_spill] sm:$0xff] %v12889_v20  ;;  %2118 = vrot.lane.b32.xlu0 %v12889_v20, %s12056_s20 }
 0x1e2   :  { %17440 = vst [vmem:[#allocation11_spill] sm:$0xff] %v12892_v17  ;;  %10302 = vmatprep.mubr.msk.bf16.mxu0 %vm73_vm0, %v581_v35  ;;  %v566_v58 = vadd.f32 %v12675_v62, %v528_v49  ;;  %2116 = vrot.lane.b32.xlu1 %v12892_v17, %s12056_s20  ;;  %v1390_v49 = vsel %vm1103_vm1, %v12892_v17, 0 }
 0x1e4   :  { %v582_v60 = vpack.c.bf16 %v566_v58, %v565_v33 }
 0x1e6   :  { %10303 = vmatmul.mubr.msk.bf16.gmra.mrb[28].mxu0 %vm73_vm0, %v582_v60 }
 0x21b   :  { %v12902_v50 = vpop.permute.xlu0 %2247  ;;  %v1836_v31 = vpop.permute.xlu1 %1835 }
 0x21c   :  { %v10276_v59 = vpop.f32.mrb[0].mxu0  ;;  %17441 = vst [vmem:[#allocation12_spill] sm:$0xff] %v12902_v50 }
 0x21d   :  { %v729_v41 = vpop.f32.mrb[1].mxu0 }
 0x21e   :  { %v10277_v14 = vpop.f32.mrb[2].mxu0 }
 0x21f   :  { %v1072_v23 = vpack.c.bf16 %v10277_v14, %v10276_v59  ;;  %v732_v39 = vpop.f32.mrb[3].mxu0  ;;  %v1834_v40 = vpop.permute.xlu0 %1833 }
 0x220   :  { %v1071_v36 = vpack.c.bf16 %v732_v39, %v729_v41 }
 0x221   :  { %2239 = vrot.lane.b32.xlu1 %v1072_v23, %s12057_s24 }
 0x222   :  { %2237 = vrot.lane.b32.xlu0 %v1071_v36, %s12057_s24  ;;  %10350 = vmatprep.mubr.msk.bf16.mxu0 %vm1103_vm1, %v1071_v36  ;;  %v1393_v36 = vsel %vm1103_vm1, %v12889_v20, 0 }
 0x223   :  { %10351 = vmatmul.mubr.msk.bf16.vlgmr.msra.gmra.mrb[32].mxu0 %vm1103_vm1, %v1072_v23  ;;  %v12922_v48 = vpop.permute.xlu0 %2245  ;;  %v1840_v12 = vpop.permute.xlu1 %1839 }
 0x224   :  { %10375 = vmatpush3.bf16.xpose.msra.mxu0 %v1295_v16  ;;  %v10280_v62 = vpop.f32.mrb[4].mxu0 }
 0x225   :  { %11051 = vmatprep.subr.msk.bf16.mxu0 %vm1103_vm1, %v12846_v3  ;;  %v745_v51 = vpop.f32.mrb[5].mxu0 }
 0x226   :  { %v10281_v61 = vpop.f32.mrb[6].mxu0 }
 0x227   :  { %v12912_v5 = vpack.c.bf16 %v10281_v61, %v10280_v62  ;;  %v748_v43 = vpop.f32.mrb[7].mxu0  ;;  %v1838_v2 = vpop.permute.xlu0 %1837 }
 0x228   :  { %v12914_v22 = vpack.c.bf16 %v748_v43, %v745_v51  ;;  %v12968_v33 = vpop.permute.xlu1 %2251 }
 0x229   :  { %17445 = vst [vmem:[#allocation16_spill] sm:$0xff] %v12968_v33 }
 0x22a   :  { %10354 = vmatprep.mubr.msk.bf16.mxu0 %vm1103_vm1, %v12914_v22 }
 0x22b   :  { %10355 = vmatmul.mubr.msk.bf16.gmra.mrb[36].mxu0 %vm1103_vm1, %v12912_v5  ;;  %v12946_v15 = vpop.permute.xlu0 %2249 }
 0x22c   :  { %10377 = vmatpush3.bf16.xpose.msra.mxu0 %v1298_v21  ;;  %v10284_v10 = vpop.f32.mrb[8].mxu0  ;;  %17443 = vst [vmem:[#allocation14_spill] sm:$0xff] %v12946_v15  ;;  %v1929_v16 = vpop.permute.xlu1 %1928 }
 0x22d   :  { %v761_v32 = vpop.f32.mrb[9].mxu0  ;;  %11052 = vmatprep.subr.msk.bf16.mxu0 %vm1103_vm1, %v12862_v27 }
 0x22e   :  { %v10285_v54 = vpop.f32.mrb[10].mxu0 }
 0x22f   :  { %v12926_v47 = vpack.c.bf16 %v10285_v54, %v10284_v10  ;;  %v764_v37 = vpop.f32.mrb[11].mxu0  ;;  %v1927_v30 = vpop.permute.xlu0 %1926 }
 0x230   :  { %v12928_v13 = vpack.c.bf16 %v764_v37, %v761_v32  ;;  %v12988_v32 = vpop.permute.xlu1 %2356 }
 0x231   :  { %17450 = vst [vmem:[#allocation21_spill] sm:$0xff] %v12988_v32 }
 0x232   :  { %10366 = vmatprep.mubr.msk.bf16.mxu1 %vm1103_vm1, %v12928_v13 }
 0x233   :  { %10367 = vmatmul.mubr.msk.bf16.vlgmr.msra.gmra.mrb[32].mxu1 %vm1103_vm1, %v12926_v47 }
 0x234   :  { %10379 = vmatpush3.bf16.xpose.msra.mxu0 %v1301_v28  ;;  %v10288_v52 = vpop.f32.mrb[12].mxu0  ;;  %10391 = vmatpush3.bf16.xpose.msra.mxu1 %v1384_v19  ;;  %v1931_v60 = vpop.permute.xlu0 %1930 }
 0x235   :  { %11053 = vmatprep.subr.msk.bf16.mxu0 %vm1103_vm1, %v12860_v38  ;;  %v777_v44 = vpop.f32.mrb[13].mxu0  ;;  %11055 = vmatprep.subr.msk.bf16.mxu1 %vm1103_vm1, %v12871_v0  ;;  %v12997_v37 = vpop.permute.xlu1 %2354 }
 0x236   :  { %v10289_v56 = vpop.f32.mrb[14].mxu0  ;;  %17451 = vst [vmem:[#allocation22_spill] sm:$0xff] %v12997_v37 }
 0x237   :  { %v12942_v9 = vpack.c.bf16 %v10289_v56, %v10288_v52  ;;  %v780_v63 = vpop.f32.mrb[15].mxu0 }
 0x238   :  { %v12944_v4 = vpack.c.bf16 %v780_v63, %v777_v44 }
 0x239   :  { %v1933_v28 = vpop.permute.xlu1 %1932 }
 0x23a   :  { %17442 = vst [vmem:[#allocation13_spill] sm:$0xff] %v12944_v4  ;;  %10370 = vmatprep.mubr.msk.bf16.mxu1 %vm1103_vm1, %v12944_v4 }
 0x23b   :  { %10371 = vmatmul.mubr.msk.bf16.gmra.mrb[36].mxu1 %vm1103_vm1, %v12942_v9  ;;  %v12980_v62 = vpop.permute.xlu0 %2021 }
 0x23c   :  { %10381 = vmatpush3.bf16.xpose.msra.mxu0 %v1304_v18  ;;  %v10292_v1 = vpop.f32.mrb[16].mxu0  ;;  %10393 = vmatpush3.bf16.xpose.msra.mxu1 %v1387_v6 }
 0x23d   :  { %v793_v45 = vpop.f32.mrb[17].mxu0  ;;  %11056 = vmatprep.subr.msk.bf16.mxu1 %vm1103_vm1, %v12892_v17  ;;  %10406 = vmatprep.subr.bf16.mxu0 %v1834_v40 }
 0x23e   :  { %v10293_v34 = vpop.f32.mrb[18].mxu0 }
 0x23f   :  { %v12958_v29 = vpack.c.bf16 %v10293_v34, %v10292_v1  ;;  %v796_v46 = vpop.f32.mrb[19].mxu0  ;;  %v12990_v54 = vpop.permute.xlu0 %2019 }
 0x240   :  { %v12960_v35 = vpack.c.bf16 %v796_v46, %v793_v45 }
 0x242   :  { %17444 = vst [vmem:[#allocation15_spill] sm:$0xff] %v12960_v35  ;;  %10382 = vmatprep.mubr.msk.bf16.mxu0 %vm1103_vm1, %v12960_v35 }
 0x243   :  { %10383 = vmatmul.mubr.msk.bf16.vlgmr.msra.gmra.mrb[40].mxu0 %vm1103_vm1, %v12958_v29 }
 0x244   :  { %v10296_v58 = vpop.f32.mrb[20].mxu0  ;;  %10395 = vmatpush3.bf16.xpose.msra.mxu1 %v1390_v49  ;;  %10407 = vmatpush3.bf16.msra.mxu0 %v1834_v40 }
 0x245   :  { %v809_v59 = vpop.f32.mrb[21].mxu0  ;;  %11057 = vmatprep.subr.msk.bf16.mxu1 %vm1103_vm1, %v12889_v20  ;;  %10408 = vmatprep.subr.bf16.mxu0 %v1836_v31 }
 0x246   :  { %v10297_v41 = vpop.f32.mrb[22].mxu0 }
 0x247   :  { %v12972_v14 = vpack.c.bf16 %v10297_v41, %v10296_v58  ;;  %v812_v23 = vpop.f32.mrb[23].mxu0 }
 0x248   :  { %v12974_v39 = vpack.c.bf16 %v812_v23, %v809_v59  ;;  %10409 = vmatpush3.bf16.msra.mxu0 %v1836_v31 }
 0x249   :  { %17446 = vst [vmem:[#allocation17_spill] sm:$0xff] %v12972_v14  ;;  %10410 = vmatprep.subr.bf16.mxu0 %v1838_v2 }
 0x24a   :  { %17447 = vst [vmem:[#allocation18_spill] sm:$0xff] %v12974_v39  ;;  %10386 = vmatprep.mubr.msk.bf16.mxu0 %vm1103_vm1, %v12974_v39 }
 0x24b   :  { %10387 = vmatmul.mubr.msk.bf16.gmra.mrb[44].mxu0 %vm1103_vm1, %v12972_v14 }
 0x24c   :  { %v10300_v51 = vpop.f32.mrb[24].mxu0  ;;  %10397 = vmatpush3.bf16.xpose.msra.mxu1 %v1393_v36  ;;  %10411 = vmatpush3.bf16.msra.mxu0 %v1838_v2  ;;  %v12999_v19 = vpop.permute.xlu0 %2112 }
 0x24d   :  { %v825_v61 = vpop.f32.mrb[25].mxu0  ;;  %10412 = vmatprep.subr.bf16.mxu0 %v1840_v12  ;;  %10422 = vmatprep.subr.bf16.mxu1 %v1927_v30 }
 0x24e   :  { %v10301_v40 = vpop.f32.mrb[26].mxu0 }
 0x24f   :  { %v12984_v43 = vpack.c.bf16 %v10301_v40, %v10300_v51  ;;  %v828_v21 = vpop.f32.mrb[27].mxu0 }
 0x250   :  { %v12986_v10 = vpack.c.bf16 %v828_v21, %v825_v61  ;;  %10413 = vmatpush3.bf16.msra.mxu0 %v1840_v12 }
 0x251   :  { %17448 = vst [vmem:[#allocation19_spill] sm:$0xff] %v12984_v43  ;;  %10438 = vmatprep.subr.bf16.mxu0 %v12990_v54 }
 0x252   :  { %17449 = vst [vmem:[#allocation20_spill] sm:$0xff] %v12986_v10  ;;  %10398 = vmatprep.mubr.msk.bf16.mxu1 %vm1103_vm1, %v12986_v10 }
 0x253   :  { %10399 = vmatmul.mubr.msk.bf16.vlgmr.msra.gmra.mrb[40].mxu1 %vm1103_vm1, %v12984_v43 }
 0x254   :  { %10423 = vmatpush3.bf16.msra.mxu1 %v1927_v30 }
 0x255   :  { %10424 = vmatprep.subr.bf16.mxu1 %v1929_v16 }
 0x258   :  { %10425 = vmatpush3.bf16.msra.mxu1 %v1929_v16 }
 0x259   :  { %10426 = vmatprep.subr.bf16.mxu1 %v1931_v60 }
 0x25c   :  { %10427 = vmatpush3.bf16.msra.mxu1 %v1931_v60 }
 0x25d   :  { %10428 = vmatprep.subr.bf16.mxu1 %v1933_v28 }
 0x260   :  { %10429 = vmatpush3.bf16.msra.mxu1 %v1933_v28 }
 0x261   :  { %10454 = vmatprep.subr.bf16.mxu1 %v12999_v19 }
 0x2b9   :  { %v10304_v2 = vpop.f32.mrb[28].mxu0 }
 0x2ba   :  { %v841_v52 = vpop.f32.mrb[29].mxu0 }
 0x2bb   :  { %v10305_v44 = vpop.f32.mrb[30].mxu0 }
 0x2bc   :  { %v13002_v56 = vpack.c.bf16 %v10305_v44, %v10304_v2  ;;  %v844_v63 = vpop.f32.mrb[31].mxu0 }
 0x2bd   :  { %v13004_v31 = vpack.c.bf16 %v844_v63, %v841_v52 }
 0x2be   :  { %17452 = vst [vmem:[#allocation23_spill] sm:$0xff] %v13002_v56 }
 0x2bf   :  { %17453 = vst [vmem:[#allocation24_spill] sm:$0xff] %v13004_v31  ;;  %10402 = vmatprep.mubr.msk.bf16.mxu1 %vm1103_vm1, %v13004_v31  ;;  %v13132_v31 = vpop.permute.xlu0 %2118 }
 0x2c0   :  { %10403 = vmatmul.mubr.msk.bf16.gmra.mrb[44].mxu1 %vm1103_vm1, %v13002_v56 }
 0x2c3   :  { %v13136_v57 = vpop.permute.xlu0 %2237 }
 0x2c4   :  { %17454 = vst [vmem:[#allocation25_spill] sm:$0xff] %v13136_v57 }
 0x2f6   :  { %v13010_v6 = vpop.f32.mrb[32].mxu0 }
 0x2f7   :  { %v13012_v18 = vpop.f32.mrb[33].mxu0  ;;  %v1467_v1 = vsel %vm1460_vm2, %v13010_v6, -inf }
 0x2f8   :  { %1468 = vmax.xlane.f32.xlu0 %v1467_v1  ;;  %v13016_v45 = vpop.f32.mrb[34].mxu0  ;;  %v1461_v30 = vsel %vm1460_vm2, %v13012_v18, -inf }
 0x2f9   :  { %v13018_v12 = vpop.f32.mrb[35].mxu0  ;;  %v1470_v34 = vsel %vm1460_vm2, %v13016_v45, -inf }
 0x2fa   :  { %1471 = vmax.xlane.f32.xlu1 %v1470_v34  ;;  %v1464_v46 = vsel %vm1460_vm2, %v13018_v12, -inf }
 0x2fc   :  { %1462 = vmax.xlane.f32.xlu0 %v1461_v30 }
 0x2fe   :  { %1465 = vmax.xlane.f32.xlu1 %v1464_v46  ;;  %v13026_v49 = vpop.f32.mrb[36].mxu0 }
 0x2ff   :  { %v13028_v58 = vpop.f32.mrb[37].mxu0  ;;  %v1479_v60 = vsel %vm1460_vm2, %v13026_v49, -inf }
 0x300   :  { %1480 = vmax.xlane.f32.xlu0 %v1479_v60  ;;  %v13032_v59 = vpop.f32.mrb[38].mxu0  ;;  %v1473_v36 = vsel %vm1460_vm2, %v13028_v58, -inf }
 0x301   :  { %v13034_v41 = vpop.f32.mrb[39].mxu0  ;;  %v1482_v23 = vsel %vm1460_vm2, %v13032_v59, -inf }
 0x302   :  { %1483 = vmax.xlane.f32.xlu1 %v1482_v23  ;;  %v1476_v16 = vsel %vm1460_vm2, %v13034_v41, -inf }
 0x304   :  { %1474 = vmax.xlane.f32.xlu0 %v1473_v36 }
 0x306   :  { %v13042_v51 = vpop.f32.mrb[32].mxu1  ;;  %1477 = vmax.xlane.f32.xlu1 %v1476_v16 }
 0x307   :  { %v13044_v61 = vpop.f32.mrb[33].mxu1  ;;  %v1491_v40 = vsel %vm1460_vm2, %v13042_v51, -inf }
 0x308   :  { %v13048_v21 = vpop.f32.mrb[34].mxu1  ;;  %1492 = vmax.xlane.f32.xlu0 %v1491_v40  ;;  %v1485_v52 = vsel %vm1460_vm2, %v13044_v61, -inf }
 0x309   :  { %v13050_v28 = vpop.f32.mrb[35].mxu1  ;;  %v1494_v2 = vsel %vm1460_vm2, %v13048_v21, -inf }
 0x30a   :  { %1495 = vmax.xlane.f32.xlu1 %v1494_v2  ;;  %v1488_v44 = vsel %vm1460_vm2, %v13050_v28, -inf }
 0x30c   :  { %1486 = vmax.xlane.f32.xlu0 %v1485_v52 }
 0x30e   :  { %v13058_v63 = vpop.f32.mrb[36].mxu1  ;;  %1489 = vmax.xlane.f32.xlu1 %v1488_v44 }
 0x30f   :  { %v13060_v1 = vpop.f32.mrb[37].mxu1  ;;  %v1503_v34 = vsel %vm1460_vm2, %v13058_v63, -inf }
 0x310   :  { %v13064_v30 = vpop.f32.mrb[38].mxu1  ;;  %1504 = vmax.xlane.f32.xlu0 %v1503_v34  ;;  %v1497_v23 = vsel %vm1460_vm2, %v13060_v1, -inf }
 0x311   :  { %v13066_v46 = vpop.f32.mrb[39].mxu1  ;;  %v1506_v60 = vsel %vm1460_vm2, %v13064_v30, -inf }
 0x312   :  { %1507 = vmax.xlane.f32.xlu1 %v1506_v60  ;;  %v1500_v36 = vsel %vm1460_vm2, %v13066_v46, -inf }
 0x314   :  { %1498 = vmax.xlane.f32.xlu0 %v1497_v23 }
 0x316   :  { %1501 = vmax.xlane.f32.xlu1 %v1500_v36  ;;  %v13074_v16 = vpop.f32.mrb[40].mxu0 }
 0x317   :  { %v13076_v40 = vpop.f32.mrb[41].mxu0  ;;  %v1515_v2 = vsel %vm1460_vm2, %v13074_v16, -inf }
 0x318   :  { %1516 = vmax.xlane.f32.xlu0 %v1515_v2  ;;  %v13080_v52 = vpop.f32.mrb[42].mxu0  ;;  %v1509_v34 = vsel %vm1460_vm2, %v13076_v40, -inf }
 0x319   :  { %v13082_v44 = vpop.f32.mrb[43].mxu0 }
 0x31a   :  { %v1512_v7 = vsel %vm1460_vm2, %v13082_v44, -inf }
 0x31c   :  { %1510 = vmax.xlane.f32.xlu0 %v1509_v34  ;;  %v1518_v34 = vsel %vm1460_vm2, %v13080_v52, -inf }
 0x31e   :  { %v13086_v60 = vpop.f32.mrb[44].mxu0 }
 0x31f   :  { %v13088_v23 = vpop.f32.mrb[45].mxu0  ;;  %v1527_v26 = vsel %vm1460_vm2, %v13086_v60, -inf }
 0x320   :  { %v13090_v36 = vpop.f32.mrb[46].mxu0  ;;  %v1521_v42 = vsel %vm1460_vm2, %v13088_v23, -inf }
 0x321   :  { %v13092_v32 = vpop.f32.mrb[47].mxu0 }
 0x326   :  { %v13094_v33 = vpop.f32.mrb[40].mxu1 }
 0x327   :  { %v13096_v15 = vpop.f32.mrb[41].mxu1  ;;  %2243 = vrot.lane.b32.xlu1 %v12912_v5, %s12057_s24  ;;  %v1530_v5 = vsel %vm1460_vm2, %v13090_v36, -inf }
 0x328   :  { %v13100_v2 = vpop.f32.mrb[42].mxu1 }
 0x329   :  { %v13102_v50 = vpop.f32.mrb[43].mxu1 }
 0x332   :  { %2241 = vrot.lane.b32.xlu0 %v12914_v22, %s12057_s24  ;;  %v1524_v22 = vsel %vm1460_vm2, %v13092_v32, -inf }
 0x34b   :  { %1519 = vmax.xlane.f32.xlu1 %v1518_v34  ;;  %v1539_v34 = vsel %vm1460_vm2, %v13094_v33, -inf }
 0x34f   :  { %1513 = vmax.xlane.f32.xlu1 %v1512_v7  ;;  %v1542_v7 = vsel %vm1460_vm2, %v13100_v2, -inf }
 0x351   :  { %1528 = vmax.xlane.f32.xlu0 %v1527_v26  ;;  %v1533_v26 = vsel %vm1460_vm2, %v13096_v15, -inf }
 0x353   :  { %1531 = vmax.xlane.f32.xlu1 %v1530_v5  ;;  %v1536_v5 = vsel %vm1460_vm2, %v13102_v50, -inf }
 0x355   :  { %1522 = vmax.xlane.f32.xlu0 %v1521_v42  ;;  %v13126_v42 = vpop.permute.xlu1 %2025 }
 0x357   :  { %1525 = vmax.xlane.f32.xlu1 %v1524_v22 }
 0x359   :  { %1540 = vmax.xlane.f32.xlu0 %v1539_v34  ;;  %v13128_v53 = vpop.permute.xlu1 %2023 }
 0x35b   :  { %1543 = vmax.xlane.f32.xlu1 %v1542_v7 }
 0x35d   :  { %1534 = vmax.xlane.f32.xlu0 %v1533_v26  ;;  %v13130_v22 = vpop.permute.xlu1 %2114 }
 0x35f   :  { %1537 = vmax.xlane.f32.xlu1 %v1536_v5 }
 0x361   :  { %v13134_v34 = vpop.permute.xlu1 %2116 }
 0x365   :  { %v13138_v7 = vpop.permute.xlu1 %2239 }
 0x366   :  { %17455 = vst [vmem:[#allocation26_spill] sm:$0xff] %v13138_v7 }
 0x385   :  { %v1469_v10 = vpop.xlane.xlu0 %1468 }
 0x386   :  { %v1559_v26 = vsub.f32 %v13010_v6, %v1469_v10 }
 0x387   :  { %v1472_v55 = vpop.xlane.xlu1 %1471 }
 0x388   :  { %v1560_v5 = vsub.f32 %v13016_v45, %v1472_v55  ;;  %v1593_v56 = vmul.f32 1.442695, %v1559_v26 }
 0x389   :  { %v1463_v14 = vpop.xlane.xlu0 %1462 }
 0x38a   :  { %v1557_v17 = vsub.f32 %v13012_v18, %v1463_v14  ;;  %v1595_v35 = vmul.f32 1.442695, %v1560_v5  ;;  %11192 = vpow2.f32 %v1593_v56 }
 0x38b   :  { %v1466_v43 = vpop.xlane.xlu1 %1465 }
 0x38c   :  { %v1558_v20 = vsub.f32 %v13018_v12, %v1466_v43  ;;  %v1589_v39 = vmul.f32 1.442695, %v1557_v17  ;;  %11194 = vpow2.f32 %v1595_v35 }
 0x38d   :  { %v1481_v38 = vpop.xlane.xlu0 %1480 }
 0x38e   :  { %v1591_v7 = vmul.f32 1.442695, %v1558_v20  ;;  %v1563_v37 = vsub.f32 %v13026_v49, %v1481_v38  ;;  %11196 = vpow2.f32 %v1589_v39 }
 0x38f   :  { %v1484_v57 = vpop.xlane.xlu1 %1483 }
 0x390   :  { %11198 = vpow2.f32 %v1591_v7  ;;  %v1601_v17 = vmul.f32 1.442695, %v1563_v37  ;;  %v1564_v35 = vsub.f32 %v13032_v59, %v1484_v57 }
 0x391   :  { %v1475_v10 = vpop.xlane.xlu0 %1474 }
 0x392   :  { %v1561_v6 = vsub.f32 %v13028_v58, %v1475_v10  ;;  %v1603_v57 = vmul.f32 1.442695, %v1564_v35 }
 0x393   :  { %v1478_v55 = vpop.xlane.xlu1 %1477  ;;  %v13146_v45 = vpop.f32.mrb[44].mxu1 }
 0x394   :  { %v1597_v14 = vmul.f32 1.442695, %v1561_v6  ;;  %v13148_v18 = vpop.f32.mrb[45].mxu1  ;;  %v1551_v43 = vsel %vm1460_vm2, %v13146_v45, -inf  ;;  %v13162_v7 = vpop.eup %11192  ;;  %v1562_v59 = vsub.f32 %v13034_v41, %v1478_v55 }
 0x395   :  { %1552 = vmax.xlane.f32.xlu0 %v1551_v43  ;;  %v13153_v20 = vpop.f32.mrb[46].mxu1  ;;  %v1493_v38 = vpop.xlane.xlu0 %1492  ;;  %v1545_v37 = vsel %vm1460_vm2, %v13148_v18, -inf }
 0x396   :  { %v1567_v56 = vsub.f32 %v13042_v51, %v1493_v38  ;;  %v13156_v39 = vpop.f32.mrb[47].mxu1  ;;  %v1554_v12 = vsel %vm1460_vm2, %v13153_v20, -inf  ;;  %11200 = vpow2.f32 %v1597_v14  ;;  %v13168_v10 = vpop.eup %11194  ;;  %v1599_v41 = vmul.f32 1.442695, %v1562_v59 }
 0x397   :  { %v1496_v49 = vpop.xlane.xlu1 %1495  ;;  %1555 = vmax.xlane.f32.xlu1 %v1554_v12  ;;  %11202 = vpow2.f32 %v1601_v17  ;;  %v1548_v5 = vsel %vm1460_vm2, %v13156_v39, -inf  ;;  %v1659_v17 = vsel %vm1460_vm2, %v13162_v7, 0.0  ;;  %v1662_v38 = vsel %vm1460_vm2, %v13168_v10, 0.0 }
 0x398   :  { %v1609_v58 = vmul.f32 1.442695, %v1567_v56  ;;  %v1568_v6 = vsub.f32 %v13048_v21, %v1496_v49  ;;  %v13173_v35 = vpop.eup %11196 }
 0x399   :  { %1546 = vmax.xlane.f32.xlu0 %v1545_v37  ;;  %v1487_v51 = vpop.xlane.xlu0 %1486  ;;  %v1653_v49 = vsel %vm1460_vm2, %v13173_v35, 0.0 }
 0x39a   :  { %v1565_v26 = vsub.f32 %v13044_v61, %v1487_v51  ;;  %11204 = vpow2.f32 %v1609_v58  ;;  %v13178_v56 = vpop.eup %11198  ;;  %v1611_v21 = vmul.f32 1.442695, %v1568_v6 }
 0x39b   :  { %v1490_v14 = vpop.xlane.xlu1 %1489  ;;  %1549 = vmax.xlane.f32.xlu1 %v1548_v5  ;;  %11206 = vpow2.f32 %v1603_v57  ;;  %v1656_v51 = vsel %vm1460_vm2, %v13178_v56, 0.0 }
 0x39c   :  { %v1605_v43 = vmul.f32 1.442695, %v1565_v26  ;;  %v1566_v61 = vsub.f32 %v13050_v28, %v1490_v14 }
 0x39d   :  { %1660 = vadd.xlane.f32.xlu0 %v1659_v17  ;;  %v1505_v55 = vpop.xlane.xlu0 %1504 }
 0x39e   :  { %11208 = vpow2.f32 %v1605_v43  ;;  %v1607_v37 = vmul.f32 1.442695, %v1566_v61  ;;  %v1571_v28 = vsub.f32 %v13058_v63, %v1505_v55 }
 0x39f   :  { %v1508_v12 = vpop.xlane.xlu1 %1507  ;;  %1663 = vadd.xlane.f32.xlu1 %v1662_v38  ;;  %11210 = vpow2.f32 %v1599_v41 }
 0x3a0   :  { %v13182_v58 = vpop.eup %11200  ;;  %11212 = vpow2.f32 %v1611_v21  ;;  %v1617_v63 = vmul.f32 1.442695, %v1571_v28 }
 0x3a1   :  { %1654 = vadd.xlane.f32.xlu0 %v1653_v49  ;;  %v1499_v57 = vpop.xlane.xlu0 %1498  ;;  %v13188_v26 = vpop.eup %11202  ;;  %v1665_v43 = vsel %vm1460_vm2, %v13182_v58, 0.0  ;;  %11214 = vpow2.f32 %v1607_v37 }
 0x3a2   :  { %v1569_v59 = vsub.f32 %v13060_v1, %v1499_v57  ;;  %v1572_v1 = vsub.f32 %v13064_v30, %v1508_v12  ;;  %v1671_v61 = vsel %vm1460_vm2, %v13188_v26, 0.0 }
 0x3a3   :  { %v1502_v5 = vpop.xlane.xlu1 %1501  ;;  %1657 = vadd.xlane.f32.xlu1 %v1656_v51 }
 0x3a4   :  { %v1613_v6 = vmul.f32 1.442695, %v1569_v59  ;;  %v1570_v14 = vsub.f32 %v13066_v46, %v1502_v5  ;;  %v13193_v17 = vpop.eup %11204  ;;  %v1619_v49 = vmul.f32 1.442695, %v1572_v1 }
 0x3a5   :  { %1666 = vadd.xlane.f32.xlu0 %v1665_v43  ;;  %v1517_v41 = vpop.xlane.xlu0 %1516  ;;  %v13198_v55 = vpop.eup %11206  ;;  %v1683_v46 = vsel %vm1460_vm2, %v13193_v17, 0.0 }
 0x3a6   :  { %11216 = vpow2.f32 %v1613_v6  ;;  %v1615_v38 = vmul.f32 1.442695, %v1570_v14  ;;  %v1575_v37 = vsub.f32 %v13074_v16, %v1517_v41  ;;  %v1674_v28 = vsel %vm1460_vm2, %v13198_v55, 0.0 }
 0x3a7   :  { %1672 = vadd.xlane.f32.xlu1 %v1671_v61  ;;  %11218 = vpow2.f32 %v1617_v63 }
 0x3a8   :  { %v13202_v21 = vpop.eup %11208  ;;  %11220 = vpow2.f32 %v1615_v38  ;;  %v1625_v6 = vmul.f32 1.442695, %v1575_v37 }
 0x3a9   :  { %1684 = vadd.xlane.f32.xlu0 %v1683_v46  ;;  %v1511_v30 = vpop.xlane.xlu0 %1510  ;;  %v13208_v57 = vpop.eup %11210  ;;  %v1677_v51 = vsel %vm1460_vm2, %v13202_v21, 0.0  ;;  %11222 = vpow2.f32 %v1619_v49 }
 0x3aa   :  { %v1573_v12 = vsub.f32 %v13076_v40, %v1511_v30  ;;  %v13212_v5 = vpop.eup %11212  ;;  %v1668_v16 = vsel %vm1460_vm2, %v13208_v57, 0.0 }
 0x3ab   :  { %1675 = vadd.xlane.f32.xlu1 %v1674_v28  ;;  %v13216_v40 = vpop.eup %11214  ;;  %v1686_v14 = vsel %vm1460_vm2, %v13212_v5, 0.0 }
 0x3ac   :  { %v1621_v59 = vmul.f32 1.442695, %v1573_v12  ;;  %v1680_v63 = vsel %vm1460_vm2, %v13216_v40, 0.0 }
 0x3ad   :  { %1678 = vadd.xlane.f32.xlu0 %v1677_v51  ;;  %v13246_v51 = vpop.permute.xlu1 %2243 }
 0x3ae   :  { %11224 = vpow2.f32 %v1621_v59  ;;  %17458 = vst [vmem:[#allocation29_spill] sm:$0xff] %v13246_v51 }
 0x3af   :  { %1669 = vadd.xlane.f32.xlu1 %v1668_v16  ;;  %11226 = vpow2.f32 %v1625_v6 }
 0x3b0   :  { %v13220_v43 = vpop.eup %11216 }
 0x3b1   :  { %1687 = vadd.xlane.f32.xlu0 %v1686_v14  ;;  %v13224_v1 = vpop.eup %11218  ;;  %v1689_v41 = vsel %vm1460_vm2, %v13220_v43, 0.0  ;;  %v13249_v14 = vpop.permute.xlu0 %2241 }
 0x3b2   :  { %v13228_v61 = vpop.eup %11220  ;;  %v1695_v38 = vsel %vm1460_vm2, %v13224_v1, 0.0  ;;  %17459 = vst [vmem:[#allocation30_spill] sm:$0xff] %v13249_v14 }
 0x3b3   :  { %1681 = vadd.xlane.f32.xlu1 %v1680_v63  ;;  %v13232_v46 = vpop.eup %11222  ;;  %v1692_v49 = vsel %vm1460_vm2, %v13228_v61, 0.0 }
 0x3b4   :  { %v1698_v30 = vsel %vm1460_vm2, %v13232_v46, 0.0 }
 0x3b5   :  { %1690 = vadd.xlane.f32.xlu0 %v1689_v41 }
 0x3b7   :  { %1696 = vadd.xlane.f32.xlu1 %v1695_v38 }
 0x3b8   :  { %v13236_v37 = vpop.eup %11224 }
 0x3b9   :  { %17456 = vst [vmem:[#allocation27_spill] sm:$0xff] %v13236_v37  ;;  %1693 = vadd.xlane.f32.xlu0 %v1692_v49  ;;  %v13240_v12 = vpop.eup %11226  ;;  %v1701_v28 = vsel %vm1460_vm2, %v13236_v37, 0.0 }
 0x3ba   :  { %17457 = vst [vmem:[#allocation28_spill] sm:$0xff] %v13240_v12  ;;  %v1707_v59 = vsel %vm1460_vm2, %v13240_v12, 0.0 }
 0x3bb   :  { %1699 = vadd.xlane.f32.xlu1 %v1698_v30 }
 0x3bd   :  { %1702 = vadd.xlane.f32.xlu0 %v1701_v28 }
 0x3bf   :  { %1708 = vadd.xlane.f32.xlu1 %v1707_v59 }
 0x3d8   :  { %v1520_v6 = vpop.xlane.xlu1 %1519 }
 0x3d9   :  { %v1576_v16 = vsub.f32 %v13080_v52, %v1520_v6 }
 0x3db   :  { %v1627_v63 = vmul.f32 1.442695, %v1576_v16 }
 0x3dc   :  { %v1514_v41 = vpop.xlane.xlu1 %1513 }
 0x3dd   :  { %11228 = vpow2.f32 %v1627_v63  ;;  %v1574_v38 = vsub.f32 %v13082_v44, %v1514_v41 }
 0x3de   :  { %v1529_v49 = vpop.xlane.xlu0 %1528 }
 0x3df   :  { %v1623_v30 = vmul.f32 1.442695, %v1574_v38  ;;  %v1579_v28 = vsub.f32 %v13086_v60, %v1529_v49 }
 0x3e0   :  { %v1532_v37 = vpop.xlane.xlu1 %1531 }
 0x3e1   :  { %11230 = vpow2.f32 %v1623_v30  ;;  %v1633_v12 = vmul.f32 1.442695, %v1579_v28  ;;  %v1580_v59 = vsub.f32 %v13090_v36, %v1532_v37 }
 0x3e2   :  { %v1523_v51 = vpop.xlane.xlu0 %1522 }
 0x3e3   :  { %11232 = vpow2.f32 %v1633_v12  ;;  %v1635_v4 = vmul.f32 1.442695, %v1580_v59  ;;  %v1577_v52 = vsub.f32 %v13088_v23, %v1523_v51 }
 0x3e4   :  { %v1526_v6 = vpop.xlane.xlu1 %1525 }
 0x3e5   :  { %11234 = vpow2.f32 %v1635_v4  ;;  %v1629_v16 = vmul.f32 1.442695, %v1577_v52  ;;  %v1578_v63 = vsub.f32 %v13092_v32, %v1526_v6 }
 0x3e6   :  { %v1541_v44 = vpop.xlane.xlu0 %1540 }
 0x3e7   :  { %v13256_v41 = vpop.eup %11228  ;;  %11236 = vpow2.f32 %v1629_v16  ;;  %v1631_v60 = vmul.f32 1.442695, %v1578_v63  ;;  %v1583_v38 = vsub.f32 %v13094_v33, %v1541_v44 }
 0x3e8   :  { %v1544_v49 = vpop.xlane.xlu1 %1543  ;;  %v1710_v36 = vsel %vm1460_vm2, %v13256_v41, 0.0 }
 0x3e9   :  { %11238 = vpow2.f32 %v1631_v60  ;;  %v1641_v37 = vmul.f32 1.442695, %v1583_v38  ;;  %1711 = vadd.xlane.f32.xlu1 %v1710_v36  ;;  %v1584_v4 = vsub.f32 %v13100_v2, %v1544_v49 }
 0x3ea   :  { %v1535_v23 = vpop.xlane.xlu0 %1534 }
 0x3eb   :  { %v13261_v12 = vpop.eup %11230  ;;  %11240 = vpow2.f32 %v1641_v37  ;;  %v1581_v32 = vsub.f32 %v13096_v15, %v1535_v23  ;;  %v1643_v16 = vmul.f32 1.442695, %v1584_v4 }
 0x3ec   :  { %v1538_v51 = vpop.xlane.xlu1 %1537  ;;  %v1704_v30 = vsel %vm1460_vm2, %v13261_v12, 0.0 }
 0x3ed   :  { %v13267_v33 = vpop.eup %11232  ;;  %v1637_v28 = vmul.f32 1.442695, %v1581_v32  ;;  %v1582_v59 = vsub.f32 %v13102_v50, %v1538_v51  ;;  %1705 = vadd.xlane.f32.xlu1 %v1704_v30 }
 0x3ee   :  { %v1719_v52 = vsel %vm1460_vm2, %v13267_v33, 0.0 }
 0x3ef   :  { %v13272_v6 = vpop.eup %11234  ;;  %11242 = vpow2.f32 %v1637_v28  ;;  %v1639_v2 = vmul.f32 1.442695, %v1582_v59  ;;  %1720 = vadd.xlane.f32.xlu0 %v1719_v52 }
 0x3f0   :  { %v1722_v15 = vsel %vm1460_vm2, %v13272_v6, 0.0 }
 0x3f1   :  { %v13276_v63 = vpop.eup %11236  ;;  %11244 = vpow2.f32 %v1639_v2  ;;  %1723 = vadd.xlane.f32.xlu1 %v1722_v15 }
 0x3f2   :  { %v1713_v50 = vsel %vm1460_vm2, %v13276_v63, 0.0  ;;  %11246 = vpow2.f32 %v1643_v16 }
 0x3f3   :  { %v13280_v44 = vpop.eup %11238  ;;  %1714 = vadd.xlane.f32.xlu0 %v1713_v50 }
 0x3f4   :  { %v1716_v60 = vsel %vm1460_vm2, %v13280_v44, 0.0 }
 0x3f5   :  { %v13284_v38 = vpop.eup %11240  ;;  %1717 = vadd.xlane.f32.xlu1 %v1716_v60 }
 0x3f6   :  { %v1731_v49 = vsel %vm1460_vm2, %v13284_v38, 0.0 }
 0x3f9   :  { %v13288_v36 = vpop.eup %11242  ;;  %1732 = vadd.xlane.f32.xlu1 %v1731_v49 }
 0x3fa   :  { %v1725_v4 = vsel %vm1460_vm2, %v13288_v36, 0.0 }
 0x3fb   :  { %v13290_v37 = vpop.eup %11244 }
 0x3fc   :  { %v1728_v23 = vsel %vm1460_vm2, %v13290_v37, 0.0  ;;  %v13296_v32 = vpop.eup %11246 }
 0x3fd   :  { %1729 = vadd.xlane.f32.xlu0 %v1728_v23  ;;  %1726 = vadd.xlane.f32.xlu1 %v1725_v4  ;;  %v1734_v51 = vsel %vm1460_vm2, %v13296_v32, 0.0 }
 0x401   :  { %1735 = vadd.xlane.f32.xlu1 %v1734_v51 }
 0x412   :  { %2463 = vrot.lane.b32.xlu1 %v12848_v11, %s12057_s24 }
 0x413   :  { %2358 = vrot.lane.b32.xlu0 %v12832_v25, %s12057_s24 }
 0x416   :  { %2465 = vrot.lane.b32.xlu1 %v12846_v3, %s12057_s24 }
 0x422   :  { %v1553_v30 = vpop.xlane.xlu0 %1552 }
 0x423   :  { %v1587_v28 = vsub.f32 %v13146_v45, %v1553_v30 }
 0x424   :  { %v1556_v59 = vpop.xlane.xlu1 %1555 }
 0x425   :  { %v1649_v52 = vmul.f32 1.442695, %v1587_v28  ;;  %v1588_v16 = vsub.f32 %v13153_v20, %v1556_v59 }
 0x426   :  { %v1547_v2 = vpop.xlane.xlu0 %1546 }
 0x427   :  { %11248 = vpow2.f32 %v1649_v52  ;;  %v1585_v15 = vsub.f32 %v13148_v18, %v1547_v2  ;;  %v1651_v50 = vmul.f32 1.442695, %v1588_v16 }
 0x428   :  { %v1550_v60 = vpop.xlane.xlu1 %1549 }
 0x429   :  { %v1645_v49 = vmul.f32 1.442695, %v1585_v15  ;;  %v1586_v23 = vsub.f32 %v13156_v39, %v1550_v60 }
 0x42a   :  { %v1661_v4 = vpop.xlane.xlu0 %1660 }
 0x42b   :  { %11250 = vpow2.f32 %v1645_v49  ;;  %v1647_v51 = vmul.f32 1.442695, %v1586_v23 }
 0x42c   :  { %11252 = vpow2.f32 %v1651_v50  ;;  %v1664_v14 = vpop.xlane.xlu1 %1663 }
 0x42d   :  { %11254 = vpow2.f32 %v1647_v51 }
 0x42e   :  { %11256 = vrcp.f32 %v1664_v14  ;;  %v1655_v45 = vpop.xlane.xlu0 %1654 }
 0x42f   :  { %11258 = vrcp.f32 %v1655_v45 }
 0x430   :  { %11260 = vrcp.f32 %v1661_v4  ;;  %v1658_v20 = vpop.xlane.xlu1 %1657 }
 0x431   :  { %v13310_v30 = vpop.eup %11248  ;;  %11262 = vrcp.f32 %v1658_v20 }
 0x432   :  { %17460 = vst [vmem:[#allocation31_spill] sm:$0xff] %v13310_v30  ;;  %v1667_v18 = vpop.xlane.xlu0 %1666  ;;  %v1743_v28 = vsel %vm1460_vm2, %v13310_v30, 0.0 }
 0x433   :  { %1744 = vadd.xlane.f32.xlu0 %v1743_v28 }
 0x434   :  { %v1673_v39 = vpop.xlane.xlu1 %1672 }
 0x435   :  { %v13314_v59 = vpop.eup %11250 }
 0x436   :  { %17461 = vst [vmem:[#allocation32_spill] sm:$0xff] %v13314_v59  ;;  %v13316_v52 = vpop.eup %11252  ;;  %v1685_v16 = vpop.xlane.xlu0 %1684  ;;  %v1737_v14 = vsel %vm1460_vm2, %v13314_v59, 0.0 }
 0x437   :  { %17462 = vst [vmem:[#allocation33_spill] sm:$0xff] %v13316_v52  ;;  %v13320_v2 = vpop.eup %11254  ;;  %1738 = vadd.xlane.f32.xlu0 %v1737_v14  ;;  %v1746_v51 = vsel %vm1460_vm2, %v13316_v52, 0.0 }
 0x438   :  { %17463 = vst [vmem:[#allocation34_spill] sm:$0xff] %v13320_v2  ;;  %v11257_v15 = vpop.eup %11256  ;;  %v1676_v50 = vpop.xlane.xlu1 %1675  ;;  %v1740_v60 = vsel %vm1460_vm2, %v13320_v2, 0.0 }
 0x439   :  { %v11259_v49 = vpop.eup %11258  ;;  %11264 = vrcp.f32 %v1676_v50  ;;  %v1784_v20 = vmul.f32 %v11257_v15, %v13168_v10 }
 0x43a   :  { %v11261_v23 = vpop.eup %11260  ;;  %1741 = vadd.xlane.f32.xlu1 %v1740_v60  ;;  %v1679_v4 = vpop.xlane.xlu0 %1678  ;;  %11266 = vrcp.f32 %v1667_v18  ;;  %v1781_v14 = vmul.f32 %v11259_v49, %v13173_v35 }
 0x43b   :  { %v11263_v45 = vpop.eup %11262  ;;  %1747 = vadd.xlane.f32.xlu0 %v1746_v51  ;;  %11268 = vrcp.f32 %v1673_v39  ;;  %v1783_v2 = vmul.f32 %v11261_v23, %v13162_v7 }
 0x43c   :  { %v1670_v28 = vpop.xlane.xlu1 %1669  ;;  %v1782_v30 = vmul.f32 %v11263_v45, %v13178_v56 }
 0x43d   :  { %11270 = vrcp.f32 %v1670_v28  ;;  %v1814_v59 = vpack.c.bf16 %v1784_v20, %v1783_v2 }
 0x43e   :  { %11272 = vrcp.f32 %v1679_v4  ;;  %v1688_v50 = vpop.xlane.xlu0 %1687  ;;  %v1813_v60 = vpack.c.bf16 %v1782_v30, %v1781_v14 }
 0x43f   :  { %11274 = vrcp.f32 %v1688_v50  ;;  %v17474_v50 = vld [vmem:[#allocation3_spill] sm:$0xff] }
 0x440   :  { %11276 = vrcp.f32 %v1685_v16  ;;  %v1682_v52 = vpop.xlane.xlu1 %1681  ;;  %10414 = vmatprep.mubr.msk.bf16.mxu0 %vm1460_vm2, %v1813_v60  ;;  %v17475_v60 = vld [vmem:[#allocation20_spill] sm:$0xff] }
 0x441   :  { %11278 = vrcp.f32 %v1682_v52  ;;  %10415 = vmatmul.mubr.msk.bf16.vlgmr.msra.gmra.mrb[48].mxu0 %vm1460_vm2, %v1814_v59 }
 0x442   :  { %10439 = vmatpush3.bf16.msra.mxu0 %v12990_v54  ;;  %v1691_v10 = vpop.xlane.xlu0 %1690 }
 0x443   :  { %10440 = vmatprep.subr.bf16.mxu0 %v12980_v62  ;;  %v11265_v35 = vpop.eup %11264  ;;  %11280 = vrcp.f32 %v1691_v10 }
 0x444   :  { %v1697_v7 = vpop.xlane.xlu1 %1696  ;;  %v11267_v56 = vpop.eup %11266  ;;  %v1788_v59 = vmul.f32 %v11265_v35, %v13198_v55  ;;  %v17476_v35 = vld [vmem:[#allocation7_spill] sm:$0xff] }
 0x445   :  { %v11269_v18 = vpop.eup %11268  ;;  %11282 = vrcp.f32 %v1697_v7  ;;  %v1785_v16 = vmul.f32 %v11267_v56, %v13182_v58  ;;  %v17477_v7 = vld [vmem:[#allocation24_spill] sm:$0xff] }
 0x446   :  { %10441 = vmatpush3.bf16.msra.mxu0 %v12980_v62  ;;  %v1694_v30 = vpop.xlane.xlu0 %1693  ;;  %v1787_v49 = vmul.f32 %v11269_v18, %v13188_v26 }
 0x447   :  { %v11271_v39 = vpop.eup %11270  ;;  %10442 = vmatprep.subr.bf16.mxu0 %v13128_v53  ;;  %11284 = vrcp.f32 %v1694_v30  ;;  %v17478_v30 = vld [vmem:[#allocation4_spill] sm:$0xff] }
 0x448   :  { %v11273_v52 = vpop.eup %11272  ;;  %v1700_v54 = vpop.xlane.xlu1 %1699  ;;  %v1786_v2 = vmul.f32 %v11271_v39, %v13208_v57  ;;  %v1816_v55 = vpack.c.bf16 %v1788_v59, %v1787_v49 }
 0x449   :  { %v11275_v15 = vpop.eup %11274  ;;  %11286 = vrcp.f32 %v1700_v54  ;;  %v1789_v58 = vmul.f32 %v11273_v52, %v13202_v21  ;;  %v17479_v52 = vld [vmem:[#allocation6_spill] sm:$0xff] }
 0x44a   :  { %v11277_v23 = vpop.eup %11276  ;;  %10443 = vmatpush3.bf16.msra.mxu0 %v13128_v53  ;;  %v1815_v62 = vpack.c.bf16 %v1786_v2, %v1785_v16  ;;  %v1792_v51 = vmul.f32 %v11275_v15, %v13212_v5  ;;  %v1703_v56 = vpop.xlane.xlu0 %1702 }
 0x44b   :  { %v11279_v4 = vpop.eup %11278  ;;  %10444 = vmatprep.subr.bf16.mxu0 %v13126_v42  ;;  %2348 = vrot.lane.b32.xlu1 %v12926_v47, %s12057_s24  ;;  %v1791_v26 = vmul.f32 %v11277_v23, %v13193_v17 }
 0x44c   :  { %10418 = vmatprep.mubr.msk.bf16.mxu0 %vm1460_vm2, %v1815_v62  ;;  %v1790_v57 = vmul.f32 %v11279_v4, %v13216_v40  ;;  %v1709_v10 = vpop.xlane.xlu1 %1708  ;;  %v17481_v4 = vld [vmem:[#allocation8_spill] sm:$0xff] }
 0x44d   :  { %10419 = vmatmul.mubr.msk.bf16.gmra.mrb[52].mxu0 %vm1460_vm2, %v1816_v55  ;;  %v11281_v5 = vpop.eup %11280  ;;  %v1818_v45 = vpack.c.bf16 %v1792_v51, %v1791_v26  ;;  %v17482_v55 = vld [vmem:[#allocation27_spill] sm:$0xff]  ;;  %v17483_v26 = vld [vmem:[#allocation28_spill] sm:$0xff] }
 0x44e   :  { %10445 = vmatpush3.bf16.msra.mxu0 %v13126_v42  ;;  %v1817_v53 = vpack.c.bf16 %v1790_v57, %v1789_v58  ;;  %v1793_v42 = vmul.f32 %v11281_v5, %v13220_v43  ;;  %v17467_v43 = vld [vmem:[#allocation9_spill] sm:$0xff] }
 0x44f   :  { %11058 = vmatprep.subr.msk.bf16.mxu0 %vm1103_vm1, %v12922_v48  ;;  %2572 = vrot.lane.b32.xlu1 %v12873_v8, %s12057_s24  ;;  %v11283_v47 = vpop.eup %11282 }
 0x450   :  { %10430 = vmatprep.mubr.msk.bf16.mxu1 %vm1460_vm2, %v1817_v53  ;;  %v1795_v28 = vmul.f32 %v11283_v47, %v13224_v1  ;;  %v17469_v1 = vld [vmem:[#allocation15_spill] sm:$0xff] }
 0x451   :  { %v11285_v21 = vpop.eup %11284  ;;  %2360 = vrot.lane.b32.xlu0 %v12830_v24, %s12057_s24  ;;  %10431 = vmatmul.mubr.msk.bf16.vlgmr.msra.gmra.mrb[48].mxu1 %vm1460_vm2, %v1818_v45 }
 0x452   :  { %10455 = vmatpush3.bf16.msra.mxu1 %v12999_v19  ;;  %v1794_v17 = vmul.f32 %v11285_v21, %v13228_v61  ;;  %v17472_v61 = vld [vmem:[#allocation23_spill] sm:$0xff] }
 0x453   :  { %v11287_v40 = vpop.eup %11286  ;;  %10456 = vmatprep.subr.bf16.mxu1 %v13130_v22  ;;  %2352 = vrot.lane.b32.xlu1 %v12942_v9, %s12057_s24  ;;  %v17465_v9 = vld [vmem:[#allocation22_spill] sm:$0xff] }
 0x454   :  { %v1819_v20 = vpack.c.bf16 %v1794_v17, %v1793_v42  ;;  %v1796_v14 = vmul.f32 %v11287_v40, %v13232_v46  ;;  %v17473_v46 = vld [vmem:[#allocation17_spill] sm:$0xff]  ;;  %v2266_v17 = vsel %vm1103_vm1, %v12922_v48, 0 }
 0x455   :  { %2346 = vrot.lane.b32.xlu0 %v12928_v13, %s12057_s24  ;;  %v17464_v13 = vld [vmem:[#allocation13_spill] sm:$0xff] }
 0x456   :  { %10457 = vmatpush3.bf16.msra.mxu1 %v13130_v22  ;;  %10434 = vmatprep.mubr.msk.bf16.mxu1 %vm1460_vm2, %v1819_v20  ;;  %v1820_v19 = vpack.c.bf16 %v1796_v14, %v1795_v28  ;;  %v17466_v22 = vld [vmem:[#allocation18_spill] sm:$0xff]  ;;  %v17484_v20 = vld [vmem:[#allocation12_spill] sm:$0xff] }
 0x457   :  { %10458 = vmatprep.subr.bf16.mxu1 %v13134_v34  ;;  %2574 = vrot.lane.b32.xlu1 %v12871_v0, %s12057_s24 }
 0x459   :  { %2467 = vrot.lane.b32.xlu0 %v12862_v27, %s12057_s24  ;;  %10435 = vmatmul.mubr.msk.bf16.gmra.mrb[52].mxu1 %vm1460_vm2, %v1820_v19 }
 0x45a   :  { %10459 = vmatpush3.bf16.msra.mxu1 %v13134_v34  ;;  %v17468_v34 = vld [vmem:[#allocation10_spill] sm:$0xff] }
 0x45b   :  { %10460 = vmatprep.subr.bf16.mxu1 %v13132_v31  ;;  %2457 = vrot.lane.b32.xlu1 %v12958_v29, %s12057_s24  ;;  %v17470_v29 = vld [vmem:[#allocation19_spill] sm:$0xff] }
 0x45d   :  { %2350 = vrot.lane.b32.xlu0 %v17464_v13, %s12057_s24 }
 0x45e   :  { %10461 = vmatpush3.bf16.msra.mxu1 %v13132_v31  ;;  %v17471_v31 = vld [vmem:[#allocation11_spill] sm:$0xff] }
 0x45f   :  { %11062 = vmatprep.subr.msk.bf16.mxu1 %vm1103_vm1, %v17465_v9  ;;  %2459 = vrot.lane.b32.xlu1 %v17466_v22, %s12057_s24 }
 0x461   :  { %2469 = vrot.lane.b32.xlu0 %v17467_v43, %s12057_s24 }
 0x463   :  { %2578 = vrot.lane.b32.xlu1 %v17468_v34, %s12057_s24 }
 0x465   :  { %2455 = vrot.lane.b32.xlu0 %v17469_v1, %s12057_s24  ;;  %v2269_v1 = vsel %vm1103_vm1, %v17484_v20, 0 }
 0x467   :  { %2566 = vrot.lane.b32.xlu1 %v17470_v29, %s12057_s24 }
 0x469   :  { %2576 = vrot.lane.b32.xlu0 %v17471_v31, %s12057_s24 }
 0x46b   :  { %2570 = vrot.lane.b32.xlu1 %v17472_v61, %s12057_s24 }
 0x46d   :  { %2461 = vrot.lane.b32.xlu0 %v17473_v46, %s12057_s24 }
 0x46f   :  { %3039 = vrot.lane.b32.xlu1 %v17474_v50, %s12058_s25 }
 0x471   :  { %2564 = vrot.lane.b32.xlu0 %v17475_v60, %s12057_s24 }
 0x473   :  { %3128 = vrot.lane.b32.xlu1 %v17476_v35, %s12058_s25 }
 0x475   :  { %2568 = vrot.lane.b32.xlu0 %v17477_v7, %s12057_s24 }
 0x476   :  { %v1712_v18 = vpop.xlane.xlu1 %1711 }
 0x477   :  { %3215 = vrot.lane.b32.xlu1 %v12848_v11, %s12058_s25  ;;  %11288 = vrcp.f32 %v1712_v18  ;;  %v17480_v11 = vld [vmem:[#allocation5_spill] sm:$0xff] }
 0x478   :  { %11290 = vrcp.f32 %v1703_v56  ;;  %v17487_v56 = vld [vmem:[#allocation16_spill] sm:$0xff] }
 0x479   :  { %3037 = vrot.lane.b32.xlu0 %v17478_v30, %s12058_s25  ;;  %11292 = vrcp.f32 %v1709_v10 }
 0x47a   :  { %v1706_v39 = vpop.xlane.xlu1 %1705 }
 0x47b   :  { %11294 = vrcp.f32 %v1706_v39  ;;  %3217 = vrot.lane.b32.xlu1 %v12846_v3, %s12058_s25  ;;  %v17489_v39 = vld [vmem:[#allocation26_spill] sm:$0xff] }
 0x47c   :  { %v1721_v59 = vpop.xlane.xlu0 %1720 }
 0x47d   :  { %3041 = vrot.lane.b32.xlu0 %v17479_v52, %s12058_s25  ;;  %v17490_v52 = vld [vmem:[#allocation30_spill] sm:$0xff] }
 0x47e   :  { %v1724_v54 = vpop.xlane.xlu1 %1723 }
 0x47f   :  { %11296 = vrcp.f32 %v1724_v54 }
 0x480   :  { %v1715_v16 = vpop.xlane.xlu0 %1714 }
 0x481   :  { %11298 = vrcp.f32 %v1715_v16  ;;  %3043 = vrot.lane.b32.xlu0 %v17480_v11, %s12058_s25  ;;  %v11289_v2 = vpop.eup %11288  ;;  %v17491_v16 = vld [vmem:[#allocation29_spill] sm:$0xff] }
 0x482   :  { %11300 = vrcp.f32 %v1721_v59  ;;  %v1718_v15 = vpop.xlane.xlu1 %1717  ;;  %v11291_v49 = vpop.eup %11290  ;;  %v1800_v3 = vmul.f32 %v11289_v2, %v13256_v41 }
 0x483   :  { %11302 = vrcp.f32 %v1718_v15  ;;  %v11293_v23 = vpop.eup %11292  ;;  %v1797_v58 = vmul.f32 %v11291_v49, %v17482_v55 }
 0x484   :  { %v1799_v53 = vmul.f32 %v11293_v23, %v17483_v26 }
 0x485   :  { %v11295_v62 = vpop.eup %11294  ;;  %3126 = vrot.lane.b32.xlu0 %v17481_v4, %s12058_s25 }
 0x486   :  { %v1733_v51 = vpop.xlane.xlu1 %1732  ;;  %v1798_v57 = vmul.f32 %v11295_v62, %v13261_v12  ;;  %v1822_v45 = vpack.c.bf16 %v1800_v3, %v1799_v53 }
 0x488   :  { %v1821_v5 = vpack.c.bf16 %v1798_v57, %v1797_v58 }
 0x489   :  { %3130 = vrot.lane.b32.xlu0 %v12832_v25, %s12058_s25  ;;  %v11297_v47 = vpop.eup %11296 }
 0x48a   :  { %v1727_v21 = vpop.xlane.xlu1 %1726  ;;  %10446 = vmatprep.mubr.msk.bf16.mxu0 %vm1460_vm2, %v1821_v5  ;;  %v1730_v41 = vpop.xlane.xlu0 %1729  ;;  %v1804_v25 = vmul.f32 %v11297_v47, %v13272_v6 }
 0x48b   :  { %v11299_v42 = vpop.eup %11298  ;;  %11304 = vrcp.f32 %v1727_v21  ;;  %10447 = vmatmul.mubr.msk.bf16.vlgmr.msra.gmra.mrb[56].mxu0 %vm1460_vm2, %v1822_v45  ;;  %v17492_v45 = vld [vmem:[#allocation32_spill] sm:$0xff]  ;;  %v17493_v21 = vld [vmem:[#allocation34_spill] sm:$0xff] }
 0x48c   :  { %v11301_v12 = vpop.eup %11300  ;;  %11306 = vrcp.f32 %v1730_v41  ;;  %10471 = vmatpush3.bf16.xpose.msra.mxu0 %v2266_v17  ;;  %v1801_v14 = vmul.f32 %v11299_v42, %v13276_v63  ;;  %v17486_v63 = vld [vmem:[#allocation14_spill] sm:$0xff]  ;;  %v17494_v17 = vld [vmem:[#allocation31_spill] sm:$0xff] }
 0x48d   :  { %v11303_v40 = vpop.eup %11302  ;;  %11308 = vrcp.f32 %v1733_v51  ;;  %11059 = vmatprep.subr.msk.bf16.mxu0 %vm1103_vm1, %v17484_v20  ;;  %3132 = vrot.lane.b32.xlu0 %v12830_v24, %s12058_s25  ;;  %v1803_v48 = vmul.f32 %v11301_v12, %v13267_v33  ;;  %v17485_v24 = vld [vmem:[#allocation25_spill] sm:$0xff]  ;;  %v2272_v35 = vsel %vm1103_vm1, %v17486_v63, 0 }
 0x48e   :  { %v1736_v28 = vpop.xlane.xlu1 %1735  ;;  %v1802_v19 = vmul.f32 %v11303_v40, %v13280_v44  ;;  %v2359_v30 = vpop.permute.xlu0 %2358  ;;  %v17495_v40 = vld [vmem:[#allocation33_spill] sm:$0xff] }
 0x48f   :  { %11310 = vrcp.f32 %v1736_v28  ;;  %v1824_v22 = vpack.c.bf16 %v1804_v25, %v1803_v48  ;;  %v2381_v54 = vsel %vm1103_vm1, %v2359_v30, 0 }
 0x490   :  { %v1823_v13 = vpack.c.bf16 %v1802_v19, %v1801_v14 }
 0x492   :  { %10450 = vmatprep.mubr.msk.bf16.mxu0 %vm1460_vm2, %v1823_v13 }
 0x493   :  { %10451 = vmatmul.mubr.msk.bf16.gmra.mrb[60].mxu0 %vm1460_vm2, %v1824_v22 }
 0x494   :  { %10473 = vmatpush3.bf16.xpose.msra.mxu0 %v2269_v1  ;;  %10478 = vmatprep.mubr.msk.bf16.mxu0 %vm1103_vm1, %v17485_v24 }
 0x495   :  { %v11305_v6 = vpop.eup %11304  ;;  %11060 = vmatprep.subr.msk.bf16.mxu0 %vm1103_vm1, %v17486_v63 }
 0x496   :  { %v11307_v44 = vpop.eup %11306  ;;  %v1805_v33 = vmul.f32 %v11305_v6, %v13288_v36  ;;  %v2375_v36 = vsel %vm1103_vm1, %v17465_v9, 0 }
 0x497   :  { %v11309_v29 = vpop.eup %11308  ;;  %v1806_v61 = vmul.f32 %v11307_v44, %v13290_v37  ;;  %v17488_v37 = vld [vmem:[#allocation21_spill] sm:$0xff] }
 0x498   :  { %v1807_v60 = vmul.f32 %v11309_v29, %v13284_v38  ;;  %v2275_v38 = vsel %vm1103_vm1, %v17487_v56, 0  ;;  %v2378_v18 = vsel %vm1103_vm1, %v17488_v37, 0 }
 0x499   :  { %v11311_v46 = vpop.eup %11310  ;;  %v1825_v50 = vpack.c.bf16 %v1806_v61, %v1805_v33 }
 0x49a   :  { %v1808_v10 = vmul.f32 %v11311_v46, %v13296_v32  ;;  %v2464_v32 = vpop.permute.xlu1 %2463 }
 0x49b   :  { %10462 = vmatprep.mubr.msk.bf16.mxu1 %vm1460_vm2, %v1825_v50  ;;  %v2484_v9 = vsel %vm1103_vm1, %v2464_v32, 0 }
 0x49c   :  { %v1826_v7 = vpack.c.bf16 %v1808_v10, %v1807_v60  ;;  %10475 = vmatpush3.bf16.xpose.msra.mxu0 %v2272_v35 }
 0x49d   :  { %11061 = vmatprep.subr.msk.bf16.mxu0 %vm1103_vm1, %v17487_v56 }
 0x49e   :  { %10463 = vmatmul.mubr.msk.bf16.vlgmr.msra.gmra.mrb[56].mxu1 %vm1460_vm2, %v1826_v7  ;;  %v2466_v59 = vpop.permute.xlu1 %2465 }
 0x49f   :  { %10487 = vmatpush3.bf16.xpose.msra.mxu1 %v2375_v36  ;;  %v2487_v11 = vsel %vm1103_vm1, %v2466_v59, 0 }
 0x4a0   :  { %11063 = vmatprep.subr.msk.bf16.mxu1 %vm1103_vm1, %v17488_v37 }
 0x4a4   :  { %10477 = vmatpush3.bf16.xpose.msra.mxu0 %v2275_v38 }
 0x4a5   :  { %11066 = vmatprep.subr.msk.bf16.mxu0 %vm1103_vm1, %v2464_v32 }
 0x4a7   :  { %10489 = vmatpush3.bf16.xpose.msra.mxu1 %v2378_v18 }
 0x4a8   :  { %11064 = vmatprep.subr.msk.bf16.mxu1 %vm1103_vm1, %v2359_v30 }
 0x4ab   :  { %10479 = vmatmul.mubr.msk.bf16.vlgmr.msra.gmra.mrb[64].mxu0 %vm1103_vm1, %v17489_v39 }
 0x4ac   :  { %10482 = vmatprep.mubr.msk.bf16.mxu0 %vm1103_vm1, %v17490_v52  ;;  %10503 = vmatpush3.bf16.xpose.msra.mxu0 %v2484_v9 }
 0x4ad   :  { %11067 = vmatprep.subr.msk.bf16.mxu0 %vm1103_vm1, %v2466_v59 }
 0x4af   :  { %10491 = vmatpush3.bf16.xpose.msra.mxu1 %v2381_v54 }
 0x4b3   :  { %10483 = vmatmul.mubr.msk.bf16.gmra.mrb[68].mxu0 %vm1103_vm1, %v17491_v16 }
 0x4b4   :  { %10505 = vmatpush3.bf16.xpose.msra.mxu0 %v2487_v11 }
 0x4c0   :  { %v1745_v2 = vpop.xlane.xlu0 %1744 }
 0x4c4   :  { %v1739_v15 = vpop.xlane.xlu0 %1738 }
 0x4c5   :  { %11312 = vrcp.f32 %v1739_v15 }
 0x4c6   :  { %11314 = vrcp.f32 %v1745_v2 }
 0x4c7   :  { %v1742_v49 = vpop.xlane.xlu1 %1741 }
 0x4c8   :  { %11316 = vrcp.f32 %v1742_v49  ;;  %v1748_v23 = vpop.xlane.xlu0 %1747 }
 0x4c9   :  { %11318 = vrcp.f32 %v1748_v23 }
 0x4cb   :  { %v2349_v62 = vpop.permute.xlu1 %2348 }
 0x4cc   :  { %v2361_v3 = vpop.permute.xlu0 %2360 }
 0x4cd   :  { %11065 = vmatprep.subr.msk.bf16.mxu1 %vm1103_vm1, %v2361_v3  ;;  %v2384_v4 = vsel %vm1103_vm1, %v2361_v3, 0 }
 0x4ce   :  { %10493 = vmatpush3.bf16.xpose.msra.mxu1 %v2384_v4 }
 0x4cf   :  { %v2573_v51 = vpop.permute.xlu1 %2572  ;;  %v11313_v55 = vpop.eup %11312 }
 0x4d0   :  { %11070 = vmatprep.subr.msk.bf16.mxu1 %vm1103_vm1, %v2573_v51  ;;  %v2347_v58 = vpop.permute.xlu0 %2346  ;;  %v11315_v57 = vpop.eup %11314  ;;  %v1809_v47 = vmul.f32 %v11313_v55, %v17492_v45  ;;  %v2593_v6 = vsel %vm1103_vm1, %v2573_v51, 0 }
 0x4d1   :  { %v1811_v12 = vmul.f32 %v11315_v57, %v17494_v17 }
 0x4d2   :  { %v11317_v26 = vpop.eup %11316 }
 0x4d3   :  { %v11319_v53 = vpop.eup %11318  ;;  %v2353_v5 = vpop.permute.xlu1 %2352  ;;  %v1810_v41 = vmul.f32 %v11317_v26, %v17493_v21 }
 0x4d4   :  { %v2468_v42 = vpop.permute.xlu0 %2467  ;;  %v1812_v20 = vmul.f32 %v11319_v53, %v17495_v40 }
 0x4d5   :  { %11068 = vmatprep.subr.msk.bf16.mxu0 %vm1103_vm1, %v2468_v42  ;;  %v2490_v25 = vsel %vm1103_vm1, %v2468_v42, 0  ;;  %v1827_v28 = vpack.c.bf16 %v1810_v41, %v1809_v47 }
 0x4d6   :  { %10507 = vmatpush3.bf16.xpose.msra.mxu0 %v2490_v25  ;;  %v1828_v14 = vpack.c.bf16 %v1812_v20, %v1811_v12 }
 0x4d7   :  { %v2575_v19 = vpop.permute.xlu1 %2574  ;;  %10466 = vmatprep.mubr.msk.bf16.mxu1 %vm1460_vm2, %v1827_v28 }
 0x4d8   :  { %10467 = vmatmul.mubr.msk.bf16.gmra.mrb[60].mxu1 %vm1460_vm2, %v1828_v14  ;;  %v2351_v48 = vpop.permute.xlu0 %2350  ;;  %v2596_v29 = vsel %vm1103_vm1, %v2575_v19, 0 }
 0x4d9   :  { %10494 = vmatprep.mubr.msk.bf16.mxu1 %vm1103_vm1, %v2347_v58 }
 0x4db   :  { %v2458_v13 = vpop.permute.xlu1 %2457 }
 0x4dc   :  { %v2470_v22 = vpop.permute.xlu0 %2469 }
 0x4dd   :  { %11069 = vmatprep.subr.msk.bf16.mxu0 %vm1103_vm1, %v2470_v22  ;;  %v2493_v1 = vsel %vm1103_vm1, %v2470_v22, 0 }
 0x4de   :  { %10509 = vmatpush3.bf16.xpose.msra.mxu0 %v2493_v1 }
 0x4df   :  { %v2460_v24 = vpop.permute.xlu1 %2459 }
 0x4e0   :  { %10495 = vmatmul.mubr.msk.bf16.vlgmr.msra.gmra.mrb[64].mxu1 %vm1103_vm1, %v2349_v62  ;;  %v2456_v63 = vpop.permute.xlu0 %2455 }
 0x4e1   :  { %10519 = vmatpush3.bf16.xpose.msra.mxu1 %v2593_v6  ;;  %10498 = vmatprep.mubr.msk.bf16.mxu1 %vm1103_vm1, %v2351_v48 }
 0x4e2   :  { %10510 = vmatprep.mubr.msk.bf16.mxu0 %vm1103_vm1, %v2456_v63  ;;  %11071 = vmatprep.subr.msk.bf16.mxu1 %vm1103_vm1, %v2575_v19 }
 0x4e3   :  { %v2579_v44 = vpop.permute.xlu1 %2578 }
 0x4e4   :  { %v2577_v33 = vpop.permute.xlu0 %2576  ;;  %v2602_v36 = vsel %vm1103_vm1, %v2579_v44, 0 }
 0x4e5   :  { %10511 = vmatmul.mubr.msk.bf16.vlgmr.msra.gmra.mrb[72].mxu0 %vm1103_vm1, %v2458_v13  ;;  %v2599_v10 = vsel %vm1103_vm1, %v2577_v33, 0 }
 0x4e6   :  { %10514 = vmatprep.mubr.msk.bf16.mxu0 %vm1103_vm1, %v2460_v24 }
 0x4e7   :  { %v2567_v46 = vpop.permute.xlu1 %2566 }
 0x4e8   :  { %10499 = vmatmul.mubr.msk.bf16.gmra.mrb[68].mxu1 %vm1103_vm1, %v2353_v5  ;;  %v2462_v61 = vpop.permute.xlu0 %2461 }
 0x4e9   :  { %10521 = vmatpush3.bf16.xpose.msra.mxu1 %v2596_v29 }
 0x4ea   :  { %11072 = vmatprep.subr.msk.bf16.mxu1 %vm1103_vm1, %v2577_v33 }
 0x4eb   :  { %v2571_v60 = vpop.permute.xlu1 %2570 }
 0x4ec   :  { %v2565_v50 = vpop.permute.xlu0 %2564 }
 0x4ed   :  { %10515 = vmatmul.mubr.msk.bf16.gmra.mrb[76].mxu0 %vm1103_vm1, %v2462_v61  ;;  %10526 = vmatprep.mubr.msk.bf16.mxu1 %vm1103_vm1, %v2565_v50 }
 0x4ef   :  { %v3040_v56 = vpop.permute.xlu1 %3039 }
 0x4f0   :  { %v2569_v35 = vpop.permute.xlu0 %2568 }
 0x4f1   :  { %10523 = vmatpush3.bf16.xpose.msra.mxu1 %v2599_v10 }
 0x4f2   :  { %11073 = vmatprep.subr.msk.bf16.mxu1 %vm1103_vm1, %v2579_v44 }
 0x4f3   :  { %v3129_v38 = vpop.permute.xlu1 %3128 }
 0x4f4   :  { %v3038_v7 = vpop.permute.xlu0 %3037 }
 0x4f5   :  { %10534 = vmatprep.subr.bf16.mxu0 %v3038_v7 }
 0x4f6   :  { %10535 = vmatpush3.bf16.msra.mxu0 %v3038_v7 }
 0x4f7   :  { %10536 = vmatprep.subr.bf16.mxu0 %v3040_v56  ;;  %v13509_v30 = vpop.permute.xlu1 %3215 }
 0x4f8   :  { %v3042_v37 = vpop.permute.xlu0 %3041 }
 0x4f9   :  { %10525 = vmatpush3.bf16.xpose.msra.mxu1 %v2602_v36 }
 0x4fa   :  { %10537 = vmatpush3.bf16.msra.mxu0 %v3040_v56 }
 0x4fb   :  { %10538 = vmatprep.subr.bf16.mxu0 %v3042_v37 }
 0x4fc   :  { %v3044_v32 = vpop.permute.xlu0 %3043 }
 0x4fe   :  { %10539 = vmatpush3.bf16.msra.mxu0 %v3042_v37 }
 0x4ff   :  { %10540 = vmatprep.subr.bf16.mxu0 %v3044_v32 }
 0x500   :  { %10527 = vmatmul.mubr.msk.bf16.vlgmr.msra.gmra.mrb[72].mxu1 %vm1103_vm1, %v2567_v46  ;;  %v3127_v18 = vpop.permute.xlu0 %3126 }
 0x501   :  { %10530 = vmatprep.mubr.msk.bf16.mxu1 %vm1103_vm1, %v2569_v35  ;;  %10550 = vmatprep.subr.bf16.mxu1 %v3127_v18 }
 0x502   :  { %10541 = vmatpush3.bf16.msra.mxu0 %v3044_v32  ;;  %10551 = vmatpush3.bf16.msra.mxu1 %v3127_v18 }
 0x503   :  { %10552 = vmatprep.subr.bf16.mxu1 %v3129_v38  ;;  %10566 = vmatprep.subr.bf16.mxu0 %v13509_v30 }
 0x504   :  { %v3131_v39 = vpop.permute.xlu0 %3130 }
 0x506   :  { %10553 = vmatpush3.bf16.msra.mxu1 %v3129_v38 }
 0x507   :  { %10554 = vmatprep.subr.bf16.mxu1 %v3131_v39 }
 0x508   :  { %10531 = vmatmul.mubr.msk.bf16.gmra.mrb[76].mxu1 %vm1103_vm1, %v2571_v60  ;;  %v3133_v9 = vpop.permute.xlu0 %3132 }
 0x50a   :  { %10555 = vmatpush3.bf16.msra.mxu1 %v3131_v39 }
 0x50b   :  { %10556 = vmatprep.subr.bf16.mxu1 %v3133_v9 }
 0x50e   :  { %10557 = vmatpush3.bf16.msra.mxu1 %v3133_v9 }
 0x514   :  { %v10416_v59 = vpop.f32.mrb[48].mxu0 }
 0x515   :  { %2203 = vst.msk [vmem:[#allocation2 + $0x10] sm:$0xff] %vm1103_vm1, %v10416_v59  ;;  %v1891_v52 = vpop.f32.mrb[49].mxu0 }
 0x516   :  { %2201 = vst.msk [vmem:[#allocation2] sm:$0xff] %vm1103_vm1, %v1891_v52  ;;  %v10417_v54 = vpop.f32.mrb[50].mxu0 }
 0x517   :  { %2204 = vst.msk [vmem:[#allocation2 + $0x18] sm:$0xff] %vm1103_vm1, %v10417_v54  ;;  %v1894_v16 = vpop.f32.mrb[51].mxu0 }
 0x518   :  { %2202 = vst.msk [vmem:[#allocation2 + $0x8] sm:$0xff] %vm1103_vm1, %v1894_v16 }
 0x520   :  { %v10420_v11 = vpop.f32.mrb[52].mxu0 }
 0x521   :  { %2207 = vst.msk [vmem:[#allocation2 + $0x30] sm:$0xff] %vm1103_vm1, %v10420_v11  ;;  %v1907_v2 = vpop.f32.mrb[53].mxu0 }
 0x522   :  { %2205 = vst.msk [vmem:[#allocation2 + $0x20] sm:$0xff] %vm1103_vm1, %v1907_v2  ;;  %v10421_v15 = vpop.f32.mrb[54].mxu0 }
 0x523   :  { %2208 = vst.msk [vmem:[#allocation2 + $0x38] sm:$0xff] %vm1103_vm1, %v10421_v15  ;;  %v1910_v49 = vpop.f32.mrb[55].mxu0 }
 0x524   :  { %2206 = vst.msk [vmem:[#allocation2 + $0x28] sm:$0xff] %vm1103_vm1, %v1910_v49  ;;  %v10432_v23 = vpop.f32.mrb[48].mxu1 }
 0x525   :  { %2211 = vst.msk [vmem:[#allocation2 + $0x50] sm:$0xff] %vm1103_vm1, %v10432_v23  ;;  %v1984_v62 = vpop.f32.mrb[49].mxu1 }
 0x526   :  { %2209 = vst.msk [vmem:[#allocation2 + $0x40] sm:$0xff] %vm1103_vm1, %v1984_v62  ;;  %v10433_v3 = vpop.f32.mrb[50].mxu1 }
 0x527   :  { %2212 = vst.msk [vmem:[#allocation2 + $0x58] sm:$0xff] %vm1103_vm1, %v10433_v3  ;;  %v1987_v4 = vpop.f32.mrb[51].mxu1 }
 0x528   :  { %2210 = vst.msk [vmem:[#allocation2 + $0x48] sm:$0xff] %vm1103_vm1, %v1987_v4 }
 0x52c   :  { %v10436_v51 = vpop.f32.mrb[52].mxu1 }
 0x52d   :  { %2215 = vst.msk [vmem:[#allocation2 + $0x70] sm:$0xff] %vm1103_vm1, %v10436_v51  ;;  %v2000_v55 = vpop.f32.mrb[53].mxu1 }
 0x52e   :  { %2213 = vst.msk [vmem:[#allocation2 + $0x60] sm:$0xff] %vm1103_vm1, %v2000_v55  ;;  %v10437_v58 = vpop.f32.mrb[54].mxu1 }
 0x52f   :  { %2216 = vst.msk [vmem:[#allocation2 + $0x78] sm:$0xff] %vm1103_vm1, %v10437_v58  ;;  %v2003_v57 = vpop.f32.mrb[55].mxu1 }
 0x530   :  { %2214 = vst.msk [vmem:[#allocation2 + $0x68] sm:$0xff] %vm1103_vm1, %v2003_v57 }
 0x55e   :  { %v10448_v26 = vpop.f32.mrb[56].mxu0 }
 0x55f   :  { %2219 = vst.msk [vmem:[#allocation2 + $0x90] sm:$0xff] %vm1103_vm1, %v10448_v26  ;;  %v2077_v53 = vpop.f32.mrb[57].mxu0 }
 0x560   :  { %2217 = vst.msk [vmem:[#allocation2 + $0x80] sm:$0xff] %vm1103_vm1, %v2077_v53  ;;  %v10449_v5 = vpop.f32.mrb[58].mxu0 }
 0x561   :  { %2220 = vst.msk [vmem:[#allocation2 + $0x98] sm:$0xff] %vm1103_vm1, %v10449_v5  ;;  %v2080_v45 = vpop.f32.mrb[59].mxu0 }
 0x562   :  { %2218 = vst.msk [vmem:[#allocation2 + $0x88] sm:$0xff] %vm1103_vm1, %v2080_v45 }
 0x566   :  { %v10452_v47 = vpop.f32.mrb[60].mxu0 }
 0x567   :  { %2223 = vst.msk [vmem:[#allocation2 + $0xb0] sm:$0xff] %vm1103_vm1, %v10452_v47  ;;  %v2093_v21 = vpop.f32.mrb[61].mxu0 }
 0x568   :  { %2221 = vst.msk [vmem:[#allocation2 + $0xa0] sm:$0xff] %vm1103_vm1, %v2093_v21  ;;  %v10453_v41 = vpop.f32.mrb[62].mxu0 }
 0x569   :  { %2224 = vst.msk [vmem:[#allocation2 + $0xb8] sm:$0xff] %vm1103_vm1, %v10453_v41  ;;  %v2096_v42 = vpop.f32.mrb[63].mxu0 }
 0x56a   :  { %2222 = vst.msk [vmem:[#allocation2 + $0xa8] sm:$0xff] %vm1103_vm1, %v2096_v42 }
 0x571   :  { %v10464_v17 = vpop.f32.mrb[56].mxu1 }
 0x572   :  { %2227 = vst.msk [vmem:[#allocation2 + $0xd0] sm:$0xff] %vm1103_vm1, %v10464_v17  ;;  %v2170_v12 = vpop.f32.mrb[57].mxu1 }
 0x573   :  { %2225 = vst.msk [vmem:[#allocation2 + $0xc0] sm:$0xff] %vm1103_vm1, %v2170_v12  ;;  %v10465_v40 = vpop.f32.mrb[58].mxu1 }
 0x574   :  { %2228 = vst.msk [vmem:[#allocation2 + $0xd8] sm:$0xff] %vm1103_vm1, %v10465_v40  ;;  %v2173_v20 = vpop.f32.mrb[59].mxu1 }
 0x575   :  { %2226 = vst.msk [vmem:[#allocation2 + $0xc8] sm:$0xff] %vm1103_vm1, %v2173_v20 }
 0x57e   :  { %v13541_v25 = vpop.f32.mrb[64].mxu0 }
 0x57f   :  { %v13543_v28 = vpop.f32.mrb[65].mxu0  ;;  %v2675_v14 = vsel %vm1460_vm2, %v13541_v25, -inf }
 0x580   :  { %2676 = vmax.xlane.f32.xlu0 %v2675_v14  ;;  %v13547_v19 = vpop.f32.mrb[66].mxu0  ;;  %v2669_v22 = vsel %vm1460_vm2, %v13543_v28, -inf }
 0x581   :  { %v13549_v48 = vpop.f32.mrb[67].mxu0  ;;  %v2678_v6 = vsel %vm1460_vm2, %v13547_v19, -inf }
 0x582   :  { %v2672_v13 = vsel %vm1460_vm2, %v13549_v48, -inf }
 0x583   :  { %2673 = vmax.xlane.f32.xlu1 %v2672_v13 }
 0x584   :  { %2670 = vmax.xlane.f32.xlu0 %v2669_v22 }
 0x586   :  { %v13555_v1 = vpop.f32.mrb[68].mxu0 }
 0x587   :  { %v13557_v24 = vpop.f32.mrb[69].mxu0  ;;  %v2687_v29 = vsel %vm1460_vm2, %v13555_v1, -inf }
 0x588   :  { %2679 = vmax.xlane.f32.xlu0 %v2678_v6  ;;  %v13561_v63 = vpop.f32.mrb[70].mxu0  ;;  %v2681_v46 = vsel %vm1460_vm2, %v13557_v24, -inf }
 0x589   :  { %v13563_v44 = vpop.f32.mrb[71].mxu0  ;;  %v2690_v33 = vsel %vm1460_vm2, %v13561_v63, -inf }
 0x58a   :  { %2691 = vmax.xlane.f32.xlu1 %v2690_v33  ;;  %v2684_v61 = vsel %vm1460_vm2, %v13563_v44, -inf }
 0x58c   :  { %2688 = vmax.xlane.f32.xlu0 %v2687_v29 }
 0x58e   :  { %2685 = vmax.xlane.f32.xlu1 %v2684_v61 }
 0x590   :  { %2682 = vmax.xlane.f32.xlu0 %v2681_v46 }
 0x5ab   :  { %v10468_v50 = vpop.f32.mrb[60].mxu1 }
 0x5ac   :  { %2231 = vst.msk [vmem:[#allocation2 + $0xf0] sm:$0xff] %vm1103_vm1, %v10468_v50  ;;  %v2186_v60 = vpop.f32.mrb[61].mxu1 }
 0x5ad   :  { %2229 = vst.msk [vmem:[#allocation2 + $0xe0] sm:$0xff] %vm1103_vm1, %v2186_v60  ;;  %v10469_v10 = vpop.f32.mrb[62].mxu1 }
 0x5ae   :  { %2232 = vst.msk [vmem:[#allocation2 + $0xf8] sm:$0xff] %vm1103_vm1, %v10469_v10  ;;  %v2189_v35 = vpop.f32.mrb[63].mxu1 }
 0x5af   :  { %2230 = vst.msk [vmem:[#allocation2 + $0xe8] sm:$0xff] %vm1103_vm1, %v2189_v35 }
 0x5b3   :  { %v13577_v7 = vpop.f32.mrb[64].mxu1 }
 0x5b4   :  { %v13579_v56 = vpop.f32.mrb[65].mxu1  ;;  %v2699_v36 = vsel %vm1460_vm2, %v13577_v7, -inf }
 0x5b5   :  { %2700 = vmax.xlane.f32.xlu0 %v2699_v36  ;;  %v13583_v37 = vpop.f32.mrb[66].mxu1  ;;  %v2693_v39 = vsel %vm1460_vm2, %v13579_v56, -inf }
 0x5b6   :  { %v13585_v38 = vpop.f32.mrb[67].mxu1  ;;  %v2702_v32 = vsel %vm1460_vm2, %v13583_v37, -inf }
 0x5b7   :  { %2703 = vmax.xlane.f32.xlu1 %v2702_v32  ;;  %v2696_v52 = vsel %vm1460_vm2, %v13585_v38, -inf }
 0x5b8   :  { %v13589_v18 = vpop.f32.mrb[72].mxu0 }
 0x5b9   :  { %2694 = vmax.xlane.f32.xlu0 %v2693_v39  ;;  %v13593_v9 = vpop.f32.mrb[73].mxu0  ;;  %v2723_v57 = vsel %vm1460_vm2, %v13589_v18, -inf }
 0x5ba   :  { %v13595_v59 = vpop.f32.mrb[74].mxu0  ;;  %v2717_v53 = vsel %vm1460_vm2, %v13593_v9, -inf }
 0x5bb   :  { %2697 = vmax.xlane.f32.xlu1 %v2696_v52  ;;  %v13599_v54 = vpop.f32.mrb[68].mxu1  ;;  %v13601_v16 = vpop.f32.mrb[75].mxu0  ;;  %v2726_v26 = vsel %vm1460_vm2, %v13595_v59, -inf }
 0x5bc   :  { %v13603_v11 = vpop.f32.mrb[69].mxu1  ;;  %v2711_v2 = vsel %vm1460_vm2, %v13599_v54, -inf  ;;  %v2720_v5 = vsel %vm1460_vm2, %v13601_v16, -inf  ;;  %v13687_v52 = vpop.permute.xlu1 %3217 }
 0x5bd   :  { %2712 = vmax.xlane.f32.xlu0 %v2711_v2  ;;  %v13607_v15 = vpop.f32.mrb[70].mxu1  ;;  %v2705_v3 = vsel %vm1460_vm2, %v13603_v11, -inf }
 0x5be   :  { %v13609_v49 = vpop.f32.mrb[71].mxu1  ;;  %v2714_v23 = vsel %vm1460_vm2, %v13607_v15, -inf }
 0x5bf   :  { %2715 = vmax.xlane.f32.xlu1 %v2714_v23  ;;  %v2708_v55 = vsel %vm1460_vm2, %v13609_v49, -inf }
 0x5c0   :  { %v13613_v62 = vpop.f32.mrb[76].mxu0 }
 0x5c1   :  { %2706 = vmax.xlane.f32.xlu0 %v2705_v3  ;;  %v13617_v4 = vpop.f32.mrb[77].mxu0  ;;  %v2735_v45 = vsel %vm1460_vm2, %v13613_v62, -inf }
 0x5c2   :  { %v13619_v51 = vpop.f32.mrb[78].mxu0  ;;  %v2729_v21 = vsel %vm1460_vm2, %v13617_v4, -inf }
 0x5c3   :  { %2709 = vmax.xlane.f32.xlu1 %v2708_v55  ;;  %v13623_v58 = vpop.f32.mrb[79].mxu0  ;;  %v2738_v47 = vsel %vm1460_vm2, %v13619_v51, -inf }
 0x5c4   :  { %v2732_v41 = vsel %vm1460_vm2, %v13623_v58, -inf }
 0x5c5   :  { %2724 = vmax.xlane.f32.xlu0 %v2723_v57 }
 0x5c7   :  { %2727 = vmax.xlane.f32.xlu1 %v2726_v26 }
 0x5c9   :  { %2718 = vmax.xlane.f32.xlu0 %v2717_v53 }
 0x5cb   :  { %2721 = vmax.xlane.f32.xlu1 %v2720_v5 }
 0x5cd   :  { %2736 = vmax.xlane.f32.xlu0 %v2735_v45 }
 0x5cf   :  { %2739 = vmax.xlane.f32.xlu1 %v2738_v47 }
 0x5d1   :  { %2730 = vmax.xlane.f32.xlu0 %v2729_v21 }
 0x5d3   :  { %v13641_v42 = vpop.f32.mrb[72].mxu1  ;;  %2733 = vmax.xlane.f32.xlu1 %v2732_v41 }
 0x5d4   :  { %v13643_v17 = vpop.f32.mrb[73].mxu1  ;;  %v2747_v12 = vsel %vm1460_vm2, %v13641_v42, -inf }
 0x5d5   :  { %v13647_v40 = vpop.f32.mrb[74].mxu1  ;;  %2748 = vmax.xlane.f32.xlu0 %v2747_v12  ;;  %v2741_v14 = vsel %vm1460_vm2, %v13643_v17, -inf }
 0x5d6   :  { %v13649_v20 = vpop.f32.mrb[75].mxu1  ;;  %v2750_v29 = vsel %vm1460_vm2, %v13647_v40, -inf }
 0x5d9   :  { %2742 = vmax.xlane.f32.xlu0 %v2741_v14 }
 0x5db   :  { %v13653_v13 = vpop.f32.mrb[76].mxu1 }
 0x5dc   :  { %v13655_v22 = vpop.f32.mrb[77].mxu1  ;;  %v2759_v46 = vsel %vm1460_vm2, %v13653_v13, -inf }
 0x5dd   :  { %v13657_v6 = vpop.f32.mrb[78].mxu1 }
 0x5de   :  { %v13659_v33 = vpop.f32.mrb[79].mxu1 }
 0x5e4   :  { %3221 = vrot.lane.b32.xlu1 %v17467_v43, %s12058_s25  ;;  %v2744_v43 = vsel %vm1460_vm2, %v13649_v20, -inf }
 0x5e8   :  { %3304 = vrot.lane.b32.xlu1 %v12873_v8, %s12058_s25 }
 0x5ef   :  { %3219 = vrot.lane.b32.xlu0 %v12862_v27, %s12058_s25  ;;  %v2753_v27 = vsel %vm1460_vm2, %v13655_v22, -inf }
 0x60c   :  { %2751 = vmax.xlane.f32.xlu1 %v2750_v29 }
 0x60d   :  { %v2677_v61 = vpop.xlane.xlu0 %2676 }
 0x60e   :  { %v2767_v50 = vsub.f32 %v13541_v25, %v2677_v61  ;;  %2760 = vmax.xlane.f32.xlu0 %v2759_v46 }
 0x610   :  { %v2801_v60 = vmul.f32 1.442695, %v2767_v50  ;;  %2745 = vmax.xlane.f32.xlu1 %v2744_v43  ;;  %v2674_v2 = vpop.xlane.xlu1 %2673 }
 0x611   :  { %v2671_v8 = vpop.xlane.xlu0 %2670  ;;  %v2766_v57 = vsub.f32 %v13549_v48, %v2674_v2 }
 0x612   :  { %11320 = vpow2.f32 %v2801_v60  ;;  %v2765_v10 = vsub.f32 %v13543_v28, %v2671_v8  ;;  %2754 = vmax.xlane.f32.xlu0 %v2753_v27 }
 0x613   :  { %v2799_v45 = vmul.f32 1.442695, %v2766_v57 }
 0x614   :  { %v2797_v35 = vmul.f32 1.442695, %v2765_v10 }
 0x615   :  { %v2680_v28 = vpop.xlane.xlu0 %2679 }
 0x616   :  { %11322 = vpow2.f32 %v2797_v35  ;;  %v2768_v23 = vsub.f32 %v13547_v19, %v2680_v28  ;;  %v2762_v19 = vsel %vm1460_vm2, %v13657_v6, -inf }
 0x617   :  { %v2692_v55 = vpop.xlane.xlu1 %2691 }
 0x618   :  { %v2803_v26 = vmul.f32 1.442695, %v2768_v23  ;;  %v2772_v46 = vsub.f32 %v13561_v63, %v2692_v55 }
 0x619   :  { %v2689_v3 = vpop.xlane.xlu0 %2688 }
 0x61a   :  { %v2771_v53 = vsub.f32 %v13555_v1, %v2689_v3  ;;  %11324 = vpow2.f32 %v2803_v26  ;;  %v2811_v27 = vmul.f32 1.442695, %v2772_v46 }
 0x61b   :  { %11326 = vpow2.f32 %v2799_v45 }
 0x61c   :  { %v13677_v36 = vpop.eup %11320  ;;  %v2809_v47 = vmul.f32 1.442695, %v2771_v53 }
 0x61d   :  { %v2867_v25 = vsel %vm1460_vm2, %v13677_v36, 0.0  ;;  %v2683_v5 = vpop.xlane.xlu0 %2682 }
 0x61e   :  { %2868 = vadd.xlane.f32.xlu0 %v2867_v25  ;;  %v2769_v21 = vsub.f32 %v13557_v24, %v2683_v5  ;;  %11328 = vpow2.f32 %v2809_v47 }
 0x620   :  { %v13681_v32 = vpop.eup %11322  ;;  %v2805_v1 = vmul.f32 1.442695, %v2769_v21 }
 0x621   :  { %3306 = vrot.lane.b32.xlu1 %v12871_v0, %s12058_s25  ;;  %v2861_v39 = vsel %vm1460_vm2, %v13681_v32, 0.0  ;;  %v2686_v0 = vpop.xlane.xlu1 %2685 }
 0x622   :  { %2862 = vadd.xlane.f32.xlu0 %v2861_v39  ;;  %v2770_v10 = vsub.f32 %v13563_v44, %v2686_v0 }
 0x624   :  { %v13701_v43 = vpop.eup %11324  ;;  %v2807_v2 = vmul.f32 1.442695, %v2770_v10 }
 0x625   :  { %v13707_v25 = vpop.eup %11326 }
 0x628   :  { %v13711_v44 = vpop.eup %11328 }
 0x629   :  { %v2879_v47 = vsel %vm1460_vm2, %v13711_v44, 0.0 }
 0x642   :  { %v2701_v41 = vpop.xlane.xlu0 %2700 }
 0x643   :  { %v2775_v12 = vsub.f32 %v13577_v7, %v2701_v41  ;;  %v2756_v7 = vsel %vm1460_vm2, %v13659_v33, -inf }
 0x644   :  { %v2704_v14 = vpop.xlane.xlu1 %2703 }
 0x645   :  { %v2817_v29 = vmul.f32 1.442695, %v2775_v12  ;;  %v2776_v48 = vsub.f32 %v13583_v37, %v2704_v14  ;;  %2763 = vmax.xlane.f32.xlu1 %v2762_v19 }
 0x646   :  { %v2695_v61 = vpop.xlane.xlu0 %2694 }
 0x647   :  { %11330 = vpow2.f32 %v2817_v29  ;;  %v2773_v24 = vsub.f32 %v13579_v56, %v2695_v61  ;;  %v2819_v60 = vmul.f32 1.442695, %v2776_v48  ;;  %v2870_v56 = vsel %vm1460_vm2, %v13701_v43, 0.0 }
 0x648   :  { %v2698_v50 = vpop.xlane.xlu1 %2697  ;;  %11332 = vpow2.f32 %v2805_v1 }
 0x649   :  { %v2813_v8 = vmul.f32 1.442695, %v2773_v24  ;;  %2757 = vmax.xlane.f32.xlu1 %v2756_v7  ;;  %v2774_v23 = vsub.f32 %v13585_v38, %v2698_v50 }
 0x64a   :  { %v2713_v37 = vpop.xlane.xlu0 %2712 }
 0x64b   :  { %11334 = vpow2.f32 %v2813_v8  ;;  %v2779_v63 = vsub.f32 %v13599_v54, %v2713_v37  ;;  %v2864_v54 = vsel %vm1460_vm2, %v13707_v25, 0.0  ;;  %v2815_v45 = vmul.f32 1.442695, %v2774_v23 }
 0x64c   :  { %v2716_v35 = vpop.xlane.xlu1 %2715  ;;  %11336 = vpow2.f32 %v2819_v60 }
 0x64d   :  { %v2825_v39 = vmul.f32 1.442695, %v2779_v63  ;;  %2871 = vadd.xlane.f32.xlu1 %v2870_v56  ;;  %11338 = vpow2.f32 %v2811_v27  ;;  %v2780_v38 = vsub.f32 %v13607_v15, %v2716_v35 }
 0x64e   :  { %v2707_v28 = vpop.xlane.xlu0 %2706 }
 0x64f   :  { %v2777_v3 = vsub.f32 %v13603_v11, %v2707_v28  ;;  %11340 = vpow2.f32 %v2825_v39  ;;  %v2827_v15 = vmul.f32 1.442695, %v2780_v38 }
 0x650   :  { %v2710_v55 = vpop.xlane.xlu1 %2709  ;;  %11342 = vpow2.f32 %v2807_v2 }
 0x651   :  { %v13715_v57 = vpop.eup %11330  ;;  %v2821_v26 = vmul.f32 1.442695, %v2777_v3  ;;  %2865 = vadd.xlane.f32.xlu1 %v2864_v54  ;;  %v2778_v41 = vsub.f32 %v13609_v49, %v2710_v55 }
 0x652   :  { %v2725_v53 = vpop.xlane.xlu0 %2724  ;;  %v2891_v5 = vsel %vm1460_vm2, %v13715_v57, 0.0  ;;  %v13720_v11 = vpop.eup %11332 }
 0x653   :  { %2892 = vadd.xlane.f32.xlu0 %v2891_v5  ;;  %11344 = vpow2.f32 %v2821_v26  ;;  %v2873_v48 = vsel %vm1460_vm2, %v13720_v11, 0.0  ;;  %v2823_v61 = vmul.f32 1.442695, %v2778_v41  ;;  %v2783_v46 = vsub.f32 %v13589_v18, %v2725_v53 }
 0x654   :  { %v2728_v0 = vpop.xlane.xlu1 %2727  ;;  %11346 = vpow2.f32 %v2815_v45 }
 0x655   :  { %v13724_v21 = vpop.eup %11334  ;;  %2880 = vadd.xlane.f32.xlu1 %v2879_v47  ;;  %11348 = vpow2.f32 %v2827_v15  ;;  %v2833_v18 = vmul.f32 1.442695, %v2783_v46 }
 0x656   :  { %v2719_v12 = vpop.xlane.xlu0 %2718  ;;  %v2885_v14 = vsel %vm1460_vm2, %v13724_v21, 0.0  ;;  %v13729_v19 = vpop.eup %11336  ;;  %11350 = vpow2.f32 %v2823_v61 }
 0x657   :  { %2886 = vadd.xlane.f32.xlu0 %v2885_v14  ;;  %v13733_v1 = vpop.eup %11338  ;;  %v2894_v24 = vsel %vm1460_vm2, %v13729_v19, 0.0 }
 0x658   :  { %v2722_v29 = vpop.xlane.xlu1 %2721  ;;  %v2882_v8 = vsel %vm1460_vm2, %v13733_v1, 0.0 }
 0x659   :  { %2874 = vadd.xlane.f32.xlu1 %v2873_v48  ;;  %v13738_v50 = vpop.eup %11340  ;;  %v2782_v41 = vsub.f32 %v13601_v16, %v2722_v29 }
 0x65a   :  { %v2737_v49 = vpop.xlane.xlu0 %2736  ;;  %v13743_v37 = vpop.eup %11342  ;;  %v2903_v35 = vsel %vm1460_vm2, %v13738_v50, 0.0 }
 0x65b   :  { %v2787_v7 = vsub.f32 %v13613_v62, %v2737_v49  ;;  %2895 = vadd.xlane.f32.xlu0 %v2894_v24  ;;  %v2781_v62 = vsub.f32 %v13593_v9, %v2719_v12  ;;  %v2876_v2 = vsel %vm1460_vm2, %v13743_v37, 0.0  ;;  %v2784_v9 = vsub.f32 %v13595_v59, %v2728_v0 }
 0x65c   :  { %v2740_v60 = vpop.xlane.xlu1 %2739  ;;  %v2831_v15 = vmul.f32 1.442695, %v2782_v41 }
 0x65d   :  { %v2841_v27 = vmul.f32 1.442695, %v2787_v7  ;;  %v2788_v10 = vsub.f32 %v13619_v51, %v2740_v60  ;;  %2883 = vadd.xlane.f32.xlu1 %v2882_v8  ;;  %v13748_v56 = vpop.eup %11344  ;;  %v2829_v26 = vmul.f32 1.442695, %v2781_v62  ;;  %v2835_v47 = vmul.f32 1.442695, %v2784_v9 }
 0x65e   :  { %v2731_v63 = vpop.xlane.xlu0 %2730  ;;  %v13754_v51 = vpop.eup %11346  ;;  %v2897_v54 = vsel %vm1460_vm2, %v13748_v56, 0.0 }
 0x65f   :  { %11352 = vpow2.f32 %v2841_v27  ;;  %v2785_v39 = vsub.f32 %v13617_v4, %v2731_v63  ;;  %2904 = vadd.xlane.f32.xlu0 %v2903_v35  ;;  %v2843_v23 = vmul.f32 1.442695, %v2788_v10  ;;  %v2888_v5 = vsel %vm1460_vm2, %v13754_v51, 0.0  ;;  %v13764_v45 = vpop.eup %11348 }
 0x660   :  { %v2734_v28 = vpop.xlane.xlu1 %2733  ;;  %11354 = vpow2.f32 %v2833_v18  ;;  %v13767_v59 = vpop.eup %11350 }
 0x661   :  { %v2837_v3 = vmul.f32 1.442695, %v2785_v39  ;;  %2877 = vadd.xlane.f32.xlu1 %v2876_v2  ;;  %v2786_v16 = vsub.f32 %v13623_v58, %v2734_v28  ;;  %v2900_v61 = vsel %vm1460_vm2, %v13767_v59, 0.0 }
 0x662   :  { %v2749_v55 = vpop.xlane.xlu0 %2748 }
 0x663   :  { %11356 = vpow2.f32 %v2837_v3  ;;  %v2791_v4 = vsub.f32 %v13641_v42, %v2749_v55  ;;  %2898 = vadd.xlane.f32.xlu0 %v2897_v54  ;;  %v2906_v42 = vsel %vm1460_vm2, %v13764_v45, 0.0  ;;  %v2839_v7 = vmul.f32 1.442695, %v2786_v16 }
 0x664   :  { %v13760_v53 = vpop.permute.xlu1 %3221  ;;  %11358 = vpow2.f32 %v2843_v23 }
 0x665   :  { %v2849_v38 = vmul.f32 1.442695, %v2791_v4  ;;  %2889 = vadd.xlane.f32.xlu1 %v2888_v5  ;;  %11360 = vpow2.f32 %v2829_v26 }
 0x666   :  { %v2743_v48 = vpop.xlane.xlu0 %2742 }
 0x667   :  { %11362 = vpow2.f32 %v2849_v38  ;;  %v2789_v60 = vsub.f32 %v13643_v17, %v2743_v48 }
 0x668   :  { %v13769_v0 = vpop.permute.xlu1 %3304  ;;  %11364 = vpow2.f32 %v2835_v47 }
 0x669   :  { %v13773_v12 = vpop.eup %11352  ;;  %10582 = vmatprep.subr.bf16.mxu1 %v13769_v0  ;;  %2907 = vadd.xlane.f32.xlu1 %v2906_v42  ;;  %11366 = vpow2.f32 %v2831_v15  ;;  %v2845_v18 = vmul.f32 1.442695, %v2789_v60 }
 0x66a   :  { %v2927_v14 = vsel %vm1460_vm2, %v13773_v12, 0.0  ;;  %v13779_v29 = vpop.eup %11354  ;;  %11368 = vpow2.f32 %v2839_v7  ;;  %v13818_v54 = vpop.permute.xlu0 %3219 }
 0x66b   :  { %2928 = vadd.xlane.f32.xlu0 %v2927_v14  ;;  %v2915_v58 = vsel %vm1460_vm2, %v13779_v29, 0.0  ;;  %11370 = vpow2.f32 %v2845_v18 }
 0x66d   :  { %v13783_v46 = vpop.eup %11356  ;;  %2901 = vadd.xlane.f32.xlu1 %v2900_v61 }
 0x66e   :  { %v2921_v49 = vsel %vm1460_vm2, %v13783_v46, 0.0  ;;  %v13787_v24 = vpop.eup %11358 }
 0x66f   :  { %2922 = vadd.xlane.f32.xlu0 %v2921_v49  ;;  %v13792_v8 = vpop.eup %11360  ;;  %v2930_v27 = vsel %vm1460_vm2, %v13787_v24, 0.0 }
 0x670   :  { %v2909_v63 = vsel %vm1460_vm2, %v13792_v8, 0.0 }
 0x671   :  { %2916 = vadd.xlane.f32.xlu1 %v2915_v58  ;;  %v13796_v10 = vpop.eup %11362 }
 0x672   :  { %v13800_v35 = vpop.eup %11364  ;;  %v2939_v17 = vsel %vm1460_vm2, %v13796_v10, 0.0 }
 0x673   :  { %2931 = vadd.xlane.f32.xlu0 %v2930_v27  ;;  %v2918_v62 = vsel %vm1460_vm2, %v13800_v35, 0.0  ;;  %v13806_v39 = vpop.eup %11366 }
 0x674   :  { %v2912_v28 = vsel %vm1460_vm2, %v13806_v39, 0.0  ;;  %v13810_v2 = vpop.eup %11368 }
 0x675   :  { %2910 = vadd.xlane.f32.xlu1 %v2909_v63  ;;  %v2924_v23 = vsel %vm1460_vm2, %v13810_v2, 0.0  ;;  %v13814_v3 = vpop.eup %11370 }
 0x676   :  { %v2933_v55 = vsel %vm1460_vm2, %v13814_v3, 0.0 }
 0x677   :  { %2940 = vadd.xlane.f32.xlu0 %v2939_v17 }
 0x679   :  { %2919 = vadd.xlane.f32.xlu1 %v2918_v62 }
 0x67d   :  { %2913 = vadd.xlane.f32.xlu1 %v2912_v28 }
 0x681   :  { %2925 = vadd.xlane.f32.xlu1 %v2924_v23 }
 0x685   :  { %2934 = vadd.xlane.f32.xlu1 %v2933_v55 }
 0x699   :  { %v2752_v9 = vpop.xlane.xlu1 %2751 }
 0x69a   :  { %v2792_v26 = vsub.f32 %v13647_v40, %v2752_v9 }
 0x69b   :  { %v2761_v4 = vpop.xlane.xlu0 %2760 }
 0x69c   :  { %v2851_v5 = vmul.f32 1.442695, %v2792_v26  ;;  %v2795_v38 = vsub.f32 %v13653_v13, %v2761_v4 }
 0x69d   :  { %v2746_v47 = vpop.xlane.xlu1 %2745 }
 0x69e   :  { %11372 = vpow2.f32 %v2851_v5  ;;  %v2790_v41 = vsub.f32 %v13649_v20, %v2746_v47  ;;  %v2857_v42 = vmul.f32 1.442695, %v2795_v38 }
 0x69f   :  { %v2755_v14 = vpop.xlane.xlu0 %2754 }
 0x6a0   :  { %v2847_v15 = vmul.f32 1.442695, %v2790_v41  ;;  %v2793_v16 = vsub.f32 %v13655_v22, %v2755_v14 }
 0x6a1   :  { %v13842_v58 = vpop.permute.xlu1 %3306 }
 0x6a2   :  { %11374 = vpow2.f32 %v2847_v15  ;;  %v2853_v48 = vmul.f32 1.442695, %v2793_v16 }
 0x6a3   :  { %11376 = vpow2.f32 %v2857_v42 }
 0x6a4   :  { %11378 = vpow2.f32 %v2853_v48 }
 0x6a8   :  { %v13824_v61 = vpop.eup %11372 }
 0x6a9   :  { %v2942_v40 = vsel %vm1460_vm2, %v13824_v61, 0.0 }
 0x6aa   :  { %2943 = vadd.xlane.f32.xlu0 %v2942_v40 }
 0x6ab   :  { %v2869_v63 = vpop.xlane.xlu0 %2868 }
 0x6ac   :  { %v13828_v13 = vpop.eup %11374 }
 0x6ad   :  { %v13830_v49 = vpop.eup %11376  ;;  %v2936_v20 = vsel %vm1460_vm2, %v13828_v13, 0.0 }
 0x6ae   :  { %v13834_v7 = vpop.eup %11378  ;;  %2937 = vadd.xlane.f32.xlu0 %v2936_v20  ;;  %v2951_v60 = vsel %vm1460_vm2, %v13830_v49, 0.0 }
 0x6af   :  { %v2945_v22 = vsel %vm1460_vm2, %v13834_v7, 0.0  ;;  %v2863_v55 = vpop.xlane.xlu0 %2862 }
 0x6b0   :  { %2946 = vadd.xlane.f32.xlu1 %v2945_v22 }
 0x6b2   :  { %2952 = vadd.xlane.f32.xlu0 %v2951_v60 }
 0x6c1   :  { %3310 = vrot.lane.b32.xlu1 %v17468_v34, %s12058_s25 }
 0x6d2   :  { %v2764_v27 = vpop.xlane.xlu1 %2763 }
 0x6d3   :  { %v2796_v18 = vsub.f32 %v13657_v6, %v2764_v27 }
 0x6d5   :  { %v2859_v17 = vmul.f32 1.442695, %v2796_v18 }
 0x6d6   :  { %v2758_v62 = vpop.xlane.xlu1 %2757 }
 0x6d7   :  { %11380 = vpow2.f32 %v2859_v17  ;;  %v2794_v28 = vsub.f32 %v13659_v33, %v2758_v62 }
 0x6d9   :  { %v2855_v23 = vmul.f32 1.442695, %v2794_v28 }
 0x6da   :  { %v2872_v9 = vpop.xlane.xlu1 %2871 }
 0x6db   :  { %11382 = vpow2.f32 %v2855_v23 }
 0x6dc   :  { %11384 = vrcp.f32 %v2872_v9 }
 0x6dd   :  { %11386 = vrcp.f32 %v2863_v55 }
 0x6de   :  { %11388 = vrcp.f32 %v2869_v63  ;;  %v2866_v26 = vpop.xlane.xlu1 %2865 }
 0x6df   :  { %11390 = vrcp.f32 %v2866_v26 }
 0x6e0   :  { %v2893_v34 = vpop.xlane.xlu0 %2892 }
 0x6e1   :  { %v13846_v4 = vpop.eup %11380 }
 0x6e2   :  { %v2881_v5 = vpop.xlane.xlu1 %2880  ;;  %v2954_v6 = vsel %vm1460_vm2, %v13846_v4, 0.0 }
 0x6e3   :  { %2955 = vadd.xlane.f32.xlu0 %v2954_v6 }
 0x6e4   :  { %v2887_v38 = vpop.xlane.xlu0 %2886 }
 0x6e5   :  { %v13850_v47 = vpop.eup %11382 }
 0x6e6   :  { %v11385_v33 = vpop.eup %11384  ;;  %v2875_v41 = vpop.xlane.xlu1 %2874  ;;  %v2948_v42 = vsel %vm1460_vm2, %v13850_v47, 0.0 }
 0x6e7   :  { %v11387_v14 = vpop.eup %11386  ;;  %2949 = vadd.xlane.f32.xlu0 %v2948_v42  ;;  %v2992_v48 = vmul.f32 %v11385_v33, %v13701_v43 }
 0x6e8   :  { %v11389_v15 = vpop.eup %11388  ;;  %v2896_v40 = vpop.xlane.xlu0 %2895  ;;  %v2989_v22 = vmul.f32 %v11387_v14, %v13681_v32 }
 0x6e9   :  { %v11391_v16 = vpop.eup %11390  ;;  %v2991_v27 = vmul.f32 %v11389_v15, %v13677_v36 }
 0x6ea   :  { %v2884_v20 = vpop.xlane.xlu1 %2883  ;;  %v2990_v60 = vmul.f32 %v11391_v16, %v13707_v25 }
 0x6eb   :  { %11392 = vrcp.f32 %v2884_v20  ;;  %v3022_v63 = vpack.c.bf16 %v2992_v48, %v2991_v27 }
 0x6ec   :  { %v3021_v18 = vpack.c.bf16 %v2990_v60, %v2989_v22  ;;  %11394 = vrcp.f32 %v2875_v41  ;;  %v2905_v43 = vpop.xlane.xlu0 %2904 }
 0x6ed   :  { %11396 = vrcp.f32 %v2881_v5 }
 0x6ee   :  { %v2878_v17 = vpop.xlane.xlu1 %2877  ;;  %10542 = vmatprep.mubr.msk.bf16.mxu0 %vm1460_vm2, %v3021_v18 }
 0x6ef   :  { %11398 = vrcp.f32 %v2878_v17  ;;  %10543 = vmatmul.mubr.msk.bf16.vlgmr.msra.gmra.mrb[80].mxu0 %vm1460_vm2, %v3022_v63 }
 0x6f0   :  { %11400 = vrcp.f32 %v2896_v40  ;;  %10567 = vmatpush3.bf16.msra.mxu0 %v13509_v30  ;;  %v2899_v25 = vpop.xlane.xlu0 %2898 }
 0x6f1   :  { %11402 = vrcp.f32 %v2887_v38  ;;  %10568 = vmatprep.subr.bf16.mxu0 %v13687_v52 }
 0x6f2   :  { %11404 = vrcp.f32 %v2893_v34  ;;  %v2890_v36 = vpop.xlane.xlu1 %2889 }
 0x6f3   :  { %11406 = vrcp.f32 %v2890_v36 }
 0x6f4   :  { %10569 = vmatpush3.bf16.msra.mxu0 %v13687_v52 }
 0x6f5   :  { %10570 = vmatprep.subr.bf16.mxu0 %v13818_v54  ;;  %v11393_v32 = vpop.eup %11392 }
 0x6f6   :  { %v2908_v62 = vpop.xlane.xlu1 %2907  ;;  %v11395_v28 = vpop.eup %11394  ;;  %v2996_v30 = vmul.f32 %v11393_v32, %v13733_v1 }
 0x6f7   :  { %v11397_v23 = vpop.eup %11396  ;;  %11408 = vrcp.f32 %v2908_v62  ;;  %v2993_v52 = vmul.f32 %v11395_v28, %v13720_v11 }
 0x6f8   :  { %10571 = vmatpush3.bf16.msra.mxu0 %v13818_v54  ;;  %11410 = vrcp.f32 %v2899_v25  ;;  %v2995_v6 = vmul.f32 %v11397_v23, %v13711_v44  ;;  %v2929_v15 = vpop.xlane.xlu0 %2928 }
 0x6f9   :  { %v11399_v55 = vpop.eup %11398  ;;  %10572 = vmatprep.subr.bf16.mxu0 %v13760_v53  ;;  %11412 = vrcp.f32 %v2905_v43 }
 0x6fa   :  { %v11401_v9 = vpop.eup %11400  ;;  %v2902_v26 = vpop.xlane.xlu1 %2901  ;;  %v2994_v34 = vmul.f32 %v11399_v55, %v13743_v37  ;;  %v3024_v1 = vpack.c.bf16 %v2996_v30, %v2995_v6 }
 0x6fb   :  { %v11403_v5 = vpop.eup %11402  ;;  %11414 = vrcp.f32 %v2902_v26  ;;  %v3000_v41 = vmul.f32 %v11401_v9, %v13729_v19 }
 0x6fc   :  { %v11405_v38 = vpop.eup %11404  ;;  %10573 = vmatpush3.bf16.msra.mxu0 %v13760_v53  ;;  %v3023_v54 = vpack.c.bf16 %v2994_v34, %v2993_v52  ;;  %v2997_v11 = vmul.f32 %v11403_v5, %v13724_v21  ;;  %v2923_v22 = vpop.xlane.xlu0 %2922 }
 0x6fd   :  { %v11407_v33 = vpop.eup %11406  ;;  %3308 = vrot.lane.b32.xlu0 %v17471_v31, %s12058_s25  ;;  %v2999_v44 = vmul.f32 %v11405_v38, %v13715_v57 }
 0x6fe   :  { %v2917_v42 = vpop.xlane.xlu1 %2916  ;;  %10546 = vmatprep.mubr.msk.bf16.mxu0 %vm1460_vm2, %v3023_v54  ;;  %v2998_v37 = vmul.f32 %v11407_v33, %v13754_v51 }
 0x6ff   :  { %10547 = vmatmul.mubr.msk.bf16.gmra.mrb[84].mxu0 %vm1460_vm2, %v3024_v1  ;;  %v3026_v14 = vpack.c.bf16 %v3000_v41, %v2999_v44 }
 0x700   :  { %v3025_v53 = vpack.c.bf16 %v2998_v37, %v2997_v11 }
 0x701   :  { %v11409_v16 = vpop.eup %11408 }
 0x702   :  { %v2911_v19 = vpop.xlane.xlu1 %2910  ;;  %10558 = vmatprep.mubr.msk.bf16.mxu1 %vm1460_vm2, %v3025_v53  ;;  %v11411_v31 = vpop.eup %11410  ;;  %v3004_v57 = vmul.f32 %v11409_v16, %v13764_v45 }
 0x703   :  { %10559 = vmatmul.mubr.msk.bf16.vlgmr.msra.gmra.mrb[80].mxu1 %vm1460_vm2, %v3026_v14  ;;  %v11413_v48 = vpop.eup %11412  ;;  %v3001_v40 = vmul.f32 %v11411_v31, %v13748_v56  ;;  %v2932_v56 = vpop.xlane.xlu0 %2931 }
 0x704   :  { %10583 = vmatpush3.bf16.msra.mxu1 %v13769_v0  ;;  %v3003_v60 = vmul.f32 %v11413_v48, %v13738_v50 }
 0x705   :  { %v11415_v21 = vpop.eup %11414  ;;  %10584 = vmatprep.subr.bf16.mxu1 %v13842_v58 }
 0x706   :  { %v2920_v51 = vpop.xlane.xlu1 %2919  ;;  %v3002_v20 = vmul.f32 %v11415_v21, %v13767_v59  ;;  %v3028_v18 = vpack.c.bf16 %v3004_v57, %v3003_v60 }
 0x707   :  { %11416 = vrcp.f32 %v2920_v51  ;;  %v2941_v52 = vpop.xlane.xlu0 %2940 }
 0x708   :  { %10585 = vmatpush3.bf16.msra.mxu1 %v13842_v58  ;;  %v3027_v27 = vpack.c.bf16 %v3002_v20, %v3001_v40  ;;  %11418 = vrcp.f32 %v2911_v19 }
 0x709   :  { %11420 = vrcp.f32 %v2917_v42 }
 0x70a   :  { %v2914_v0 = vpop.xlane.xlu1 %2913  ;;  %10562 = vmatprep.mubr.msk.bf16.mxu1 %vm1460_vm2, %v3027_v27 }
 0x70b   :  { %11422 = vrcp.f32 %v2914_v0  ;;  %10563 = vmatmul.mubr.msk.bf16.gmra.mrb[84].mxu1 %vm1460_vm2, %v3028_v18 }
 0x70c   :  { %11424 = vrcp.f32 %v2923_v22 }
 0x70e   :  { %v2926_v45 = vpop.xlane.xlu1 %2925 }
 0x70f   :  { %11426 = vrcp.f32 %v2926_v45 }
 0x710   :  { %11428 = vrcp.f32 %v2932_v56 }
 0x711   :  { %v11417_v59 = vpop.eup %11416  ;;  %11430 = vrcp.f32 %v2929_v15 }
 0x712   :  { %v11419_v50 = vpop.eup %11418  ;;  %v3008_v17 = vmul.f32 %v11417_v59, %v13800_v35  ;;  %v2935_v34 = vpop.xlane.xlu1 %2934 }
 0x713   :  { %v11421_v63 = vpop.eup %11420  ;;  %v3005_v43 = vmul.f32 %v11419_v50, %v13792_v8  ;;  %11432 = vrcp.f32 %v2935_v34 }
 0x714   :  { %v3007_v25 = vmul.f32 %v11421_v63, %v13779_v29 }
 0x715   :  { %v11423_v58 = vpop.eup %11422 }
 0x716   :  { %v3006_v36 = vmul.f32 %v11423_v58, %v13806_v39  ;;  %v11425_v32 = vpop.eup %11424  ;;  %v3030_v23 = vpack.c.bf16 %v3008_v17, %v3007_v25 }
 0x717   :  { %v3009_v30 = vmul.f32 %v11425_v32, %v13783_v46 }
 0x718   :  { %v3029_v62 = vpack.c.bf16 %v3006_v36, %v3005_v43 }
 0x719   :  { %v11427_v28 = vpop.eup %11426 }
 0x71a   :  { %v11429_v55 = vpop.eup %11428  ;;  %10574 = vmatprep.mubr.msk.bf16.mxu0 %vm1460_vm2, %v3029_v62  ;;  %v3010_v9 = vmul.f32 %v11427_v28, %v13810_v2 }
 0x71b   :  { %10575 = vmatmul.mubr.msk.bf16.vlgmr.msra.gmra.mrb[88].mxu0 %vm1460_vm2, %v3030_v23  ;;  %v11431_v35 = vpop.eup %11430  ;;  %v3012_v8 = vmul.f32 %v11429_v55, %v13787_v24 }
 0x71c   :  { %v3031_v26 = vpack.c.bf16 %v3010_v9, %v3009_v30  ;;  %v3011_v29 = vmul.f32 %v11431_v35, %v13773_v12 }
 0x71d   :  { %v11433_v2 = vpop.eup %11432 }
 0x71e   :  { %10578 = vmatprep.mubr.msk.bf16.mxu0 %vm1460_vm2, %v3031_v26  ;;  %v3032_v39 = vpack.c.bf16 %v3012_v8, %v3011_v29  ;;  %v3013_v38 = vmul.f32 %v11433_v2, %v13814_v3 }
 0x723   :  { %10579 = vmatmul.mubr.msk.bf16.gmra.mrb[92].mxu0 %vm1460_vm2, %v3032_v39 }
 0x737   :  { %v2944_v5 = vpop.xlane.xlu0 %2943 }
 0x73b   :  { %v2938_v46 = vpop.xlane.xlu0 %2937 }
 0x73c   :  { %11434 = vrcp.f32 %v2938_v46 }
 0x73d   :  { %11436 = vrcp.f32 %v2944_v5  ;;  %v2947_v12 = vpop.xlane.xlu1 %2946 }
 0x73e   :  { %11438 = vrcp.f32 %v2941_v52 }
 0x73f   :  { %v2953_v33 = vpop.xlane.xlu0 %2952  ;;  %11440 = vrcp.f32 %v2947_v12 }
 0x741   :  { %v3311_v3 = vpop.permute.xlu1 %3310 }
 0x746   :  { %v11435_v6 = vpop.eup %11434 }
 0x747   :  { %v3014_v54 = vmul.f32 %v11435_v6, %v13828_v13  ;;  %v11437_v42 = vpop.eup %11436 }
 0x748   :  { %v11439_v37 = vpop.eup %11438  ;;  %v3016_v13 = vmul.f32 %v11437_v42, %v13824_v61 }
 0x749   :  { %v3033_v24 = vpack.c.bf16 %v3014_v54, %v3013_v38  ;;  %v11441_v44 = vpop.eup %11440  ;;  %v3015_v53 = vmul.f32 %v11439_v37, %v13796_v10 }
 0x74a   :  { %v3017_v19 = vmul.f32 %v11441_v44, %v13834_v7 }
 0x74b   :  { %10590 = vmatprep.mubr.msk.bf16.mxu1 %vm1460_vm2, %v3033_v24  ;;  %v3034_v15 = vpack.c.bf16 %v3016_v13, %v3015_v53 }
 0x770   :  { %v2956_v41 = vpop.xlane.xlu0 %2955 }
 0x774   :  { %v2950_v1 = vpop.xlane.xlu0 %2949 }
 0x775   :  { %11442 = vrcp.f32 %v2950_v1 }
 0x776   :  { %11444 = vrcp.f32 %v2956_v41 }
 0x777   :  { %11446 = vrcp.f32 %v2953_v33 }
 0x778   :  { %v3309_v11 = vpop.permute.xlu0 %3308 }
 0x779   :  { %10586 = vmatprep.subr.bf16.mxu1 %v3309_v11 }
 0x77a   :  { %10587 = vmatpush3.bf16.msra.mxu1 %v3309_v11 }
 0x77b   :  { %10588 = vmatprep.subr.bf16.mxu1 %v3311_v3 }
 0x77e   :  { %10589 = vmatpush3.bf16.msra.mxu1 %v3311_v3 }
 0x77f   :  { %v11443_v14 = vpop.eup %11442 }
 0x780   :  { %v11445_v16 = vpop.eup %11444  ;;  %v3018_v31 = vmul.f32 %v11443_v14, %v13850_v47 }
 0x781   :  { %10591 = vmatmul.mubr.msk.bf16.vlgmr.msra.gmra.mrb[88].mxu1 %vm1460_vm2, %v3034_v15  ;;  %v11447_v48 = vpop.eup %11446  ;;  %v3020_v57 = vmul.f32 %v11445_v16, %v13846_v4 }
 0x782   :  { %v3035_v21 = vpack.c.bf16 %v3018_v31, %v3017_v19  ;;  %v3019_v61 = vmul.f32 %v11447_v48, %v13830_v49  ;;  %v12024_v19 = vld [vmem:[%s17305_s0 + $0x10] sm:$0xff] }
 0x784   :  { %10594 = vmatprep.mubr.msk.bf16.mxu1 %vm1460_vm2, %v3035_v21  ;;  %v3036_v51 = vpack.c.bf16 %v3020_v57, %v3019_v61  ;;  %v12025_v57 = vld [vmem:[%s17305_s0] sm:$0xff] }
 0x789   :  { %10595 = vmatmul.mubr.msk.bf16.gmra.mrb[92].mxu1 %vm1460_vm2, %v3036_v51 }
 0x7c2   :  { %v10544_v10 = vpop.f32.mrb[80].mxu0 }
 0x7c3   :  { %3429 = vrot.lane.b32.xlu0 %v10544_v10, %s12059_s26  ;;  %v3095_v7 = vpop.f32.mrb[81].mxu0 }
 0x7c4   :  { %3425 = vrot.lane.b32.xlu1 %v3095_v7, %s12059_s26  ;;  %v10545_v47 = vpop.f32.mrb[82].mxu0  ;;  %v12026_v7 = vld [vmem:[%s17305_s0 + $0x18] sm:$0xff] }
 0x7c5   :  { %v3098_v40 = vpop.f32.mrb[83].mxu0 }
 0x7c8   :  { %3431 = vrot.lane.b32.xlu1 %v10545_v47, %s12059_s26 }
 0x7cc   :  { %3427 = vrot.lane.b32.xlu1 %v3098_v40, %s12059_s26 }
 0x7d2   :  { %v10548_v4 = vpop.f32.mrb[84].mxu0 }
 0x7d3   :  { %3437 = vrot.lane.b32.xlu0 %v10548_v4, %s12059_s26  ;;  %v3111_v49 = vpop.f32.mrb[85].mxu0 }
 0x7d4   :  { %v10549_v20 = vpop.f32.mrb[86].mxu0 }
 0x7d5   :  { %3439 = vrot.lane.b32.xlu1 %v10549_v20, %s12059_s26  ;;  %v3114_v22 = vpop.f32.mrb[87].mxu0 }
 0x7d6   :  { %v10560_v60 = vpop.f32.mrb[80].mxu1 }
 0x7d7   :  { %3433 = vrot.lane.b32.xlu0 %v3111_v49, %s12059_s26  ;;  %v3184_v27 = vpop.f32.mrb[81].mxu1  ;;  %v12027_v49 = vld [vmem:[%s17305_s0 + $0x8] sm:$0xff] }
 0x7d8   :  { %v10561_v18 = vpop.f32.mrb[82].mxu1 }
 0x7d9   :  { %3435 = vrot.lane.b32.xlu1 %v3114_v22, %s12059_s26  ;;  %v3187_v0 = vpop.f32.mrb[83].mxu1 }
 0x7db   :  { %3445 = vrot.lane.b32.xlu0 %v10560_v60, %s12059_s26 }
 0x7dd   :  { %3447 = vrot.lane.b32.xlu1 %v10561_v18, %s12059_s26 }
 0x7de   :  { %v10564_v56 = vpop.f32.mrb[84].mxu1 }
 0x7df   :  { %3441 = vrot.lane.b32.xlu0 %v3184_v27, %s12059_s26  ;;  %v3200_v45 = vpop.f32.mrb[85].mxu1  ;;  %v12028_v27 = vld [vmem:[%s17305_s0 + $0x20] sm:$0xff] }
 0x7e0   :  { %v10565_v59 = vpop.f32.mrb[86].mxu1 }
 0x7e1   :  { %3443 = vrot.lane.b32.xlu1 %v3187_v0, %s12059_s26  ;;  %v3203_v50 = vpop.f32.mrb[87].mxu1 }
 0x7e3   :  { %3453 = vrot.lane.b32.xlu0 %v10564_v56, %s12059_s26 }
 0x7e5   :  { %3455 = vrot.lane.b32.xlu1 %v10565_v59, %s12059_s26 }
 0x7e7   :  { %3449 = vrot.lane.b32.xlu0 %v3200_v45, %s12059_s26  ;;  %v12029_v45 = vld [vmem:[%s17305_s0 + $0x30] sm:$0xff] }
 0x7e9   :  { %3451 = vrot.lane.b32.xlu1 %v3203_v50, %s12059_s26 }
 0x7ee   :  { %v10576_v63 = vpop.f32.mrb[88].mxu0 }
 0x7ef   :  { %v3273_v58 = vpop.f32.mrb[89].mxu0  ;;  %3461 = vrot.lane.b32.xlu0 %v10576_v63, %s12059_s26 }
 0x7f0   :  { %v10577_v17 = vpop.f32.mrb[90].mxu0 }
 0x7f1   :  { %v3276_v43 = vpop.f32.mrb[91].mxu0  ;;  %3463 = vrot.lane.b32.xlu1 %v10577_v17, %s12059_s26  ;;  %v12030_v17 = vld [vmem:[%s17305_s0 + $0x28] sm:$0xff] }
 0x7f3   :  { %3457 = vrot.lane.b32.xlu0 %v3273_v58, %s12059_s26 }
 0x7f5   :  { %3459 = vrot.lane.b32.xlu1 %v3276_v43, %s12059_s26 }
 0x7f6   :  { %v10580_v36 = vpop.f32.mrb[92].mxu0 }
 0x7f7   :  { %3469 = vrot.lane.b32.xlu0 %v10580_v36, %s12059_s26  ;;  %v3289_v32 = vpop.f32.mrb[93].mxu0  ;;  %v12031_v36 = vld [vmem:[%s17305_s0 + $0x38] sm:$0xff] }
 0x7f8   :  { %v10581_v25 = vpop.f32.mrb[94].mxu0 }
 0x7f9   :  { %3471 = vrot.lane.b32.xlu1 %v10581_v25, %s12059_s26  ;;  %v3292_v62 = vpop.f32.mrb[95].mxu0 }
 0x7fb   :  { %3465 = vrot.lane.b32.xlu0 %v3289_v32, %s12059_s26 }
 0x7fd   :  { %3467 = vrot.lane.b32.xlu1 %v3292_v62, %s12059_s26 }
 0x835   :  { %v3430_v28 = vpop.permute.xlu0 %3429 }
 0x836   :  { %3524 = vst.msk [vmem:[#allocation2 + $0x10] sm:$0xff] %vm3521_vm3, %v3430_v28  ;;  %v3426_v23 = vpop.permute.xlu1 %3425 }
 0x837   :  { %3522 = vst.msk [vmem:[#allocation2] sm:$0xff] %vm3521_vm3, %v3426_v23 }
 0x83a   :  { %v3432_v55 = vpop.permute.xlu1 %3431 }
 0x83b   :  { %3525 = vst.msk [vmem:[#allocation2 + $0x18] sm:$0xff] %vm3521_vm3, %v3432_v55  ;;  %v12032_v55 = vld [vmem:[%s17305_s0 + $0x48] sm:$0xff] }
 0x83d   :  { %v3556_v16 = vld [vmem:[#allocation2 + $0x10] sm:$0xff] }
 0x83e   :  { %v3428_v30 = vpop.permute.xlu1 %3427  ;;  %v13971_v31 = vadd.f32 %v12024_v19, %v3556_v16  ;;  %v3554_v48 = vld [vmem:[#allocation2] sm:$0xff] }
 0x83f   :  { %3523 = vst.msk [vmem:[#allocation2 + $0x8] sm:$0xff] %vm3521_vm3, %v3428_v30  ;;  %v13978_v61 = vadd.f32 %v12025_v57, %v3554_v48 }
 0x840   :  { %v3626_v21 = vsel %vm73_vm0, %v13971_v31, 0.0 }
 0x841   :  { %v3620_v10 = vsel %vm73_vm0, %v13978_v61, 0.0 }
 0x842   :  { %v3557_v51 = vld [vmem:[#allocation2 + $0x18] sm:$0xff] }
 0x843   :  { %v13985_v47 = vadd.f32 %v12026_v7, %v3557_v51  ;;  %v12040_v51 = vld [vmem:[%s17305_s0 + $0x88] sm:$0xff]  ;;  %v12041_v7 = vld [vmem:[%s17305_s0 + $0x80] sm:$0xff] }
 0x845   :  { %v3438_v9 = vpop.permute.xlu0 %3437  ;;  %v3629_v40 = vsel %vm73_vm0, %v13985_v47, 0.0 }
 0x846   :  { %3528 = vst.msk [vmem:[#allocation2 + $0x30] sm:$0xff] %vm3521_vm3, %v3438_v9  ;;  %v3555_v4 = vld [vmem:[#allocation2 + $0x8] sm:$0xff]  ;;  %v12033_v9 = vld [vmem:[%s17305_s0 + $0x40] sm:$0xff] }
 0x847   :  { %v3440_v35 = vpop.permute.xlu1 %3439  ;;  %v13992_v20 = vadd.f32 %v12027_v49, %v3555_v4 }
 0x848   :  { %3529 = vst.msk [vmem:[#allocation2 + $0x38] sm:$0xff] %vm3521_vm3, %v3440_v35 }
 0x849   :  { %v3434_v26 = vpop.permute.xlu0 %3433  ;;  %v3623_v22 = vsel %vm73_vm0, %v13992_v20, 0.0 }
 0x84a   :  { %3526 = vst.msk [vmem:[#allocation2 + $0x20] sm:$0xff] %vm3521_vm3, %v3434_v26 }
 0x84b   :  { %v3436_v8 = vpop.permute.xlu1 %3435 }
 0x84c   :  { %3527 = vst.msk [vmem:[#allocation2 + $0x28] sm:$0xff] %vm3521_vm3, %v3436_v8 }
 0x84d   :  { %v3446_v29 = vpop.permute.xlu0 %3445  ;;  %v3560_v0 = vld [vmem:[#allocation2 + $0x30] sm:$0xff] }
 0x84e   :  { %3532 = vst.msk [vmem:[#allocation2 + $0x50] sm:$0xff] %vm3521_vm3, %v3446_v29  ;;  %v14008_v59 = vadd.f32 %v12029_v45, %v3560_v0  ;;  %v12042_v0 = vld [vmem:[%s17305_s0 + $0x98] sm:$0xff]  ;;  %v12043_v45 = vld [vmem:[%s17305_s0 + $0x90] sm:$0xff] }
 0x84f   :  { %v3448_v39 = vpop.permute.xlu1 %3447  ;;  %v3561_v63 = vld [vmem:[#allocation2 + $0x38] sm:$0xff] }
 0x850   :  { %3533 = vst.msk [vmem:[#allocation2 + $0x58] sm:$0xff] %vm3521_vm3, %v3448_v39  ;;  %v3638_v58 = vsel %vm73_vm0, %v14008_v59, 0.0  ;;  %v14020_v32 = vadd.f32 %v12031_v36, %v3561_v63 }
 0x851   :  { %v3442_v52 = vpop.permute.xlu0 %3441  ;;  %v3558_v60 = vld [vmem:[#allocation2 + $0x20] sm:$0xff] }
 0x852   :  { %3530 = vst.msk [vmem:[#allocation2 + $0x40] sm:$0xff] %vm3521_vm3, %v3442_v52  ;;  %v14001_v18 = vadd.f32 %v12028_v27, %v3558_v60  ;;  %v3641_v23 = vsel %vm73_vm0, %v14020_v32, 0.0  ;;  %v12034_v52 = vld [vmem:[%s17305_s0 + $0x58] sm:$0xff] }
 0x853   :  { %v3444_v34 = vpop.permute.xlu1 %3443  ;;  %v3559_v50 = vld [vmem:[#allocation2 + $0x28] sm:$0xff] }
 0x854   :  { %3531 = vst.msk [vmem:[#allocation2 + $0x48] sm:$0xff] %vm3521_vm3, %v3444_v34  ;;  %v10592_v5 = vpop.f32.mrb[88].mxu1  ;;  %v3632_v56 = vsel %vm73_vm0, %v14001_v18, 0.0  ;;  %v14015_v43 = vadd.f32 %v12030_v17, %v3559_v50 }
 0x855   :  { %3477 = vrot.lane.b32.xlu0 %v10592_v5, %s12059_s26  ;;  %v3362_v46 = vpop.f32.mrb[89].mxu1  ;;  %v3454_v2 = vpop.permute.xlu0 %3453  ;;  %v3564_v8 = vld [vmem:[#allocation2 + $0x50] sm:$0xff] }
 0x856   :  { %3536 = vst.msk [vmem:[#allocation2 + $0x70] sm:$0xff] %vm3521_vm3, %v3454_v2  ;;  %v10593_v6 = vpop.f32.mrb[90].mxu1  ;;  %v3635_v28 = vsel %vm73_vm0, %v14015_v43, 0.0  ;;  %v12035_v5 = vld [vmem:[%s17305_s0 + $0x50] sm:$0xff] }
 0x857   :  { %v3456_v38 = vpop.permute.xlu1 %3455  ;;  %3479 = vrot.lane.b32.xlu1 %v10593_v6, %s12059_s26  ;;  %v3365_v54 = vpop.f32.mrb[91].mxu1  ;;  %v3565_v26 = vld [vmem:[#allocation2 + $0x58] sm:$0xff] }
 0x858   :  { %3537 = vst.msk [vmem:[#allocation2 + $0x78] sm:$0xff] %vm3521_vm3, %v3456_v38  ;;  %v14043_v34 = vadd.f32 %v12034_v52, %v3565_v26  ;;  %v12046_v52 = vld [vmem:[%s17305_s0 + $0xb8] sm:$0xff] }
 0x859   :  { %3473 = vrot.lane.b32.xlu0 %v3362_v46, %s12059_s26  ;;  %v3450_v24 = vpop.permute.xlu0 %3449  ;;  %v3562_v62 = vld [vmem:[#allocation2 + $0x40] sm:$0xff]  ;;  %v14048_v46 = vadd.f32 %v12035_v5, %v3564_v8 }
 0x85a   :  { %3534 = vst.msk [vmem:[#allocation2 + $0x60] sm:$0xff] %vm3521_vm3, %v3450_v24  ;;  %v14034_v35 = vadd.f32 %v12033_v9, %v3562_v62  ;;  %v3653_v38 = vsel %vm73_vm0, %v14043_v34, 0.0  ;;  %v12036_v24 = vld [vmem:[%s17305_s0 + $0x68] sm:$0xff] }
 0x85b   :  { %v3452_v33 = vpop.permute.xlu1 %3451  ;;  %3475 = vrot.lane.b32.xlu1 %v3365_v54, %s12059_s26  ;;  %v3563_v25 = vld [vmem:[#allocation2 + $0x48] sm:$0xff]  ;;  %v3650_v54 = vsel %vm73_vm0, %v14048_v46, 0.0 }
 0x85c   :  { %3535 = vst.msk [vmem:[#allocation2 + $0x68] sm:$0xff] %vm3521_vm3, %v3452_v33  ;;  %v10596_v12 = vpop.f32.mrb[92].mxu1  ;;  %v14029_v30 = vadd.f32 %v12032_v55, %v3563_v25  ;;  %v3644_v39 = vsel %vm73_vm0, %v14034_v35, 0.0  ;;  %v12044_v62 = vld [vmem:[%s17305_s0 + $0xa8] sm:$0xff] }
 0x85d   :  { %v3378_v41 = vpop.f32.mrb[93].mxu1 }
 0x85e   :  { %v10597_v1 = vpop.f32.mrb[94].mxu1  ;;  %v3647_v29 = vsel %vm73_vm0, %v14029_v30, 0.0 }
 0x85f   :  { %v3381_v42 = vpop.f32.mrb[95].mxu1 }
 0x860   :  { %3483 = vrot.lane.b32.xlu1 %v3381_v42, %s12059_s26  ;;  %v3568_v42 = vld [vmem:[#allocation2 + $0x70] sm:$0xff] }
 0x861   :  { %v3462_v11 = vpop.permute.xlu0 %3461  ;;  %v3566_v6 = vld [vmem:[#allocation2 + $0x60] sm:$0xff] }
 0x862   :  { %3540 = vst.msk [vmem:[#allocation2 + $0x90] sm:$0xff] %vm3521_vm3, %v3462_v11 }
 0x863   :  { %v3464_v37 = vpop.permute.xlu1 %3463  ;;  %v3567_v2 = vld [vmem:[#allocation2 + $0x68] sm:$0xff] }
 0x864   :  { %3541 = vst.msk [vmem:[#allocation2 + $0x98] sm:$0xff] %vm3521_vm3, %v3464_v37  ;;  %3485 = vrot.lane.b32.xlu1 %v10596_v12, %s12059_s26  ;;  %v14057_v33 = vadd.f32 %v12036_v24, %v3567_v2  ;;  %v12037_v12 = vld [vmem:[%s17305_s0 + $0x60] sm:$0xff]  ;;  %v12047_v2 = vld [vmem:[%s17305_s0 + $0xb0] sm:$0xff] }
 0x865   :  { %v3458_v3 = vpop.permute.xlu0 %3457 }
 0x866   :  { %3538 = vst.msk [vmem:[#allocation2 + $0x80] sm:$0xff] %vm3521_vm3, %v3458_v3  ;;  %17496 = vst [vmem:[#allocation13_spill] sm:$0xff] %v14057_v33  ;;  %v3659_v37 = vsel %vm73_vm0, %v14057_v33, 0.0 }
 0x867   :  { %v3460_v13 = vpop.permute.xlu1 %3459 }
 0x868   :  { %3539 = vst.msk [vmem:[#allocation2 + $0x88] sm:$0xff] %vm3521_vm3, %v3460_v13  ;;  %v12038_v13 = vld [vmem:[%s17305_s0 + $0x78] sm:$0xff] }
 0x869   :  { %v3470_v44 = vpop.permute.xlu0 %3469 }
 0x86a   :  { %3544 = vst.msk [vmem:[#allocation2 + $0xb0] sm:$0xff] %vm3521_vm3, %v3470_v44 }
 0x86b   :  { %v3472_v53 = vpop.permute.xlu1 %3471  ;;  %v3573_v49 = vld [vmem:[#allocation2 + $0x98] sm:$0xff] }
 0x86c   :  { %3545 = vst.msk [vmem:[#allocation2 + $0xb8] sm:$0xff] %vm3521_vm3, %v3472_v53  ;;  %v12039_v53 = vld [vmem:[%s17305_s0 + $0x70] sm:$0xff] }
 0x86d   :  { %v3466_v14 = vpop.permute.xlu0 %3465  ;;  %v3570_v19 = vld [vmem:[#allocation2 + $0x80] sm:$0xff] }
 0x86e   :  { %3542 = vst.msk [vmem:[#allocation2 + $0xa0] sm:$0xff] %vm3521_vm3, %v3466_v14  ;;  %v14077_v14 = vadd.f32 %v12039_v53, %v3568_v42 }
 0x86f   :  { %v3468_v15 = vpop.permute.xlu1 %3467  ;;  %v3571_v16 = vld [vmem:[#allocation2 + $0x88] sm:$0xff] }
 0x870   :  { %3543 = vst.msk [vmem:[#allocation2 + $0xa8] sm:$0xff] %vm3521_vm3, %v3468_v15  ;;  %v3662_v57 = vsel %vm73_vm0, %v14077_v14, 0.0 }
 0x871   :  { %v3576_v26 = vld [vmem:[#allocation2 + $0xb0] sm:$0xff] }
 0x873   :  { %v3577_v9 = vld [vmem:[#allocation2 + $0xb8] sm:$0xff] }
 0x874   :  { %v14133_v5 = vadd.f32 %v12046_v52, %v3577_v9 }
 0x876   :  { %17504 = vst [vmem:[#allocation23_spill] sm:$0xff] %v14133_v5  ;;  %v3689_v24 = vsel %vm73_vm0, %v14133_v5, 0.0 }
 0x877   :  { %v3575_v63 = vld [vmem:[#allocation2 + $0xa8] sm:$0xff] }
 0x878   :  { %3627 = vadd.xlane.f32.xlu0 %v3626_v21 }
 0x87c   :  { %3621 = vadd.xlane.f32.xlu0 %v3620_v10  ;;  %v14088_v10 = vadd.f32 %v12040_v51, %v3571_v16  ;;  %v12050_v16 = vld [vmem:[%s17305_s0 + $0xd8] sm:$0xff] }
 0x87e   :  { %17498 = vst [vmem:[#allocation18_spill] sm:$0xff] %v14088_v10  ;;  %v3671_v60 = vsel %vm73_vm0, %v14088_v10, 0.0 }
 0x880   :  { %3630 = vadd.xlane.f32.xlu0 %v3629_v40  ;;  %v14093_v40 = vadd.f32 %v12041_v7, %v3570_v19 }
 0x882   :  { %17499 = vst [vmem:[#allocation9_spill] sm:$0xff] %v14093_v40  ;;  %v3668_v27 = vsel %vm73_vm0, %v14093_v40, 0.0 }
 0x888   :  { %3624 = vadd.xlane.f32.xlu1 %v3623_v22  ;;  %v3572_v22 = vld [vmem:[#allocation2 + $0x90] sm:$0xff] }
 0x889   :  { %v14108_v50 = vadd.f32 %v12043_v45, %v3572_v22 }
 0x88b   :  { %17501 = vst [vmem:[#allocation15_spill] sm:$0xff] %v14108_v50  ;;  %v3674_v25 = vsel %vm73_vm0, %v14108_v50, 0.0 }
 0x896   :  { %3481 = vrot.lane.b32.xlu0 %v3378_v41, %s12059_s26  ;;  %v14062_v41 = vadd.f32 %v12037_v12, %v3566_v6  ;;  %v14138_v6 = vadd.f32 %v12047_v2, %v3576_v26  ;;  %v12053_v2 = vld [vmem:[%s17305_s0 + $0xe0] sm:$0xff] }
 0x898   :  { %v3656_v3 = vsel %vm73_vm0, %v14062_v41, 0.0  ;;  %17505 = vst [vmem:[#allocation17_spill] sm:$0xff] %v14138_v6  ;;  %v3686_v12 = vsel %vm73_vm0, %v14138_v6, 0.0 }
 0x899   :  { %3487 = vrot.lane.b32.xlu1 %v10597_v1, %s12059_s26  ;;  %v3569_v1 = vld [vmem:[#allocation2 + $0x78] sm:$0xff] }
 0x89a   :  { %v14072_v44 = vadd.f32 %v12038_v13, %v3569_v1  ;;  %v12048_v1 = vld [vmem:[%s17305_s0 + $0xc8] sm:$0xff] }
 0x89c   :  { %17497 = vst [vmem:[#allocation22_spill] sm:$0xff] %v14072_v44  ;;  %v3665_v21 = vsel %vm73_vm0, %v14072_v44, 0.0 }
 0x8b5   :  { %3633 = vadd.xlane.f32.xlu0 %v3632_v56  ;;  %v14103_v56 = vadd.f32 %v12042_v0, %v3573_v49 }
 0x8b7   :  { %17500 = vst [vmem:[#allocation10_spill] sm:$0xff] %v14103_v56  ;;  %v3677_v36 = vsel %vm73_vm0, %v14103_v56, 0.0 }
 0x8b9   :  { %3639 = vadd.xlane.f32.xlu0 %v3638_v58  ;;  %v3574_v58 = vld [vmem:[#allocation2 + $0xa0] sm:$0xff] }
 0x8bd   :  { %3636 = vadd.xlane.f32.xlu1 %v3635_v28  ;;  %3642 = vadd.xlane.f32.xlu0 %v3641_v23  ;;  %v14118_v28 = vadd.f32 %v12044_v62, %v3575_v63  ;;  %v12045_v23 = vld [vmem:[%s17305_s0 + $0xa0] sm:$0xff] }
 0x8be   :  { %v14123_v55 = vadd.f32 %v12045_v23, %v3574_v58 }
 0x8bf   :  { %17502 = vst [vmem:[#allocation19_spill] sm:$0xff] %v14118_v28 }
 0x8c0   :  { %17503 = vst [vmem:[#allocation11_spill] sm:$0xff] %v14123_v55 }
 0x8c1   :  { %3648 = vadd.xlane.f32.xlu1 %v3647_v29  ;;  %3645 = vadd.xlane.f32.xlu0 %v3644_v39  ;;  %v3683_v29 = vsel %vm73_vm0, %v14118_v28, 0.0  ;;  %v3680_v39 = vsel %vm73_vm0, %v14123_v55, 0.0 }
 0x8c5   :  { %3654 = vadd.xlane.f32.xlu1 %v3653_v38  ;;  %3651 = vadd.xlane.f32.xlu0 %v3650_v54 }
 0x8c7   :  { %v3478_v11 = vpop.permute.xlu0 %3477 }
 0x8c8   :  { %3548 = vst.msk [vmem:[#allocation2 + $0xd0] sm:$0xff] %vm3521_vm3, %v3478_v11  ;;  %v12049_v11 = vld [vmem:[%s17305_s0 + $0xc0] sm:$0xff] }
 0x8c9   :  { %v3480_v15 = vpop.permute.xlu1 %3479  ;;  %3660 = vadd.xlane.f32.xlu1 %v3659_v37  ;;  %3657 = vadd.xlane.f32.xlu0 %v3656_v3 }
 0x8ca   :  { %3549 = vst.msk [vmem:[#allocation2 + $0xd8] sm:$0xff] %vm3521_vm3, %v3480_v15 }
 0x8cb   :  { %v3474_v48 = vpop.permute.xlu0 %3473 }
 0x8cc   :  { %3546 = vst.msk [vmem:[#allocation2 + $0xc0] sm:$0xff] %vm3521_vm3, %v3474_v48  ;;  %v12051_v48 = vld [vmem:[%s17305_s0 + $0xd0] sm:$0xff] }
 0x8cd   :  { %v3476_v4 = vpop.permute.xlu1 %3475  ;;  %3666 = vadd.xlane.f32.xlu1 %v3665_v21  ;;  %3663 = vadd.xlane.f32.xlu0 %v3662_v57 }
 0x8ce   :  { %3547 = vst.msk [vmem:[#allocation2 + $0xc8] sm:$0xff] %vm3521_vm3, %v3476_v4  ;;  %v12052_v4 = vld [vmem:[%s17305_s0 + $0xe8] sm:$0xff] }
 0x8cf   :  { %v3580_v13 = vld [vmem:[#allocation2 + $0xd0] sm:$0xff] }
 0x8d0   :  { %v14166_v21 = vadd.f32 %v12051_v48, %v3580_v13 }
 0x8d1   :  { %3672 = vadd.xlane.f32.xlu1 %v3671_v60  ;;  %3669 = vadd.xlane.f32.xlu0 %v3668_v27  ;;  %v3581_v3 = vld [vmem:[#allocation2 + $0xd8] sm:$0xff] }
 0x8d2   :  { %v3484_v17 = vpop.permute.xlu1 %3483  ;;  %v14161_v19 = vadd.f32 %v12050_v16, %v3581_v3  ;;  %17509 = vst [vmem:[#allocation24_spill] sm:$0xff] %v14166_v21  ;;  %v3698_v7 = vsel %vm73_vm0, %v14166_v21, 0.0 }
 0x8d3   :  { %3551 = vst.msk [vmem:[#allocation2 + $0xe8] sm:$0xff] %vm3521_vm3, %v3484_v17  ;;  %v3578_v54 = vld [vmem:[#allocation2 + $0xc0] sm:$0xff] }
 0x8d4   :  { %v14152_v37 = vadd.f32 %v12049_v11, %v3578_v54  ;;  %17508 = vst [vmem:[#allocation7_spill] sm:$0xff] %v14161_v19  ;;  %v3701_v51 = vsel %vm73_vm0, %v14161_v19, 0.0 }
 0x8d5   :  { %3678 = vadd.xlane.f32.xlu1 %v3677_v36  ;;  %3675 = vadd.xlane.f32.xlu0 %v3674_v25  ;;  %v3579_v38 = vld [vmem:[#allocation2 + $0xc8] sm:$0xff] }
 0x8d6   :  { %v3486_v8 = vpop.permute.xlu1 %3485  ;;  %v14147_v42 = vadd.f32 %v12048_v1, %v3579_v38  ;;  %17507 = vst [vmem:[#allocation20_spill] sm:$0xff] %v14152_v37  ;;  %v3692_v15 = vsel %vm73_vm0, %v14152_v37, 0.0 }
 0x8d7   :  { %3552 = vst.msk [vmem:[#allocation2 + $0xf0] sm:$0xff] %vm3521_vm3, %v3486_v8 }
 0x8d8   :  { %17506 = vst [vmem:[#allocation3_spill] sm:$0xff] %v14147_v42  ;;  %v3695_v53 = vsel %vm73_vm0, %v14147_v42, 0.0 }
 0x8d9   :  { %3684 = vadd.xlane.f32.xlu1 %v3683_v29  ;;  %3681 = vadd.xlane.f32.xlu0 %v3680_v39 }
 0x8da   :  { %v3583_v57 = vld [vmem:[#allocation2 + $0xe8] sm:$0xff] }
 0x8db   :  { %v14175_v49 = vadd.f32 %v12052_v4, %v3583_v57 }
 0x8dd   :  { %3690 = vadd.xlane.f32.xlu1 %v3689_v24  ;;  %3687 = vadd.xlane.f32.xlu0 %v3686_v12  ;;  %17510 = vst [vmem:[#allocation4_spill] sm:$0xff] %v14175_v49  ;;  %v3707_v22 = vsel %vm73_vm0, %v14175_v49, 0.0 }
 0x8e1   :  { %3696 = vadd.xlane.f32.xlu1 %v3695_v53  ;;  %3693 = vadd.xlane.f32.xlu0 %v3692_v15  ;;  %v3584_v53 = vld [vmem:[#allocation2 + $0xf0] sm:$0xff]  ;;  %v12054_v15 = vld [vmem:[%s17305_s0 + $0xf8] sm:$0xff] }
 0x8e5   :  { %3702 = vadd.xlane.f32.xlu1 %v3701_v51  ;;  %3699 = vadd.xlane.f32.xlu0 %v3698_v7  ;;  %v12055_v51 = vld [vmem:[%s17305_s0 + $0xf0] sm:$0xff] }
 0x8e6   :  { %v14222_v7 = vadd.f32 %v12055_v51, %v3584_v53 }
 0x8e8   :  { %17513 = vst [vmem:[#allocation8_spill] sm:$0xff] %v14222_v7  ;;  %v3710_v4 = vsel %vm73_vm0, %v14222_v7, 0.0 }
 0x8e9   :  { %3708 = vadd.xlane.f32.xlu1 %v3707_v22 }
 0x905   :  { %v3628_v60 = vpop.xlane.xlu0 %3627 }
 0x906   :  { %v3718_v36 = vmul.f32 0.03125, %v3628_v60 }
 0x908   :  { %v14187_v9 = vsub.f32 %v13971_v31, %v3718_v36 }
 0x909   :  { %v3622_v27 = vpop.xlane.xlu0 %3621 }
 0x90a   :  { %v3716_v26 = vmul.f32 0.03125, %v3622_v27  ;;  %v3782_v1 = vmul.f32 %v14187_v9, %v14187_v9  ;;  %v11114_v27 = vld [vmem:[%s17310_s7] sm:$0xff]  }
 0x90b   :  { %10598 = vmatprep.subr.bf16.mxu0 %v11114_v27 }
 0x90c   :  { %v14201_v54 = vsub.f32 %v13978_v61, %v3716_v26  ;;  %v3818_v11 = vsel %vm73_vm0, %v3782_v1, 0.0  ;;  %10599 = vmatpush3.bf16.msra.mxu0 %v11114_v27 }
 0x90d   :  { %v3631_v0 = vpop.xlane.xlu0 %3630 }
 0x90e   :  { %v3719_v45 = vmul.f32 0.03125, %v3631_v0  ;;  %v3780_v3 = vmul.f32 %v14201_v54, %v14201_v54  ;;  %v11115_v0 = vld [vmem:[%s17310_s7 + $0x8] sm:$0xff]  }
 0x90f   :  { %10600 = vmatprep.subr.bf16.mxu0 %v11115_v0 }
 0x910   :  { %v14180_v63 = vsub.f32 %v13985_v47, %v3719_v45  ;;  %v3812_v57 = vsel %vm73_vm0, %v3780_v3, 0.0  ;;  %10601 = vmatpush3.bf16.msra.mxu0 %v11115_v0 }
 0x911   :  { %v3482_v58 = vpop.permute.xlu0 %3481 }
 0x912   :  { %3550 = vst.msk [vmem:[#allocation2 + $0xe0] sm:$0xff] %vm3521_vm3, %v3482_v58  ;;  %v3783_v17 = vmul.f32 %v14180_v63, %v14180_v63 }
 0x914   :  { %v3821_v25 = vsel %vm73_vm0, %v3783_v17, 0.0 }
 0x915   :  { %v3625_v62 = vpop.xlane.xlu1 %3624  ;;  %3822 = vadd.xlane.f32.xlu1 %v3821_v25 }
 0x916   :  { %v3717_v23 = vmul.f32 0.03125, %v3625_v62 }
 0x918   :  { %v14190_v8 = vsub.f32 %v13992_v20, %v3717_v23 }
 0x919   :  { %v3488_v29 = vpop.permute.xlu1 %3487  ;;  %v3582_v39 = vld [vmem:[#allocation2 + $0xe0] sm:$0xff] }
 0x91a   :  { %3553 = vst.msk [vmem:[#allocation2 + $0xf8] sm:$0xff] %vm3521_vm3, %v3488_v29  ;;  %v3781_v52 = vmul.f32 %v14190_v8, %v14190_v8  ;;  %v14198_v38 = vadd.f32 %v12053_v2, %v3582_v39 }
 0x91c   :  { %17511 = vst [vmem:[#allocation6_spill] sm:$0xff] %v14198_v38  ;;  %v3815_v24 = vsel %vm73_vm0, %v3781_v52, 0.0  ;;  %v3704_v12 = vsel %vm73_vm0, %v14198_v38, 0.0 }
 0x91d   :  { %3816 = vadd.xlane.f32.xlu1 %v3815_v24  ;;  %3705 = vadd.xlane.f32.xlu0 %v3704_v12 }
 0x921   :  { %3819 = vadd.xlane.f32.xlu0 %v3818_v11  ;;  %v3585_v13 = vld [vmem:[#allocation2 + $0xf8] sm:$0xff] }
 0x922   :  { %v14214_v16 = vadd.f32 %v12054_v15, %v3585_v13 }
 0x924   :  { %17512 = vst [vmem:[#allocation5_spill] sm:$0xff] %v14214_v16  ;;  %v3713_v48 = vsel %vm73_vm0, %v14214_v16, 0.0 }
 0x925   :  { %3714 = vadd.xlane.f32.xlu1 %v3713_v48  ;;  %3813 = vadd.xlane.f32.xlu0 %v3812_v57 }
 0x929   :  { %3711 = vadd.xlane.f32.xlu0 %v3710_v4 }
 0x942   :  { %v3634_v22 = vpop.xlane.xlu0 %3633 }
 0x943   :  { %v3720_v60 = vmul.f32 0.03125, %v3634_v22 }
 0x945   :  { %v14233_v45 = vsub.f32 %v14001_v18, %v3720_v60 }
 0x946   :  { %v3640_v58 = vpop.xlane.xlu0 %3639 }
 0x947   :  { %v3722_v17 = vmul.f32 0.03125, %v3640_v58  ;;  %v3784_v36 = vmul.f32 %v14233_v45, %v14233_v45 }
 0x949   :  { %v14238_v25 = vsub.f32 %v14008_v59, %v3722_v17  ;;  %v3824_v62 = vsel %vm73_vm0, %v3784_v36, 0.0 }
 0x94a   :  { %v3637_v23 = vpop.xlane.xlu1 %3636  ;;  %3825 = vadd.xlane.f32.xlu0 %v3824_v62  ;;  %v3643_v26 = vpop.xlane.xlu0 %3642 }
 0x94b   :  { %v3721_v29 = vmul.f32 0.03125, %v3637_v23  ;;  %v3723_v39 = vmul.f32 0.03125, %v3643_v26  ;;  %v3786_v52 = vmul.f32 %v14238_v25, %v14238_v25 }
 0x94d   :  { %v14244_v2 = vsub.f32 %v14015_v43, %v3721_v29  ;;  %v14247_v24 = vsub.f32 %v14020_v32, %v3723_v39  ;;  %v3830_v12 = vsel %vm73_vm0, %v3786_v52, 0.0 }
 0x94e   :  { %v3649_v1 = vpop.xlane.xlu1 %3648  ;;  %3831 = vadd.xlane.f32.xlu0 %v3830_v12  ;;  %v3646_v11 = vpop.xlane.xlu0 %3645 }
 0x94f   :  { %v3725_v3 = vmul.f32 0.03125, %v3649_v1  ;;  %v3724_v13 = vmul.f32 0.03125, %v3646_v11  ;;  %v3785_v53 = vmul.f32 %v14244_v2, %v14244_v2  ;;  %v3787_v15 = vmul.f32 %v14247_v24, %v14247_v24 }
 0x951   :  { %v14255_v48 = vsub.f32 %v14029_v30, %v3725_v3  ;;  %v14258_v57 = vsub.f32 %v14034_v35, %v3724_v13  ;;  %v3827_v51 = vsel %vm73_vm0, %v3785_v53, 0.0  ;;  %v3833_v58 = vsel %vm73_vm0, %v3787_v15, 0.0 }
 0x952   :  { %v3655_v4 = vpop.xlane.xlu1 %3654  ;;  %3828 = vadd.xlane.f32.xlu1 %v3827_v51  ;;  %v3652_v22 = vpop.xlane.xlu0 %3651 }
 0x953   :  { %v3727_v60 = vmul.f32 0.03125, %v3655_v4  ;;  %v3726_v27 = vmul.f32 0.03125, %v3652_v22  ;;  %v3788_v0 = vmul.f32 %v14258_v57, %v14258_v57  ;;  %v3789_v23 = vmul.f32 %v14255_v48, %v14255_v48 }
 0x955   :  { %v14265_v17 = vsub.f32 %v14043_v34, %v3727_v60  ;;  %v14268_v36 = vsub.f32 %v14048_v46, %v3726_v27  ;;  %v3836_v62 = vsel %vm73_vm0, %v3788_v0, 0.0  ;;  %v3839_v13 = vsel %vm73_vm0, %v3789_v23, 0.0 }
 0x956   :  { %v3661_v26 = vpop.xlane.xlu1 %3660  ;;  %3834 = vadd.xlane.f32.xlu1 %v3833_v58  ;;  %3837 = vadd.xlane.f32.xlu0 %v3836_v62  ;;  %v3658_v29 = vpop.xlane.xlu0 %3657 }
 0x957   :  { %v3729_v39 = vmul.f32 0.03125, %v3661_v26  ;;  %v3728_v52 = vmul.f32 0.03125, %v3658_v29  ;;  %v3790_v12 = vmul.f32 %v14268_v36, %v14268_v36  ;;  %v3791_v1 = vmul.f32 %v14265_v17, %v14265_v17 }
 0x959   :  { %v14278_v11 = vsub.f32 %v14057_v33, %v3729_v39  ;;  %v14281_v3 = vsub.f32 %v14062_v41, %v3728_v52  ;;  %v3842_v53 = vsel %vm73_vm0, %v3790_v12, 0.0  ;;  %v3845_v27 = vsel %vm73_vm0, %v3791_v1, 0.0 }
 0x95a   :  { %v3667_v15 = vpop.xlane.xlu1 %3666  ;;  %3840 = vadd.xlane.f32.xlu1 %v3839_v13  ;;  %3843 = vadd.xlane.f32.xlu0 %v3842_v53  ;;  %v3664_v51 = vpop.xlane.xlu0 %3663 }
 0x95b   :  { %v3731_v4 = vmul.f32 0.03125, %v3667_v15  ;;  %v3730_v22 = vmul.f32 0.03125, %v3664_v51  ;;  %v3792_v60 = vmul.f32 %v14281_v3, %v14281_v3  ;;  %v3793_v23 = vmul.f32 %v14278_v11, %v14278_v11 }
 0x95d   :  { %v14289_v0 = vsub.f32 %v14072_v44, %v3731_v4  ;;  %v14292_v58 = vsub.f32 %v14077_v14, %v3730_v22  ;;  %v3848_v62 = vsel %vm73_vm0, %v3792_v60, 0.0  ;;  %v3851_v15 = vsel %vm73_vm0, %v3793_v23, 0.0 }
 0x95e   :  { %v3673_v26 = vpop.xlane.xlu1 %3672  ;;  %3846 = vadd.xlane.f32.xlu1 %v3845_v27  ;;  %3849 = vadd.xlane.f32.xlu0 %v3848_v62  ;;  %v3670_v29 = vpop.xlane.xlu0 %3669 }
 0x95f   :  { %v3733_v39 = vmul.f32 0.03125, %v3673_v26  ;;  %v3732_v52 = vmul.f32 0.03125, %v3670_v29  ;;  %v3794_v12 = vmul.f32 %v14292_v58, %v14292_v58  ;;  %v3795_v1 = vmul.f32 %v14289_v0, %v14289_v0 }
 0x961   :  { %v14302_v13 = vsub.f32 %v14088_v10, %v3733_v39  ;;  %v14305_v53 = vsub.f32 %v14093_v40, %v3732_v52  ;;  %v3854_v51 = vsel %vm73_vm0, %v3794_v12, 0.0  ;;  %v3857_v26 = vsel %vm73_vm0, %v3795_v1, 0.0 }
 0x962   :  { %v3679_v4 = vpop.xlane.xlu1 %3678  ;;  %3852 = vadd.xlane.f32.xlu1 %v3851_v15  ;;  %3855 = vadd.xlane.f32.xlu0 %v3854_v51  ;;  %v3676_v22 = vpop.xlane.xlu0 %3675 }
 0x963   :  { %v3735_v60 = vmul.f32 0.03125, %v3679_v4  ;;  %v3734_v27 = vmul.f32 0.03125, %v3676_v22  ;;  %v3796_v62 = vmul.f32 %v14305_v53, %v14305_v53  ;;  %v3797_v52 = vmul.f32 %v14302_v13, %v14302_v13 }
 0x965   :  { %v14313_v29 = vsub.f32 %v14103_v56, %v3735_v60  ;;  %v14316_v39 = vsub.f32 %v14108_v50, %v3734_v27  ;;  %v3860_v23 = vsel %vm73_vm0, %v3796_v62, 0.0  ;;  %v3863_v62 = vsel %vm73_vm0, %v3797_v52, 0.0 }
 0x966   :  { %v3685_v12 = vpop.xlane.xlu1 %3684  ;;  %3858 = vadd.xlane.f32.xlu1 %v3857_v26  ;;  %3861 = vadd.xlane.f32.xlu0 %v3860_v23  ;;  %v3682_v15 = vpop.xlane.xlu0 %3681 }
 0x967   :  { %v3737_v51 = vmul.f32 0.03125, %v3685_v12  ;;  %v3736_v4 = vmul.f32 0.03125, %v3682_v15  ;;  %v3798_v1 = vmul.f32 %v14316_v39, %v14316_v39  ;;  %v3799_v22 = vmul.f32 %v14313_v29, %v14313_v29 }
 0x969   :  { %v14326_v60 = vsub.f32 %v14118_v28, %v3737_v51  ;;  %v14329_v27 = vsub.f32 %v14123_v55, %v3736_v4  ;;  %v3866_v26 = vsel %vm73_vm0, %v3798_v1, 0.0  ;;  %v3869_v50 = vsel %vm73_vm0, %v3799_v22, 0.0 }
 0x96a   :  { %v3691_v23 = vpop.xlane.xlu1 %3690  ;;  %3864 = vadd.xlane.f32.xlu1 %v3863_v62  ;;  %3867 = vadd.xlane.f32.xlu0 %v3866_v26  ;;  %v3688_v12 = vpop.xlane.xlu0 %3687 }
 0x96b   :  { %v3739_v15 = vmul.f32 0.03125, %v3691_v23  ;;  %v3738_v56 = vmul.f32 0.03125, %v3688_v12  ;;  %v3800_v10 = vmul.f32 %v14329_v27, %v14329_v27  ;;  %v3801_v1 = vmul.f32 %v14326_v60, %v14326_v60 }
 0x96d   :  { %v14337_v51 = vsub.f32 %v14133_v5, %v3739_v15  ;;  %v14340_v4 = vsub.f32 %v14138_v6, %v3738_v56  ;;  %v3872_v52 = vsel %vm73_vm0, %v3800_v10, 0.0  ;;  %v3875_v5 = vsel %vm73_vm0, %v3801_v1, 0.0 }
 0x96e   :  { %v3697_v62 = vpop.xlane.xlu1 %3696  ;;  %3870 = vadd.xlane.f32.xlu1 %v3869_v50  ;;  %3873 = vadd.xlane.f32.xlu0 %v3872_v52  ;;  %v3694_v26 = vpop.xlane.xlu0 %3693 }
 0x96f   :  { %v3741_v23 = vmul.f32 0.03125, %v3697_v62  ;;  %v3740_v12 = vmul.f32 0.03125, %v3694_v26  ;;  %v3802_v22 = vmul.f32 %v14340_v4, %v14340_v4  ;;  %v3803_v15 = vmul.f32 %v14337_v51, %v14337_v51 }
 0x971   :  { %v14350_v56 = vsub.f32 %v14147_v42, %v3741_v23  ;;  %v14353_v10 = vsub.f32 %v14152_v37, %v3740_v12  ;;  %v3878_v50 = vsel %vm73_vm0, %v3802_v22, 0.0  ;;  %v3881_v55 = vsel %vm73_vm0, %v3803_v15, 0.0 }
 0x972   :  { %v3703_v52 = vpop.xlane.xlu1 %3702  ;;  %3876 = vadd.xlane.f32.xlu1 %v3875_v5  ;;  %3879 = vadd.xlane.f32.xlu0 %v3878_v50  ;;  %v3700_v62 = vpop.xlane.xlu0 %3699 }
 0x973   :  { %v3743_v26 = vmul.f32 0.03125, %v3703_v52  ;;  %v3742_v28 = vmul.f32 0.03125, %v3700_v62  ;;  %v3804_v6 = vmul.f32 %v14353_v10, %v14353_v10  ;;  %v3805_v5 = vmul.f32 %v14350_v56, %v14350_v56 }
 0x975   :  { %v14361_v23 = vsub.f32 %v14161_v19, %v3743_v26  ;;  %v14364_v12 = vsub.f32 %v14166_v21, %v3742_v28  ;;  %v3884_v1 = vsel %vm73_vm0, %v3804_v6, 0.0  ;;  %v3887_v62 = vsel %vm73_vm0, %v3805_v5, 0.0 }
 0x976   :  { %v3709_v22 = vpop.xlane.xlu1 %3708  ;;  %3882 = vadd.xlane.f32.xlu1 %v3881_v55  ;;  %3885 = vadd.xlane.f32.xlu0 %v3884_v1 }
 0x977   :  { %v3745_v50 = vmul.f32 0.03125, %v3709_v22  ;;  %v3806_v52 = vmul.f32 %v14364_v12, %v14364_v12  ;;  %v3807_v6 = vmul.f32 %v14361_v23, %v14361_v23 }
 0x979   :  { %v14372_v15 = vsub.f32 %v14175_v49, %v3745_v50  ;;  %v3890_v28 = vsel %vm73_vm0, %v3806_v52, 0.0  ;;  %v3893_v26 = vsel %vm73_vm0, %v3807_v6, 0.0 }
 0x97a   :  { %3888 = vadd.xlane.f32.xlu1 %v3887_v62  ;;  %3891 = vadd.xlane.f32.xlu0 %v3890_v28 }
 0x97b   :  { %v3809_v55 = vmul.f32 %v14372_v15, %v14372_v15 }
 0x97d   :  { %v3899_v1 = vsel %vm73_vm0, %v3809_v55, 0.0 }
 0x97e   :  { %3894 = vadd.xlane.f32.xlu1 %v3893_v26 }
 0x982   :  { %3900 = vadd.xlane.f32.xlu1 %v3899_v1 }
 0x9a2   :  { %v3823_v22 = vpop.xlane.xlu1 %3822 }
 0x9a3   :  { %v3911_v50 = vmul.f32 0.03125, %v3823_v22 }
 0x9a5   :  { %v3943_v62 = vadd.f32 1e-05, %v3911_v50 }
 0x9aa   :  { %v3817_v49 = vpop.xlane.xlu1 %3816  ;;  %v3706_v5 = vpop.xlane.xlu0 %3705 }
 0x9ab   :  { %v3909_v19 = vmul.f32 0.03125, %v3817_v49  ;;  %v3744_v52 = vmul.f32 0.03125, %v3706_v5 }
 0x9ad   :  { %v3941_v42 = vadd.f32 1e-05, %v3909_v19  ;;  %v14383_v21 = vsub.f32 %v14198_v38, %v3744_v52 }
 0x9ae   :  { %v3820_v28 = vpop.xlane.xlu0 %3819 }
 0x9af   :  { %v3910_v6 = vmul.f32 0.03125, %v3820_v28  ;;  %v3808_v37 = vmul.f32 %v14383_v21, %v14383_v21  ;;  %11448 = vrsqrt.f32 %v3941_v42 }
 0x9b0   :  { %11450 = vrsqrt.f32 %v3943_v62 }
 0x9b1   :  { %v3942_v26 = vadd.f32 1e-05, %v3910_v6  ;;  %v3896_v55 = vsel %vm73_vm0, %v3808_v37, 0.0 }
 0x9b2   :  { %v3715_v1 = vpop.xlane.xlu1 %3714  ;;  %3897 = vadd.xlane.f32.xlu0 %v3896_v55  ;;  %v3814_v22 = vpop.xlane.xlu0 %3813 }
 0x9b3   :  { %11452 = vrsqrt.f32 %v3942_v26  ;;  %v3747_v49 = vmul.f32 0.03125, %v3715_v1  ;;  %v3908_v19 = vmul.f32 0.03125, %v3814_v22 }
 0x9b5   :  { %v14389_v5 = vsub.f32 %v14214_v16, %v3747_v49  ;;  %v3940_v50 = vadd.f32 1e-05, %v3908_v19 }
 0x9b6   :  { %v3712_v52 = vpop.xlane.xlu0 %3711 }
 0x9b7   :  { %11454 = vrsqrt.f32 %v3940_v50  ;;  %v3746_v28 = vmul.f32 0.03125, %v3712_v52  ;;  %v3811_v42 = vmul.f32 %v14389_v5, %v14389_v5  ;;  %v14406_v52 = vld [vmem:[%s17311_s5] ss:$0 sm:$0xff] }
 0x9b9   :  { %v14394_v6 = vsub.f32 %v14222_v7, %v3746_v28  ;;  %v3905_v37 = vsel %vm73_vm0, %v3811_v42, 0.0  ;;  %v11449_v62 = vpop.eup %11448 }
 0x9ba   :  { %3906 = vadd.xlane.f32.xlu1 %v3905_v37  ;;  %v11451_v55 = vpop.eup %11450  ;;  %v4005_v19 = vmul.f32 %v11449_v62, %v14190_v8 }
 0x9bb   :  { %v3810_v26 = vmul.f32 %v14394_v6, %v14394_v6  ;;  %v4007_v50 = vmul.f32 %v11451_v55, %v14180_v63 }
 0x9bc   :  { %v4043_v16 = vmul.f32 %v14406_v52, %v4005_v19 }
 0x9bd   :  { %v11453_v1 = vpop.eup %11452  ;;  %v3902_v22 = vsel %vm73_vm0, %v3810_v26, 0.0  ;;  %v4045_v26 = vmul.f32 %v14406_v52, %v4007_v50 }
 0x9be   :  { %v4006_v49 = vmul.f32 %v11453_v1, %v14187_v9  ;;  %3903 = vadd.xlane.f32.xlu0 %v3902_v22  ;;  %v14415_v9 = vld [vmem:[%s17312_s6] ss:$0 sm:$0xff] }
 0x9bf   :  { %v4081_v55 = vadd.f32 %v14415_v9, %v4043_v16  ;;  %v4083_v1 = vadd.f32 %v14415_v9, %v4045_v26 }
 0x9c0   :  { %v4044_v42 = vmul.f32 %v14406_v52, %v4006_v49 }
 0x9c1   :  { %v11455_v28 = vpop.eup %11454 }
 0x9c2   :  { %v4004_v37 = vmul.f32 %v11455_v28, %v14201_v54  ;;  %v4082_v8 = vadd.f32 %v14415_v9, %v4044_v42 }
 0x9c4   :  { %v4042_v63 = vmul.f32 %v14406_v52, %v4004_v37  ;;  %v4113_v22 = vpack.c.bf16 %v4083_v1, %v4082_v8 }
 0x9c6   :  { %v4080_v62 = vadd.f32 %v14415_v9, %v4042_v63 }
 0x9c8   :  { %v4112_v54 = vpack.c.bf16 %v4081_v55, %v4080_v62 }
 0x9ca   :  { %10602 = vmatprep.mubr.msk.bf16.mxu0 %vm73_vm0, %v4112_v54 }
 0x9cb   :  { %10603 = vmatmul.mubr.msk.bf16.vlgmr.msra.gmra.mrb[96].mxu0 %vm73_vm0, %v4113_v22 }
 0x9d7   :  { %v3826_v49 = vpop.xlane.xlu0 %3825 }
 0x9d8   :  { %v3912_v19 = vmul.f32 0.03125, %v3826_v49 }
 0x9da   :  { %v3944_v50 = vadd.f32 1e-05, %v3912_v19 }
 0x9db   :  { %v3832_v28 = vpop.xlane.xlu0 %3831 }
 0x9dc   :  { %v3914_v7 = vmul.f32 0.03125, %v3832_v28  ;;  %11456 = vrsqrt.f32 %v3944_v50 }
 0x9de   :  { %v3946_v37 = vadd.f32 1e-05, %v3914_v7 }
 0x9df   :  { %v3829_v42 = vpop.xlane.xlu1 %3828 }
 0x9e0   :  { %v3913_v38 = vmul.f32 0.03125, %v3829_v42  ;;  %11458 = vrsqrt.f32 %v3946_v37 }
 0x9e2   :  { %v3945_v63 = vadd.f32 1e-05, %v3913_v38 }
 0x9e3   :  { %v3835_v16 = vpop.xlane.xlu1 %3834  ;;  %v3838_v40 = vpop.xlane.xlu0 %3837 }
 0x9e4   :  { %11460 = vrsqrt.f32 %v3945_v63  ;;  %v3915_v26 = vmul.f32 0.03125, %v3835_v16  ;;  %v3916_v8 = vmul.f32 0.03125, %v3838_v40 }
 0x9e6   :  { %v3947_v62 = vadd.f32 1e-05, %v3915_v26  ;;  %v3948_v55 = vadd.f32 1e-05, %v3916_v8  ;;  %v11457_v22 = vpop.eup %11456 }
 0x9e7   :  { %v3841_v1 = vpop.xlane.xlu1 %3840  ;;  %v3844_v54 = vpop.xlane.xlu0 %3843  ;;  %v4008_v38 = vmul.f32 %v11457_v22, %v14233_v45 }
 0x9e8   :  { %11462 = vrsqrt.f32 %v3947_v62  ;;  %v3917_v49 = vmul.f32 0.03125, %v3841_v1  ;;  %v3918_v19 = vmul.f32 0.03125, %v3844_v54 }
 0x9e9   :  { %11464 = vrsqrt.f32 %v3948_v55  ;;  %v4046_v55 = vmul.f32 %v14406_v52, %v4008_v38 }
 0x9ea   :  { %v3949_v50 = vadd.f32 1e-05, %v3917_v49  ;;  %v3950_v7 = vadd.f32 1e-05, %v3918_v19  ;;  %v11459_v37 = vpop.eup %11458 }
 0x9eb   :  { %v3847_v28 = vpop.xlane.xlu1 %3846  ;;  %v3850_v42 = vpop.xlane.xlu0 %3849  ;;  %v4010_v1 = vmul.f32 %v11459_v37, %v14238_v25 }
 0x9ec   :  { %11466 = vrsqrt.f32 %v3949_v50  ;;  %v3919_v63 = vmul.f32 0.03125, %v3847_v28  ;;  %v3920_v16 = vmul.f32 0.03125, %v3850_v42 }
 0x9ed   :  { %11468 = vrsqrt.f32 %v3950_v7  ;;  %v4048_v25 = vmul.f32 %v14406_v52, %v4010_v1 }
 0x9ee   :  { %v11461_v40 = vpop.eup %11460  ;;  %v3951_v26 = vadd.f32 1e-05, %v3919_v63  ;;  %v3952_v8 = vadd.f32 1e-05, %v3920_v16  ;;  %v4084_v63 = vadd.f32 %v14415_v9, %v4046_v55 }
 0x9ef   :  { %v3853_v44 = vpop.xlane.xlu1 %3852  ;;  %v3856_v33 = vpop.xlane.xlu0 %3855  ;;  %v4009_v62 = vmul.f32 %v11461_v40, %v14244_v2 }
 0x9f0   :  { %11470 = vrsqrt.f32 %v3951_v26  ;;  %v3921_v54 = vmul.f32 0.03125, %v3853_v44  ;;  %v3922_v49 = vmul.f32 0.03125, %v3856_v33 }
 0x9f1   :  { %11472 = vrsqrt.f32 %v3952_v8  ;;  %v4047_v45 = vmul.f32 %v14406_v52, %v4009_v62 }
 0x9f2   :  { %v11463_v22 = vpop.eup %11462  ;;  %v3953_v19 = vadd.f32 1e-05, %v3921_v54  ;;  %v3954_v50 = vadd.f32 1e-05, %v3922_v49 }
 0x9f3   :  { %v11465_v7 = vpop.eup %11464  ;;  %v3859_v28 = vpop.xlane.xlu1 %3858  ;;  %v4085_v2 = vadd.f32 %v14415_v9, %v4047_v45  ;;  %v4011_v38 = vmul.f32 %v11463_v22, %v14247_v24  ;;  %v4086_v24 = vadd.f32 %v14415_v9, %v4048_v25 }
 0x9f4   :  { %v3862_v42 = vpop.xlane.xlu0 %3861  ;;  %11474 = vrsqrt.f32 %v3953_v19  ;;  %v3923_v44 = vmul.f32 0.03125, %v3859_v28  ;;  %v4012_v37 = vmul.f32 %v11465_v7, %v14258_v57 }
 0x9f5   :  { %v3924_v33 = vmul.f32 0.03125, %v3862_v42  ;;  %11476 = vrsqrt.f32 %v3954_v50  ;;  %v4114_v16 = vpack.c.bf16 %v4085_v2, %v4084_v63  ;;  %v4049_v40 = vmul.f32 %v14406_v52, %v4011_v38 }
 0x9f6   :  { %v11467_v26 = vpop.eup %11466  ;;  %v3955_v8 = vadd.f32 1e-05, %v3923_v44  ;;  %v4050_v57 = vmul.f32 %v14406_v52, %v4012_v37 }
 0x9f7   :  { %v3956_v62 = vadd.f32 1e-05, %v3924_v33  ;;  %v11469_v54 = vpop.eup %11468  ;;  %v3865_v55 = vpop.xlane.xlu1 %3864  ;;  %10606 = vmatprep.mubr.msk.bf16.mxu0 %vm73_vm0, %v4114_v16  ;;  %v4087_v1 = vadd.f32 %v14415_v9, %v4049_v40  ;;  %v4013_v45 = vmul.f32 %v11467_v26, %v14255_v48 }
 0x9f8   :  { %v3868_v49 = vpop.xlane.xlu0 %3867  ;;  %11478 = vrsqrt.f32 %v3955_v8  ;;  %v3925_v22 = vmul.f32 0.03125, %v3865_v55  ;;  %v4014_v28 = vmul.f32 %v11469_v54, %v14268_v36  ;;  %v4088_v48 = vadd.f32 %v14415_v9, %v4050_v57 }
 0x9f9   :  { %v3926_v19 = vmul.f32 0.03125, %v3868_v49  ;;  %11480 = vrsqrt.f32 %v3956_v62  ;;  %v4115_v50 = vpack.c.bf16 %v4087_v1, %v4086_v24  ;;  %v4051_v7 = vmul.f32 %v14406_v52, %v4013_v45 }
 0x9fa   :  { %v11471_v42 = vpop.eup %11470  ;;  %v3957_v63 = vadd.f32 1e-05, %v3925_v22  ;;  %v4052_v16 = vmul.f32 %v14406_v52, %v4014_v28 }
 0x9fb   :  { %v3958_v2 = vadd.f32 1e-05, %v3926_v19  ;;  %v11473_v38 = vpop.eup %11472  ;;  %v3871_v25 = vpop.xlane.xlu1 %3870  ;;  %10607 = vmatmul.mubr.msk.bf16.gmra.mrb[100].mxu0 %vm73_vm0, %v4115_v50  ;;  %v4089_v33 = vadd.f32 %v14415_v9, %v4051_v7  ;;  %v4015_v37 = vmul.f32 %v11471_v42, %v14265_v17 }
 0x9fc   :  { %v3874_v44 = vpop.xlane.xlu0 %3873  ;;  %11482 = vrsqrt.f32 %v3957_v63  ;;  %v3927_v40 = vmul.f32 0.03125, %v3871_v25  ;;  %v4016_v36 = vmul.f32 %v11473_v38, %v14281_v3  ;;  %v4090_v17 = vadd.f32 %v14415_v9, %v4052_v16 }
 0x9fd   :  { %v3928_v26 = vmul.f32 0.03125, %v3874_v44  ;;  %11484 = vrsqrt.f32 %v3958_v2  ;;  %v4116_v8 = vpack.c.bf16 %v4089_v33, %v4088_v48  ;;  %v4053_v62 = vmul.f32 %v14406_v52, %v4015_v37 }
 0x9fe   :  { %v11475_v54 = vpop.eup %11474  ;;  %v3959_v55 = vadd.f32 1e-05, %v3927_v40  ;;  %v4054_v3 = vmul.f32 %v14406_v52, %v4016_v36 }
 0x9ff   :  { %v3960_v49 = vadd.f32 1e-05, %v3928_v26  ;;  %v11477_v24 = vpop.eup %11476  ;;  %v3877_v1 = vpop.xlane.xlu1 %3876  ;;  %10610 = vmatprep.mubr.msk.bf16.mxu0 %vm73_vm0, %v4116_v8  ;;  %v4091_v57 = vadd.f32 %v14415_v9, %v4053_v62  ;;  %v4017_v22 = vmul.f32 %v11475_v54, %v14278_v11 }
 0xa00   :  { %v3880_v45 = vpop.xlane.xlu0 %3879  ;;  %11486 = vrsqrt.f32 %v3959_v55  ;;  %v3929_v19 = vmul.f32 0.03125, %v3877_v1  ;;  %v4018_v42 = vmul.f32 %v11477_v24, %v14292_v58  ;;  %v4092_v11 = vadd.f32 %v14415_v9, %v4054_v3 }
 0xa01   :  { %v3930_v50 = vmul.f32 0.03125, %v3880_v45  ;;  %11488 = vrsqrt.f32 %v3960_v49  ;;  %v4117_v7 = vpack.c.bf16 %v4091_v57, %v4090_v17  ;;  %v4055_v28 = vmul.f32 %v14406_v52, %v4017_v22 }
 0xa02   :  { %v11479_v63 = vpop.eup %11478  ;;  %v3961_v2 = vadd.f32 1e-05, %v3929_v19  ;;  %v4056_v16 = vmul.f32 %v14406_v52, %v4018_v42 }
 0xa03   :  { %v3962_v38 = vadd.f32 1e-05, %v3930_v50  ;;  %v11481_v25 = vpop.eup %11480  ;;  %v3883_v44 = vpop.xlane.xlu1 %3882  ;;  %10611 = vmatmul.mubr.msk.bf16.gmra.mrb[104].mxu0 %vm73_vm0, %v4117_v7  ;;  %v4093_v33 = vadd.f32 %v14415_v9, %v4055_v28  ;;  %v4019_v37 = vmul.f32 %v11479_v63, %v14289_v0 }
 0xa04   :  { %v3886_v48 = vpop.xlane.xlu0 %3885  ;;  %11490 = vrsqrt.f32 %v3961_v2  ;;  %v3931_v40 = vmul.f32 0.03125, %v3883_v44  ;;  %v4020_v58 = vmul.f32 %v11481_v25, %v14305_v53  ;;  %v4094_v0 = vadd.f32 %v14415_v9, %v4056_v16 }
 0xa05   :  { %v3932_v26 = vmul.f32 0.03125, %v3886_v48  ;;  %11492 = vrsqrt.f32 %v3962_v38  ;;  %v4118_v36 = vpack.c.bf16 %v4093_v33, %v4092_v11  ;;  %v4057_v8 = vmul.f32 %v14406_v52, %v4019_v37 }
 0xa06   :  { %v11483_v62 = vpop.eup %11482  ;;  %v3963_v54 = vadd.f32 1e-05, %v3931_v40  ;;  %v4058_v53 = vmul.f32 %v14406_v52, %v4020_v58 }
 0xa07   :  { %v3964_v55 = vadd.f32 1e-05, %v3932_v26  ;;  %v11485_v49 = vpop.eup %11484  ;;  %v3889_v24 = vpop.xlane.xlu1 %3888  ;;  %10614 = vmatprep.mubr.msk.bf16.mxu0 %vm73_vm0, %v4118_v36  ;;  %v4095_v45 = vadd.f32 %v14415_v9, %v4057_v8  ;;  %v4021_v17 = vmul.f32 %v11483_v62, %v14302_v13 }
 0xa08   :  { %v3892_v1 = vpop.xlane.xlu0 %3891  ;;  %11494 = vrsqrt.f32 %v3963_v54  ;;  %v3933_v57 = vmul.f32 0.03125, %v3889_v24  ;;  %v4022_v50 = vmul.f32 %v11485_v49, %v14316_v39  ;;  %v4096_v13 = vadd.f32 %v14415_v9, %v4058_v53 }
 0xa09   :  { %v3934_v22 = vmul.f32 0.03125, %v3892_v1  ;;  %11496 = vrsqrt.f32 %v3964_v55  ;;  %v4119_v3 = vpack.c.bf16 %v4095_v45, %v4094_v0  ;;  %v4059_v19 = vmul.f32 %v14406_v52, %v4021_v17 }
 0xa0a   :  { %v11487_v7 = vpop.eup %11486  ;;  %v3965_v28 = vadd.f32 1e-05, %v3933_v57  ;;  %v4060_v44 = vmul.f32 %v14406_v52, %v4022_v50 }
 0xa0b   :  { %v3966_v42 = vadd.f32 1e-05, %v3934_v22  ;;  %v11489_v63 = vpop.eup %11488  ;;  %v3895_v2 = vpop.xlane.xlu1 %3894  ;;  %10615 = vmatmul.mubr.msk.bf16.gmra.mrb[108].mxu0 %vm73_vm0, %v4119_v3  ;;  %v4097_v38 = vadd.f32 %v14415_v9, %v4059_v19  ;;  %v4023_v25 = vmul.f32 %v11487_v7, %v14313_v29 }
 0xa0c   :  { %11498 = vrsqrt.f32 %v3965_v28  ;;  %v3935_v48 = vmul.f32 0.03125, %v3895_v2  ;;  %v4024_v11 = vmul.f32 %v11489_v63, %v14329_v27  ;;  %v4098_v26 = vadd.f32 %v14415_v9, %v4060_v44  ;;  %v11116_v44 = vld [vmem:[%s17313_s9] sm:$0xff]  }
 0xa0d   :  { %11500 = vrsqrt.f32 %v3966_v42  ;;  %v4120_v39 = vpack.c.bf16 %v4097_v38, %v4096_v13  ;;  %v4061_v33 = vmul.f32 %v14406_v52, %v4023_v25  ;;  %10634 = vmatprep.subr.bf16.mxu1 %v11116_v44 }
 0xa0e   :  { %v11491_v37 = vpop.eup %11490  ;;  %v3967_v16 = vadd.f32 1e-05, %v3935_v48  ;;  %v4062_v36 = vmul.f32 %v14406_v52, %v4024_v11  ;;  %10635 = vmatpush3.bf16.msra.mxu1 %v11116_v44  ;;  %v11117_v48 = vld [vmem:[%s17313_s9 + $0x8] sm:$0xff]  }
 0xa0f   :  { %v11493_v40 = vpop.eup %11492  ;;  %10618 = vmatprep.mubr.msk.bf16.mxu0 %vm73_vm0, %v4120_v39  ;;  %v4099_v58 = vadd.f32 %v14415_v9, %v4061_v33  ;;  %v4025_v29 = vmul.f32 %v11491_v37, %v14326_v60  ;;  %10636 = vmatprep.subr.bf16.mxu1 %v11117_v48  ;;  %v11118_v39 = vld [vmem:[%s17313_s9 + $0x10] sm:$0xff]   ;;  %v11119_v37 = vld [vmem:[%s17313_s9 + $0x18] sm:$0xff]  }
 0xa10   :  { %11502 = vrsqrt.f32 %v3967_v16  ;;  %v4026_v27 = vmul.f32 %v11493_v40, %v14340_v4  ;;  %v4100_v49 = vadd.f32 %v14415_v9, %v4062_v36 }
 0xa11   :  { %v4121_v8 = vpack.c.bf16 %v4099_v58, %v4098_v26  ;;  %v4063_v62 = vmul.f32 %v14406_v52, %v4025_v29 }
 0xa12   :  { %v11495_v54 = vpop.eup %11494  ;;  %v4064_v60 = vmul.f32 %v14406_v52, %v4026_v27  ;;  %10637 = vmatpush3.bf16.msra.mxu1 %v11117_v48 }
 0xa13   :  { %v11497_v55 = vpop.eup %11496  ;;  %10619 = vmatmul.mubr.msk.bf16.gmra.mrb[112].mxu0 %vm73_vm0, %v4121_v8  ;;  %v4101_v24 = vadd.f32 %v14415_v9, %v4063_v62  ;;  %v4027_v1 = vmul.f32 %v11495_v54, %v14337_v51  ;;  %10638 = vmatprep.subr.bf16.mxu1 %v11118_v39 }
 0xa14   :  { %v4028_v0 = vmul.f32 %v11497_v55, %v14353_v10  ;;  %v4102_v57 = vadd.f32 %v14415_v9, %v4064_v60 }
 0xa15   :  { %v4122_v45 = vpack.c.bf16 %v4101_v24, %v4100_v49  ;;  %v4065_v4 = vmul.f32 %v14406_v52, %v4027_v1 }
 0xa16   :  { %v11499_v17 = vpop.eup %11498  ;;  %v4066_v19 = vmul.f32 %v14406_v52, %v4028_v0  ;;  %10639 = vmatpush3.bf16.msra.mxu1 %v11118_v39 }
 0xa17   :  { %v11501_v53 = vpop.eup %11500  ;;  %10622 = vmatprep.mubr.msk.bf16.mxu0 %vm73_vm0, %v4122_v45  ;;  %v4103_v22 = vadd.f32 %v14415_v9, %v4065_v4  ;;  %v4029_v3 = vmul.f32 %v11499_v17, %v14350_v56  ;;  %10640 = vmatprep.subr.bf16.mxu1 %v11119_v37 }
 0xa18   :  { %v4030_v51 = vmul.f32 %v11501_v53, %v14364_v12  ;;  %v4104_v28 = vadd.f32 %v14415_v9, %v4066_v19 }
 0xa19   :  { %v4123_v50 = vpack.c.bf16 %v4103_v22, %v4102_v57  ;;  %v4067_v10 = vmul.f32 %v14406_v52, %v4029_v3 }
 0xa1a   :  { %v11503_v7 = vpop.eup %11502  ;;  %v4068_v2 = vmul.f32 %v14406_v52, %v4030_v51  ;;  %10641 = vmatpush3.bf16.msra.mxu1 %v11119_v37 }
 0xa1b   :  { %10623 = vmatmul.mubr.msk.bf16.gmra.mrb[116].mxu0 %vm73_vm0, %v4123_v50  ;;  %v4105_v42 = vadd.f32 %v14415_v9, %v4067_v10  ;;  %v4031_v63 = vmul.f32 %v11503_v7, %v14361_v23  ;;  %v3901_v23 = vpop.xlane.xlu1 %3900  ;;  %v14537_v50 = vld [vmem:[%s17314_s8] ss:$0 sm:$0xff] }
 0xa1c   :  { %v4106_v12 = vadd.f32 %v14415_v9, %v4068_v2  ;;  %v3937_v11 = vmul.f32 0.03125, %v3901_v23 }
 0xa1d   :  { %v4124_v13 = vpack.c.bf16 %v4105_v42, %v4104_v28  ;;  %v4069_v56 = vmul.f32 %v14406_v52, %v4031_v63 }
 0xa1e   :  { %v3969_v33 = vadd.f32 1e-05, %v3937_v11 }
 0xa1f   :  { %10626 = vmatprep.mubr.msk.bf16.mxu0 %vm73_vm0, %v4124_v13  ;;  %v4107_v38 = vadd.f32 %v14415_v9, %v4069_v56 }
 0xa20   :  { %11504 = vrsqrt.f32 %v3969_v33 }
 0xa21   :  { %v4125_v25 = vpack.c.bf16 %v4107_v38, %v4106_v12 }
 0xa23   :  { %10627 = vmatmul.mubr.msk.bf16.gmra.mrb[120].mxu0 %vm73_vm0, %v4125_v25 }
 0xa2a   :  { %v11505_v29 = vpop.eup %11504 }
 0xa2b   :  { %v4033_v62 = vmul.f32 %v11505_v29, %v14372_v15 }
 0xa2d   :  { %v4071_v1 = vmul.f32 %v14406_v52, %v4033_v62 }
 0xa2f   :  { %v4109_v45 = vadd.f32 %v14415_v9, %v4071_v1 }
 0xa3f   :  { %v3898_v16 = vpop.xlane.xlu0 %3897 }
 0xa40   :  { %v3936_v40 = vmul.f32 0.03125, %v3898_v16 }
 0xa42   :  { %v3968_v26 = vadd.f32 1e-05, %v3936_v40 }
 0xa44   :  { %11506 = vrsqrt.f32 %v3968_v26 }
 0xa47   :  { %v3907_v58 = vpop.xlane.xlu1 %3906 }
 0xa48   :  { %v3939_v36 = vmul.f32 0.03125, %v3907_v58 }
 0xa4a   :  { %v3971_v27 = vadd.f32 1e-05, %v3939_v36 }
 0xa4b   :  { %v3904_v8 = vpop.xlane.xlu0 %3903 }
 0xa4c   :  { %11508 = vrsqrt.f32 %v3971_v27  ;;  %v3938_v54 = vmul.f32 0.03125, %v3904_v8 }
 0xa4e   :  { %v11507_v55 = vpop.eup %11506  ;;  %v3970_v49 = vadd.f32 1e-05, %v3938_v54 }
 0xa4f   :  { %v4032_v24 = vmul.f32 %v11507_v55, %v14383_v21 }
 0xa50   :  { %11510 = vrsqrt.f32 %v3970_v49 }
 0xa51   :  { %v4070_v60 = vmul.f32 %v14406_v52, %v4032_v24 }
 0xa53   :  { %v4108_v0 = vadd.f32 %v14415_v9, %v4070_v60 }
 0xa55   :  { %v4126_v4 = vpack.c.bf16 %v4109_v45, %v4108_v0 }
 0xa56   :  { %v11509_v17 = vpop.eup %11508 }
 0xa57   :  { %10630 = vmatprep.mubr.msk.bf16.mxu0 %vm73_vm0, %v4126_v4  ;;  %v4035_v15 = vmul.f32 %v11509_v17, %v14389_v5 }
 0xa59   :  { %v4073_v21 = vmul.f32 %v14406_v52, %v4035_v15 }
 0xa5a   :  { %v11511_v53 = vpop.eup %11510 }
 0xa5b   :  { %v4034_v57 = vmul.f32 %v11511_v53, %v14394_v6  ;;  %v4111_v19 = vadd.f32 %v14415_v9, %v4073_v21 }
 0xa5d   :  { %v4072_v22 = vmul.f32 %v14406_v52, %v4034_v57 }
 0xa5f   :  { %v4110_v3 = vadd.f32 %v14415_v9, %v4072_v22 }
 0xa61   :  { %v4127_v51 = vpack.c.bf16 %v4111_v19, %v4110_v3 }
 0xa63   :  { %10631 = vmatmul.mubr.msk.bf16.gmra.mrb[124].mxu0 %vm73_vm0, %v4127_v51 }
 0xa9e   :  { %v10604_v5 = vpop.f32.mrb[96].mxu0 }
 0xa9f   :  { %v4242_v10 = vadd.f32 %v10604_v5, %v14537_v50  ;;  %v4233_v6 = vpop.f32.mrb[97].mxu0 }
 0xaa0   :  { %v4234_v7 = vadd.f32 %v14537_v50, %v4233_v6  ;;  %v10605_v28 = vpop.f32.mrb[98].mxu0 }
 0xaa1   :  { %v4394_v52 = vmul.f32 0.044715, %v4242_v10  ;;  %v4245_v42 = vadd.f32 %v10605_v28, %v14537_v50  ;;  %v4236_v63 = vpop.f32.mrb[99].mxu0  ;;  %v4362_v24 = vmul.f32 0.5, %v4242_v10 }
 0xaa2   :  { %v4392_v9 = vmul.f32 0.044715, %v4234_v7  ;;  %v4237_v2 = vadd.f32 %v14537_v50, %v4236_v63  ;;  %v4360_v0 = vmul.f32 0.5, %v4234_v7 }
 0xaa3   :  { %v4426_v13 = vmul.f32 %v4394_v52, %v4242_v10  ;;  %v4395_v56 = vmul.f32 0.044715, %v4245_v42  ;;  %v4363_v1 = vmul.f32 0.5, %v4245_v42 }
 0xaa4   :  { %v4424_v12 = vmul.f32 %v4392_v9, %v4234_v7  ;;  %v4393_v38 = vmul.f32 0.044715, %v4237_v2  ;;  %v4361_v45 = vmul.f32 0.5, %v4237_v2 }
 0xaa5   :  { %v4458_v25 = vmul.f32 %v4426_v13, %v4242_v10  ;;  %v4427_v44 = vmul.f32 %v4395_v56, %v4245_v42 }
 0xaa6   :  { %v4456_v23 = vmul.f32 %v4424_v12, %v4234_v7  ;;  %v4425_v48 = vmul.f32 %v4393_v38, %v4237_v2 }
 0xaa7   :  { %v4490_v11 = vadd.f32 %v4458_v25, %v4242_v10  ;;  %v4459_v39 = vmul.f32 %v4427_v44, %v4245_v42 }
 0xaa8   :  { %v4488_v33 = vadd.f32 %v4456_v23, %v4234_v7  ;;  %v4457_v37 = vmul.f32 %v4425_v48, %v4237_v2 }
 0xaa9   :  { %v4522_v16 = vmul.f32 0.7978846, %v4490_v11  ;;  %v4491_v40 = vadd.f32 %v4459_v39, %v4245_v42 }
 0xaaa   :  { %v4520_v26 = vmul.f32 0.7978846, %v4488_v33  ;;  %v4489_v58 = vadd.f32 %v4457_v37, %v4237_v2 }
 0xaab   :  { %11512 = vtanh.f32 %v4522_v16  ;;  %v4523_v29 = vmul.f32 0.7978846, %v4491_v40 }
 0xaac   :  { %11514 = vtanh.f32 %v4520_v26  ;;  %v4521_v36 = vmul.f32 0.7978846, %v4489_v58 }
 0xaad   :  { %11516 = vtanh.f32 %v4523_v29 }
 0xaae   :  { %11518 = vtanh.f32 %v4521_v36 }
 0xab5   :  { %v11513_v27 = vpop.eup %11512 }
 0xab6   :  { %v11515_v8 = vpop.eup %11514  ;;  %v4586_v62 = vadd.f32 1.0, %v11513_v27 }
 0xab7   :  { %v11517_v54 = vpop.eup %11516  ;;  %v4584_v55 = vadd.f32 1.0, %v11515_v8 }
 0xab8   :  { %v11519_v49 = vpop.eup %11518  ;;  %v4587_v60 = vadd.f32 1.0, %v11517_v54  ;;  %v4618_v17 = vmul.f32 %v4586_v62, %v4362_v24 }
 0xab9   :  { %v4585_v4 = vadd.f32 1.0, %v11519_v49  ;;  %v4616_v53 = vmul.f32 %v4584_v55, %v4360_v0 }
 0xaba   :  { %v4619_v15 = vmul.f32 %v4587_v60, %v4363_v1 }
 0xabb   :  { %v4617_v57 = vmul.f32 %v4585_v4, %v4361_v45 }
 0xabc   :  { %v4649_v21 = vpack.c.bf16 %v4619_v15, %v4618_v17 }
 0xabd   :  { %v4648_v22 = vpack.c.bf16 %v4617_v57, %v4616_v53 }
 0xabf   :  { %10642 = vmatprep.mubr.msk.bf16.mxu1 %vm1460_vm2, %v4648_v22 }
 0xac0   :  { %10643 = vmatmul.mubr.msk.bf16.vlgmr.msra.gmra.mrb[96].mxu1 %vm1460_vm2, %v4649_v21 }
 0xace   :  { %v10608_v3 = vpop.f32.mrb[100].mxu0 }
 0xacf   :  { %v4258_v19 = vadd.f32 %v10608_v3, %v14537_v50  ;;  %v4249_v51 = vpop.f32.mrb[101].mxu0 }
 0xad0   :  { %v4250_v5 = vadd.f32 %v14537_v50, %v4249_v51  ;;  %v10609_v10 = vpop.f32.mrb[102].mxu0 }
 0xad1   :  { %v4398_v6 = vmul.f32 0.044715, %v4258_v19  ;;  %v4261_v7 = vadd.f32 %v10609_v10, %v14537_v50  ;;  %v4252_v28 = vpop.f32.mrb[103].mxu0  ;;  %v14551_v48 = vmul.f32 0.5, %v4258_v19 }
 0xad2   :  { %v4396_v52 = vmul.f32 0.044715, %v4250_v5  ;;  %v4253_v42 = vadd.f32 %v14537_v50, %v4252_v28  ;;  %v14549_v23 = vmul.f32 0.5, %v4250_v5 }
 0xad3   :  { %v4430_v63 = vmul.f32 %v4398_v6, %v4258_v19  ;;  %v4399_v9 = vmul.f32 0.044715, %v4261_v7  ;;  %v14554_v16 = vmul.f32 0.5, %v4261_v7 }
 0xad4   :  { %v4428_v2 = vmul.f32 %v4396_v52, %v4250_v5  ;;  %v4397_v13 = vmul.f32 0.044715, %v4253_v42  ;;  %v14557_v36 = vmul.f32 0.5, %v4253_v42 }
 0xad5   :  { %v4462_v56 = vmul.f32 %v4430_v63, %v4258_v19  ;;  %v4431_v12 = vmul.f32 %v4399_v9, %v4261_v7 }
 0xad6   :  { %v4460_v38 = vmul.f32 %v4428_v2, %v4250_v5  ;;  %v4429_v25 = vmul.f32 %v4397_v13, %v4253_v42  ;;  %v10612_v44 = vpop.f32.mrb[104].mxu0 }
 0xad7   :  { %v4494_v11 = vadd.f32 %v4462_v56, %v4258_v19  ;;  %v4463_v39 = vmul.f32 %v4431_v12, %v4261_v7  ;;  %v4274_v33 = vadd.f32 %v10612_v44, %v14537_v50  ;;  %v4265_v37 = vpop.f32.mrb[105].mxu0 }
 0xad8   :  { %v4492_v40 = vadd.f32 %v4460_v38, %v4250_v5  ;;  %v4461_v26 = vmul.f32 %v4429_v25, %v4253_v42  ;;  %v4266_v58 = vadd.f32 %v14537_v50, %v4265_v37  ;;  %v10613_v29 = vpop.f32.mrb[106].mxu0 }
 0xad9   :  { %v4526_v27 = vmul.f32 0.7978846, %v4494_v11  ;;  %v4495_v8 = vadd.f32 %v4463_v39, %v4261_v7  ;;  %v4402_v62 = vmul.f32 0.044715, %v4274_v33  ;;  %v4277_v54 = vadd.f32 %v10613_v29, %v14537_v50  ;;  %v4268_v55 = vpop.f32.mrb[107].mxu0 }
 0xada   :  { %v4524_v49 = vmul.f32 0.7978846, %v4492_v40  ;;  %v4493_v24 = vadd.f32 %v4461_v26, %v4253_v42  ;;  %v4400_v1 = vmul.f32 0.044715, %v4266_v58  ;;  %v4269_v60 = vadd.f32 %v14537_v50, %v4268_v55 }
 0xadb   :  { %11520 = vtanh.f32 %v4526_v27  ;;  %v4527_v0 = vmul.f32 0.7978846, %v4495_v8  ;;  %v4434_v45 = vmul.f32 %v4402_v62, %v4274_v33  ;;  %v4403_v4 = vmul.f32 0.044715, %v4277_v54 }
 0xadc   :  { %11522 = vtanh.f32 %v4524_v49  ;;  %v4525_v17 = vmul.f32 0.7978846, %v4493_v24  ;;  %v4432_v15 = vmul.f32 %v4400_v1, %v4266_v58  ;;  %v4401_v53 = vmul.f32 0.044715, %v4269_v60 }
 0xadd   :  { %11524 = vtanh.f32 %v4527_v0  ;;  %v4466_v57 = vmul.f32 %v4434_v45, %v4274_v33  ;;  %v4435_v21 = vmul.f32 %v4403_v4, %v4277_v54  ;;  %v14561_v22 = vmul.f32 0.5, %v4266_v58 }
 0xade   :  { %11526 = vtanh.f32 %v4525_v17  ;;  %v4464_v3 = vmul.f32 %v4432_v15, %v4266_v58  ;;  %v4433_v19 = vmul.f32 %v4401_v53, %v4269_v60  ;;  %v10616_v51 = vpop.f32.mrb[108].mxu0  ;;  %v14563_v5 = vmul.f32 0.5, %v4269_v60 }
 0xadf   :  { %v4498_v10 = vadd.f32 %v4466_v57, %v4274_v33  ;;  %v4467_v6 = vmul.f32 %v4435_v21, %v4277_v54  ;;  %v14566_v7 = vadd.f32 %v10616_v51, %v14537_v50  ;;  %v4281_v28 = vpop.f32.mrb[109].mxu0  ;;  %v14568_v52 = vmul.f32 0.5, %v4274_v33 }
 0xae0   :  { %v4496_v42 = vadd.f32 %v4464_v3, %v4266_v58  ;;  %v4465_v63 = vmul.f32 %v4433_v19, %v4269_v60  ;;  %v4282_v9 = vadd.f32 %v14537_v50, %v4281_v28  ;;  %v10617_v2 = vpop.f32.mrb[110].mxu0  ;;  %v14571_v13 = vmul.f32 0.5, %v4277_v54 }
 0xae1   :  { %v4530_v56 = vmul.f32 0.7978846, %v4498_v10  ;;  %v4499_v12 = vadd.f32 %v4467_v6, %v4277_v54  ;;  %v4406_v38 = vmul.f32 0.044715, %v14566_v7  ;;  %v14575_v25 = vadd.f32 %v10617_v2, %v14537_v50  ;;  %v4284_v44 = vpop.f32.mrb[111].mxu0 }
 0xae2   :  { %v4528_v11 = vmul.f32 0.7978846, %v4496_v42  ;;  %v4497_v39 = vadd.f32 %v4465_v63, %v4269_v60  ;;  %v4404_v37 = vmul.f32 0.044715, %v4282_v9  ;;  %v14578_v33 = vadd.f32 %v14537_v50, %v4284_v44 }
 0xae3   :  { %11528 = vtanh.f32 %v4530_v56  ;;  %v4531_v40 = vmul.f32 0.7978846, %v4499_v12  ;;  %v4438_v26 = vmul.f32 %v4406_v38, %v14566_v7  ;;  %v4407_v58 = vmul.f32 0.044715, %v14575_v25 }
 0xae4   :  { %11530 = vtanh.f32 %v4528_v11  ;;  %v4529_v29 = vmul.f32 0.7978846, %v4497_v39  ;;  %v4436_v27 = vmul.f32 %v4404_v37, %v4282_v9  ;;  %v4405_v8 = vmul.f32 0.044715, %v14578_v33 }
 0xae5   :  { %v11521_v62 = vpop.eup %11520  ;;  %11532 = vtanh.f32 %v4531_v40  ;;  %v4470_v54 = vmul.f32 %v4438_v26, %v14566_v7  ;;  %v4439_v55 = vmul.f32 %v4407_v58, %v14575_v25  ;;  %v14585_v49 = vmul.f32 0.5, %v4282_v9 }
 0xae6   :  { %v11523_v24 = vpop.eup %11522  ;;  %11534 = vtanh.f32 %v4529_v29  ;;  %v4468_v1 = vmul.f32 %v4436_v27, %v4282_v9  ;;  %v4437_v60 = vmul.f32 %v4405_v8, %v14578_v33  ;;  %v10620_v0 = vpop.f32.mrb[112].mxu0  ;;  %v4590_v45 = vadd.f32 1.0, %v11521_v62 }
 0xae7   :  { %v11525_v4 = vpop.eup %11524  ;;  %v4502_v17 = vadd.f32 %v4470_v54, %v14566_v7  ;;  %v4471_v15 = vmul.f32 %v4439_v55, %v14575_v25  ;;  %v14591_v53 = vadd.f32 %v10620_v0, %v14537_v50  ;;  %v4297_v57 = vpop.f32.mrb[113].mxu0  ;;  %v4588_v21 = vadd.f32 1.0, %v11523_v24 }
 0xae8   :  { %v11527_v3 = vpop.eup %11526  ;;  %v4500_v19 = vadd.f32 %v4468_v1, %v4282_v9  ;;  %v4469_v51 = vmul.f32 %v4437_v60, %v14578_v33  ;;  %v14595_v10 = vadd.f32 %v14537_v50, %v4297_v57  ;;  %v10621_v6 = vpop.f32.mrb[114].mxu0  ;;  %v4591_v28 = vadd.f32 1.0, %v11525_v4 }
 0xae9   :  { %v4534_v42 = vmul.f32 0.7978846, %v4502_v17  ;;  %v4503_v63 = vadd.f32 %v4471_v15, %v14575_v25  ;;  %v4410_v2 = vmul.f32 0.044715, %v14591_v53  ;;  %v14600_v56 = vadd.f32 %v10621_v6, %v14537_v50  ;;  %v4300_v12 = vpop.f32.mrb[115].mxu0 }
 0xaea   :  { %v4532_v38 = vmul.f32 0.7978846, %v4500_v19  ;;  %v4501_v44 = vadd.f32 %v4469_v51, %v14578_v33  ;;  %v4408_v9 = vmul.f32 0.044715, %v14595_v10  ;;  %v14605_v11 = vadd.f32 %v14537_v50, %v4300_v12 }
 0xaeb   :  { %11536 = vtanh.f32 %v4534_v42  ;;  %v4535_v39 = vmul.f32 0.7978846, %v4503_v63  ;;  %v4442_v37 = vmul.f32 %v4410_v2, %v14591_v53  ;;  %v4411_v40 = vmul.f32 0.044715, %v14600_v56 }
 0xaec   :  { %11538 = vtanh.f32 %v4532_v38  ;;  %v4533_v26 = vmul.f32 0.7978846, %v4501_v44  ;;  %v4440_v58 = vmul.f32 %v4408_v9, %v14595_v10  ;;  %v4409_v29 = vmul.f32 0.044715, %v14605_v11 }
 0xaed   :  { %v14611_v27 = vpop.eup %11528  ;;  %11540 = vtanh.f32 %v4535_v39  ;;  %v4474_v8 = vmul.f32 %v4442_v37, %v14591_v53  ;;  %v4443_v62 = vmul.f32 %v4411_v40, %v14600_v56  ;;  %v4589_v54 = vadd.f32 1.0, %v11527_v3 }
 0xaee   :  { %v11531_v55 = vpop.eup %11530  ;;  %11542 = vtanh.f32 %v4533_v26  ;;  %v4472_v24 = vmul.f32 %v4440_v58, %v14595_v10  ;;  %v4441_v1 = vmul.f32 %v4409_v29, %v14605_v11  ;;  %v10624_v60 = vpop.f32.mrb[116].mxu0  ;;  %v4620_v0 = vmul.f32 %v4588_v21, %v14549_v23 }
 0xaef   :  { %v14618_v4 = vpop.eup %11532  ;;  %v4506_v17 = vadd.f32 %v4474_v8, %v14591_v53  ;;  %v4475_v15 = vmul.f32 %v4443_v62, %v14600_v56  ;;  %v14623_v57 = vadd.f32 %v10624_v60, %v14537_v50  ;;  %v4313_v19 = vpop.f32.mrb[117].mxu0  ;;  %v4621_v3 = vmul.f32 %v4589_v54, %v14557_v36 }
 0xaf0   :  { %v11535_v51 = vpop.eup %11534  ;;  %v4504_v6 = vadd.f32 %v4472_v24, %v14595_v10  ;;  %v4473_v42 = vmul.f32 %v4441_v1, %v14605_v11  ;;  %v14629_v63 = vadd.f32 %v14537_v50, %v4313_v19  ;;  %v10625_v23 = vpop.f32.mrb[118].mxu0  ;;  %v4622_v21 = vmul.f32 %v4590_v45, %v14551_v48 }
 0xaf1   :  { %v4538_v2 = vmul.f32 0.7978846, %v4506_v17  ;;  %v4507_v12 = vadd.f32 %v4475_v15, %v14600_v56  ;;  %v4414_v38 = vmul.f32 0.044715, %v14623_v57  ;;  %v4650_v44 = vpack.c.bf16 %v4621_v3, %v4620_v0  ;;  %v4316_v9 = vpop.f32.mrb[119].mxu0 }
 0xaf2   :  { %v4536_v39 = vmul.f32 0.7978846, %v4504_v6  ;;  %v4505_v36 = vadd.f32 %v4473_v42, %v14605_v11  ;;  %v4412_v37 = vmul.f32 0.044715, %v14629_v63  ;;  %v14637_v40 = vadd.f32 %v10625_v23, %v14537_v50 }
 0xaf3   :  { %11544 = vtanh.f32 %v4538_v2  ;;  %v4539_v26 = vmul.f32 0.7978846, %v4507_v12  ;;  %v4446_v58 = vmul.f32 %v4414_v38, %v14623_v57  ;;  %10646 = vmatprep.mubr.msk.bf16.mxu1 %vm1460_vm2, %v4650_v44  ;;  %v4623_v48 = vmul.f32 %v4591_v28, %v14554_v16 }
 0xaf4   :  { %11546 = vtanh.f32 %v4536_v39  ;;  %v4537_v45 = vmul.f32 0.7978846, %v4505_v36  ;;  %v4444_v29 = vmul.f32 %v4412_v37, %v14629_v63  ;;  %v4415_v8 = vmul.f32 0.044715, %v14637_v40 }
 0xaf5   :  { %v14644_v62 = vpop.eup %11536  ;;  %11548 = vtanh.f32 %v4539_v26  ;;  %v4478_v54 = vmul.f32 %v4446_v58, %v14623_v57  ;;  %v4651_v24 = vpack.c.bf16 %v4623_v48, %v4622_v21  ;;  %v14648_v1 = vadd.f32 %v14537_v50, %v4316_v9 }
 0xaf6   :  { %v11539_v60 = vpop.eup %11538  ;;  %11550 = vtanh.f32 %v4537_v45  ;;  %v4476_v0 = vmul.f32 %v4444_v29, %v14629_v63  ;;  %v4447_v16 = vmul.f32 %v4415_v8, %v14637_v40  ;;  %v10628_v28 = vpop.f32.mrb[120].mxu0  ;;  %v4592_v17 = vadd.f32 1.0, %v11531_v55 }
 0xaf7   :  { %v14652_v15 = vpop.eup %11540  ;;  %v4510_v19 = vadd.f32 %v4478_v54, %v14623_v57  ;;  %10647 = vmatmul.mubr.msk.bf16.gmra.mrb[100].mxu1 %vm1460_vm2, %v4651_v24  ;;  %v4413_v3 = vmul.f32 0.044715, %v14648_v1  ;;  %v14658_v6 = vadd.f32 %v10628_v28, %v14537_v50  ;;  %v4329_v42 = vpop.f32.mrb[121].mxu0  ;;  %v4593_v23 = vadd.f32 1.0, %v11535_v51 }
 0xaf8   :  { %v11543_v21 = vpop.eup %11542  ;;  %v4508_v2 = vadd.f32 %v4476_v0, %v14629_v63  ;;  %v4479_v12 = vmul.f32 %v4447_v16, %v14637_v40  ;;  %v14663_v55 = vadd.f32 %v14537_v50, %v4329_v42  ;;  %v4624_v38 = vmul.f32 %v4592_v17, %v14561_v22  ;;  %v10629_v44 = vpop.f32.mrb[122].mxu0 }
 0xaf9   :  { %v4542_v9 = vmul.f32 0.7978846, %v4510_v19  ;;  %v4445_v39 = vmul.f32 %v4413_v3, %v14648_v1  ;;  %v4418_v36 = vmul.f32 0.044715, %v14658_v6  ;;  %v4625_v37 = vmul.f32 %v4593_v23, %v14563_v5  ;;  %v4332_v26 = vpop.f32.mrb[123].mxu0 }
 0xafa   :  { %v4540_v51 = vmul.f32 0.7978846, %v4508_v2  ;;  %v4511_v58 = vadd.f32 %v4479_v12, %v14637_v40  ;;  %v4416_v48 = vmul.f32 0.044715, %v14663_v55  ;;  %v14672_v45 = vadd.f32 %v10629_v44, %v14537_v50 }
 0xafb   :  { %11552 = vtanh.f32 %v4542_v9  ;;  %v4477_v22 = vmul.f32 %v4445_v39, %v14648_v1  ;;  %v4450_v29 = vmul.f32 %v4418_v36, %v14658_v6  ;;  %v4652_v8 = vpack.c.bf16 %v4625_v37, %v4624_v38 }
 0xafc   :  { %11554 = vtanh.f32 %v4540_v51  ;;  %v4543_v54 = vmul.f32 0.7978846, %v4511_v58  ;;  %v4448_v24 = vmul.f32 %v4416_v48, %v14663_v55  ;;  %v4419_v5 = vmul.f32 0.044715, %v14672_v45 }
 0xafd   :  { %v11545_v0 = vpop.eup %11544  ;;  %v4509_v16 = vadd.f32 %v4477_v22, %v14648_v1  ;;  %v4482_v28 = vmul.f32 %v4450_v29, %v14658_v6  ;;  %10650 = vmatprep.mubr.msk.bf16.mxu1 %vm1460_vm2, %v4652_v8  ;;  %v4594_v17 = vadd.f32 1.0, %v14611_v27  ;;  %v4595_v19 = vadd.f32 1.0, %v14618_v4 }
 0xafe   :  { %v11547_v3 = vpop.eup %11546  ;;  %11556 = vtanh.f32 %v4543_v54  ;;  %v4480_v42 = vmul.f32 %v4448_v24, %v14663_v55  ;;  %v4451_v23 = vmul.f32 %v4419_v5, %v14672_v45  ;;  %v14686_v2 = vadd.f32 %v14537_v50, %v4332_v26 }
 0xaff   :  { %v11549_v12 = vpop.eup %11548  ;;  %v4541_v38 = vmul.f32 0.7978846, %v4509_v16  ;;  %v4514_v44 = vadd.f32 %v4482_v28, %v14658_v6  ;;  %v4626_v9 = vmul.f32 %v4594_v17, %v14568_v52  ;;  %v4627_v39 = vmul.f32 %v4595_v19, %v14571_v13 }
 0xb00   :  { %v11551_v27 = vpop.eup %11550  ;;  %v4512_v4 = vadd.f32 %v4480_v42, %v14663_v55  ;;  %v4483_v36 = vmul.f32 %v4451_v23, %v14672_v45  ;;  %v4417_v37 = vmul.f32 0.044715, %v14686_v2  ;;  %v4373_v51 = vmul.f32 0.5, %v14578_v33 }
 0xb01   :  { %11558 = vtanh.f32 %v4541_v38  ;;  %v4546_v26 = vmul.f32 0.7978846, %v4514_v44  ;;  %v4653_v58 = vpack.c.bf16 %v4627_v39, %v4626_v9  ;;  %v4596_v48 = vadd.f32 1.0, %v11539_v60 }
 0xb02   :  { %v4544_v22 = vmul.f32 0.7978846, %v4512_v4  ;;  %v4515_v29 = vadd.f32 %v4483_v36, %v14672_v45  ;;  %v4449_v52 = vmul.f32 %v4417_v37, %v14686_v2  ;;  %v4597_v8 = vadd.f32 1.0, %v11543_v21 }
 0xb03   :  { %11560 = vtanh.f32 %v4546_v26  ;;  %10651 = vmatmul.mubr.msk.bf16.gmra.mrb[104].mxu1 %vm1460_vm2, %v4653_v58  ;;  %v4628_v13 = vmul.f32 %v4596_v48, %v14585_v49  ;;  %v4374_v54 = vmul.f32 0.5, %v14566_v7  ;;  %v4375_v16 = vmul.f32 0.5, %v14575_v25 }
 0xb04   :  { %v4547_v24 = vmul.f32 0.7978846, %v4515_v29  ;;  %v4481_v33 = vmul.f32 %v4449_v52, %v14686_v2  ;;  %v4629_v5 = vmul.f32 %v4597_v8, %v4373_v51  ;;  %11562 = vtanh.f32 %v4544_v22 }
 0xb05   :  { %v11553_v60 = vpop.eup %11552  ;;  %v4598_v28 = vadd.f32 1.0, %v14644_v62  ;;  %v4599_v17 = vadd.f32 1.0, %v14652_v15  ;;  %v4376_v21 = vmul.f32 0.5, %v14595_v10  ;;  %v4600_v7 = vadd.f32 1.0, %v11547_v3 }
 0xb06   :  { %v11555_v19 = vpop.eup %11554  ;;  %11564 = vtanh.f32 %v4547_v24  ;;  %v4513_v49 = vadd.f32 %v4481_v33, %v14686_v2  ;;  %v4654_v42 = vpack.c.bf16 %v4629_v5, %v4628_v13  ;;  %v4377_v44 = vmul.f32 0.5, %v14605_v11 }
 0xb07   :  { %v4630_v23 = vmul.f32 %v4598_v28, %v4374_v54  ;;  %v4631_v38 = vmul.f32 %v4599_v17, %v4375_v16  ;;  %v4601_v9 = vadd.f32 1.0, %v11551_v27  ;;  %v4632_v62 = vmul.f32 %v4600_v7, %v4376_v21 }
 0xb08   :  { %v11557_v25 = vpop.eup %11556  ;;  %v4545_v39 = vmul.f32 0.7978846, %v4513_v49  ;;  %10654 = vmatprep.mubr.msk.bf16.mxu1 %vm1460_vm2, %v4654_v42  ;;  %v4378_v15 = vmul.f32 0.5, %v14591_v53  ;;  %v4602_v4 = vadd.f32 1.0, %v11545_v0  ;;  %v4379_v37 = vmul.f32 0.5, %v14600_v56 }
 0xb09   :  { %v4655_v10 = vpack.c.bf16 %v4631_v38, %v4630_v23  ;;  %v4633_v36 = vmul.f32 %v4601_v9, %v4377_v44  ;;  %v4603_v51 = vadd.f32 1.0, %v11549_v12  ;;  %v4380_v26 = vmul.f32 0.5, %v14629_v63 }
 0xb0a   :  { %11566 = vtanh.f32 %v4545_v39  ;;  %v4634_v3 = vmul.f32 %v4602_v4, %v4378_v15  ;;  %v4604_v58 = vadd.f32 1.0, %v11555_v19  ;;  %v4381_v22 = vmul.f32 0.5, %v14648_v1 }
 0xb0b   :  { %v11559_v11 = vpop.eup %11558  ;;  %10655 = vmatmul.mubr.msk.bf16.gmra.mrb[108].mxu1 %vm1460_vm2, %v4655_v10  ;;  %v4656_v27 = vpack.c.bf16 %v4633_v36, %v4632_v62  ;;  %v4635_v48 = vmul.f32 %v4603_v51, %v4379_v37  ;;  %v4382_v53 = vmul.f32 0.5, %v14623_v57  ;;  %v4383_v29 = vmul.f32 0.5, %v14637_v40 }
 0xb0c   :  { %v4605_v0 = vadd.f32 1.0, %v11559_v11  ;;  %v4606_v52 = vadd.f32 1.0, %v11553_v60  ;;  %v4607_v56 = vadd.f32 1.0, %v11557_v25  ;;  %v4636_v63 = vmul.f32 %v4604_v58, %v4380_v26 }
 0xb0d   :  { %v11561_v12 = vpop.eup %11560  ;;  %10658 = vmatprep.mubr.msk.bf16.mxu1 %vm1460_vm2, %v4656_v27  ;;  %v4657_v8 = vpack.c.bf16 %v4635_v48, %v4634_v3  ;;  %v4386_v57 = vmul.f32 0.5, %v14658_v6  ;;  %v4387_v17 = vmul.f32 0.5, %v14672_v45  ;;  %v4384_v42 = vmul.f32 0.5, %v14663_v55 }
 0xb0e   :  { %v4637_v13 = vmul.f32 %v4605_v0, %v4381_v22  ;;  %v4638_v54 = vmul.f32 %v4606_v52, %v4382_v53  ;;  %v4639_v24 = vmul.f32 %v4607_v56, %v4383_v29  ;;  %v11563_v33 = vpop.eup %11562  ;;  %v4610_v5 = vadd.f32 1.0, %v11561_v12 }
 0xb0f   :  { %v4608_v60 = vadd.f32 1.0, %v11563_v33  ;;  %v4385_v7 = vmul.f32 0.5, %v14686_v2 }
 0xb10   :  { %v11565_v16 = vpop.eup %11564  ;;  %v4658_v28 = vpack.c.bf16 %v4637_v13, %v4636_v63  ;;  %v4659_v1 = vpack.c.bf16 %v4639_v24, %v4638_v54  ;;  %v4642_v21 = vmul.f32 %v4610_v5, %v4386_v57 }
 0xb11   :  { %v4611_v40 = vadd.f32 1.0, %v11565_v16  ;;  %v4640_v44 = vmul.f32 %v4608_v60, %v4384_v42 }
 0xb13   :  { %10659 = vmatmul.mubr.msk.bf16.gmra.mrb[112].mxu1 %vm1460_vm2, %v4657_v8  ;;  %v4643_v19 = vmul.f32 %v4611_v40, %v4387_v17 }
 0xb14   :  { %v11567_v49 = vpop.eup %11566  ;;  %10662 = vmatprep.mubr.msk.bf16.mxu1 %vm1460_vm2, %v4658_v28 }
 0xb15   :  { %v4609_v23 = vadd.f32 1.0, %v11567_v49  ;;  %v4661_v38 = vpack.c.bf16 %v4643_v19, %v4642_v21 }
 0xb17   :  { %v4641_v9 = vmul.f32 %v4609_v23, %v4385_v7 }
 0xb19   :  { %v4660_v6 = vpack.c.bf16 %v4641_v9, %v4640_v44 }
 0xb1b   :  { %10663 = vmatmul.mubr.msk.bf16.gmra.mrb[116].mxu1 %vm1460_vm2, %v4659_v1 }
 0xb1c   :  { %10666 = vmatprep.mubr.msk.bf16.mxu1 %vm1460_vm2, %v4660_v6 }
 0xb23   :  { %10667 = vmatmul.mubr.msk.bf16.gmra.mrb[120].mxu1 %vm1460_vm2, %v4661_v38  ;;  %v14734_v38 = vld [vmem:[%s17315_s10] ss:$0 sm:$0xff] }
 0xb36   :  { %v10632_v45 = vpop.f32.mrb[124].mxu0 }
 0xb37   :  { %v4354_v25 = vadd.f32 %v10632_v45, %v14537_v50  ;;  %v4345_v39 = vpop.f32.mrb[125].mxu0 }
 0xb38   :  { %v4346_v62 = vadd.f32 %v14537_v50, %v4345_v39  ;;  %v10633_v55 = vpop.f32.mrb[126].mxu0 }
 0xb39   :  { %v4422_v15 = vmul.f32 0.044715, %v4354_v25  ;;  %v4357_v2 = vadd.f32 %v10633_v55, %v14537_v50  ;;  %v4348_v4 = vpop.f32.mrb[127].mxu0  ;;  %v4390_v28 = vmul.f32 0.5, %v4354_v25 }
 0xb3a   :  { %v4420_v10 = vmul.f32 0.044715, %v4346_v62  ;;  %v4349_v36 = vadd.f32 %v14537_v50, %v4348_v4  ;;  %v4388_v17 = vmul.f32 0.5, %v4346_v62 }
 0xb3b   :  { %v4454_v37 = vmul.f32 %v4422_v15, %v4354_v25  ;;  %v4423_v51 = vmul.f32 0.044715, %v4357_v2  ;;  %v4391_v1 = vmul.f32 0.5, %v4357_v2 }
 0xb3c   :  { %v4452_v3 = vmul.f32 %v4420_v10, %v4346_v62  ;;  %v4421_v26 = vmul.f32 0.044715, %v4349_v36  ;;  %v4389_v40 = vmul.f32 0.5, %v4349_v36 }
 0xb3d   :  { %v4486_v58 = vmul.f32 %v4454_v37, %v4354_v25  ;;  %v4455_v11 = vmul.f32 %v4423_v51, %v4357_v2 }
 0xb3e   :  { %v4484_v27 = vmul.f32 %v4452_v3, %v4346_v62  ;;  %v4453_v48 = vmul.f32 %v4421_v26, %v4349_v36 }
 0xb3f   :  { %v4518_v22 = vadd.f32 %v4486_v58, %v4354_v25  ;;  %v4487_v53 = vmul.f32 %v4455_v11, %v4357_v2 }
 0xb40   :  { %v4516_v0 = vadd.f32 %v4484_v27, %v4346_v62  ;;  %v4485_v29 = vmul.f32 %v4453_v48, %v4349_v36 }
 0xb41   :  { %v4550_v52 = vmul.f32 0.7978846, %v4518_v22  ;;  %v4519_v56 = vadd.f32 %v4487_v53, %v4357_v2 }
 0xb42   :  { %v4548_v12 = vmul.f32 0.7978846, %v4516_v0  ;;  %v4517_v8 = vadd.f32 %v4485_v29, %v4349_v36 }
 0xb43   :  { %11568 = vtanh.f32 %v4550_v52  ;;  %v4551_v63 = vmul.f32 0.7978846, %v4519_v56 }
 0xb44   :  { %11570 = vtanh.f32 %v4548_v12  ;;  %v4549_v50 = vmul.f32 0.7978846, %v4517_v8 }
 0xb45   :  { %11572 = vtanh.f32 %v4551_v63 }
 0xb46   :  { %11574 = vtanh.f32 %v4549_v50 }
 0xb4d   :  { %v11569_v13 = vpop.eup %11568 }
 0xb4e   :  { %v11571_v54 = vpop.eup %11570  ;;  %v4614_v24 = vadd.f32 1.0, %v11569_v13 }
 0xb4f   :  { %v11573_v33 = vpop.eup %11572  ;;  %v4612_v5 = vadd.f32 1.0, %v11571_v54 }
 0xb50   :  { %v11575_v16 = vpop.eup %11574  ;;  %v4615_v57 = vadd.f32 1.0, %v11573_v33  ;;  %v4646_v21 = vmul.f32 %v4614_v24, %v4390_v28 }
 0xb51   :  { %v4613_v60 = vadd.f32 1.0, %v11575_v16  ;;  %v4644_v49 = vmul.f32 %v4612_v5, %v4388_v17 }
 0xb52   :  { %v4647_v19 = vmul.f32 %v4615_v57, %v4391_v1 }
 0xb53   :  { %v4645_v42 = vmul.f32 %v4613_v60, %v4389_v40 }
 0xb54   :  { %v4663_v7 = vpack.c.bf16 %v4647_v19, %v4646_v21 }
 0xb55   :  { %v4662_v23 = vpack.c.bf16 %v4645_v42, %v4644_v49  ;;  %v17528_v42 = vld [vmem:[#allocation13_spill] sm:$0xff] }
 0xb57   :  { %10670 = vmatprep.mubr.msk.bf16.mxu1 %vm1460_vm2, %v4662_v23 }
 0xb58   :  { %10671 = vmatmul.mubr.msk.bf16.gmra.mrb[124].mxu1 %vm1460_vm2, %v4663_v7 }
 0xb93   :  { %v10644_v44 = vpop.f32.mrb[96].mxu1 }
 0xb94   :  { %v4785_v9 = vpop.f32.mrb[97].mxu1  ;;  %v4794_v6 = vadd.f32 %v10644_v44, %v14734_v38 }
 0xb95   :  { %v4786_v45 = vadd.f32 %v14734_v38, %v4785_v9  ;;  %v10645_v25 = vpop.f32.mrb[98].mxu1 }
 0xb96   :  { %v4788_v39 = vpop.f32.mrb[99].mxu1  ;;  %v4797_v55 = vadd.f32 %v10645_v25, %v14734_v38  ;;  %v14744_v2 = vadd.f32 %v4794_v6, %v13971_v31 }
 0xb97   :  { %v14739_v62 = vadd.f32 %v4786_v45, %v13978_v61  ;;  %v4789_v15 = vadd.f32 %v14734_v38, %v4788_v39 }
 0xb98   :  { %17515 = vst [vmem:[#allocation28_spill] sm:$0xff] %v14744_v2  ;;  %v14752_v36 = vadd.f32 %v4797_v55, %v13985_v47  ;;  %v4954_v37 = vsel %vm73_vm0, %v14744_v2, 0.0 }
 0xb99   :  { %17514 = vst [vmem:[#allocation27_spill] sm:$0xff] %v14739_v62  ;;  %v14747_v4 = vadd.f32 %v4789_v15, %v13992_v20  ;;  %v4948_v10 = vsel %vm73_vm0, %v14739_v62, 0.0 }
 0xb9a   :  { %4949 = vadd.xlane.f32.xlu0 %v4948_v10  ;;  %17517 = vst [vmem:[#allocation25_spill] sm:$0xff] %v14752_v36  ;;  %v4957_v31 = vsel %vm73_vm0, %v14752_v36, 0.0  ;;  %v17532_v10 = vld [vmem:[#allocation9_spill] sm:$0xff] }
 0xb9b   :  { %17516 = vst [vmem:[#allocation12_spill] sm:$0xff] %v14747_v4  ;;  %v4951_v61 = vsel %vm73_vm0, %v14747_v4, 0.0 }
 0xb9c   :  { %4952 = vadd.xlane.f32.xlu1 %v4951_v61 }
 0xb9e   :  { %4955 = vadd.xlane.f32.xlu0 %v4954_v37 }
 0xba0   :  { %4958 = vadd.xlane.f32.xlu1 %v4957_v31 }
 0xbca   :  { %v10648_v20 = vpop.f32.mrb[100].mxu1 }
 0xbcb   :  { %v4801_v51 = vpop.f32.mrb[101].mxu1  ;;  %v4810_v3 = vadd.f32 %v10648_v20, %v14734_v38 }
 0xbcc   :  { %v4802_v26 = vadd.f32 %v14734_v38, %v4801_v51  ;;  %v10649_v47 = vpop.f32.mrb[102].mxu1  ;;  %v17534_v51 = vld [vmem:[#allocation15_spill] sm:$0xff] }
 0xbcd   :  { %v4804_v58 = vpop.f32.mrb[103].mxu1  ;;  %v4813_v27 = vadd.f32 %v10649_v47, %v14734_v38  ;;  %v14768_v22 = vadd.f32 %v4810_v3, %v14008_v59 }
 0xbce   :  { %v14763_v11 = vadd.f32 %v4802_v26, %v14001_v18  ;;  %v4805_v48 = vadd.f32 %v14734_v38, %v4804_v58  ;;  %v17536_v26 = vld [vmem:[#allocation18_spill] sm:$0xff] }
 0xbcf   :  { %17519 = vst [vmem:[#allocation16_spill] sm:$0xff] %v14768_v22  ;;  %v14776_v29 = vadd.f32 %v4813_v27, %v14020_v32  ;;  %v4966_v52 = vsel %vm73_vm0, %v14768_v22, 0.0  ;;  %v17538_v27 = vld [vmem:[#allocation10_spill] sm:$0xff] }
 0xbd0   :  { %17518 = vst [vmem:[#allocation14_spill] sm:$0xff] %v14763_v11  ;;  %v14771_v53 = vadd.f32 %v4805_v48, %v14015_v43  ;;  %v4960_v0 = vsel %vm73_vm0, %v14763_v11, 0.0 }
 0xbd1   :  { %4961 = vadd.xlane.f32.xlu0 %v4960_v0  ;;  %17521 = vst [vmem:[#allocation26_spill] sm:$0xff] %v14776_v29  ;;  %v4969_v43 = vsel %vm73_vm0, %v14776_v29, 0.0 }
 0xbd2   :  { %17520 = vst [vmem:[#allocation21_spill] sm:$0xff] %v14771_v53  ;;  %v4963_v18 = vsel %vm73_vm0, %v14771_v53, 0.0 }
 0xbd3   :  { %4964 = vadd.xlane.f32.xlu1 %v4963_v18 }
 0xbd5   :  { %4967 = vadd.xlane.f32.xlu0 %v4966_v52 }
 0xbd6   :  { %v10652_v59 = vpop.f32.mrb[104].mxu1 }
 0xbd7   :  { %v4817_v56 = vpop.f32.mrb[105].mxu1  ;;  %4970 = vadd.xlane.f32.xlu1 %v4969_v43  ;;  %v4826_v12 = vadd.f32 %v10652_v59, %v14734_v38 }
 0xbd8   :  { %v4818_v8 = vadd.f32 %v14734_v38, %v4817_v56  ;;  %v10653_v32 = vpop.f32.mrb[106].mxu1 }
 0xbd9   :  { %v4820_v63 = vpop.f32.mrb[107].mxu1  ;;  %v4829_v13 = vadd.f32 %v10653_v32, %v14734_v38  ;;  %v14792_v24 = vadd.f32 %v4826_v12, %v14048_v46  ;;  %v17540_v32 = vld [vmem:[#allocation11_spill] sm:$0xff] }
 0xbda   :  { %v14787_v50 = vadd.f32 %v4818_v8, %v14034_v35  ;;  %v4821_v54 = vadd.f32 %v14734_v38, %v4820_v63 }
 0xbdb   :  { %17523 = vst [vmem:[#allocation29_spill] sm:$0xff] %v14792_v24  ;;  %v14800_v16 = vadd.f32 %v4829_v13, %v14043_v34 }
 0xbdc   :  { %17522 = vst [vmem:[#allocation30_spill] sm:$0xff] %v14787_v50  ;;  %v14795_v33 = vadd.f32 %v4821_v54, %v14029_v30  ;;  %v4972_v5 = vsel %vm73_vm0, %v14787_v50, 0.0  ;;  %v4978_v30 = vsel %vm73_vm0, %v14792_v24, 0.0 }
 0xbdd   :  { %4973 = vadd.xlane.f32.xlu0 %v4972_v5  ;;  %17525 = vst [vmem:[#allocation34_spill] sm:$0xff] %v14800_v16  ;;  %v4981_v19 = vsel %vm73_vm0, %v14800_v16, 0.0 }
 0xbde   :  { %17524 = vst [vmem:[#allocation32_spill] sm:$0xff] %v14795_v33  ;;  %v10656_v28 = vpop.f32.mrb[108].mxu1  ;;  %v4975_v35 = vsel %vm73_vm0, %v14795_v33, 0.0 }
 0xbdf   :  { %4976 = vadd.xlane.f32.xlu1 %v4975_v35  ;;  %v4833_v1 = vpop.f32.mrb[109].mxu1  ;;  %v4842_v57 = vadd.f32 %v10656_v28, %v14734_v38  ;;  %v17542_v28 = vld [vmem:[#allocation17_spill] sm:$0xff] }
 0xbe0   :  { %v4834_v46 = vadd.f32 %v14734_v38, %v4833_v1  ;;  %v10657_v17 = vpop.f32.mrb[110].mxu1  ;;  %v17544_v1 = vld [vmem:[#allocation19_spill] sm:$0xff] }
 0xbe1   :  { %4979 = vadd.xlane.f32.xlu0 %v4978_v30  ;;  %v4836_v40 = vpop.f32.mrb[111].mxu1  ;;  %v4845_v34 = vadd.f32 %v10657_v17, %v14734_v38  ;;  %v14816_v49 = vadd.f32 %v4842_v57, %v14077_v14  ;;  %v17546_v17 = vld [vmem:[#allocation23_spill] sm:$0xff] }
 0xbe2   :  { %v14809_v60 = vadd.f32 %v4834_v46, %v14062_v41  ;;  %v4837_v21 = vadd.f32 %v14734_v38, %v4836_v40  ;;  %v17530_v41 = vld [vmem:[#allocation22_spill] sm:$0xff] }
 0xbe3   :  { %4982 = vadd.xlane.f32.xlu1 %v4981_v19  ;;  %17527 = vst [vmem:[#allocation33_spill] sm:$0xff] %v14816_v49  ;;  %v14824_v44 = vadd.f32 %v4845_v34, %v17530_v41  ;;  %v4990_v55 = vsel %vm73_vm0, %v14816_v49, 0.0 }
 0xbe4   :  { %17526 = vst [vmem:[#allocation31_spill] sm:$0xff] %v14809_v60  ;;  %v14819_v7 = vadd.f32 %v4837_v21, %v17528_v42  ;;  %v4984_v23 = vsel %vm73_vm0, %v14809_v60, 0.0 }
 0xbe5   :  { %4985 = vadd.xlane.f32.xlu0 %v4984_v23  ;;  %17531 = vst [vmem:[#allocation22_spill] sm:$0xff] %v14824_v44  ;;  %v4993_v20 = vsel %vm73_vm0, %v14824_v44, 0.0 }
 0xbe6   :  { %17529 = vst [vmem:[#allocation13_spill] sm:$0xff] %v14819_v7  ;;  %v10660_v9 = vpop.f32.mrb[112].mxu1  ;;  %v4987_v6 = vsel %vm73_vm0, %v14819_v7, 0.0 }
 0xbe7   :  { %4988 = vadd.xlane.f32.xlu1 %v4987_v6  ;;  %v4849_v45 = vpop.f32.mrb[113].mxu1  ;;  %v4858_v25 = vadd.f32 %v10660_v9, %v14734_v38  ;;  %v17548_v6 = vld [vmem:[#allocation20_spill] sm:$0xff] }
 0xbe8   :  { %v4850_v14 = vadd.f32 %v14734_v38, %v4849_v45  ;;  %v10661_v39 = vpop.f32.mrb[114].mxu1 }
 0xbe9   :  { %4991 = vadd.xlane.f32.xlu0 %v4990_v55  ;;  %v4852_v15 = vpop.f32.mrb[115].mxu1  ;;  %v4861_v37 = vadd.f32 %v10661_v39, %v14734_v38  ;;  %v14840_v3 = vadd.f32 %v4858_v25, %v17534_v51  ;;  %v17550_v55 = vld [vmem:[#allocation24_spill] sm:$0xff] }
 0xbea   :  { %v14833_v61 = vadd.f32 %v4850_v14, %v17532_v10  ;;  %v4853_v31 = vadd.f32 %v14734_v38, %v4852_v15  ;;  %v17552_v10 = vld [vmem:[#allocation3_spill] sm:$0xff] }
 0xbeb   :  { %4994 = vadd.xlane.f32.xlu1 %v4993_v20  ;;  %17535 = vst [vmem:[#allocation15_spill] sm:$0xff] %v14840_v3  ;;  %v14848_v48 = vadd.f32 %v4861_v37, %v17538_v27  ;;  %v5002_v12 = vsel %vm73_vm0, %v14840_v3, 0.0  ;;  %v17554_v20 = vld [vmem:[#allocation7_spill] sm:$0xff] }
 0xbec   :  { %17533 = vst [vmem:[#allocation9_spill] sm:$0xff] %v14833_v61  ;;  %v14843_v47 = vadd.f32 %v4853_v31, %v17536_v26  ;;  %v4996_v58 = vsel %vm73_vm0, %v14833_v61, 0.0 }
 0xbed   :  { %4997 = vadd.xlane.f32.xlu0 %v4996_v58  ;;  %17539 = vst [vmem:[#allocation10_spill] sm:$0xff] %v14848_v48  ;;  %v5005_v5 = vsel %vm73_vm0, %v14848_v48, 0.0 }
 0xbee   :  { %17537 = vst [vmem:[#allocation18_spill] sm:$0xff] %v14843_v47  ;;  %v10664_v0 = vpop.f32.mrb[116].mxu1  ;;  %v4999_v18 = vsel %vm73_vm0, %v14843_v47, 0.0 }
 0xbef   :  { %5000 = vadd.xlane.f32.xlu1 %v4999_v18  ;;  %v4865_v52 = vpop.f32.mrb[117].mxu1  ;;  %v4874_v59 = vadd.f32 %v10664_v0, %v14734_v38 }
 0xbf0   :  { %v4866_v43 = vadd.f32 %v14734_v38, %v4865_v52  ;;  %v10665_v56 = vpop.f32.mrb[118].mxu1 }
 0xbf1   :  { %5003 = vadd.xlane.f32.xlu0 %v5002_v12  ;;  %v4868_v8 = vpop.f32.mrb[119].mxu1  ;;  %v4877_v13 = vadd.f32 %v10665_v56, %v14734_v38  ;;  %v14864_v35 = vadd.f32 %v4874_v59, %v17542_v28 }
 0xbf2   :  { %v14857_v63 = vadd.f32 %v4866_v43, %v17540_v32  ;;  %v4869_v54 = vadd.f32 %v14734_v38, %v4868_v8 }
 0xbf3   :  { %5006 = vadd.xlane.f32.xlu1 %v5005_v5  ;;  %17543 = vst [vmem:[#allocation17_spill] sm:$0xff] %v14864_v35  ;;  %v14872_v30 = vadd.f32 %v4877_v13, %v17546_v17  ;;  %v5014_v41 = vsel %vm73_vm0, %v14864_v35, 0.0 }
 0xbf4   :  { %17541 = vst [vmem:[#allocation11_spill] sm:$0xff] %v14857_v63  ;;  %v14867_v57 = vadd.f32 %v4869_v54, %v17544_v1  ;;  %v5008_v46 = vsel %vm73_vm0, %v14857_v63, 0.0 }
 0xbf5   :  { %5009 = vadd.xlane.f32.xlu0 %v5008_v46  ;;  %17547 = vst [vmem:[#allocation23_spill] sm:$0xff] %v14872_v30  ;;  %v5017_v39 = vsel %vm73_vm0, %v14872_v30, 0.0  ;;  %v17556_v46 = vld [vmem:[#allocation6_spill] sm:$0xff] }
 0xbf6   :  { %17545 = vst [vmem:[#allocation19_spill] sm:$0xff] %v14867_v57  ;;  %v10668_v40 = vpop.f32.mrb[120].mxu1  ;;  %v5011_v34 = vsel %vm73_vm0, %v14867_v57, 0.0 }
 0xbf7   :  { %5012 = vadd.xlane.f32.xlu1 %v5011_v34  ;;  %v4881_v21 = vpop.f32.mrb[121].mxu1  ;;  %v4890_v19 = vadd.f32 %v10668_v40, %v14734_v38 }
 0xbf8   :  { %v4882_v42 = vadd.f32 %v14734_v38, %v4881_v21  ;;  %v10669_v23 = vpop.f32.mrb[122].mxu1 }
 0xbf9   :  { %5015 = vadd.xlane.f32.xlu0 %v5014_v41  ;;  %v4884_v9 = vpop.f32.mrb[123].mxu1  ;;  %v4893_v25 = vadd.f32 %v10669_v23, %v14734_v38  ;;  %v14888_v15 = vadd.f32 %v4890_v19, %v17550_v55  ;;  %v17558_v19 = vld [vmem:[#allocation4_spill] sm:$0xff] }
 0xbfa   :  { %v14881_v45 = vadd.f32 %v4882_v42, %v17548_v6  ;;  %v4885_v14 = vadd.f32 %v14734_v38, %v4884_v9 }
 0xbfb   :  { %5018 = vadd.xlane.f32.xlu1 %v5017_v39  ;;  %17551 = vst [vmem:[#allocation24_spill] sm:$0xff] %v14888_v15  ;;  %v14896_v51 = vadd.f32 %v4893_v25, %v17554_v20  ;;  %v5026_v58 = vsel %vm73_vm0, %v14888_v15, 0.0 }
 0xbfc   :  { %17549 = vst [vmem:[#allocation20_spill] sm:$0xff] %v14881_v45  ;;  %v14891_v37 = vadd.f32 %v4885_v14, %v17552_v10  ;;  %v5020_v31 = vsel %vm73_vm0, %v14881_v45, 0.0 }
 0xbfd   :  { %5021 = vadd.xlane.f32.xlu0 %v5020_v31  ;;  %17555 = vst [vmem:[#allocation7_spill] sm:$0xff] %v14896_v51  ;;  %v5029_v27 = vsel %vm73_vm0, %v14896_v51, 0.0 }
 0xbfe   :  { %17553 = vst [vmem:[#allocation3_spill] sm:$0xff] %v14891_v37  ;;  %v5023_v26 = vsel %vm73_vm0, %v14891_v37, 0.0 }
 0xbff   :  { %5024 = vadd.xlane.f32.xlu1 %v5023_v26  ;;  %v17560_v26 = vld [vmem:[#allocation8_spill] sm:$0xff] }
 0xc01   :  { %5027 = vadd.xlane.f32.xlu0 %v5026_v58 }
 0xc03   :  { %5030 = vadd.xlane.f32.xlu1 %v5029_v27 }
 0xc27   :  { %v4950_v0 = vpop.xlane.xlu0 %4949 }
 0xc28   :  { %v5044_v12 = vmul.f32 0.03125, %v4950_v0  ;;  %v17562_v0 = vld [vmem:[#allocation5_spill] sm:$0xff] }
 0xc29   :  { %v4953_v18 = vpop.xlane.xlu1 %4952 }
 0xc2a   :  { %v5045_v1 = vmul.f32 0.03125, %v4953_v18  ;;  %v14916_v21 = vsub.f32 %v14739_v62, %v5044_v12 }
 0xc2b   :  { %v10672_v52 = vpop.f32.mrb[124].mxu1  ;;  %v4956_v59 = vpop.xlane.xlu0 %4955 }
 0xc2c   :  { %v5046_v43 = vmul.f32 0.03125, %v4956_v59  ;;  %v4897_v56 = vpop.f32.mrb[125].mxu1  ;;  %v14926_v9 = vsub.f32 %v14747_v4, %v5045_v1  ;;  %v4906_v14 = vadd.f32 %v10672_v52, %v14734_v38  ;;  %v5108_v55 = vmul.f32 %v14916_v21, %v14916_v21 }
 0xc2d   :  { %v4898_v8 = vadd.f32 %v14734_v38, %v4897_v56  ;;  %v4959_v32 = vpop.xlane.xlu1 %4958  ;;  %v10673_v13 = vpop.f32.mrb[126].mxu1  ;;  %v11121_v56 = vld [vmem:[%s17306_s4 + $0x18] sm:$0xff]  }
 0xc2e   :  { %v14906_v54 = vsub.f32 %v14744_v2, %v5046_v43  ;;  %v5047_v5 = vmul.f32 0.03125, %v4959_v32  ;;  %v4900_v28 = vpop.f32.mrb[127].mxu1  ;;  %v4909_v10 = vadd.f32 %v10673_v13, %v14734_v38  ;;  %v5109_v20 = vmul.f32 %v14926_v9, %v14926_v9  ;;  %v11120_v43 = vld [vmem:[%s17306_s4 + $0x10] sm:$0xff]  }
 0xc2f   :  { %v14909_v17 = vadd.f32 %v4898_v8, %v17556_v46  ;;  %v4901_v40 = vadd.f32 %v14734_v38, %v4900_v28  ;;  %v14941_v58 = vadd.f32 %v4906_v14, %v17560_v26  ;;  %v5140_v27 = vsel %vm73_vm0, %v5108_v55, 0.0  ;;  %10674 = vmatprep.subr.bf16.mxu0 %v11120_v43 }
 0xc30   :  { %v14913_v34 = vsub.f32 %v14752_v36, %v5047_v5  ;;  %v5110_v41 = vmul.f32 %v14906_v54, %v14906_v54  ;;  %v14945_v18 = vadd.f32 %v4909_v10, %v17562_v0  ;;  %v5143_v52 = vsel %vm73_vm0, %v5109_v20, 0.0  ;;  %10675 = vmatpush3.bf16.msra.mxu0 %v11120_v43 }
 0xc31   :  { %17557 = vst [vmem:[#allocation6_spill] sm:$0xff] %v14909_v17  ;;  %v14919_v42 = vadd.f32 %v4901_v40, %v17558_v19  ;;  %v5032_v23 = vsel %vm73_vm0, %v14909_v17, 0.0  ;;  %17561 = vst [vmem:[#allocation8_spill] sm:$0xff] %v14941_v58  ;;  %v5038_v38 = vsel %vm73_vm0, %v14941_v58, 0.0  ;;  %10676 = vmatprep.subr.bf16.mxu0 %v11121_v56 }
 0xc32   :  { %5033 = vadd.xlane.f32.xlu0 %v5032_v23  ;;  %v5111_v25 = vmul.f32 %v14913_v34, %v14913_v34  ;;  %v5146_v39 = vsel %vm73_vm0, %v5110_v41, 0.0  ;;  %17563 = vst [vmem:[#allocation5_spill] sm:$0xff] %v14945_v18  ;;  %v5041_v59 = vsel %vm73_vm0, %v14945_v18, 0.0 }
 0xc33   :  { %17559 = vst [vmem:[#allocation4_spill] sm:$0xff] %v14919_v42  ;;  %v5035_v6 = vsel %vm73_vm0, %v14919_v42, 0.0 }
 0xc34   :  { %5036 = vadd.xlane.f32.xlu1 %v5035_v6  ;;  %v5149_v31 = vsel %vm73_vm0, %v5111_v25, 0.0  ;;  %10677 = vmatpush3.bf16.msra.mxu0 %v11121_v56 }
 0xc36   :  { %5147 = vadd.xlane.f32.xlu0 %v5146_v39 }
 0xc38   :  { %5150 = vadd.xlane.f32.xlu1 %v5149_v31 }
 0xc3a   :  { %5141 = vadd.xlane.f32.xlu0 %v5140_v27 }
 0xc3c   :  { %5144 = vadd.xlane.f32.xlu1 %v5143_v52 }
 0xc3e   :  { %5039 = vadd.xlane.f32.xlu0 %v5038_v38 }
 0xc40   :  { %5042 = vadd.xlane.f32.xlu1 %v5041_v59 }
 0xc5e   :  { %v4962_v12 = vpop.xlane.xlu0 %4961 }
 0xc5f   :  { %v5048_v8 = vmul.f32 0.03125, %v4962_v12 }
 0xc60   :  { %v4965_v32 = vpop.xlane.xlu1 %4964 }
 0xc61   :  { %v14959_v13 = vsub.f32 %v14763_v11, %v5048_v8  ;;  %v5049_v5 = vmul.f32 0.03125, %v4965_v32 }
 0xc62   :  { %v4968_v28 = vpop.xlane.xlu0 %4967 }
 0xc63   :  { %v14962_v1 = vsub.f32 %v14771_v53, %v5049_v5  ;;  %v5050_v46 = vmul.f32 0.03125, %v4968_v28  ;;  %v5112_v40 = vmul.f32 %v14959_v13, %v14959_v13 }
 0xc64   :  { %v4971_v19 = vpop.xlane.xlu1 %4970 }
 0xc65   :  { %v14967_v23 = vsub.f32 %v14768_v22, %v5050_v46  ;;  %v5051_v41 = vmul.f32 0.03125, %v4971_v19  ;;  %v5152_v6 = vsel %vm73_vm0, %v5112_v40, 0.0  ;;  %v5113_v25 = vmul.f32 %v14962_v1, %v14962_v1 }
 0xc66   :  { %5153 = vadd.xlane.f32.xlu0 %v5152_v6 }
 0xc67   :  { %v14973_v14 = vsub.f32 %v14776_v29, %v5051_v41  ;;  %v5155_v39 = vsel %vm73_vm0, %v5113_v25, 0.0  ;;  %v5114_v55 = vmul.f32 %v14967_v23, %v14967_v23 }
 0xc68   :  { %5156 = vadd.xlane.f32.xlu1 %v5155_v39 }
 0xc69   :  { %v5158_v10 = vsel %vm73_vm0, %v5114_v55, 0.0  ;;  %v5115_v31 = vmul.f32 %v14973_v14, %v14973_v14 }
 0xc6a   :  { %v4974_v20 = vpop.xlane.xlu0 %4973  ;;  %5159 = vadd.xlane.f32.xlu0 %v5158_v10 }
 0xc6b   :  { %v5052_v26 = vmul.f32 0.03125, %v4974_v20  ;;  %v5161_v27 = vsel %vm73_vm0, %v5115_v31, 0.0 }
 0xc6c   :  { %v4977_v0 = vpop.xlane.xlu1 %4976  ;;  %5162 = vadd.xlane.f32.xlu1 %v5161_v27 }
 0xc6d   :  { %v14983_v52 = vsub.f32 %v14787_v50, %v5052_v26  ;;  %v5053_v38 = vmul.f32 0.03125, %v4977_v0 }
 0xc6e   :  { %v4980_v59 = vpop.xlane.xlu0 %4979 }
 0xc6f   :  { %v14986_v43 = vsub.f32 %v14795_v33, %v5053_v38  ;;  %v5054_v56 = vmul.f32 0.03125, %v4980_v59  ;;  %v5116_v12 = vmul.f32 %v14983_v52, %v14983_v52 }
 0xc70   :  { %v4983_v8 = vpop.xlane.xlu1 %4982 }
 0xc71   :  { %v14991_v32 = vsub.f32 %v14792_v24, %v5054_v56  ;;  %v5055_v5 = vmul.f32 0.03125, %v4983_v8  ;;  %v5164_v28 = vsel %vm73_vm0, %v5116_v12, 0.0  ;;  %v5117_v46 = vmul.f32 %v14986_v43, %v14986_v43 }
 0xc72   :  { %5165 = vadd.xlane.f32.xlu0 %v5164_v28  ;;  %v4986_v40 = vpop.xlane.xlu0 %4985 }
 0xc73   :  { %v14997_v19 = vsub.f32 %v14800_v16, %v5055_v5  ;;  %v5056_v41 = vmul.f32 0.03125, %v4986_v40  ;;  %v5167_v6 = vsel %vm73_vm0, %v5117_v46, 0.0  ;;  %v5118_v25 = vmul.f32 %v14991_v32, %v14991_v32 }
 0xc74   :  { %v4989_v39 = vpop.xlane.xlu1 %4988  ;;  %5168 = vadd.xlane.f32.xlu1 %v5167_v6 }
 0xc75   :  { %v15003_v55 = vsub.f32 %v14809_v60, %v5056_v41  ;;  %v5057_v10 = vmul.f32 0.03125, %v4989_v39  ;;  %v5170_v31 = vsel %vm73_vm0, %v5118_v25, 0.0  ;;  %v5119_v20 = vmul.f32 %v14997_v19, %v14997_v19 }
 0xc76   :  { %5171 = vadd.xlane.f32.xlu0 %v5170_v31  ;;  %v4992_v26 = vpop.xlane.xlu0 %4991 }
 0xc77   :  { %v15009_v27 = vsub.f32 %v14819_v7, %v5057_v10  ;;  %v5058_v0 = vmul.f32 0.03125, %v4992_v26  ;;  %v5173_v38 = vsel %vm73_vm0, %v5119_v20, 0.0  ;;  %v5120_v59 = vmul.f32 %v15003_v55, %v15003_v55 }
 0xc78   :  { %v4995_v56 = vpop.xlane.xlu1 %4994  ;;  %5174 = vadd.xlane.f32.xlu1 %v5173_v38 }
 0xc79   :  { %v15015_v12 = vsub.f32 %v14816_v49, %v5058_v0  ;;  %v5059_v8 = vmul.f32 0.03125, %v4995_v56  ;;  %v5176_v5 = vsel %vm73_vm0, %v5120_v59, 0.0  ;;  %v5121_v28 = vmul.f32 %v15009_v27, %v15009_v27 }
 0xc7a   :  { %5177 = vadd.xlane.f32.xlu0 %v5176_v5  ;;  %v4998_v46 = vpop.xlane.xlu0 %4997 }
 0xc7b   :  { %v15021_v40 = vsub.f32 %v14824_v44, %v5059_v8  ;;  %v5060_v41 = vmul.f32 0.03125, %v4998_v46  ;;  %v5179_v6 = vsel %vm73_vm0, %v5121_v28, 0.0  ;;  %v5122_v25 = vmul.f32 %v15015_v12, %v15015_v12 }
 0xc7c   :  { %v5001_v39 = vpop.xlane.xlu1 %5000  ;;  %5180 = vadd.xlane.f32.xlu1 %v5179_v6 }
 0xc7d   :  { %v15027_v10 = vsub.f32 %v14833_v61, %v5060_v41  ;;  %v5061_v31 = vmul.f32 0.03125, %v5001_v39  ;;  %v5182_v20 = vsel %vm73_vm0, %v5122_v25, 0.0  ;;  %v5123_v26 = vmul.f32 %v15021_v40, %v15021_v40 }
 0xc7e   :  { %5183 = vadd.xlane.f32.xlu0 %v5182_v20  ;;  %v5004_v0 = vpop.xlane.xlu0 %5003 }
 0xc7f   :  { %v15033_v38 = vsub.f32 %v14843_v47, %v5061_v31  ;;  %v5062_v59 = vmul.f32 0.03125, %v5004_v0  ;;  %v5185_v56 = vsel %vm73_vm0, %v5123_v26, 0.0  ;;  %v5124_v8 = vmul.f32 %v15027_v10, %v15027_v10 }
 0xc80   :  { %v5007_v5 = vpop.xlane.xlu1 %5006  ;;  %5186 = vadd.xlane.f32.xlu1 %v5185_v56 }
 0xc81   :  { %v15039_v28 = vsub.f32 %v14840_v3, %v5062_v59  ;;  %v5063_v46 = vmul.f32 0.03125, %v5007_v5  ;;  %v5188_v41 = vsel %vm73_vm0, %v5124_v8, 0.0  ;;  %v5125_v6 = vmul.f32 %v15033_v38, %v15033_v38 }
 0xc82   :  { %5189 = vadd.xlane.f32.xlu0 %v5188_v41  ;;  %v5010_v25 = vpop.xlane.xlu0 %5009 }
 0xc83   :  { %v15045_v39 = vsub.f32 %v14848_v48, %v5063_v46  ;;  %v5064_v31 = vmul.f32 0.03125, %v5010_v25  ;;  %v5191_v20 = vsel %vm73_vm0, %v5125_v6, 0.0  ;;  %v5126_v26 = vmul.f32 %v15039_v28, %v15039_v28 }
 0xc84   :  { %v5013_v0 = vpop.xlane.xlu1 %5012  ;;  %5192 = vadd.xlane.f32.xlu1 %v5191_v20 }
 0xc85   :  { %v15051_v59 = vsub.f32 %v14857_v63, %v5064_v31  ;;  %v5065_v56 = vmul.f32 0.03125, %v5013_v0  ;;  %v5194_v8 = vsel %vm73_vm0, %v5126_v26, 0.0  ;;  %v5127_v5 = vmul.f32 %v15045_v39, %v15045_v39 }
 0xc86   :  { %5195 = vadd.xlane.f32.xlu0 %v5194_v8  ;;  %v5016_v46 = vpop.xlane.xlu0 %5015 }
 0xc87   :  { %v15057_v41 = vsub.f32 %v14867_v57, %v5065_v56  ;;  %v5066_v6 = vmul.f32 0.03125, %v5016_v46  ;;  %v5197_v25 = vsel %vm73_vm0, %v5127_v5, 0.0  ;;  %v5128_v20 = vmul.f32 %v15051_v59, %v15051_v59 }
 0xc88   :  { %v5019_v48 = vpop.xlane.xlu1 %5018  ;;  %5198 = vadd.xlane.f32.xlu1 %v5197_v25 }
 0xc89   :  { %v15063_v31 = vsub.f32 %v14864_v35, %v5066_v6  ;;  %v5067_v26 = vmul.f32 0.03125, %v5019_v48  ;;  %v5200_v0 = vsel %vm73_vm0, %v5128_v20, 0.0  ;;  %v5129_v8 = vmul.f32 %v15057_v41, %v15057_v41 }
 0xc8a   :  { %5201 = vadd.xlane.f32.xlu0 %v5200_v0  ;;  %v5022_v56 = vpop.xlane.xlu0 %5021 }
 0xc8b   :  { %v15069_v46 = vsub.f32 %v14872_v30, %v5067_v26  ;;  %v5068_v5 = vmul.f32 0.03125, %v5022_v56  ;;  %v5203_v57 = vsel %vm73_vm0, %v5129_v8, 0.0  ;;  %v5130_v25 = vmul.f32 %v15063_v31, %v15063_v31 }
 0xc8c   :  { %v5025_v63 = vpop.xlane.xlu1 %5024  ;;  %5204 = vadd.xlane.f32.xlu1 %v5203_v57 }
 0xc8d   :  { %v15075_v48 = vsub.f32 %v14881_v45, %v5068_v5  ;;  %v5069_v6 = vmul.f32 0.03125, %v5025_v63  ;;  %v5206_v20 = vsel %vm73_vm0, %v5130_v25, 0.0  ;;  %v5131_v0 = vmul.f32 %v15069_v46, %v15069_v46 }
 0xc8e   :  { %5207 = vadd.xlane.f32.xlu0 %v5206_v20  ;;  %v5028_v26 = vpop.xlane.xlu0 %5027 }
 0xc8f   :  { %v15081_v56 = vsub.f32 %v14891_v37, %v5069_v6  ;;  %v5070_v8 = vmul.f32 0.03125, %v5028_v26  ;;  %v5209_v30 = vsel %vm73_vm0, %v5131_v0, 0.0  ;;  %v5132_v57 = vmul.f32 %v15075_v48, %v15075_v48 }
 0xc90   :  { %v5031_v35 = vpop.xlane.xlu1 %5030  ;;  %5210 = vadd.xlane.f32.xlu1 %v5209_v30 }
 0xc91   :  { %v15087_v63 = vsub.f32 %v14888_v15, %v5070_v8  ;;  %v5071_v5 = vmul.f32 0.03125, %v5031_v35  ;;  %v5212_v25 = vsel %vm73_vm0, %v5132_v57, 0.0  ;;  %v5133_v20 = vmul.f32 %v15081_v56, %v15081_v56 }
 0xc92   :  { %5213 = vadd.xlane.f32.xlu0 %v5212_v25 }
 0xc93   :  { %v15093_v6 = vsub.f32 %v14896_v51, %v5071_v5  ;;  %v5215_v0 = vsel %vm73_vm0, %v5133_v20, 0.0  ;;  %v5134_v26 = vmul.f32 %v15087_v63, %v15087_v63 }
 0xc94   :  { %5216 = vadd.xlane.f32.xlu1 %v5215_v0 }
 0xc95   :  { %v5218_v30 = vsel %vm73_vm0, %v5134_v26, 0.0  ;;  %v5135_v35 = vmul.f32 %v15093_v6, %v15093_v6 }
 0xc96   :  { %5219 = vadd.xlane.f32.xlu0 %v5218_v30 }
 0xc97   :  { %v5221_v8 = vsel %vm73_vm0, %v5135_v35, 0.0 }
 0xc98   :  { %5222 = vadd.xlane.f32.xlu1 %v5221_v8 }
 0xcbf   :  { %v5034_v57 = vpop.xlane.xlu0 %5033 }
 0xcc0   :  { %v5072_v25 = vmul.f32 0.03125, %v5034_v57 }
 0xcc1   :  { %v5037_v37 = vpop.xlane.xlu1 %5036 }
 0xcc2   :  { %v15103_v5 = vsub.f32 %v14909_v17, %v5072_v25  ;;  %v5073_v20 = vmul.f32 0.03125, %v5037_v37 }
 0xcc3   :  { %v5148_v51 = vpop.xlane.xlu0 %5147 }
 0xcc4   :  { %v15106_v15 = vsub.f32 %v14919_v42, %v5073_v20  ;;  %v5238_v0 = vmul.f32 0.03125, %v5148_v51  ;;  %v5136_v26 = vmul.f32 %v15103_v5, %v15103_v5 }
 0xcc5   :  { %v5151_v45 = vpop.xlane.xlu1 %5150 }
 0xcc6   :  { %v5270_v30 = vadd.f32 1e-05, %v5238_v0  ;;  %v5239_v47 = vmul.f32 0.03125, %v5151_v45  ;;  %v5224_v35 = vsel %vm73_vm0, %v5136_v26, 0.0  ;;  %v5137_v8 = vmul.f32 %v15106_v15, %v15106_v15 }
 0xcc7   :  { %5225 = vadd.xlane.f32.xlu0 %v5224_v35  ;;  %v5142_v57 = vpop.xlane.xlu0 %5141 }
 0xcc8   :  { %v5271_v25 = vadd.f32 1e-05, %v5239_v47  ;;  %v5236_v37 = vmul.f32 0.03125, %v5142_v57  ;;  %v5227_v17 = vsel %vm73_vm0, %v5137_v8, 0.0  ;;  %11576 = vrsqrt.f32 %v5270_v30 }
 0xcc9   :  { %5228 = vadd.xlane.f32.xlu1 %v5227_v17  ;;  %v5145_v51 = vpop.xlane.xlu1 %5144 }
 0xcca   :  { %11578 = vrsqrt.f32 %v5271_v25  ;;  %v5268_v20 = vadd.f32 1e-05, %v5236_v37  ;;  %v5237_v42 = vmul.f32 0.03125, %v5145_v51 }
 0xccb   :  { %v5040_v3 = vpop.xlane.xlu0 %5039 }
 0xccc   :  { %11580 = vrsqrt.f32 %v5268_v20  ;;  %v5269_v45 = vadd.f32 1e-05, %v5237_v42  ;;  %v5074_v0 = vmul.f32 0.03125, %v5040_v3  ;;  %v15131_v20 = vld [vmem:[%s17308_s2 + $0x1] ss:$0 sm:$0xff]  ;;  %s12060_s2 = smov 64  }
 0xccd   :  { %v5043_v26 = vpop.xlane.xlu1 %5042 }
 0xcce   :  { %11582 = vrsqrt.f32 %v5269_v45  ;;  %v15115_v44 = vsub.f32 %v14941_v58, %v5074_v0  ;;  %v5075_v35 = vmul.f32 0.03125, %v5043_v26 }
 0xcd0   :  { %v15118_v47 = vsub.f32 %v14945_v18, %v5075_v35  ;;  %v5138_v17 = vmul.f32 %v15115_v44, %v15115_v44 }
 0xcd2   :  { %v5230_v30 = vsel %vm73_vm0, %v5138_v17, 0.0  ;;  %v5139_v8 = vmul.f32 %v15118_v47, %v15118_v47  ;;  %v11577_v57 = vpop.eup %11576 }
 0xcd3   :  { %5231 = vadd.xlane.f32.xlu0 %v5230_v30  ;;  %v5334_v51 = vmul.f32 %v11577_v57, %v14906_v54  ;;  %v15141_v54 = vld [vmem:[%s17309_s3 + $0x1] ss:$0 sm:$0xff]  ;;  %s12061_s3 = smov 48  }
 0xcd4   :  { %v11579_v3 = vpop.eup %11578  ;;  %v5233_v42 = vsel %vm73_vm0, %v5139_v8, 0.0 }
 0xcd5   :  { %v5335_v25 = vmul.f32 %v11579_v3, %v14913_v34  ;;  %5234 = vadd.xlane.f32.xlu1 %v5233_v42  ;;  %v5372_v34 = vmul.f32 %v15131_v20, %v5334_v51 }
 0xcd6   :  { %v11581_v37 = vpop.eup %11580 }
 0xcd7   :  { %v5332_v45 = vmul.f32 %v11581_v37, %v14916_v21  ;;  %v5373_v26 = vmul.f32 %v15131_v20, %v5335_v25  ;;  %v5410_v3 = vadd.f32 %v15141_v54, %v5372_v34 }
 0xcd8   :  { %v11583_v0 = vpop.eup %11582 }
 0xcd9   :  { %v5333_v35 = vmul.f32 %v11583_v0, %v14926_v9  ;;  %v5370_v17 = vmul.f32 %v15131_v20, %v5332_v45  ;;  %v5411_v8 = vadd.f32 %v15141_v54, %v5373_v26 }
 0xcdb   :  { %v5371_v30 = vmul.f32 %v15131_v20, %v5333_v35  ;;  %v5408_v21 = vadd.f32 %v15141_v54, %v5370_v17  ;;  %v5441_v42 = vpack.c.bf16 %v5411_v8, %v5410_v3 }
 0xcdd   :  { %v5409_v57 = vadd.f32 %v15141_v54, %v5371_v30 }
 0xcdf   :  { %v5440_v9 = vpack.c.bf16 %v5409_v57, %v5408_v21 }
 0xce1   :  { %10678 = vmatprep.mubr.msk.bf16.mxu0 %vm73_vm0, %v5440_v9 }
 0xce2   :  { %10679 = vmatmul.mubr.msk.bf16.vlgmr.msra.gmra.mrb[128].mxu0 %vm73_vm0, %v5441_v42 }
 0xcf3   :  { %v5154_v25 = vpop.xlane.xlu0 %5153 }
 0xcf4   :  { %v5240_v37 = vmul.f32 0.03125, %v5154_v25 }
 0xcf5   :  { %v5157_v51 = vpop.xlane.xlu1 %5156 }
 0xcf6   :  { %v5272_v45 = vadd.f32 1e-05, %v5240_v37  ;;  %v5241_v0 = vmul.f32 0.03125, %v5157_v51 }
 0xcf7   :  { %v5160_v35 = vpop.xlane.xlu0 %5159 }
 0xcf8   :  { %11584 = vrsqrt.f32 %v5272_v45  ;;  %v5273_v26 = vadd.f32 1e-05, %v5241_v0  ;;  %v5242_v18 = vmul.f32 0.03125, %v5160_v35 }
 0xcf9   :  { %v5163_v17 = vpop.xlane.xlu1 %5162 }
 0xcfa   :  { %11586 = vrsqrt.f32 %v5273_v26  ;;  %v5274_v30 = vadd.f32 1e-05, %v5242_v18  ;;  %v5243_v58 = vmul.f32 0.03125, %v5163_v17 }
 0xcfc   :  { %11588 = vrsqrt.f32 %v5274_v30  ;;  %v5275_v34 = vadd.f32 1e-05, %v5243_v58 }
 0xcfe   :  { %11590 = vrsqrt.f32 %v5275_v34 }
 0xcff   :  { %v5166_v8 = vpop.xlane.xlu0 %5165 }
 0xd00   :  { %v5244_v21 = vmul.f32 0.03125, %v5166_v8 }
 0xd01   :  { %v5169_v57 = vpop.xlane.xlu1 %5168 }
 0xd02   :  { %v11585_v3 = vpop.eup %11584  ;;  %v5276_v9 = vadd.f32 1e-05, %v5244_v21  ;;  %v5245_v42 = vmul.f32 0.03125, %v5169_v57 }
 0xd03   :  { %v5172_v25 = vpop.xlane.xlu0 %5171  ;;  %v5336_v37 = vmul.f32 %v11585_v3, %v14959_v13 }
 0xd04   :  { %v11587_v51 = vpop.eup %11586  ;;  %11592 = vrsqrt.f32 %v5276_v9  ;;  %v5277_v45 = vadd.f32 1e-05, %v5245_v42  ;;  %v5246_v0 = vmul.f32 0.03125, %v5172_v25 }
 0xd05   :  { %v5175_v35 = vpop.xlane.xlu1 %5174  ;;  %v5337_v18 = vmul.f32 %v11587_v51, %v14962_v1  ;;  %v5374_v26 = vmul.f32 %v15131_v20, %v5336_v37 }
 0xd06   :  { %v11589_v58 = vpop.eup %11588  ;;  %11594 = vrsqrt.f32 %v5277_v45  ;;  %v5278_v17 = vadd.f32 1e-05, %v5246_v0  ;;  %v5247_v30 = vmul.f32 0.03125, %v5175_v35 }
 0xd07   :  { %v5178_v34 = vpop.xlane.xlu0 %5177  ;;  %v5375_v8 = vmul.f32 %v15131_v20, %v5337_v18  ;;  %v5338_v21 = vmul.f32 %v11589_v58, %v14967_v23  ;;  %v5412_v42 = vadd.f32 %v15141_v54, %v5374_v26 }
 0xd08   :  { %v11591_v57 = vpop.eup %11590  ;;  %11596 = vrsqrt.f32 %v5278_v17  ;;  %v5279_v13 = vadd.f32 1e-05, %v5247_v30  ;;  %v5248_v3 = vmul.f32 0.03125, %v5178_v34 }
 0xd09   :  { %v5181_v9 = vpop.xlane.xlu1 %5180  ;;  %v5413_v1 = vadd.f32 %v15141_v54, %v5375_v8  ;;  %v5339_v25 = vmul.f32 %v11591_v57, %v14973_v14  ;;  %v5376_v37 = vmul.f32 %v15131_v20, %v5338_v21 }
 0xd0a   :  { %11598 = vrsqrt.f32 %v5279_v13  ;;  %v5280_v51 = vadd.f32 1e-05, %v5248_v3  ;;  %v5249_v45 = vmul.f32 0.03125, %v5181_v9 }
 0xd0b   :  { %v5184_v0 = vpop.xlane.xlu0 %5183  ;;  %v5442_v35 = vpack.c.bf16 %v5413_v1, %v5412_v42  ;;  %v5377_v23 = vmul.f32 %v15131_v20, %v5339_v25  ;;  %v5414_v26 = vadd.f32 %v15141_v54, %v5376_v37 }
 0xd0c   :  { %11600 = vrsqrt.f32 %v5280_v51  ;;  %v5281_v18 = vadd.f32 1e-05, %v5249_v45  ;;  %v5250_v58 = vmul.f32 0.03125, %v5184_v0 }
 0xd0d   :  { %v5187_v17 = vpop.xlane.xlu1 %5186  ;;  %10682 = vmatprep.mubr.msk.bf16.mxu0 %vm73_vm0, %v5442_v35  ;;  %v5415_v30 = vadd.f32 %v15141_v54, %v5377_v23 }
 0xd0e   :  { %v11593_v14 = vpop.eup %11592  ;;  %11602 = vrsqrt.f32 %v5281_v18  ;;  %v5282_v34 = vadd.f32 1e-05, %v5250_v58  ;;  %v5251_v8 = vmul.f32 0.03125, %v5187_v17 }
 0xd0f   :  { %v5190_v21 = vpop.xlane.xlu0 %5189  ;;  %v5443_v57 = vpack.c.bf16 %v5415_v30, %v5414_v26  ;;  %v5340_v13 = vmul.f32 %v11593_v14, %v14983_v52 }
 0xd10   :  { %v11595_v3 = vpop.eup %11594  ;;  %11604 = vrsqrt.f32 %v5282_v34  ;;  %v5283_v9 = vadd.f32 1e-05, %v5251_v8  ;;  %v5252_v42 = vmul.f32 0.03125, %v5190_v21 }
 0xd11   :  { %v5193_v1 = vpop.xlane.xlu1 %5192  ;;  %10683 = vmatmul.mubr.msk.bf16.gmra.mrb[132].mxu0 %vm73_vm0, %v5443_v57  ;;  %v5341_v25 = vmul.f32 %v11595_v3, %v14986_v43  ;;  %v5378_v37 = vmul.f32 %v15131_v20, %v5340_v13 }
 0xd12   :  { %v11597_v51 = vpop.eup %11596  ;;  %11606 = vrsqrt.f32 %v5283_v9  ;;  %v5284_v45 = vadd.f32 1e-05, %v5252_v42  ;;  %v5253_v0 = vmul.f32 0.03125, %v5193_v1 }
 0xd13   :  { %v5196_v35 = vpop.xlane.xlu0 %5195  ;;  %v5379_v23 = vmul.f32 %v15131_v20, %v5341_v25  ;;  %v5342_v52 = vmul.f32 %v11597_v51, %v14991_v32  ;;  %v5416_v30 = vadd.f32 %v15141_v54, %v5378_v37 }
 0xd14   :  { %v11599_v18 = vpop.eup %11598  ;;  %11608 = vrsqrt.f32 %v5284_v45  ;;  %v5285_v58 = vadd.f32 1e-05, %v5253_v0  ;;  %v5254_v17 = vmul.f32 0.03125, %v5196_v35 }
 0xd15   :  { %v5199_v26 = vpop.xlane.xlu1 %5198  ;;  %v5417_v43 = vadd.f32 %v15141_v54, %v5379_v23  ;;  %v5343_v14 = vmul.f32 %v11599_v18, %v14997_v19  ;;  %v5380_v34 = vmul.f32 %v15131_v20, %v5342_v52 }
 0xd16   :  { %v11601_v8 = vpop.eup %11600  ;;  %11610 = vrsqrt.f32 %v5285_v58  ;;  %v5286_v21 = vadd.f32 1e-05, %v5254_v17  ;;  %v5255_v57 = vmul.f32 0.03125, %v5199_v26 }
 0xd17   :  { %v5202_v13 = vpop.xlane.xlu0 %5201  ;;  %v5444_v3 = vpack.c.bf16 %v5417_v43, %v5416_v30  ;;  %v5381_v32 = vmul.f32 %v15131_v20, %v5343_v14  ;;  %v5344_v9 = vmul.f32 %v11601_v8, %v15003_v55  ;;  %v5418_v19 = vadd.f32 %v15141_v54, %v5380_v34 }
 0xd18   :  { %v11603_v42 = vpop.eup %11602  ;;  %11612 = vrsqrt.f32 %v5286_v21  ;;  %v5287_v1 = vadd.f32 1e-05, %v5255_v57  ;;  %v5256_v25 = vmul.f32 0.03125, %v5202_v13 }
 0xd19   :  { %v5205_v37 = vpop.xlane.xlu1 %5204  ;;  %10686 = vmatprep.mubr.msk.bf16.mxu0 %vm73_vm0, %v5444_v3  ;;  %v5419_v51 = vadd.f32 %v15141_v54, %v5381_v32  ;;  %v5345_v45 = vmul.f32 %v11603_v42, %v15009_v27  ;;  %v5382_v0 = vmul.f32 %v15131_v20, %v5344_v9 }
 0xd1a   :  { %v11605_v35 = vpop.eup %11604  ;;  %11614 = vrsqrt.f32 %v5287_v1  ;;  %v5288_v23 = vadd.f32 1e-05, %v5256_v25  ;;  %v5257_v52 = vmul.f32 0.03125, %v5205_v37 }
 0xd1b   :  { %v5208_v55 = vpop.xlane.xlu0 %5207  ;;  %v5445_v18 = vpack.c.bf16 %v5419_v51, %v5418_v19  ;;  %v5383_v58 = vmul.f32 %v15131_v20, %v5345_v45  ;;  %v5346_v17 = vmul.f32 %v11605_v35, %v15015_v12  ;;  %v5420_v27 = vadd.f32 %v15141_v54, %v5382_v0 }
 0xd1c   :  { %v11607_v26 = vpop.eup %11606  ;;  %11616 = vrsqrt.f32 %v5288_v23  ;;  %v5289_v30 = vadd.f32 1e-05, %v5257_v52  ;;  %v5258_v43 = vmul.f32 0.03125, %v5208_v55 }
 0xd1d   :  { %v5211_v14 = vpop.xlane.xlu1 %5210  ;;  %10687 = vmatmul.mubr.msk.bf16.gmra.mrb[136].mxu0 %vm73_vm0, %v5445_v18  ;;  %v5421_v34 = vadd.f32 %v15141_v54, %v5383_v58  ;;  %v5347_v8 = vmul.f32 %v11607_v26, %v15021_v40  ;;  %v5384_v21 = vmul.f32 %v15131_v20, %v5346_v17 }
 0xd1e   :  { %v11609_v57 = vpop.eup %11608  ;;  %11618 = vrsqrt.f32 %v5289_v30  ;;  %v5290_v13 = vadd.f32 1e-05, %v5258_v43  ;;  %v5259_v3 = vmul.f32 0.03125, %v5211_v14 }
 0xd1f   :  { %v5214_v12 = vpop.xlane.xlu0 %5213  ;;  %v5446_v32 = vpack.c.bf16 %v5421_v34, %v5420_v27  ;;  %v5385_v9 = vmul.f32 %v15131_v20, %v5347_v8  ;;  %v5348_v42 = vmul.f32 %v11609_v57, %v15027_v10  ;;  %v5422_v40 = vadd.f32 %v15141_v54, %v5384_v21 }
 0xd20   :  { %v11611_v1 = vpop.eup %11610  ;;  %11620 = vrsqrt.f32 %v5290_v13  ;;  %v5291_v25 = vadd.f32 1e-05, %v5259_v3  ;;  %v5260_v37 = vmul.f32 0.03125, %v5214_v12 }
 0xd21   :  { %v5217_v19 = vpop.xlane.xlu1 %5216  ;;  %10690 = vmatprep.mubr.msk.bf16.mxu0 %vm73_vm0, %v5446_v32  ;;  %v5423_v51 = vadd.f32 %v15141_v54, %v5385_v9  ;;  %v5349_v45 = vmul.f32 %v11611_v1, %v15033_v38  ;;  %v5386_v0 = vmul.f32 %v15131_v20, %v5348_v42 }
 0xd22   :  { %v11613_v35 = vpop.eup %11612  ;;  %11622 = vrsqrt.f32 %v5291_v25  ;;  %v5292_v23 = vadd.f32 1e-05, %v5260_v37  ;;  %v5261_v52 = vmul.f32 0.03125, %v5217_v19 }
 0xd23   :  { %v5220_v10 = vpop.xlane.xlu0 %5219  ;;  %v5447_v55 = vpack.c.bf16 %v5423_v51, %v5422_v40  ;;  %v5387_v18 = vmul.f32 %v15131_v20, %v5349_v45  ;;  %v5350_v58 = vmul.f32 %v11613_v35, %v15039_v28  ;;  %v5424_v38 = vadd.f32 %v15141_v54, %v5386_v0 }
 0xd24   :  { %v11615_v17 = vpop.eup %11614  ;;  %11624 = vrsqrt.f32 %v5292_v23  ;;  %v5293_v26 = vadd.f32 1e-05, %v5261_v52  ;;  %v5262_v30 = vmul.f32 0.03125, %v5220_v10 }
 0xd25   :  { %v5223_v43 = vpop.xlane.xlu1 %5222  ;;  %10691 = vmatmul.mubr.msk.bf16.gmra.mrb[140].mxu0 %vm73_vm0, %v5447_v55  ;;  %v5425_v14 = vadd.f32 %v15141_v54, %v5387_v18  ;;  %v5351_v27 = vmul.f32 %v11615_v17, %v15045_v39  ;;  %v5388_v34 = vmul.f32 %v15131_v20, %v5350_v58 }
 0xd26   :  { %v11617_v8 = vpop.eup %11616  ;;  %11626 = vrsqrt.f32 %v5293_v26  ;;  %v5294_v21 = vadd.f32 1e-05, %v5262_v30  ;;  %v5263_v57 = vmul.f32 0.03125, %v5223_v43 }
 0xd27   :  { %v5448_v28 = vpack.c.bf16 %v5425_v14, %v5424_v38  ;;  %v5389_v13 = vmul.f32 %v15131_v20, %v5351_v27  ;;  %v5352_v3 = vmul.f32 %v11617_v8, %v15051_v59  ;;  %v5426_v9 = vadd.f32 %v15141_v54, %v5388_v34 }
 0xd28   :  { %v11619_v12 = vpop.eup %11618  ;;  %11628 = vrsqrt.f32 %v5294_v21  ;;  %v5295_v32 = vadd.f32 1e-05, %v5263_v57 }
 0xd29   :  { %10694 = vmatprep.mubr.msk.bf16.mxu0 %vm73_vm0, %v5448_v28  ;;  %v5427_v39 = vadd.f32 %v15141_v54, %v5389_v13  ;;  %v5353_v42 = vmul.f32 %v11619_v12, %v15057_v41  ;;  %v5390_v1 = vmul.f32 %v15131_v20, %v5352_v3 }
 0xd2a   :  { %v11621_v25 = vpop.eup %11620  ;;  %11630 = vrsqrt.f32 %v5295_v32 }
 0xd2b   :  { %v5449_v37 = vpack.c.bf16 %v5427_v39, %v5426_v9  ;;  %v5391_v19 = vmul.f32 %v15131_v20, %v5353_v42  ;;  %v5354_v59 = vmul.f32 %v11621_v25, %v15063_v31  ;;  %v5428_v51 = vadd.f32 %v15141_v54, %v5390_v1 }
 0xd2c   :  { %v11623_v40 = vpop.eup %11622 }
 0xd2d   :  { %10695 = vmatmul.mubr.msk.bf16.gmra.mrb[144].mxu0 %vm73_vm0, %v5449_v37  ;;  %v5429_v45 = vadd.f32 %v15141_v54, %v5391_v19  ;;  %v5355_v0 = vmul.f32 %v11623_v40, %v15069_v46  ;;  %v5392_v41 = vmul.f32 %v15131_v20, %v5354_v59 }
 0xd2e   :  { %v11625_v35 = vpop.eup %11624 }
 0xd2f   :  { %v5450_v23 = vpack.c.bf16 %v5429_v45, %v5428_v51  ;;  %v5393_v52 = vmul.f32 %v15131_v20, %v5355_v0  ;;  %v5356_v10 = vmul.f32 %v11625_v35, %v15075_v48  ;;  %v5430_v31 = vadd.f32 %v15141_v54, %v5392_v41 }
 0xd30   :  { %v11627_v55 = vpop.eup %11626 }
 0xd31   :  { %10698 = vmatprep.mubr.msk.bf16.mxu0 %vm73_vm0, %v5450_v23  ;;  %v5431_v18 = vadd.f32 %v15141_v54, %v5393_v52  ;;  %v5357_v58 = vmul.f32 %v11627_v55, %v15081_v56  ;;  %v5394_v17 = vmul.f32 %v15131_v20, %v5356_v10 }
 0xd32   :  { %v11629_v46 = vpop.eup %11628 }
 0xd33   :  { %v5451_v26 = vpack.c.bf16 %v5431_v18, %v5430_v31  ;;  %v5395_v30 = vmul.f32 %v15131_v20, %v5357_v58  ;;  %v5358_v43 = vmul.f32 %v11629_v46, %v15087_v63  ;;  %v5432_v48 = vadd.f32 %v15141_v54, %v5394_v17 }
 0xd34   :  { %v11631_v38 = vpop.eup %11630 }
 0xd35   :  { %10699 = vmatmul.mubr.msk.bf16.gmra.mrb[148].mxu0 %vm73_vm0, %v5451_v26  ;;  %v5433_v14 = vadd.f32 %v15141_v54, %v5395_v30  ;;  %v5359_v27 = vmul.f32 %v11631_v38, %v15093_v6  ;;  %v5396_v34 = vmul.f32 %v15131_v20, %v5358_v43 }
 0xd37   :  { %v5452_v56 = vpack.c.bf16 %v5433_v14, %v5432_v48  ;;  %v5397_v8 = vmul.f32 %v15131_v20, %v5359_v27  ;;  %v5434_v21 = vadd.f32 %v15141_v54, %v5396_v34 }
 0xd39   :  { %10702 = vmatprep.mubr.msk.bf16.mxu0 %vm73_vm0, %v5452_v56  ;;  %v5435_v63 = vadd.f32 %v15141_v54, %v5397_v8 }
 0xd3b   :  { %v5453_v57 = vpack.c.bf16 %v5435_v63, %v5434_v21 }
 0xd3d   :  { %10703 = vmatmul.mubr.msk.bf16.gmra.mrb[152].mxu0 %vm73_vm0, %v5453_v57 }
 0xd54   :  { %v5226_v28 = vpop.xlane.xlu0 %5225 }
 0xd55   :  { %v5264_v13 = vmul.f32 0.03125, %v5226_v28 }
 0xd56   :  { %v5229_v3 = vpop.xlane.xlu1 %5228 }
 0xd57   :  { %v5296_v12 = vadd.f32 1e-05, %v5264_v13  ;;  %v5265_v32 = vmul.f32 0.03125, %v5229_v3 }
 0xd59   :  { %11632 = vrsqrt.f32 %v5296_v12  ;;  %v5297_v6 = vadd.f32 1e-05, %v5265_v32 }
 0xd5b   :  { %11634 = vrsqrt.f32 %v5297_v6 }
 0xd60   :  { %v5232_v9 = vpop.xlane.xlu0 %5231 }
 0xd61   :  { %v5266_v39 = vmul.f32 0.03125, %v5232_v9 }
 0xd62   :  { %v5235_v42 = vpop.xlane.xlu1 %5234 }
 0xd63   :  { %v11633_v1 = vpop.eup %11632  ;;  %v5298_v25 = vadd.f32 1e-05, %v5266_v39  ;;  %v5267_v37 = vmul.f32 0.03125, %v5235_v42 }
 0xd64   :  { %v5360_v19 = vmul.f32 %v11633_v1, %v15103_v5 }
 0xd65   :  { %v11635_v59 = vpop.eup %11634  ;;  %11636 = vrsqrt.f32 %v5298_v25  ;;  %v5299_v40 = vadd.f32 1e-05, %v5267_v37 }
 0xd66   :  { %v5361_v51 = vmul.f32 %v11635_v59, %v15106_v15  ;;  %v5398_v45 = vmul.f32 %v15131_v20, %v5360_v19 }
 0xd67   :  { %11638 = vrsqrt.f32 %v5299_v40 }
 0xd68   :  { %v5399_v0 = vmul.f32 %v15131_v20, %v5361_v51  ;;  %v5436_v41 = vadd.f32 %v15141_v54, %v5398_v45 }
 0xd6a   :  { %v5437_v35 = vadd.f32 %v15141_v54, %v5399_v0 }
 0xd6c   :  { %v5454_v23 = vpack.c.bf16 %v5437_v35, %v5436_v41 }
 0xd6e   :  { %10706 = vmatprep.mubr.msk.bf16.mxu0 %vm73_vm0, %v5454_v23 }
 0xd6f   :  { %v11637_v52 = vpop.eup %11636 }
 0xd70   :  { %v5362_v5 = vmul.f32 %v11637_v52, %v15115_v44 }
 0xd71   :  { %v11639_v10 = vpop.eup %11638 }
 0xd72   :  { %v5363_v55 = vmul.f32 %v11639_v10, %v15118_v47  ;;  %v5400_v15 = vmul.f32 %v15131_v20, %v5362_v5 }
 0xd74   :  { %v5401_v31 = vmul.f32 %v15131_v20, %v5363_v55  ;;  %v5438_v18 = vadd.f32 %v15141_v54, %v5400_v15 }
 0xd76   :  { %v5439_v58 = vadd.f32 %v15141_v54, %v5401_v31 }
 0xd78   :  { %v5455_v17 = vpack.c.bf16 %v5439_v58, %v5438_v18 }
 0xd7a   :  { %10707 = vmatmul.mubr.msk.bf16.gmra.mrb[156].mxu0 %vm73_vm0, %v5455_v17 }
 0xdb5   :  { %v10680_v46 = vpop.f32.mrb[128].mxu0 }
 0xdb6   :  { %v5555_v26 = vpop.f32.mrb[129].mxu0 }
 0xdb7   :  { %v10681_v30 = vpop.f32.mrb[130].mxu0 }
 0xdb8   :  { %v15248_v43 = vpack.c.bf16 %v10681_v30, %v10680_v46  ;;  %v5558_v44 = vpop.f32.mrb[131].mxu0 }
 0xdb9   :  { %v15250_v38 = vpack.c.bf16 %v5558_v44, %v5555_v26 }
 0xdba   :  { %17564 = vst [vmem:[#allocation35_spill] sm:$0xff] %v15248_v43  ;;  %5704 = vrot.lane.b32.xlu1 %v15248_v43, %s12056_s20 }
 0xdbb   :  { %17565 = vst [vmem:[#allocation36_spill] sm:$0xff] %v15250_v38  ;;  %10718 = vmatprep.mubr.msk.bf16.mxu1 %vm1103_vm1, %v15250_v38  ;;  %5702 = vrot.lane.b32.xlu0 %v15250_v38, %s12056_s20 }
 0xde4   :  { %v10684_v47 = vpop.f32.mrb[132].mxu0 }
 0xde5   :  { %v5571_v20 = vpop.f32.mrb[133].mxu0 }
 0xde6   :  { %v10685_v54 = vpop.f32.mrb[134].mxu0 }
 0xde7   :  { %v15258_v48 = vpack.c.bf16 %v10685_v54, %v10684_v47  ;;  %v5574_v14 = vpop.f32.mrb[135].mxu0 }
 0xde8   :  { %v15260_v27 = vpack.c.bf16 %v5574_v14, %v5571_v20 }
 0xdea   :  { %17566 = vst [vmem:[#allocation37_spill] sm:$0xff] %v15260_v27  ;;  %5706 = vrot.lane.b32.xlu1 %v15260_v27, %s12056_s20 }
 0xdee   :  { %5708 = vrot.lane.b32.xlu1 %v15258_v48, %s12056_s20 }
 0xdf0   :  { %v10688_v34 = vpop.f32.mrb[136].mxu0 }
 0xdf1   :  { %v5587_v56 = vpop.f32.mrb[137].mxu0 }
 0xdf2   :  { %v10689_v8 = vpop.f32.mrb[138].mxu0 }
 0xdf3   :  { %v15266_v21 = vpack.c.bf16 %v10689_v8, %v10688_v34  ;;  %v5590_v63 = vpop.f32.mrb[139].mxu0 }
 0xdf4   :  { %v15268_v57 = vpack.c.bf16 %v5590_v63, %v5587_v56 }
 0xdf5   :  { %5805 = vrot.lane.b32.xlu1 %v15266_v21, %s12056_s20 }
 0xdf6   :  { %5803 = vrot.lane.b32.xlu0 %v15268_v57, %s12056_s20 }
 0xdf8   :  { %v10692_v28 = vpop.f32.mrb[140].mxu0 }
 0xdf9   :  { %v5603_v13 = vpop.f32.mrb[141].mxu0 }
 0xdfa   :  { %v10693_v3 = vpop.f32.mrb[142].mxu0 }
 0xdfb   :  { %v15274_v12 = vpack.c.bf16 %v10693_v3, %v10692_v28  ;;  %v5606_v32 = vpop.f32.mrb[143].mxu0 }
 0xdfc   :  { %v15276_v6 = vpack.c.bf16 %v5606_v32, %v5603_v13 }
 0xdfe   :  { %5807 = vrot.lane.b32.xlu0 %v15276_v6, %s12056_s20 }
 0xe00   :  { %v10696_v9 = vpop.f32.mrb[144].mxu0 }
 0xe01   :  { %v5619_v39 = vpop.f32.mrb[145].mxu0 }
 0xe02   :  { %5809 = vrot.lane.b32.xlu0 %v15274_v12, %s12056_s20  ;;  %v10697_v42 = vpop.f32.mrb[146].mxu0 }
 0xe03   :  { %v15282_v1 = vpack.c.bf16 %v10697_v42, %v10696_v9  ;;  %v5622_v25 = vpop.f32.mrb[147].mxu0 }
 0xe04   :  { %v15284_v37 = vpack.c.bf16 %v5622_v25, %v5619_v39 }
 0xe06   :  { %5904 = vrot.lane.b32.xlu1 %v15284_v37, %s12056_s20  ;;  %10750 = vmatprep.mubr.msk.bf16.mxu0 %vm1103_vm1, %v15284_v37 }
 0xe08   :  { %v10700_v19 = vpop.f32.mrb[148].mxu0 }
 0xe09   :  { %v5635_v59 = vpop.f32.mrb[149].mxu0 }
 0xe0a   :  { %5906 = vrot.lane.b32.xlu1 %v15282_v1, %s12056_s20  ;;  %v10701_v40 = vpop.f32.mrb[150].mxu0 }
 0xe0b   :  { %v15292_v51 = vpack.c.bf16 %v10701_v40, %v10700_v19  ;;  %v5638_v45 = vpop.f32.mrb[151].mxu0 }
 0xe0c   :  { %v15294_v0 = vpack.c.bf16 %v5638_v45, %v5635_v59 }
 0xe0e   :  { %5908 = vrot.lane.b32.xlu0 %v15294_v0, %s12056_s20 }
 0xe10   :  { %v10704_v41 = vpop.f32.mrb[152].mxu0 }
 0xe11   :  { %v5651_v35 = vpop.f32.mrb[153].mxu0 }
 0xe12   :  { %5910 = vrot.lane.b32.xlu0 %v15292_v51, %s12056_s20  ;;  %v10705_v23 = vpop.f32.mrb[154].mxu0 }
 0xe13   :  { %v15300_v52 = vpack.c.bf16 %v10705_v23, %v10704_v41  ;;  %v5654_v5 = vpop.f32.mrb[155].mxu0 }
 0xe14   :  { %v15302_v10 = vpack.c.bf16 %v5654_v5, %v5651_v35 }
 0xe15   :  { %17567 = vst [vmem:[#allocation38_spill] sm:$0xff] %v15300_v52 }
 0xe16   :  { %6005 = vrot.lane.b32.xlu1 %v15302_v10, %s12056_s20 }
 0xe1a   :  { %6007 = vrot.lane.b32.xlu1 %v15300_v52, %s12056_s20 }
 0xe2c   :  { %v5705_v31 = vpop.permute.xlu1 %5704 }
 0xe2d   :  { %v5703_v55 = vpop.permute.xlu0 %5702  ;;  %v5726_v18 = vsel %vm1103_vm1, %v5705_v31, 0 }
 0xe2e   :  { %11074 = vmatprep.subr.msk.bf16.mxu1 %vm1103_vm1, %v5703_v55  ;;  %v5723_v15 = vsel %vm1103_vm1, %v5703_v55, 0 }
 0xe2f   :  { %10711 = vmatpush3.bf16.xpose.msra.mxu1 %v5723_v15 }
 0xe30   :  { %11075 = vmatprep.subr.msk.bf16.mxu1 %vm1103_vm1, %v5705_v31 }
 0xe37   :  { %10713 = vmatpush3.bf16.xpose.msra.mxu1 %v5726_v18 }
 0xe4d   :  { %v10708_v58 = vpop.f32.mrb[156].mxu0 }
 0xe4e   :  { %v5667_v17 = vpop.f32.mrb[157].mxu0 }
 0xe4f   :  { %v10709_v46 = vpop.f32.mrb[158].mxu0 }
 0xe50   :  { %v15312_v26 = vpack.c.bf16 %v10709_v46, %v10708_v58  ;;  %v5670_v30 = vpop.f32.mrb[159].mxu0 }
 0xe51   :  { %v15314_v44 = vpack.c.bf16 %v5670_v30, %v5667_v17 }
 0xe52   :  { %17568 = vst [vmem:[#allocation39_spill] sm:$0xff] %v15312_v26  ;;  %6011 = vrot.lane.b32.xlu1 %v15312_v26, %s12056_s20 }
 0xe53   :  { %6009 = vrot.lane.b32.xlu0 %v15314_v44, %s12056_s20 }
 0xe56   :  { %6474 = vrot.lane.b32.xlu1 %v15260_v27, %s12060_s2 }
 0xe57   :  { %6470 = vrot.lane.b32.xlu0 %v15250_v38, %s12060_s2 }
 0xe5a   :  { %6559 = vrot.lane.b32.xlu1 %v15268_v57, %s12060_s2 }
 0xe5b   :  { %6472 = vrot.lane.b32.xlu0 %v15248_v43, %s12060_s2 }
 0xe5c   :  { %v5707_v47 = vpop.permute.xlu1 %5706 }
 0xe5d   :  { %11076 = vmatprep.subr.msk.bf16.mxu1 %vm1103_vm1, %v5707_v47  ;;  %v5729_v20 = vsel %vm1103_vm1, %v5707_v47, 0 }
 0xe5e   :  { %10715 = vmatpush3.bf16.xpose.msra.mxu1 %v5729_v20  ;;  %6648 = vrot.lane.b32.xlu1 %v15284_v37, %s12060_s2 }
 0xe5f   :  { %6476 = vrot.lane.b32.xlu0 %v15258_v48, %s12060_s2 }
 0xe60   :  { %v5709_v54 = vpop.permute.xlu1 %5708 }
 0xe61   :  { %11077 = vmatprep.subr.msk.bf16.mxu1 %vm1103_vm1, %v5709_v54  ;;  %v5732_v14 = vsel %vm1103_vm1, %v5709_v54, 0 }
 0xe62   :  { %6563 = vrot.lane.b32.xlu1 %v15276_v6, %s12060_s2 }
 0xe63   :  { %6561 = vrot.lane.b32.xlu0 %v15266_v21, %s12060_s2 }
 0xe66   :  { %10717 = vmatpush3.bf16.xpose.msra.mxu1 %v5732_v14  ;;  %6652 = vrot.lane.b32.xlu1 %v15294_v0, %s12060_s2 }
 0xe67   :  { %6650 = vrot.lane.b32.xlu0 %v15282_v1, %s12060_s2  ;;  %v5806_v8 = vpop.permute.xlu1 %5805 }
 0xe68   :  { %v5804_v34 = vpop.permute.xlu0 %5803  ;;  %v5827_v63 = vsel %vm1103_vm1, %v5806_v8, 0 }
 0xe69   :  { %11078 = vmatprep.subr.msk.bf16.mxu1 %vm1103_vm1, %v5804_v34  ;;  %v5824_v56 = vsel %vm1103_vm1, %v5804_v34, 0 }
 0xe6a   :  { %6737 = vrot.lane.b32.xlu1 %v15302_v10, %s12060_s2 }
 0xe6b   :  { %6565 = vrot.lane.b32.xlu0 %v15274_v12, %s12060_s2 }
 0xe6d   :  { %10719 = vmatmul.mubr.msk.bf16.vlgmr.msra.gmra.mrb[128].mxu1 %vm1103_vm1, %v15248_v43 }
 0xe6e   :  { %10722 = vmatprep.mubr.msk.bf16.mxu1 %vm1103_vm1, %v15260_v27  ;;  %10727 = vmatpush3.bf16.xpose.msra.mxu1 %v5824_v56 }
 0xe6f   :  { %11079 = vmatprep.subr.msk.bf16.mxu1 %vm1103_vm1, %v5806_v8  ;;  %6739 = vrot.lane.b32.xlu1 %v15300_v52, %s12060_s2 }
 0xe70   :  { %6654 = vrot.lane.b32.xlu0 %v15292_v51, %s12060_s2  ;;  %v5808_v28 = vpop.permute.xlu0 %5807 }
 0xe71   :  { %v5830_v9 = vsel %vm1103_vm1, %v5808_v28, 0 }
 0xe73   :  { %6743 = vrot.lane.b32.xlu1 %v15312_v26, %s12060_s2 }
 0xe74   :  { %6866 = vrot.lane.b32.xlu0 %v15250_v38, %s12058_s25  ;;  %v5810_v39 = vpop.permute.xlu0 %5809 }
 0xe75   :  { %10723 = vmatmul.mubr.msk.bf16.gmra.mrb[132].mxu1 %vm1103_vm1, %v15258_v48  ;;  %v5833_v19 = vsel %vm1103_vm1, %v5810_v39, 0 }
 0xe76   :  { %10729 = vmatpush3.bf16.xpose.msra.mxu1 %v5827_v63  ;;  %10734 = vmatprep.mubr.msk.bf16.mxu1 %vm1103_vm1, %v15268_v57 }
 0xe77   :  { %11080 = vmatprep.subr.msk.bf16.mxu1 %vm1103_vm1, %v5808_v28  ;;  %6868 = vrot.lane.b32.xlu1 %v15248_v43, %s12058_s25 }
 0xe78   :  { %v5905_v13 = vpop.permute.xlu1 %5904  ;;  %6870 = vrot.lane.b32.xlu0 %v15260_v27, %s12058_s25 }
 0xe79   :  { %11082 = vmatprep.subr.msk.bf16.mxu0 %vm1103_vm1, %v5905_v13  ;;  %v5925_v3 = vsel %vm1103_vm1, %v5905_v13, 0 }
 0xe7a   :  { %10743 = vmatpush3.bf16.xpose.msra.mxu0 %v5925_v3 }
 0xe7b   :  { %6971 = vrot.lane.b32.xlu1 %v15268_v57, %s12058_s25 }
 0xe7c   :  { %v5907_v32 = vpop.permute.xlu1 %5906  ;;  %6973 = vrot.lane.b32.xlu0 %v15266_v21, %s12058_s25 }
 0xe7d   :  { %11083 = vmatprep.subr.msk.bf16.mxu0 %vm1103_vm1, %v5907_v32  ;;  %v5928_v42 = vsel %vm1103_vm1, %v5907_v32, 0 }
 0xe7e   :  { %10731 = vmatpush3.bf16.xpose.msra.mxu1 %v5830_v9 }
 0xe7f   :  { %11081 = vmatprep.subr.msk.bf16.mxu1 %vm1103_vm1, %v5810_v39  ;;  %6872 = vrot.lane.b32.xlu1 %v15258_v48, %s12058_s25 }
 0xe80   :  { %6860 = vrot.lane.b32.xlu0 %v15248_v43, %s12057_s24  ;;  %v5909_v25 = vpop.permute.xlu0 %5908 }
 0xe81   :  { %v5931_v40 = vsel %vm1103_vm1, %v5909_v25, 0 }
 0xe82   :  { %10745 = vmatpush3.bf16.xpose.msra.mxu0 %v5928_v42 }
 0xe83   :  { %11084 = vmatprep.subr.msk.bf16.mxu0 %vm1103_vm1, %v5909_v25  ;;  %6858 = vrot.lane.b32.xlu1 %v15250_v38, %s12057_s24 }
 0xe84   :  { %v5911_v45 = vpop.permute.xlu0 %5910 }
 0xe85   :  { %v5934_v23 = vsel %vm1103_vm1, %v5911_v45, 0 }
 0xe86   :  { %10733 = vmatpush3.bf16.xpose.msra.mxu1 %v5833_v19 }
 0xe87   :  { %6975 = vrot.lane.b32.xlu1 %v15276_v6, %s12058_s25 }
 0xe88   :  { %v6006_v59 = vpop.permute.xlu1 %6005 }
 0xe89   :  { %11086 = vmatprep.subr.msk.bf16.mxu1 %vm1103_vm1, %v6006_v59  ;;  %v6026_v41 = vsel %vm1103_vm1, %v6006_v59, 0 }
 0xe8a   :  { %10747 = vmatpush3.bf16.xpose.msra.mxu0 %v5931_v40 }
 0xe8b   :  { %11085 = vmatprep.subr.msk.bf16.mxu0 %vm1103_vm1, %v5911_v45  ;;  %6741 = vrot.lane.b32.xlu1 %v15314_v44, %s12060_s2 }
 0xe8c   :  { %v6008_v35 = vpop.permute.xlu1 %6007 }
 0xe8d   :  { %10735 = vmatmul.mubr.msk.bf16.vlgmr.msra.gmra.mrb[136].mxu1 %vm1103_vm1, %v15266_v21  ;;  %v6029_v5 = vsel %vm1103_vm1, %v6008_v35, 0 }
 0xe8e   :  { %10738 = vmatprep.mubr.msk.bf16.mxu1 %vm1103_vm1, %v15276_v6  ;;  %10759 = vmatpush3.bf16.xpose.msra.mxu1 %v6026_v41 }
 0xe8f   :  { %11087 = vmatprep.subr.msk.bf16.mxu1 %vm1103_vm1, %v6008_v35 }
 0xe92   :  { %10749 = vmatpush3.bf16.xpose.msra.mxu0 %v5934_v23 }
 0xe95   :  { %10739 = vmatmul.mubr.msk.bf16.gmra.mrb[140].mxu1 %vm1103_vm1, %v15274_v12 }
 0xe96   :  { %10761 = vmatpush3.bf16.xpose.msra.mxu1 %v6029_v5  ;;  %10766 = vmatprep.mubr.msk.bf16.mxu1 %vm1103_vm1, %v15302_v10 }
 0xe99   :  { %10751 = vmatmul.mubr.msk.bf16.vlgmr.msra.gmra.mrb[160].mxu0 %vm1103_vm1, %v15282_v1 }
 0xe9a   :  { %10754 = vmatprep.mubr.msk.bf16.mxu0 %vm1103_vm1, %v15294_v0 }
 0xea1   :  { %10755 = vmatmul.mubr.msk.bf16.gmra.mrb[164].mxu0 %vm1103_vm1, %v15292_v51 }
 0xec4   :  { %v6012_v55 = vpop.permute.xlu1 %6011 }
 0xec5   :  { %v6010_v15 = vpop.permute.xlu0 %6009  ;;  %v6035_v30 = vsel %vm1103_vm1, %v6012_v55, 0 }
 0xec6   :  { %11088 = vmatprep.subr.msk.bf16.mxu1 %vm1103_vm1, %v6010_v15  ;;  %v6032_v31 = vsel %vm1103_vm1, %v6010_v15, 0 }
 0xec7   :  { %10763 = vmatpush3.bf16.xpose.msra.mxu1 %v6032_v31 }
 0xec8   :  { %v6475_v18 = vpop.permute.xlu1 %6474  ;;  %11089 = vmatprep.subr.msk.bf16.mxu1 %vm1103_vm1, %v6012_v55 }
 0xec9   :  { %v6471_v58 = vpop.permute.xlu0 %6470 }
 0xeca   :  { %10774 = vmatprep.subr.bf16.mxu0 %v6471_v58 }
 0xecb   :  { %10775 = vmatpush3.bf16.msra.mxu0 %v6471_v58 }
 0xecc   :  { %v6560_v17 = vpop.permute.xlu1 %6559 }
 0xecd   :  { %v6473_v46 = vpop.permute.xlu0 %6472 }
 0xece   :  { %10776 = vmatprep.subr.bf16.mxu0 %v6473_v46 }
 0xecf   :  { %10765 = vmatpush3.bf16.xpose.msra.mxu1 %v6035_v30  ;;  %10777 = vmatpush3.bf16.msra.mxu0 %v6473_v46 }
 0xed0   :  { %10778 = vmatprep.subr.bf16.mxu0 %v6475_v18  ;;  %10790 = vmatprep.subr.bf16.mxu1 %v6560_v17  ;;  %v15420_v20 = vpop.permute.xlu1 %6648 }
 0xed1   :  { %v6477_v47 = vpop.permute.xlu0 %6476 }
 0xed3   :  { %10779 = vmatpush3.bf16.msra.mxu0 %v6475_v18 }
 0xed4   :  { %10780 = vmatprep.subr.bf16.mxu0 %v6477_v47  ;;  %v6564_v14 = vpop.permute.xlu1 %6563 }
 0xed5   :  { %v6562_v54 = vpop.permute.xlu0 %6561 }
 0xed6   :  { %10767 = vmatmul.mubr.msk.bf16.vlgmr.msra.gmra.mrb[144].mxu1 %vm1103_vm1, %v15300_v52 }
 0xed7   :  { %10770 = vmatprep.mubr.msk.bf16.mxu1 %vm1103_vm1, %v15314_v44  ;;  %10781 = vmatpush3.bf16.msra.mxu0 %v6477_v47 }
 0xed8   :  { %10791 = vmatpush3.bf16.msra.mxu1 %v6560_v17  ;;  %10806 = vmatprep.subr.bf16.mxu0 %v15420_v20  ;;  %v15429_v56 = vpop.permute.xlu1 %6652 }
 0xed9   :  { %10792 = vmatprep.subr.bf16.mxu1 %v6562_v54  ;;  %v15427_v34 = vpop.permute.xlu0 %6650 }
 0xedc   :  { %10793 = vmatpush3.bf16.msra.mxu1 %v6562_v54  ;;  %v15433_v63 = vpop.permute.xlu1 %6737 }
 0xedd   :  { %10794 = vmatprep.subr.bf16.mxu1 %v6564_v14  ;;  %v6566_v8 = vpop.permute.xlu0 %6565  ;;  %17569 = vst [vmem:[#allocation40_spill] sm:$0xff] %v15433_v63 }
 0xede   :  { %10771 = vmatmul.mubr.msk.bf16.gmra.mrb[148].mxu1 %vm1103_vm1, %v15312_v26 }
 0xee0   :  { %10795 = vmatpush3.bf16.msra.mxu1 %v6564_v14 }
 0xee1   :  { %10796 = vmatprep.subr.bf16.mxu1 %v6566_v8 }
 0xee2   :  { %v15556_v50 = vpop.permute.xlu0 %6654 }
 0xee4   :  { %10797 = vmatpush3.bf16.msra.mxu1 %v6566_v8 }
 0xee5   :  { %10822 = vmatprep.subr.bf16.mxu1 %v15433_v63 }
 0xee6   :  { %v15564_v22 = vpop.permute.xlu0 %6866 }
 0xeea   :  { %v15570_v11 = vpop.permute.xlu0 %6870 }
 0xeeb   :  { %17575 = vst [vmem:[#allocation46_spill] sm:$0xff] %v15570_v11 }
 0xf40   :  { %v15436_v28 = vpop.f32.mrb[128].mxu1 }
 0xf41   :  { %v15438_v13 = vpop.f32.mrb[129].mxu1  ;;  %v6108_v3 = vsel %vm1460_vm2, %v15436_v28, -inf }
 0xf42   :  { %6109 = vmax.xlane.f32.xlu0 %v6108_v3  ;;  %v15442_v32 = vpop.f32.mrb[130].mxu1  ;;  %v6102_v42 = vsel %vm1460_vm2, %v15438_v13, -inf }
 0xf43   :  { %v15444_v9 = vpop.f32.mrb[131].mxu1  ;;  %v6111_v59 = vsel %vm1460_vm2, %v15442_v32, -inf }
 0xf44   :  { %v6105_v39 = vsel %vm1460_vm2, %v15444_v9, -inf }
 0xf45   :  { %6106 = vmax.xlane.f32.xlu1 %v6105_v39 }
 0xf46   :  { %6103 = vmax.xlane.f32.xlu0 %v6102_v42 }
 0xf48   :  { %v15450_v25 = vpop.f32.mrb[132].mxu1 }
 0xf49   :  { %v15452_v19 = vpop.f32.mrb[133].mxu1  ;;  %v6120_v35 = vsel %vm1460_vm2, %v15450_v25, -inf }
 0xf4a   :  { %6112 = vmax.xlane.f32.xlu0 %v6111_v59  ;;  %v15456_v40 = vpop.f32.mrb[134].mxu1  ;;  %v6114_v5 = vsel %vm1460_vm2, %v15452_v19, -inf }
 0xf4b   :  { %v15458_v45 = vpop.f32.mrb[135].mxu1  ;;  %v6123_v41 = vsel %vm1460_vm2, %v15456_v40, -inf }
 0xf4c   :  { %6124 = vmax.xlane.f32.xlu1 %v6123_v41  ;;  %v6117_v23 = vsel %vm1460_vm2, %v15458_v45, -inf }
 0xf4e   :  { %6121 = vmax.xlane.f32.xlu0 %v6120_v35 }
 0xf50   :  { %6118 = vmax.xlane.f32.xlu1 %v6117_v23 }
 0xf52   :  { %6115 = vmax.xlane.f32.xlu0 %v6114_v5 }
 0xf60   :  { %v15468_v55 = vpop.f32.mrb[136].mxu1 }
 0xf61   :  { %v15470_v15 = vpop.f32.mrb[137].mxu1  ;;  %v6132_v31 = vsel %vm1460_vm2, %v15468_v55, -inf }
 0xf62   :  { %6133 = vmax.xlane.f32.xlu0 %v6132_v31  ;;  %v15474_v18 = vpop.f32.mrb[138].mxu1  ;;  %v6126_v41 = vsel %vm1460_vm2, %v15470_v15, -inf }
 0xf63   :  { %v15476_v58 = vpop.f32.mrb[139].mxu1  ;;  %v6135_v17 = vsel %vm1460_vm2, %v15474_v18, -inf }
 0xf64   :  { %6136 = vmax.xlane.f32.xlu1 %v6135_v17  ;;  %v6129_v35 = vsel %vm1460_vm2, %v15476_v58, -inf }
 0xf68   :  { %v15480_v46 = vpop.f32.mrb[140].mxu1 }
 0xf69   :  { %v15482_v30 = vpop.f32.mrb[141].mxu1 }
 0xf6a   :  { %v15484_v47 = vpop.f32.mrb[142].mxu1  ;;  %v6138_v61 = vsel %vm1460_vm2, %v15482_v30, -inf }
 0xf6b   :  { %v15486_v54 = vpop.f32.mrb[143].mxu1 }
 0xf6c   :  { %v15488_v14 = vpop.f32.mrb[160].mxu0 }
 0xf6d   :  { %v15490_v8 = vpop.f32.mrb[161].mxu0  ;;  %v6156_v3 = vsel %vm1460_vm2, %v15488_v14, -inf }
 0xf6e   :  { %6157 = vmax.xlane.f32.xlu0 %v6156_v3  ;;  %v15494_v39 = vpop.f32.mrb[162].mxu0  ;;  %v6150_v31 = vsel %vm1460_vm2, %v15490_v8, -inf }
 0xf6f   :  { %v15496_v42 = vpop.f32.mrb[163].mxu0  ;;  %v6159_v59 = vsel %vm1460_vm2, %v15494_v39, -inf }
 0xf70   :  { %6160 = vmax.xlane.f32.xlu1 %v6159_v59  ;;  %v6153_v59 = vsel %vm1460_vm2, %v15496_v42, -inf }
 0xf72   :  { %6127 = vmax.xlane.f32.xlu0 %v6126_v41  ;;  %v6144_v41 = vsel %vm1460_vm2, %v15480_v46, -inf }
 0xf74   :  { %6130 = vmax.xlane.f32.xlu1 %v6129_v35  ;;  %v15504_v23 = vpop.f32.mrb[164].mxu0  ;;  %v6147_v35 = vsel %vm1460_vm2, %v15484_v47, -inf }
 0xf75   :  { %v15506_v5 = vpop.f32.mrb[165].mxu0  ;;  %v6168_v7 = vsel %vm1460_vm2, %v15504_v23, -inf }
 0xf76   :  { %6151 = vmax.xlane.f32.xlu0 %v6150_v31  ;;  %v15510_v17 = vpop.f32.mrb[166].mxu0 }
 0xf77   :  { %v15512_v3 = vpop.f32.mrb[167].mxu0  ;;  %v6171_v31 = vsel %vm1460_vm2, %v15510_v17, -inf }
 0xf78   :  { %6154 = vmax.xlane.f32.xlu1 %v6153_v59  ;;  %v6141_v59 = vsel %vm1460_vm2, %v15486_v54, -inf }
 0xf7a   :  { %6145 = vmax.xlane.f32.xlu0 %v6144_v41  ;;  %v6162_v41 = vsel %vm1460_vm2, %v15506_v5, -inf }
 0xf7c   :  { %6148 = vmax.xlane.f32.xlu1 %v6147_v35  ;;  %v6165_v35 = vsel %vm1460_vm2, %v15512_v3, -inf }
 0xf7e   :  { %6169 = vmax.xlane.f32.xlu0 %v6168_v7  ;;  %v15534_v7 = vpop.permute.xlu1 %6739 }
 0xf7f   :  { %17570 = vst [vmem:[#allocation41_spill] sm:$0xff] %v15534_v7 }
 0xf80   :  { %6172 = vmax.xlane.f32.xlu1 %v6171_v31 }
 0xf82   :  { %6139 = vmax.xlane.f32.xlu0 %v6138_v61  ;;  %v15542_v49 = vpop.permute.xlu1 %6743 }
 0xf83   :  { %17571 = vst [vmem:[#allocation42_spill] sm:$0xff] %v15542_v49 }
 0xf84   :  { %6142 = vmax.xlane.f32.xlu1 %v6141_v59 }
 0xf86   :  { %6163 = vmax.xlane.f32.xlu0 %v6162_v41  ;;  %v15550_v16 = vpop.permute.xlu1 %6868 }
 0xf87   :  { %17572 = vst [vmem:[#allocation43_spill] sm:$0xff] %v15550_v16 }
 0xf88   :  { %6166 = vmax.xlane.f32.xlu1 %v6165_v35 }
 0xf99   :  { %6862 = vrot.lane.b32.xlu1 %v15260_v27, %s12057_s24  ;;  %v15578_v27 = vpop.permute.xlu0 %6973 }
 0xf9a   :  { %17577 = vst [vmem:[#allocation48_spill] sm:$0xff] %v15578_v27 }
 0xfa9   :  { %v15536_v31 = vpop.f32.mrb[144].mxu1 }
 0xfaa   :  { %v15538_v61 = vpop.f32.mrb[145].mxu1  ;;  %v6180_v59 = vsel %vm1460_vm2, %v15536_v31, -inf }
 0xfab   :  { %6181 = vmax.xlane.f32.xlu0 %v6180_v59  ;;  %v15544_v41 = vpop.f32.mrb[146].mxu1  ;;  %v6174_v35 = vsel %vm1460_vm2, %v15538_v61, -inf  ;;  %v15562_v59 = vpop.permute.xlu1 %6971 }
 0xfac   :  { %v15546_v60 = vpop.f32.mrb[147].mxu1  ;;  %17573 = vst [vmem:[#allocation44_spill] sm:$0xff] %v15562_v59  ;;  %v6183_v36 = vsel %vm1460_vm2, %v15544_v41, -inf  ;;  %v15586_v59 = vpop.permute.xlu0 %6860 }
 0xfad   :  { %v6177_v62 = vsel %vm1460_vm2, %v15546_v60, -inf  ;;  %17579 = vst [vmem:[#allocation50_spill] sm:$0xff] %v15586_v59 }
 0xfaf   :  { %6175 = vmax.xlane.f32.xlu0 %v6174_v35  ;;  %v15568_v35 = vpop.permute.xlu1 %6872 }
 0xfb0   :  { %17574 = vst [vmem:[#allocation45_spill] sm:$0xff] %v15568_v35 }
 0xfb1   :  { %v15552_v24 = vpop.f32.mrb[148].mxu1 }
 0xfb2   :  { %v15554_v33 = vpop.f32.mrb[149].mxu1 }
 0xfb3   :  { %v15558_v29 = vpop.f32.mrb[150].mxu1  ;;  %v15574_v2 = vpop.permute.xlu1 %6858 }
 0xfb4   :  { %v15560_v53 = vpop.f32.mrb[151].mxu1  ;;  %17576 = vst [vmem:[#allocation47_spill] sm:$0xff] %v15574_v2  ;;  %v6195_v4 = vsel %vm1460_vm2, %v15558_v29, -inf }
 0xfb7   :  { %v15584_v38 = vpop.permute.xlu1 %6975 }
 0xfb8   :  { %17578 = vst [vmem:[#allocation49_spill] sm:$0xff] %v15584_v38 }
 0xfbd   :  { %6184 = vmax.xlane.f32.xlu1 %v6183_v36  ;;  %v6189_v36 = vsel %vm1460_vm2, %v15560_v53, -inf }
 0xfc1   :  { %6178 = vmax.xlane.f32.xlu1 %v6177_v62  ;;  %v15588_v62 = vpop.permute.xlu1 %6741 }
 0xfc2   :  { %17580 = vst [vmem:[#allocation51_spill] sm:$0xff] %v15588_v62 }
 0xfc5   :  { %6196 = vmax.xlane.f32.xlu1 %v6195_v4  ;;  %7076 = vrot.lane.b32.xlu0 %v15284_v37, %s12058_s25 }
 0xfc9   :  { %6190 = vmax.xlane.f32.xlu1 %v6189_v36 }
 0xfcf   :  { %v6110_v2 = vpop.xlane.xlu0 %6109 }
 0xfd0   :  { %v6200_v49 = vsub.f32 %v15436_v28, %v6110_v2 }
 0xfd2   :  { %v6107_v26 = vpop.xlane.xlu1 %6106  ;;  %v6234_v11 = vmul.f32 1.442695, %v6200_v49 }
 0xfd3   :  { %v6104_v35 = vpop.xlane.xlu0 %6103  ;;  %v6199_v4 = vsub.f32 %v15444_v9, %v6107_v26 }
 0xfd4   :  { %v6198_v7 = vsub.f32 %v15438_v13, %v6104_v35 }
 0xfd5   :  { %v6232_v38 = vmul.f32 1.442695, %v6199_v4 }
 0xfd6   :  { %v6230_v62 = vmul.f32 1.442695, %v6198_v7 }
 0xfd7   :  { %v6113_v27 = vpop.xlane.xlu0 %6112 }
 0xfd8   :  { %v6201_v43 = vsub.f32 %v15442_v32, %v6113_v27  ;;  %v6192_v32 = vsel %vm1460_vm2, %v15552_v24, -inf }
 0xfd9   :  { %v6125_v63 = vpop.xlane.xlu1 %6124 }
 0xfda   :  { %v6236_v36 = vmul.f32 1.442695, %v6201_v43  ;;  %v6205_v16 = vsub.f32 %v15456_v40, %v6125_v63 }
 0xfdb   :  { %v6122_v52 = vpop.xlane.xlu0 %6121 }
 0xfdc   :  { %11640 = vpow2.f32 %v6236_v36  ;;  %v6204_v59 = vsub.f32 %v15450_v25, %v6122_v52  ;;  %v6244_v49 = vmul.f32 1.442695, %v6205_v16  ;;  %v6186_v16 = vsel %vm1460_vm2, %v15554_v33, -inf }
 0xfdd   :  { %11642 = vpow2.f32 %v6234_v11  ;;  %v6119_v26 = vpop.xlane.xlu1 %6118 }
 0xfde   :  { %11644 = vpow2.f32 %v6232_v38  ;;  %v6242_v2 = vmul.f32 1.442695, %v6204_v59  ;;  %v6203_v13 = vsub.f32 %v15458_v45, %v6119_v26 }
 0xfdf   :  { %v6116_v28 = vpop.xlane.xlu0 %6115  ;;  %11646 = vpow2.f32 %v6230_v62 }
 0xfe0   :  { %v6202_v27 = vsub.f32 %v15452_v19, %v6116_v28  ;;  %11648 = vpow2.f32 %v6242_v2  ;;  %v6240_v52 = vmul.f32 1.442695, %v6203_v13 }
 0xfe1   :  { %11650 = vpow2.f32 %v6244_v49 }
 0xfe2   :  { %v6238_v43 = vmul.f32 1.442695, %v6202_v27 }
 0xfe4   :  { %6193 = vmax.xlane.f32.xlu0 %v6192_v32  ;;  %11652 = vpow2.f32 %v6238_v43 }
 0xfe5   :  { %11654 = vpow2.f32 %v6240_v52 }
 0xfe6   :  { %v15600_v11 = vpop.eup %11640 }
 0xfe7   :  { %v15602_v38 = vpop.eup %11642  ;;  %v6303_v63 = vsel %vm1460_vm2, %v15600_v11, 0.0 }
 0xfe8   :  { %v15608_v9 = vpop.eup %11644  ;;  %6304 = vadd.xlane.f32.xlu1 %v6303_v63  ;;  %6187 = vmax.xlane.f32.xlu0 %v6186_v16  ;;  %v6300_v40 = vsel %vm1460_vm2, %v15602_v38, 0.0 }
 0xfe9   :  { %v15610_v25 = vpop.eup %11646  ;;  %v6297_v19 = vsel %vm1460_vm2, %v15608_v9, 0.0 }
 0xfea   :  { %v15616_v45 = vpop.eup %11648  ;;  %v6294_v62 = vsel %vm1460_vm2, %v15610_v25, 0.0 }
 0xfeb   :  { %v15618_v7 = vpop.eup %11650  ;;  %v6312_v35 = vsel %vm1460_vm2, %v15616_v45, 0.0 }
 0xfec   :  { %6298 = vadd.xlane.f32.xlu1 %v6297_v19  ;;  %6301 = vadd.xlane.f32.xlu0 %v6300_v40  ;;  %v6315_v26 = vsel %vm1460_vm2, %v15618_v7, 0.0 }
 0xfee   :  { %v15624_v4 = vpop.eup %11652 }
 0xfef   :  { %v6134_v59 = vpop.xlane.xlu0 %6133  ;;  %v6306_v28 = vsel %vm1460_vm2, %v15624_v4, 0.0  ;;  %v15631_v27 = vpop.eup %11654 }
 0xff0   :  { %v6208_v36 = vsub.f32 %v15468_v55, %v6134_v59  ;;  %6313 = vadd.xlane.f32.xlu1 %v6312_v35  ;;  %6295 = vadd.xlane.f32.xlu0 %v6294_v62  ;;  %v6309_v49 = vsel %vm1460_vm2, %v15631_v27, 0.0 }
 0xff1   :  { %v6137_v13 = vpop.xlane.xlu1 %6136 }
 0xff2   :  { %v6250_v2 = vmul.f32 1.442695, %v6208_v36  ;;  %v6209_v62 = vsub.f32 %v15474_v18, %v6137_v13 }
 0xff4   :  { %11656 = vpow2.f32 %v6250_v2  ;;  %6316 = vadd.xlane.f32.xlu1 %v6315_v26  ;;  %6307 = vadd.xlane.f32.xlu0 %v6306_v28  ;;  %v6252_v28 = vmul.f32 1.442695, %v6209_v62 }
 0xff8   :  { %6310 = vadd.xlane.f32.xlu1 %v6309_v49 }
 0xffb   :  { %v6158_v55 = vpop.xlane.xlu0 %6157 }
 0xffc   :  { %v6216_v43 = vsub.f32 %v15488_v14, %v6158_v55 }
 0xffd   :  { %v6161_v32 = vpop.xlane.xlu1 %6160 }
 0xffe   :  { %v15636_v52 = vpop.eup %11656  ;;  %v6266_v63 = vmul.f32 1.442695, %v6216_v43  ;;  %v6217_v16 = vsub.f32 %v15494_v39, %v6161_v32 }
 0xfff   :  { %v6128_v19 = vpop.xlane.xlu0 %6127  ;;  %v6324_v40 = vsel %vm1460_vm2, %v15636_v52, 0.0 }
0x1000   :  { %11658 = vpow2.f32 %v6266_v63  ;;  %v6268_v59 = vmul.f32 1.442695, %v6217_v16  ;;  %v6206_v35 = vsub.f32 %v15470_v15, %v6128_v19  ;;  %6325 = vadd.xlane.f32.xlu1 %v6324_v40 }
0x1001   :  { %v6131_v36 = vpop.xlane.xlu1 %6130 }
0x1002   :  { %11660 = vpow2.f32 %v6268_v59  ;;  %v6246_v14 = vmul.f32 1.442695, %v6206_v35  ;;  %v6207_v39 = vsub.f32 %v15476_v58, %v6131_v36 }
0x1003   :  { %v6152_v2 = vpop.xlane.xlu0 %6151 }
0x1004   :  { %11662 = vpow2.f32 %v6246_v14  ;;  %v6214_v26 = vsub.f32 %v15490_v8, %v6152_v2  ;;  %v6248_v63 = vmul.f32 1.442695, %v6207_v39 }
0x1005   :  { %v6155_v49 = vpop.xlane.xlu1 %6154 }
0x1006   :  { %v6262_v55 = vmul.f32 1.442695, %v6214_v26  ;;  %v6215_v43 = vsub.f32 %v15496_v42, %v6155_v49 }
0x1007   :  { %v6146_v32 = vpop.xlane.xlu0 %6145 }
0x1008   :  { %11664 = vpow2.f32 %v6262_v55  ;;  %v6264_v15 = vmul.f32 1.442695, %v6215_v43  ;;  %v6212_v16 = vsub.f32 %v15480_v46, %v6146_v32 }
0x1009   :  { %11666 = vpow2.f32 %v6252_v28  ;;  %v6149_v18 = vpop.xlane.xlu1 %6148 }
0x100a   :  { %v15646_v13 = vpop.eup %11658  ;;  %11668 = vpow2.f32 %v6264_v15  ;;  %v6213_v8 = vsub.f32 %v15484_v47, %v6149_v18  ;;  %v6258_v46 = vmul.f32 1.442695, %v6212_v16 }
0x100b   :  { %v6170_v19 = vpop.xlane.xlu0 %6169  ;;  %v6348_v58 = vsel %vm1460_vm2, %v15646_v13, 0.0  ;;  %11670 = vpow2.f32 %v6248_v63 }
0x100c   :  { %v15652_v40 = vpop.eup %11660  ;;  %v6260_v42 = vmul.f32 1.442695, %v6213_v8  ;;  %6349 = vadd.xlane.f32.xlu1 %v6348_v58  ;;  %v6220_v59 = vsub.f32 %v15504_v23, %v6170_v19 }
0x100d   :  { %v6173_v35 = vpop.xlane.xlu1 %6172  ;;  %v6351_v62 = vsel %vm1460_vm2, %v15652_v40, 0.0 }
0x100e   :  { %v15657_v36 = vpop.eup %11662  ;;  %11672 = vpow2.f32 %v6260_v42  ;;  %6352 = vadd.xlane.f32.xlu0 %v6351_v62  ;;  %v6274_v2 = vmul.f32 1.442695, %v6220_v59  ;;  %v6221_v62 = vsub.f32 %v15510_v17, %v6173_v35 }
0x100f   :  { %v6140_v47 = vpop.xlane.xlu0 %6139  ;;  %v6318_v14 = vsel %vm1460_vm2, %v15657_v36, 0.0  ;;  %11674 = vpow2.f32 %v6258_v46 }
0x1010   :  { %6319 = vadd.xlane.f32.xlu1 %v6318_v14  ;;  %v6210_v26 = vsub.f32 %v15482_v30, %v6140_v47  ;;  %11676 = vpow2.f32 %v6274_v2  ;;  %v6276_v47 = vmul.f32 1.442695, %v6221_v62 }
0x1011   :  { %v6143_v28 = vpop.xlane.xlu1 %6142 }
0x1012   :  { %v15662_v39 = vpop.eup %11664  ;;  %v6211_v23 = vsub.f32 %v15486_v54, %v6143_v28  ;;  %v6254_v63 = vmul.f32 1.442695, %v6210_v26 }
0x1013   :  { %v15665_v49 = vpop.eup %11666  ;;  %v6164_v55 = vpop.xlane.xlu0 %6163  ;;  %v6342_v43 = vsel %vm1460_vm2, %v15662_v39, 0.0 }
0x1014   :  { %v15669_v32 = vpop.eup %11668  ;;  %v6256_v15 = vmul.f32 1.442695, %v6211_v23  ;;  %6343 = vadd.xlane.f32.xlu1 %v6342_v43  ;;  %v6218_v16 = vsub.f32 %v15506_v5, %v6164_v55  ;;  %v6327_v19 = vsel %vm1460_vm2, %v15665_v49, 0.0 }
0x1015   :  { %v6167_v18 = vpop.xlane.xlu1 %6166  ;;  %v6345_v30 = vsel %vm1460_vm2, %v15669_v32, 0.0  ;;  %v15675_v8 = vpop.eup %11670 }
0x1016   :  { %11678 = vpow2.f32 %v6256_v15  ;;  %v6219_v54 = vsub.f32 %v15512_v3, %v6167_v18  ;;  %6346 = vadd.xlane.f32.xlu0 %v6345_v30  ;;  %v6270_v46 = vmul.f32 1.442695, %v6218_v16  ;;  %v6321_v5 = vsel %vm1460_vm2, %v15675_v8, 0.0 }
0x1017   :  { %11680 = vpow2.f32 %v6254_v63 }
0x1018   :  { %v15679_v58 = vpop.eup %11672  ;;  %v6272_v42 = vmul.f32 1.442695, %v6219_v54  ;;  %6328 = vadd.xlane.f32.xlu1 %v6327_v19 }
0x1019   :  { %v6339_v59 = vsel %vm1460_vm2, %v15679_v58, 0.0  ;;  %v15686_v3 = vpop.eup %11674 }
0x101a   :  { %11682 = vpow2.f32 %v6272_v42  ;;  %6340 = vadd.xlane.f32.xlu0 %v6339_v59  ;;  %v15688_v14 = vpop.eup %11676  ;;  %v6336_v2 = vsel %vm1460_vm2, %v15686_v3, 0.0 }
0x101b   :  { %11684 = vpow2.f32 %v6270_v46  ;;  %v6360_v28 = vsel %vm1460_vm2, %v15688_v14, 0.0  ;;  %v15716_v46 = vpop.permute.xlu1 %6862 }
0x101c   :  { %6322 = vadd.xlane.f32.xlu1 %v6321_v5  ;;  %11686 = vpow2.f32 %v6276_v47 }
0x1020   :  { %v15692_v26 = vpop.eup %11678  ;;  %6337 = vadd.xlane.f32.xlu1 %v6336_v2 }
0x1021   :  { %v6333_v17 = vsel %vm1460_vm2, %v15692_v26, 0.0  ;;  %v15696_v35 = vpop.eup %11680 }
0x1022   :  { %6334 = vadd.xlane.f32.xlu0 %v6333_v17  ;;  %v6330_v43 = vsel %vm1460_vm2, %v15696_v35, 0.0 }
0x1024   :  { %v15700_v23 = vpop.eup %11682  ;;  %6361 = vadd.xlane.f32.xlu1 %v6360_v28 }
0x1025   :  { %v6357_v55 = vsel %vm1460_vm2, %v15700_v23, 0.0  ;;  %v15706_v15 = vpop.eup %11684 }
0x1026   :  { %6358 = vadd.xlane.f32.xlu0 %v6357_v55  ;;  %v6354_v63 = vsel %vm1460_vm2, %v15706_v15, 0.0  ;;  %v15710_v18 = vpop.eup %11686 }
0x1027   :  { %v6363_v30 = vsel %vm1460_vm2, %v15710_v18, 0.0 }
0x1028   :  { %6331 = vadd.xlane.f32.xlu1 %v6330_v43 }
0x102c   :  { %6355 = vadd.xlane.f32.xlu1 %v6354_v63 }
0x1030   :  { %6364 = vadd.xlane.f32.xlu1 %v6363_v30 }
0x1038   :  { %v6182_v16 = vpop.xlane.xlu0 %6181 }
0x1039   :  { %v6224_v54 = vsub.f32 %v15536_v31, %v6182_v16 }
0x103b   :  { %v6282_v19 = vmul.f32 1.442695, %v6224_v54 }
0x103c   :  { %v6176_v42 = vpop.xlane.xlu0 %6175 }
0x103d   :  { %11688 = vpow2.f32 %v6282_v19  ;;  %v6222_v59 = vsub.f32 %v15538_v61, %v6176_v42 }
0x103f   :  { %v6278_v62 = vmul.f32 1.442695, %v6222_v59 }
0x1040   :  { %v15738_v42 = vpop.permute.xlu0 %7076 }
0x1041   :  { %11690 = vpow2.f32 %v6278_v62 }
0x1047   :  { %v15718_v5 = vpop.eup %11688 }
0x1048   :  { %v6372_v47 = vsel %vm1460_vm2, %v15718_v5, 0.0 }
0x1049   :  { %6373 = vadd.xlane.f32.xlu1 %v6372_v47 }
0x104a   :  { %v6185_v2 = vpop.xlane.xlu1 %6184 }
0x104b   :  { %v15722_v17 = vpop.eup %11690  ;;  %v6225_v31 = vsub.f32 %v15544_v41, %v6185_v2 }
0x104c   :  { %v6366_v28 = vsel %vm1460_vm2, %v15722_v17, 0.0 }
0x104d   :  { %v6284_v55 = vmul.f32 1.442695, %v6225_v31  ;;  %6367 = vadd.xlane.f32.xlu1 %v6366_v28 }
0x104e   :  { %v6179_v61 = vpop.xlane.xlu1 %6178 }
0x104f   :  { %11692 = vpow2.f32 %v6284_v55  ;;  %v6223_v43 = vsub.f32 %v15546_v60, %v6179_v61 }
0x1051   :  { %v6280_v63 = vmul.f32 1.442695, %v6223_v43 }
0x1052   :  { %v6197_v19 = vpop.xlane.xlu1 %6196 }
0x1053   :  { %11694 = vpow2.f32 %v6280_v63  ;;  %v6229_v62 = vsub.f32 %v15558_v29, %v6197_v19 }
0x1055   :  { %v6292_v55 = vmul.f32 1.442695, %v6229_v62 }
0x1056   :  { %v6191_v60 = vpop.xlane.xlu1 %6190 }
0x1059   :  { %v15728_v30 = vpop.eup %11692 }
0x105a   :  { %v6375_v16 = vsel %vm1460_vm2, %v15728_v30, 0.0 }
0x105b   :  { %6376 = vadd.xlane.f32.xlu0 %v6375_v16 }
0x105d   :  { %v15732_v54 = vpop.eup %11694 }
0x105e   :  { %v6369_v41 = vsel %vm1460_vm2, %v15732_v54, 0.0  ;;  %6977 = vrot.lane.b32.xlu1 %v15274_v12, %s12058_s25 }
0x105f   :  { %6370 = vadd.xlane.f32.xlu0 %v6369_v41  ;;  %v6227_v41 = vsub.f32 %v15560_v53, %v6191_v60 }
0x1061   :  { %v6288_v19 = vmul.f32 1.442695, %v6227_v41 }
0x1071   :  { %v6194_v59 = vpop.xlane.xlu0 %6193 }
0x1072   :  { %v6228_v47 = vsub.f32 %v15552_v24, %v6194_v59 }
0x1074   :  { %v6290_v2 = vmul.f32 1.442695, %v6228_v47 }
0x1075   :  { %6864 = vrot.lane.b32.xlu0 %v15258_v48, %s12057_s24  ;;  %v6305_v31 = vpop.xlane.xlu1 %6304  ;;  %v6188_v28 = vpop.xlane.xlu0 %6187 }
0x1076   :  { %v6226_v61 = vsub.f32 %v15554_v33, %v6188_v28  ;;  %11696 = vpow2.f32 %v6290_v2 }
0x1077   :  { %11698 = vpow2.f32 %v6292_v55 }
0x1078   :  { %v6286_v43 = vmul.f32 1.442695, %v6226_v61 }
0x1079   :  { %v6299_v63 = vpop.xlane.xlu1 %6298  ;;  %v6302_v16 = vpop.xlane.xlu0 %6301 }
0x107a   :  { %11700 = vpow2.f32 %v6286_v43 }
0x107b   :  { %11702 = vrcp.f32 %v6302_v16 }
0x107c   :  { %11704 = vrcp.f32 %v6299_v63 }
0x107d   :  { %v6314_v29 = vpop.xlane.xlu1 %6313  ;;  %v6296_v24 = vpop.xlane.xlu0 %6295  ;;  %11706 = vrcp.f32 %v6305_v31 }
0x107e   :  { %11708 = vrcp.f32 %v6296_v24 }
0x107f   :  { %11710 = vpow2.f32 %v6288_v19 }
0x1080   :  { %v15746_v59 = vpop.eup %11696 }
0x1081   :  { %v6317_v62 = vpop.xlane.xlu1 %6316  ;;  %v6308_v47 = vpop.xlane.xlu0 %6307  ;;  %v6384_v33 = vsel %vm1460_vm2, %v15746_v59, 0.0 }
0x1082   :  { %11712 = vrcp.f32 %v6308_v47  ;;  %6385 = vadd.xlane.f32.xlu1 %v6384_v33  ;;  %v15750_v2 = vpop.eup %11698 }
0x1083   :  { %11714 = vrcp.f32 %v6317_v62  ;;  %v6387_v16 = vsel %vm1460_vm2, %v15750_v2, 0.0 }
0x1084   :  { %v15752_v53 = vpop.eup %11700  ;;  %11716 = vrcp.f32 %v6314_v29 }
0x1085   :  { %v6311_v60 = vpop.xlane.xlu1 %6310  ;;  %v11703_v28 = vpop.eup %11702  ;;  %v6378_v31 = vsel %vm1460_vm2, %v15752_v53, 0.0 }
0x1086   :  { %11718 = vrcp.f32 %v6311_v60  ;;  %v11705_v55 = vpop.eup %11704  ;;  %6379 = vadd.xlane.f32.xlu1 %v6378_v31  ;;  %v6424_v63 = vmul.f32 %v11703_v28, %v15602_v38 }
0x1087   :  { %v11707_v61 = vpop.eup %11706  ;;  %v6423_v24 = vmul.f32 %v11705_v55, %v15608_v9 }
0x1088   :  { %v11709_v43 = vpop.eup %11708  ;;  %v6425_v29 = vmul.f32 %v11707_v61, %v15600_v11 }
0x1089   :  { %v6422_v41 = vmul.f32 %v11709_v43, %v15610_v25  ;;  %v15762_v19 = vpop.eup %11710 }
0x108a   :  { %6388 = vadd.xlane.f32.xlu1 %v6387_v16  ;;  %v6455_v33 = vpack.c.bf16 %v6425_v29, %v6424_v63  ;;  %v6381_v25 = vsel %vm1460_vm2, %v15762_v19, 0.0 }
0x108b   :  { %v6454_v62 = vpack.c.bf16 %v6423_v24, %v6422_v41 }
0x108c   :  { %v11713_v47 = vpop.eup %11712 }
0x108d   :  { %v11715_v60 = vpop.eup %11714  ;;  %10782 = vmatprep.mubr.msk.bf16.mxu0 %vm1460_vm2, %v6454_v62  ;;  %v6426_v38 = vmul.f32 %v11713_v47, %v15624_v4  ;;  %v6326_v43 = vpop.xlane.xlu1 %6325 }
0x108e   :  { %v11717_v31 = vpop.eup %11716  ;;  %10783 = vmatmul.mubr.msk.bf16.vlgmr.msra.gmra.mrb[168].mxu0 %vm1460_vm2, %v6455_v33  ;;  %v6429_v9 = vmul.f32 %v11715_v60, %v15618_v7 }
0x108f   :  { %10807 = vmatpush3.bf16.msra.mxu0 %v15420_v20  ;;  %v6428_v61 = vmul.f32 %v11717_v31, %v15616_v45 }
0x1090   :  { %v11719_v28 = vpop.eup %11718  ;;  %10808 = vmatprep.subr.bf16.mxu0 %v15427_v34 }
0x1091   :  { %v6427_v11 = vmul.f32 %v11719_v28, %v15631_v27  ;;  %v6457_v20 = vpack.c.bf16 %v6429_v9, %v6428_v61 }
0x1093   :  { %v6456_v55 = vpack.c.bf16 %v6427_v11, %v6426_v38  ;;  %10809 = vmatpush3.bf16.msra.mxu0 %v15427_v34 }
0x1094   :  { %6382 = vadd.xlane.f32.xlu0 %v6381_v25  ;;  %10810 = vmatprep.subr.bf16.mxu0 %v15429_v56 }
0x1095   :  { %10786 = vmatprep.mubr.msk.bf16.mxu0 %vm1460_vm2, %v6456_v55 }
0x1096   :  { %10787 = vmatmul.mubr.msk.bf16.gmra.mrb[172].mxu0 %vm1460_vm2, %v6457_v20 }
0x1097   :  { %10811 = vmatpush3.bf16.msra.mxu0 %v15429_v56 }
0x1098   :  { %10812 = vmatprep.subr.bf16.mxu0 %v15556_v50 }
0x1099   :  { %v6350_v7 = vpop.xlane.xlu1 %6349 }
0x109b   :  { %10813 = vmatpush3.bf16.msra.mxu0 %v15556_v50  ;;  %6963 = vrot.lane.b32.xlu1 %v15268_v57, %s12057_s24  ;;  %v6353_v34 = vpop.xlane.xlu0 %6352 }
0x109c   :  { %11090 = vmatprep.subr.msk.bf16.mxu0 %vm1103_vm1, %v15564_v22  ;;  %11720 = vrcp.f32 %v6353_v34 }
0x109d   :  { %v6320_v45 = vpop.xlane.xlu1 %6319 }
0x109f   :  { %7080 = vrot.lane.b32.xlu1 %v15294_v0, %s12058_s25 }
0x10a1   :  { %v6344_v4 = vpop.xlane.xlu1 %6343 }
0x10a2   :  { %11722 = vrcp.f32 %v6344_v4  ;;  %v17584_v4 = vld [vmem:[#allocation41_spill] sm:$0xff] }
0x10a3   :  { %11724 = vrcp.f32 %v6350_v7  ;;  %v6347_v56 = vpop.xlane.xlu0 %6346  ;;  %6967 = vrot.lane.b32.xlu1 %v15276_v6, %s12057_s24 }
0x10a4   :  { %11726 = vrcp.f32 %v6347_v56 }
0x10a5   :  { %v6329_v50 = vpop.xlane.xlu1 %6328 }
0x10a6   :  { %11728 = vrcp.f32 %v6329_v50  ;;  %v11721_v63 = vpop.eup %11720 }
0x10a7   :  { %11730 = vrcp.f32 %v6320_v45  ;;  %7082 = vrot.lane.b32.xlu1 %v15292_v51, %s12058_s25  ;;  %v6341_v16 = vpop.xlane.xlu0 %6340  ;;  %v6441_v47 = vmul.f32 %v11721_v63, %v15652_v40  ;;  %v17585_v63 = vld [vmem:[#allocation46_spill] sm:$0xff] }
0x10a8   :  { %11732 = vrcp.f32 %v6326_v43 }
0x10a9   :  { %v6323_v27 = vpop.xlane.xlu1 %6322 }
0x10aa   :  { %11734 = vrcp.f32 %v6323_v27  ;;  %7078 = vrot.lane.b32.xlu0 %v15282_v1, %s12058_s25 }
0x10ab   :  { %7068 = vrot.lane.b32.xlu1 %v15284_v37, %s12057_s24 }
0x10ac   :  { %v11723_v41 = vpop.eup %11722 }
0x10ad   :  { %v11725_v24 = vpop.eup %11724  ;;  %v6338_v29 = vpop.xlane.xlu1 %6337  ;;  %v6438_v60 = vmul.f32 %v11723_v41, %v15662_v39 }
0x10ae   :  { %v11727_v62 = vpop.eup %11726  ;;  %6965 = vrot.lane.b32.xlu0 %v15266_v21, %s12057_s24  ;;  %v6440_v38 = vmul.f32 %v11725_v24, %v15646_v13  ;;  %v6887_v13 = vsel %vm1103_vm1, %v15564_v22, 0  ;;  %v17586_v24 = vld [vmem:[#allocation51_spill] sm:$0xff] }
0x10af   :  { %v6335_v33 = vpop.xlane.xlu0 %6334  ;;  %v6439_v31 = vmul.f32 %v11727_v62, %v15669_v32  ;;  %7185 = vrot.lane.b32.xlu1 %v15314_v44, %s12058_s25 }
0x10b0   :  { %v11729_v28 = vpop.eup %11728  ;;  %v6463_v55 = vpack.c.bf16 %v6441_v47, %v6440_v38  ;;  %11736 = vrcp.f32 %v6335_v33 }
0x10b1   :  { %v6362_v11 = vpop.xlane.xlu1 %6361  ;;  %v6462_v9 = vpack.c.bf16 %v6439_v31, %v6438_v60  ;;  %v11731_v25 = vpop.eup %11730  ;;  %v6433_v39 = vmul.f32 %v11729_v28, %v15665_v49  ;;  %11738 = vrcp.f32 %v6338_v29  ;;  %v17581_v49 = vld [vmem:[#allocation43_spill] sm:$0xff] }
0x10b2   :  { %7181 = vrot.lane.b32.xlu0 %v15302_v10, %s12058_s25  ;;  %v11733_v40 = vpop.eup %11732  ;;  %v6430_v20 = vmul.f32 %v11731_v25, %v15657_v36  ;;  %v6890_v56 = vsel %vm1103_vm1, %v17581_v49, 0  ;;  %v17587_v29 = vld [vmem:[#allocation35_spill] sm:$0xff] }
0x10b3   :  { %10814 = vmatprep.mubr.msk.bf16.mxu0 %vm1460_vm2, %v6462_v9  ;;  %7074 = vrot.lane.b32.xlu1 %v15292_v51, %s12057_s24  ;;  %v6359_v32 = vpop.xlane.xlu0 %6358  ;;  %v6432_v45 = vmul.f32 %v11733_v40, %v15636_v52  ;;  %v17582_v52 = vld [vmem:[#allocation38_spill] sm:$0xff]  ;;  %v6893_v9 = vsel %vm1103_vm1, %v17585_v63, 0  ;;  %v17590_v40 = vld [vmem:[#allocation39_spill] sm:$0xff] }
0x10b4   :  { %v11735_v61 = vpop.eup %11734  ;;  %10815 = vmatmul.mubr.msk.bf16.vlgmr.msra.gmra.mrb[176].mxu0 %vm1460_vm2, %v6463_v55  ;;  %v17589_v55 = vld [vmem:[#allocation45_spill] sm:$0xff] }
0x10b5   :  { %10839 = vmatpush3.bf16.xpose.msra.mxu0 %v6887_v13  ;;  %v6332_v43 = vpop.xlane.xlu1 %6331  ;;  %v6431_v7 = vmul.f32 %v11735_v61, %v15675_v8  ;;  %v6459_v34 = vpack.c.bf16 %v6433_v39, %v6432_v45  ;;  %v17583_v8 = vld [vmem:[#allocation40_spill] sm:$0xff] }
0x10b6   :  { %11740 = vrcp.f32 %v6332_v43  ;;  %11091 = vmatprep.subr.msk.bf16.mxu0 %vm1103_vm1, %v17581_v49  ;;  %6969 = vrot.lane.b32.xlu0 %v15274_v12, %s12057_s24  ;;  %v17595_v43 = vld [vmem:[#allocation37_spill] sm:$0xff] }
0x10b7   :  { %11742 = vrcp.f32 %v6341_v16  ;;  %v6458_v22 = vpack.c.bf16 %v6431_v7, %v6430_v20  ;;  %7173 = vrot.lane.b32.xlu1 %v15302_v10, %s12057_s24 }
0x10b8   :  { %11744 = vrcp.f32 %v6359_v32  ;;  %v6896_v32 = vsel %vm1103_vm1, %v17589_v55, 0 }
0x10b9   :  { %10798 = vmatprep.mubr.msk.bf16.mxu1 %vm1460_vm2, %v6458_v22  ;;  %v6356_v36 = vpop.xlane.xlu1 %6355 }
0x10ba   :  { %11746 = vrcp.f32 %v6356_v36  ;;  %7183 = vrot.lane.b32.xlu0 %v17582_v52, %s12058_s25  ;;  %10799 = vmatmul.mubr.msk.bf16.vlgmr.msra.gmra.mrb[152].mxu1 %vm1460_vm2, %v6459_v34  ;;  %v11737_v27 = vpop.eup %11736 }
0x10bb   :  { %10823 = vmatpush3.bf16.msra.mxu1 %v17583_v8  ;;  %11748 = vrcp.f32 %v6362_v11  ;;  %7177 = vrot.lane.b32.xlu1 %v15314_v44, %s12057_s24  ;;  %v11739_v16 = vpop.eup %11738  ;;  %v6435_v33 = vmul.f32 %v11737_v27, %v15692_v26  ;;  %v17588_v11 = vld [vmem:[#allocation42_spill] sm:$0xff] }
0x10bc   :  { %10824 = vmatprep.subr.bf16.mxu1 %v17584_v4  ;;  %v6436_v31 = vmul.f32 %v11739_v16, %v15686_v3 }
0x10bd   :  { %10841 = vmatpush3.bf16.xpose.msra.mxu0 %v6890_v56  ;;  %v6365_v50 = vpop.xlane.xlu1 %6364 }
0x10be   :  { %11750 = vrcp.f32 %v6365_v50  ;;  %11092 = vmatprep.subr.msk.bf16.mxu0 %vm1103_vm1, %v17585_v63  ;;  %7070 = vrot.lane.b32.xlu0 %v15282_v1, %s12057_s24 }
0x10bf   :  { %10825 = vmatpush3.bf16.msra.mxu1 %v17584_v4  ;;  %7648 = vrot.lane.b32.xlu1 %v17587_v29, %s12061_s3  ;;  %v17596_v4 = vld [vmem:[#allocation48_spill] sm:$0xff] }
0x10c0   :  { %v11741_v41 = vpop.eup %11740  ;;  %10826 = vmatprep.subr.bf16.mxu1 %v17586_v24 }
0x10c1   :  { %v11743_v62 = vpop.eup %11742  ;;  %v6434_v47 = vmul.f32 %v11741_v41, %v15696_v35 }
0x10c2   :  { %v11745_v60 = vpop.eup %11744  ;;  %7072 = vrot.lane.b32.xlu0 %v15294_v0, %s12057_s24  ;;  %v6437_v25 = vmul.f32 %v11743_v62, %v15679_v58 }
0x10c3   :  { %10827 = vmatpush3.bf16.msra.mxu1 %v17586_v24  ;;  %v6460_v38 = vpack.c.bf16 %v6435_v33, %v6434_v47  ;;  %7735 = vrot.lane.b32.xlu1 %v15268_v57, %s12061_s3  ;;  %v6443_v3 = vmul.f32 %v11745_v60, %v15700_v23  ;;  %v17591_v57 = vld [vmem:[#allocation44_spill] sm:$0xff] }
0x10c4   :  { %v11747_v28 = vpop.eup %11746  ;;  %10828 = vmatprep.subr.bf16.mxu1 %v17588_v11  ;;  %v6461_v61 = vpack.c.bf16 %v6437_v25, %v6436_v31  ;;  %v6992_v8 = vsel %vm1103_vm1, %v17591_v57, 0 }
0x10c5   :  { %10843 = vmatpush3.bf16.xpose.msra.mxu0 %v6893_v9  ;;  %10802 = vmatprep.mubr.msk.bf16.mxu1 %vm1460_vm2, %v6460_v38  ;;  %v6442_v26 = vmul.f32 %v11747_v28, %v15706_v15  ;;  %v11749_v35 = vpop.eup %11748 }
0x10c6   :  { %11093 = vmatprep.subr.msk.bf16.mxu0 %vm1103_vm1, %v17589_v55  ;;  %7187 = vrot.lane.b32.xlu0 %v17590_v40, %s12058_s25  ;;  %v6444_v23 = vmul.f32 %v11749_v35, %v15688_v14  ;;  %v17593_v14 = vld [vmem:[#allocation36_spill] sm:$0xff] }
0x10c7   :  { %10829 = vmatpush3.bf16.msra.mxu1 %v17588_v11  ;;  %v6464_v58 = vpack.c.bf16 %v6443_v3, %v6442_v26  ;;  %7737 = vrot.lane.b32.xlu1 %v15266_v21, %s12061_s3  ;;  %v17592_v21 = vld [vmem:[#allocation47_spill] sm:$0xff] }
0x10c8   :  { %v11751_v39 = vpop.eup %11750  ;;  %10803 = vmatmul.mubr.msk.bf16.gmra.mrb[156].mxu1 %vm1460_vm2, %v6461_v61  ;;  %11094 = vmatprep.subr.msk.bf16.mxu1 %vm1103_vm1, %v17591_v57 }
0x10c9   :  { %10818 = vmatprep.mubr.msk.bf16.mxu0 %vm1460_vm2, %v6464_v58  ;;  %v6445_v15 = vmul.f32 %v11751_v39, %v15710_v18  ;;  %v7097_v18 = vsel %vm1103_vm1, %v15738_v42, 0 }
0x10ca   :  { %7175 = vrot.lane.b32.xlu0 %v17582_v52, %s12057_s24 }
0x10cb   :  { %v6465_v13 = vpack.c.bf16 %v6445_v15, %v6444_v23  ;;  %7741 = vrot.lane.b32.xlu1 %v15274_v12, %s12061_s3  ;;  %v17594_v12 = vld [vmem:[#allocation50_spill] sm:$0xff] }
0x10cd   :  { %10845 = vmatpush3.bf16.xpose.msra.mxu0 %v6896_v32 }
0x10ce   :  { %10819 = vmatmul.mubr.msk.bf16.gmra.mrb[180].mxu0 %vm1460_vm2, %v6465_v13  ;;  %11098 = vmatprep.subr.msk.bf16.mxu0 %vm1103_vm1, %v15738_v42 }
0x10cf   :  { %7179 = vrot.lane.b32.xlu0 %v17590_v40, %s12057_s24  ;;  %10846 = vmatprep.mubr.msk.bf16.mxu0 %vm1103_vm1, %v17592_v21 }
0x10d0   :  { %7826 = vrot.lane.b32.xlu1 %v15282_v1, %s12061_s3 }
0x10d3   :  { %7646 = vrot.lane.b32.xlu0 %v17593_v14, %s12061_s3 }
0x10d4   :  { %7830 = vrot.lane.b32.xlu1 %v15292_v51, %s12061_s3 }
0x10d6   :  { %10847 = vmatmul.mubr.msk.bf16.vlgmr.msra.gmra.mrb[184].mxu0 %vm1103_vm1, %v17594_v12  ;;  %v6374_v1 = vpop.xlane.xlu1 %6373 }
0x10d7   :  { %10871 = vmatpush3.bf16.xpose.msra.mxu0 %v7097_v18  ;;  %7650 = vrot.lane.b32.xlu0 %v17595_v43, %s12061_s3 }
0x10d8   :  { %10850 = vmatprep.mubr.msk.bf16.mxu0 %vm1103_vm1, %v15716_v46 }
0x10da   :  { %v6368_v51 = vpop.xlane.xlu1 %6367 }
0x10db   :  { %7652 = vrot.lane.b32.xlu0 %v15258_v48, %s12061_s3 }
0x10df   :  { %7739 = vrot.lane.b32.xlu0 %v15276_v6, %s12061_s3 }
0x10e3   :  { %7824 = vrot.lane.b32.xlu0 %v15284_v37, %s12061_s3 }
0x10e7   :  { %7828 = vrot.lane.b32.xlu0 %v15294_v0, %s12061_s3 }
0x10e8   :  { %v6377_v42 = vpop.xlane.xlu0 %6376 }
0x10e9   :  { %11752 = vrcp.f32 %v6377_v42 }
0x10ea   :  { %11754 = vrcp.f32 %v6368_v51 }
0x10eb   :  { %11756 = vrcp.f32 %v6374_v1 }
0x10ec   :  { %v6371_v20 = vpop.xlane.xlu0 %6370 }
0x10ed   :  { %11758 = vrcp.f32 %v6371_v20 }
0x10f0   :  { %v6865_v46 = vpop.permute.xlu0 %6864 }
0x10f1   :  { %10851 = vmatmul.mubr.msk.bf16.gmra.mrb[188].mxu0 %vm1103_vm1, %v6865_v46 }
0x10f3   :  { %v11753_v48 = vpop.eup %11752 }
0x10f4   :  { %v11755_v7 = vpop.eup %11754  ;;  %v6449_v49 = vmul.f32 %v11753_v48, %v15728_v30  ;;  %v17597_v30 = vld [vmem:[#allocation49_spill] sm:$0xff] }
0x10f5   :  { %v11757_v6 = vpop.eup %11756  ;;  %v6446_v37 = vmul.f32 %v11755_v7, %v15722_v17  ;;  %v6995_v17 = vsel %vm1103_vm1, %v17596_v4, 0 }
0x10f6   :  { %v6448_v22 = vmul.f32 %v11757_v6, %v15718_v5  ;;  %v6978_v5 = vpop.permute.xlu1 %6977 }
0x10f7   :  { %v11759_v45 = vpop.eup %11758  ;;  %v7001_v27 = vsel %vm1103_vm1, %v6978_v5, 0 }
0x10f8   :  { %v6447_v0 = vmul.f32 %v11759_v45, %v15732_v54  ;;  %v6467_v36 = vpack.c.bf16 %v6449_v49, %v6448_v22  ;;  %v6998_v54 = vsel %vm1103_vm1, %v17597_v30, 0 }
0x10fa   :  { %v6466_v34 = vpack.c.bf16 %v6447_v0, %v6446_v37 }
0x10fc   :  { %10830 = vmatprep.mubr.msk.bf16.mxu1 %vm1460_vm2, %v6466_v34 }
0x10fd   :  { %10831 = vmatmul.mubr.msk.bf16.vlgmr.msra.gmra.mrb[160].mxu1 %vm1460_vm2, %v6467_v36 }
0x10fe   :  { %10855 = vmatpush3.bf16.xpose.msra.mxu1 %v6992_v8 }
0x10ff   :  { %11095 = vmatprep.subr.msk.bf16.mxu1 %vm1103_vm1, %v17596_v4 }
0x1106   :  { %10857 = vmatpush3.bf16.xpose.msra.mxu1 %v6995_v17 }
0x1107   :  { %11096 = vmatprep.subr.msk.bf16.mxu1 %vm1103_vm1, %v17597_v30 }
0x110e   :  { %10859 = vmatpush3.bf16.xpose.msra.mxu1 %v6998_v54 }
0x110f   :  { %11097 = vmatprep.subr.msk.bf16.mxu1 %vm1103_vm1, %v6978_v5  ;;  %v6386_v56 = vpop.xlane.xlu1 %6385 }
0x1113   :  { %v6380_v50 = vpop.xlane.xlu1 %6379 }
0x1116   :  { %10861 = vmatpush3.bf16.xpose.msra.mxu1 %v7001_v27 }
0x1117   :  { %v6389_v63 = vpop.xlane.xlu1 %6388 }
0x1118   :  { %11760 = vrcp.f32 %v6389_v63 }
0x1119   :  { %11762 = vrcp.f32 %v6386_v56 }
0x111a   :  { %11764 = vrcp.f32 %v6380_v50 }
0x111b   :  { %v6964_v16 = vpop.permute.xlu1 %6963 }
0x111f   :  { %v7081_v41 = vpop.permute.xlu1 %7080 }
0x1120   :  { %v7103_v61 = vsel %vm1103_vm1, %v7081_v41, 0 }
0x1121   :  { %v6383_v24 = vpop.xlane.xlu0 %6382 }
0x1122   :  { %11766 = vrcp.f32 %v6383_v24  ;;  %v11761_v33 = vpop.eup %11760 }
0x1123   :  { %v6968_v29 = vpop.permute.xlu1 %6967  ;;  %v11763_v31 = vpop.eup %11762  ;;  %v6453_v11 = vmul.f32 %v11761_v33, %v15750_v2 }
0x1124   :  { %v11765_v28 = vpop.eup %11764  ;;  %v6452_v25 = vmul.f32 %v11763_v31, %v15746_v59 }
0x1125   :  { %v7079_v62 = vpop.permute.xlu0 %7078  ;;  %v6450_v35 = vmul.f32 %v11765_v28, %v15752_v53 }
0x1126   :  { %11099 = vmatprep.subr.msk.bf16.mxu0 %vm1103_vm1, %v7079_v62  ;;  %v7100_v47 = vsel %vm1103_vm1, %v7079_v62, 0  ;;  %v6469_v58 = vpack.c.bf16 %v6453_v11, %v6452_v25 }
0x1127   :  { %10873 = vmatpush3.bf16.xpose.msra.mxu0 %v7100_v47  ;;  %v7083_v60 = vpop.permute.xlu1 %7082 }
0x1128   :  { %11100 = vmatprep.subr.msk.bf16.mxu0 %vm1103_vm1, %v7081_v41 }
0x1129   :  { %v6966_v38 = vpop.permute.xlu0 %6965 }
0x112b   :  { %v7069_v26 = vpop.permute.xlu1 %7068 }
0x112c   :  { %v11767_v9 = vpop.eup %11766  ;;  %10878 = vmatprep.mubr.msk.bf16.mxu0 %vm1103_vm1, %v7069_v26 }
0x112d   :  { %v7182_v3 = vpop.permute.xlu0 %7181  ;;  %v6451_v55 = vmul.f32 %v11767_v9, %v15762_v19  ;;  %v7106_v19 = vsel %vm1103_vm1, %v7083_v60, 0 }
0x112e   :  { %11102 = vmatprep.subr.msk.bf16.mxu1 %vm1103_vm1, %v7182_v3  ;;  %v7202_v23 = vsel %vm1103_vm1, %v7182_v3, 0 }
0x112f   :  { %10875 = vmatpush3.bf16.xpose.msra.mxu0 %v7103_v61  ;;  %v6468_v39 = vpack.c.bf16 %v6451_v55, %v6450_v35  ;;  %v7186_v2 = vpop.permute.xlu1 %7185 }
0x1130   :  { %11101 = vmatprep.subr.msk.bf16.mxu0 %vm1103_vm1, %v7083_v60  ;;  %v7208_v1 = vsel %vm1103_vm1, %v7186_v2, 0 }
0x1131   :  { %10834 = vmatprep.mubr.msk.bf16.mxu1 %vm1460_vm2, %v6468_v39  ;;  %v6970_v59 = vpop.permute.xlu0 %6969 }
0x1132   :  { %10835 = vmatmul.mubr.msk.bf16.gmra.mrb[164].mxu1 %vm1460_vm2, %v6469_v58 }
0x1133   :  { %10862 = vmatprep.mubr.msk.bf16.mxu1 %vm1103_vm1, %v6964_v16  ;;  %v7075_v15 = vpop.permute.xlu1 %7074 }
0x1135   :  { %v7184_v53 = vpop.permute.xlu0 %7183 }
0x1136   :  { %v7205_v14 = vsel %vm1103_vm1, %v7184_v53, 0 }
0x1137   :  { %10877 = vmatpush3.bf16.xpose.msra.mxu0 %v7106_v19  ;;  %v7174_v32 = vpop.permute.xlu1 %7173 }
0x1139   :  { %v7071_v57 = vpop.permute.xlu0 %7070 }
0x113a   :  { %10863 = vmatmul.mubr.msk.bf16.vlgmr.msra.gmra.mrb[168].mxu1 %vm1103_vm1, %v6966_v38 }
0x113b   :  { %10887 = vmatpush3.bf16.xpose.msra.mxu1 %v7202_v23  ;;  %10866 = vmatprep.mubr.msk.bf16.mxu1 %vm1103_vm1, %v6968_v29  ;;  %v7178_v18 = vpop.permute.xlu1 %7177 }
0x113c   :  { %11103 = vmatprep.subr.msk.bf16.mxu1 %vm1103_vm1, %v7184_v53 }
0x113d   :  { %v7073_v13 = vpop.permute.xlu0 %7072 }
0x113e   :  { %10879 = vmatmul.mubr.msk.bf16.vlgmr.msra.gmra.mrb[192].mxu0 %vm1103_vm1, %v7071_v57 }
0x113f   :  { %10882 = vmatprep.mubr.msk.bf16.mxu0 %vm1103_vm1, %v7073_v13  ;;  %v7649_v51 = vpop.permute.xlu1 %7648 }
0x1141   :  { %v7188_v21 = vpop.permute.xlu0 %7187 }
0x1142   :  { %10867 = vmatmul.mubr.msk.bf16.gmra.mrb[172].mxu1 %vm1103_vm1, %v6970_v59  ;;  %v7211_v46 = vsel %vm1103_vm1, %v7188_v21, 0 }
0x1143   :  { %10889 = vmatpush3.bf16.xpose.msra.mxu1 %v7205_v14  ;;  %10894 = vmatprep.mubr.msk.bf16.mxu1 %vm1103_vm1, %v7174_v32  ;;  %v7736_v48 = vpop.permute.xlu1 %7735 }
0x1144   :  { %11104 = vmatprep.subr.msk.bf16.mxu1 %vm1103_vm1, %v7186_v2 }
0x1145   :  { %v7176_v12 = vpop.permute.xlu0 %7175 }
0x1146   :  { %10883 = vmatmul.mubr.msk.bf16.gmra.mrb[196].mxu0 %vm1103_vm1, %v7075_v15 }
0x1147   :  { %v7738_v45 = vpop.permute.xlu1 %7737 }
0x1149   :  { %v7180_v43 = vpop.permute.xlu0 %7179 }
0x114b   :  { %10891 = vmatpush3.bf16.xpose.msra.mxu1 %v7208_v1  ;;  %v7742_v0 = vpop.permute.xlu1 %7741 }
0x114c   :  { %11105 = vmatprep.subr.msk.bf16.mxu1 %vm1103_vm1, %v7188_v21 }
0x114d   :  { %v7647_v42 = vpop.permute.xlu0 %7646 }
0x114e   :  { %10902 = vmatprep.subr.bf16.mxu0 %v7647_v42 }
0x114f   :  { %10903 = vmatpush3.bf16.msra.mxu0 %v7647_v42 }
0x1150   :  { %10904 = vmatprep.subr.bf16.mxu0 %v7649_v51 }
0x1151   :  { %v7651_v20 = vpop.permute.xlu0 %7650 }
0x1153   :  { %10893 = vmatpush3.bf16.xpose.msra.mxu1 %v7211_v46  ;;  %10905 = vmatpush3.bf16.msra.mxu0 %v7649_v51 }
0x1154   :  { %10918 = vmatprep.subr.bf16.mxu1 %v7736_v48  ;;  %10906 = vmatprep.subr.bf16.mxu0 %v7651_v20 }
0x1155   :  { %v7653_v7 = vpop.permute.xlu0 %7652 }
0x1157   :  { %10907 = vmatpush3.bf16.msra.mxu0 %v7651_v20 }
0x1158   :  { %10908 = vmatprep.subr.bf16.mxu0 %v7653_v7 }
0x1159   :  { %v7740_v6 = vpop.permute.xlu0 %7739 }
0x115a   :  { %10895 = vmatmul.mubr.msk.bf16.vlgmr.msra.gmra.mrb[176].mxu1 %vm1103_vm1, %v7176_v12 }
0x115b   :  { %10898 = vmatprep.mubr.msk.bf16.mxu1 %vm1103_vm1, %v7178_v18  ;;  %10919 = vmatpush3.bf16.msra.mxu1 %v7736_v48 }
0x115c   :  { %10909 = vmatpush3.bf16.msra.mxu0 %v7653_v7  ;;  %10920 = vmatprep.subr.bf16.mxu1 %v7738_v45 }
0x115d   :  { %v15952_v49 = vpop.permute.xlu0 %7824 }
0x115e   :  { %10934 = vmatprep.subr.bf16.mxu0 %v15952_v49 }
0x115f   :  { %10921 = vmatpush3.bf16.msra.mxu1 %v7738_v45 }
0x1160   :  { %10922 = vmatprep.subr.bf16.mxu1 %v7740_v6 }
0x1161   :  { %v10784_v37 = vpop.f32.mrb[168].mxu0 }
0x1162   :  { %10899 = vmatmul.mubr.msk.bf16.gmra.mrb[180].mxu1 %vm1103_vm1, %v7180_v43  ;;  %6828 = vst.msk [vmem:[#allocation2 + $0x10] sm:$0xff] %vm1103_vm1, %v10784_v37  ;;  %v6528_v22 = vpop.f32.mrb[169].mxu0 }
0x1163   :  { %10923 = vmatpush3.bf16.msra.mxu1 %v7740_v6  ;;  %6826 = vst.msk [vmem:[#allocation2] sm:$0xff] %vm1103_vm1, %v6528_v22  ;;  %v10785_v34 = vpop.f32.mrb[170].mxu0 }
0x1164   :  { %10924 = vmatprep.subr.bf16.mxu1 %v7742_v0  ;;  %6829 = vst.msk [vmem:[#allocation2 + $0x18] sm:$0xff] %vm1103_vm1, %v10785_v34  ;;  %v6531_v36 = vpop.f32.mrb[171].mxu0 }
0x1165   :  { %6827 = vst.msk [vmem:[#allocation2 + $0x8] sm:$0xff] %vm1103_vm1, %v6531_v36 }
0x1167   :  { %10925 = vmatpush3.bf16.msra.mxu1 %v7742_v0 }
0x1169   :  { %v10788_v8 = vpop.f32.mrb[172].mxu0 }
0x116a   :  { %6832 = vst.msk [vmem:[#allocation2 + $0x30] sm:$0xff] %vm1103_vm1, %v10788_v8  ;;  %v6544_v4 = vpop.f32.mrb[173].mxu0 }
0x116b   :  { %6830 = vst.msk [vmem:[#allocation2 + $0x20] sm:$0xff] %vm1103_vm1, %v6544_v4  ;;  %v10789_v17 = vpop.f32.mrb[174].mxu0 }
0x116c   :  { %6833 = vst.msk [vmem:[#allocation2 + $0x38] sm:$0xff] %vm1103_vm1, %v10789_v17  ;;  %v6547_v30 = vpop.f32.mrb[175].mxu0 }
0x116d   :  { %6831 = vst.msk [vmem:[#allocation2 + $0x28] sm:$0xff] %vm1103_vm1, %v6547_v30 }
0x1187   :  { %v10816_v5 = vpop.f32.mrb[176].mxu0 }
0x1188   :  { %6844 = vst.msk [vmem:[#allocation2 + $0x90] sm:$0xff] %vm1103_vm1, %v10816_v5  ;;  %v6706_v54 = vpop.f32.mrb[177].mxu0 }
0x1189   :  { %6842 = vst.msk [vmem:[#allocation2 + $0x80] sm:$0xff] %vm1103_vm1, %v6706_v54  ;;  %v10817_v56 = vpop.f32.mrb[178].mxu0 }
0x118a   :  { %6845 = vst.msk [vmem:[#allocation2 + $0x98] sm:$0xff] %vm1103_vm1, %v10817_v56  ;;  %v6709_v50 = vpop.f32.mrb[179].mxu0 }
0x118b   :  { %6843 = vst.msk [vmem:[#allocation2 + $0x88] sm:$0xff] %vm1103_vm1, %v6709_v50 }
0x118d   :  { %v10800_v27 = vpop.f32.mrb[152].mxu1 }
0x118e   :  { %6836 = vst.msk [vmem:[#allocation2 + $0x50] sm:$0xff] %vm1103_vm1, %v10800_v27  ;;  %v6617_v63 = vpop.f32.mrb[153].mxu1 }
0x118f   :  { %6834 = vst.msk [vmem:[#allocation2 + $0x40] sm:$0xff] %vm1103_vm1, %v6617_v63  ;;  %v10801_v16 = vpop.f32.mrb[154].mxu1 }
0x1190   :  { %6837 = vst.msk [vmem:[#allocation2 + $0x58] sm:$0xff] %vm1103_vm1, %v10801_v16  ;;  %v6620_v41 = vpop.f32.mrb[155].mxu1 }
0x1191   :  { %6835 = vst.msk [vmem:[#allocation2 + $0x48] sm:$0xff] %vm1103_vm1, %v6620_v41 }
0x119b   :  { %v10804_v24 = vpop.f32.mrb[156].mxu1 }
0x119c   :  { %6840 = vst.msk [vmem:[#allocation2 + $0x70] sm:$0xff] %vm1103_vm1, %v10804_v24  ;;  %v6633_v29 = vpop.f32.mrb[157].mxu1 }
0x119d   :  { %6838 = vst.msk [vmem:[#allocation2 + $0x60] sm:$0xff] %vm1103_vm1, %v6633_v29  ;;  %v10805_v62 = vpop.f32.mrb[158].mxu1 }
0x119e   :  { %6841 = vst.msk [vmem:[#allocation2 + $0x78] sm:$0xff] %vm1103_vm1, %v10805_v62  ;;  %v6636_v47 = vpop.f32.mrb[159].mxu1 }
0x119f   :  { %6839 = vst.msk [vmem:[#allocation2 + $0x68] sm:$0xff] %vm1103_vm1, %v6636_v47 }
0x11a1   :  { %v10820_v33 = vpop.f32.mrb[180].mxu0 }
0x11a2   :  { %6848 = vst.msk [vmem:[#allocation2 + $0xb0] sm:$0xff] %vm1103_vm1, %v10820_v33  ;;  %v6722_v60 = vpop.f32.mrb[181].mxu0 }
0x11a3   :  { %6846 = vst.msk [vmem:[#allocation2 + $0xa0] sm:$0xff] %vm1103_vm1, %v6722_v60  ;;  %v10821_v31 = vpop.f32.mrb[182].mxu0 }
0x11a4   :  { %6849 = vst.msk [vmem:[#allocation2 + $0xb8] sm:$0xff] %vm1103_vm1, %v10821_v31  ;;  %v6725_v38 = vpop.f32.mrb[183].mxu0 }
0x11a5   :  { %6847 = vst.msk [vmem:[#allocation2 + $0xa8] sm:$0xff] %vm1103_vm1, %v6725_v38 }
0x11a9   :  { %v15980_v28 = vpop.f32.mrb[184].mxu0 }
0x11aa   :  { %v15982_v11 = vpop.f32.mrb[185].mxu0  ;;  %v7284_v9 = vsel %vm1460_vm2, %v15980_v28, -inf }
0x11ab   :  { %7285 = vmax.xlane.f32.xlu0 %v7284_v9  ;;  %v15986_v25 = vpop.f32.mrb[186].mxu0  ;;  %v7278_v26 = vsel %vm1460_vm2, %v15982_v11, -inf }
0x11ac   :  { %7279 = vmax.xlane.f32.xlu1 %v7278_v26  ;;  %v15990_v3 = vpop.f32.mrb[187].mxu0  ;;  %v7287_v55 = vsel %vm1460_vm2, %v15986_v25, -inf }
0x11ad   :  { %v7281_v35 = vsel %vm1460_vm2, %v15990_v3, -inf }
0x11af   :  { %7282 = vmax.xlane.f32.xlu0 %v7281_v35 }
0x11b0   :  { %7288 = vmax.xlane.f32.xlu1 %v7287_v55 }
0x11c4   :  { %v15996_v61 = vpop.f32.mrb[188].mxu0 }
0x11c5   :  { %v15998_v58 = vpop.f32.mrb[189].mxu0  ;;  %v7296_v39 = vsel %vm1460_vm2, %v15996_v61, -inf }
0x11c6   :  { %7297 = vmax.xlane.f32.xlu0 %v7296_v39  ;;  %v16002_v59 = vpop.f32.mrb[190].mxu0  ;;  %v7290_v19 = vsel %vm1460_vm2, %v15998_v58, -inf }
0x11c7   :  { %v16004_v2 = vpop.f32.mrb[191].mxu0  ;;  %v7299_v53 = vsel %vm1460_vm2, %v16002_v59, -inf }
0x11c8   :  { %7300 = vmax.xlane.f32.xlu1 %v7299_v53  ;;  %v7293_v57 = vsel %vm1460_vm2, %v16004_v2, -inf }
0x11ca   :  { %7291 = vmax.xlane.f32.xlu0 %v7290_v19 }
0x11cc   :  { %7294 = vmax.xlane.f32.xlu1 %v7293_v57 }
0x11d0   :  { %v10832_v23 = vpop.f32.mrb[160].mxu1 }
0x11d1   :  { %6852 = vst.msk [vmem:[#allocation2 + $0xd0] sm:$0xff] %vm1103_vm1, %v10832_v23  ;;  %v6795_v15 = vpop.f32.mrb[161].mxu1 }
0x11d2   :  { %6850 = vst.msk [vmem:[#allocation2 + $0xc0] sm:$0xff] %vm1103_vm1, %v6795_v15  ;;  %v10833_v13 = vpop.f32.mrb[162].mxu1 }
0x11d3   :  { %6853 = vst.msk [vmem:[#allocation2 + $0xd8] sm:$0xff] %vm1103_vm1, %v10833_v13  ;;  %v6798_v32 = vpop.f32.mrb[163].mxu1 }
0x11d4   :  { %6851 = vst.msk [vmem:[#allocation2 + $0xc8] sm:$0xff] %vm1103_vm1, %v6798_v32 }
0x1205   :  { %v10836_v21 = vpop.f32.mrb[164].mxu1 }
0x1206   :  { %6856 = vst.msk [vmem:[#allocation2 + $0xf0] sm:$0xff] %vm1103_vm1, %v10836_v21  ;;  %v6811_v14 = vpop.f32.mrb[165].mxu1 }
0x1207   :  { %6854 = vst.msk [vmem:[#allocation2 + $0xe0] sm:$0xff] %vm1103_vm1, %v6811_v14  ;;  %v10837_v12 = vpop.f32.mrb[166].mxu1  ;;  %v16116_v14 = vpop.permute.xlu1 %7826 }
0x1208   :  { %6857 = vst.msk [vmem:[#allocation2 + $0xf8] sm:$0xff] %vm1103_vm1, %v10837_v12  ;;  %v6814_v18 = vpop.f32.mrb[167].mxu1 }
0x1209   :  { %6855 = vst.msk [vmem:[#allocation2 + $0xe8] sm:$0xff] %vm1103_vm1, %v6814_v18  ;;  %v16122_v18 = vpop.permute.xlu0 %7828 }
0x120b   :  { %v16120_v12 = vpop.permute.xlu1 %7830 }
0x120d   :  { %v16020_v43 = vpop.f32.mrb[168].mxu1 }
0x120e   :  { %v16022_v1 = vpop.f32.mrb[169].mxu1  ;;  %v7308_v51 = vsel %vm1460_vm2, %v16020_v43, -inf }
0x120f   :  { %7309 = vmax.xlane.f32.xlu0 %v7308_v51  ;;  %v16026_v42 = vpop.f32.mrb[170].mxu1  ;;  %v7302_v36 = vsel %vm1460_vm2, %v16022_v1, -inf }
0x1210   :  { %v16028_v20 = vpop.f32.mrb[171].mxu1  ;;  %v7311_v46 = vsel %vm1460_vm2, %v16026_v42, -inf }
0x1211   :  { %7312 = vmax.xlane.f32.xlu1 %v7311_v46  ;;  %v16032_v48 = vpop.f32.mrb[192].mxu0  ;;  %v7305_v17 = vsel %vm1460_vm2, %v16028_v20, -inf }
0x1212   :  { %v16034_v7 = vpop.f32.mrb[193].mxu0  ;;  %v7332_v6 = vsel %vm1460_vm2, %v16032_v48, -inf }
0x1213   :  { %7333 = vmax.xlane.f32.xlu0 %v7332_v6  ;;  %v16038_v45 = vpop.f32.mrb[194].mxu0  ;;  %v7326_v54 = vsel %vm1460_vm2, %v16034_v7, -inf }
0x1214   :  { %v16040_v37 = vpop.f32.mrb[195].mxu0  ;;  %v7335_v0 = vsel %vm1460_vm2, %v16038_v45, -inf }
0x1215   :  { %v16044_v22 = vpop.f32.mrb[172].mxu1  ;;  %7336 = vmax.xlane.f32.xlu1 %v7335_v0  ;;  %v7329_v27 = vsel %vm1460_vm2, %v16040_v37, -inf }
0x1216   :  { %v16046_v34 = vpop.f32.mrb[173].mxu1  ;;  %v7320_v63 = vsel %vm1460_vm2, %v16044_v22, -inf }
0x1217   :  { %v16050_v8 = vpop.f32.mrb[174].mxu1  ;;  %7303 = vmax.xlane.f32.xlu0 %v7302_v36  ;;  %v7314_v29 = vsel %vm1460_vm2, %v16046_v34, -inf }
0x1218   :  { %v16052_v4 = vpop.f32.mrb[175].mxu1  ;;  %v7323_v16 = vsel %vm1460_vm2, %v16050_v8, -inf }
0x1219   :  { %7306 = vmax.xlane.f32.xlu1 %v7305_v17  ;;  %v16056_v30 = vpop.f32.mrb[196].mxu0  ;;  %v7317_v62 = vsel %vm1460_vm2, %v16052_v4, -inf }
0x121a   :  { %v16058_v5 = vpop.f32.mrb[197].mxu0  ;;  %v7344_v41 = vsel %vm1460_vm2, %v16056_v30, -inf }
0x121b   :  { %7327 = vmax.xlane.f32.xlu0 %v7326_v54  ;;  %v16062_v56 = vpop.f32.mrb[198].mxu0  ;;  %v7338_v47 = vsel %vm1460_vm2, %v16058_v5, -inf }
0x121c   :  { %v16064_v50 = vpop.f32.mrb[199].mxu0  ;;  %v7347_v24 = vsel %vm1460_vm2, %v16062_v56, -inf }
0x121d   :  { %7330 = vmax.xlane.f32.xlu1 %v7329_v27  ;;  %v7341_v33 = vsel %vm1460_vm2, %v16064_v50, -inf }
0x121f   :  { %7321 = vmax.xlane.f32.xlu0 %v7320_v63 }
0x1221   :  { %7324 = vmax.xlane.f32.xlu1 %v7323_v16 }
0x1223   :  { %7345 = vmax.xlane.f32.xlu0 %v7344_v41 }
0x1225   :  { %7348 = vmax.xlane.f32.xlu1 %v7347_v24 }
0x1227   :  { %7315 = vmax.xlane.f32.xlu0 %v7314_v29 }
0x1229   :  { %7318 = vmax.xlane.f32.xlu1 %v7317_v62 }
0x122b   :  { %7339 = vmax.xlane.f32.xlu0 %v7338_v47 }
0x122d   :  { %v16084_v60 = vpop.f32.mrb[176].mxu1  ;;  %7342 = vmax.xlane.f32.xlu1 %v7341_v33 }
0x122e   :  { %v16086_v31 = vpop.f32.mrb[177].mxu1  ;;  %v7356_v38 = vsel %vm1460_vm2, %v16084_v60, -inf }
0x122f   :  { %v16090_v9 = vpop.f32.mrb[178].mxu1  ;;  %7357 = vmax.xlane.f32.xlu0 %v7356_v38  ;;  %v7350_v55 = vsel %vm1460_vm2, %v16086_v31, -inf }
0x1230   :  { %v16092_v26 = vpop.f32.mrb[179].mxu1  ;;  %v7359_v35 = vsel %vm1460_vm2, %v16090_v9, -inf }
0x1231   :  { %7360 = vmax.xlane.f32.xlu1 %v7359_v35  ;;  %v7353_v39 = vsel %vm1460_vm2, %v16092_v26, -inf }
0x1233   :  { %7351 = vmax.xlane.f32.xlu0 %v7350_v55 }
0x1235   :  { %v16100_v53 = vpop.f32.mrb[180].mxu1  ;;  %7354 = vmax.xlane.f32.xlu1 %v7353_v39 }
0x1236   :  { %v16102_v19 = vpop.f32.mrb[181].mxu1  ;;  %v7368_v57 = vsel %vm1460_vm2, %v16100_v53, -inf }
0x1237   :  { %v16106_v23 = vpop.f32.mrb[182].mxu1  ;;  %7369 = vmax.xlane.f32.xlu0 %v7368_v57  ;;  %v7362_v32 = vsel %vm1460_vm2, %v16102_v19, -inf }
0x1238   :  { %v16108_v15 = vpop.f32.mrb[183].mxu1  ;;  %v7371_v13 = vsel %vm1460_vm2, %v16106_v23, -inf  ;;  %v7286_v51 = vpop.xlane.xlu0 %7285 }
0x1239   :  { %7372 = vmax.xlane.f32.xlu1 %v7371_v13  ;;  %v7365_v21 = vsel %vm1460_vm2, %v16108_v15, -inf  ;;  %v7280_v46 = vpop.xlane.xlu1 %7279  ;;  %v7376_v36 = vsub.f32 %v15980_v28, %v7286_v51 }
0x123a   :  { %v7374_v63 = vsub.f32 %v15982_v11, %v7280_v46 }
0x123b   :  { %7363 = vmax.xlane.f32.xlu0 %v7362_v32  ;;  %v7410_v27 = vmul.f32 1.442695, %v7376_v36 }
0x123c   :  { %v7283_v6 = vpop.xlane.xlu0 %7282  ;;  %v7406_v24 = vmul.f32 1.442695, %v7374_v63 }
0x123d   :  { %7366 = vmax.xlane.f32.xlu1 %v7365_v21  ;;  %v7289_v0 = vpop.xlane.xlu1 %7288  ;;  %v7375_v16 = vsub.f32 %v15990_v3, %v7283_v6  ;;  %11768 = vpow2.f32 %v7410_v27 }
0x123e   :  { %v7377_v17 = vsub.f32 %v15986_v25, %v7289_v0 }
0x123f   :  { %v7408_v62 = vmul.f32 1.442695, %v7375_v16 }
0x1240   :  { %v7412_v41 = vmul.f32 1.442695, %v7377_v17 }
0x1242   :  { %11770 = vpow2.f32 %v7412_v41 }
0x1243   :  { %11772 = vpow2.f32 %v7406_v24 }
0x1244   :  { %11774 = vpow2.f32 %v7408_v62 }
0x1247   :  { %v16134_v35 = vpop.eup %11768 }
0x124c   :  { %v16136_v55 = vpop.eup %11770 }
0x124d   :  { %v16140_v39 = vpop.eup %11772 }
0x124e   :  { %7915 = vrot.lane.b32.xlu1 %v17582_v52, %s12061_s3  ;;  %v7470_v57 = vsel %vm1460_vm2, %v16140_v39, 0.0 }
0x1251   :  { %7913 = vrot.lane.b32.xlu0 %v15302_v10, %s12061_s3 }
0x1253   :  { %v7298_v54 = vpop.xlane.xlu0 %7297 }
0x1254   :  { %v7380_v10 = vsub.f32 %v15996_v61, %v7298_v54 }
0x1255   :  { %v7301_v52 = vpop.xlane.xlu1 %7300 }
0x1256   :  { %v7381_v47 = vsub.f32 %v16002_v59, %v7301_v52  ;;  %v7418_v25 = vmul.f32 1.442695, %v7380_v10  ;;  %v7476_v59 = vsel %vm1460_vm2, %v16134_v35, 0.0 }
0x1257   :  { %v7292_v29 = vpop.xlane.xlu0 %7291 }
0x1258   :  { %v7378_v33 = vsub.f32 %v15998_v58, %v7292_v29  ;;  %v7420_v11 = vmul.f32 1.442695, %v7381_v47  ;;  %11776 = vpow2.f32 %v7418_v25  ;;  %v7479_v58 = vsel %vm1460_vm2, %v16136_v55, 0.0 }
0x1259   :  { %v7295_v28 = vpop.xlane.xlu1 %7294 }
0x125a   :  { %v7379_v38 = vsub.f32 %v16004_v2, %v7295_v28  ;;  %v7414_v3 = vmul.f32 1.442695, %v7378_v33  ;;  %11778 = vpow2.f32 %v7420_v11  ;;  %v16144_v2 = vpop.eup %11774 }
0x125b   :  { %v7473_v32 = vsel %vm1460_vm2, %v16144_v2, 0.0 }
0x125c   :  { %v7416_v61 = vmul.f32 1.442695, %v7379_v38  ;;  %11780 = vpow2.f32 %v7414_v3 }
0x125e   :  { %11782 = vpow2.f32 %v7416_v61 }
0x1262   :  { %v16148_v13 = vpop.eup %11776 }
0x1263   :  { %v7488_v51 = vsel %vm1460_vm2, %v16148_v13, 0.0 }
0x1264   :  { %v16152_v21 = vpop.eup %11778 }
0x1265   :  { %v7491_v6 = vsel %vm1460_vm2, %v16152_v21, 0.0 }
0x1266   :  { %v16156_v46 = vpop.eup %11780 }
0x1267   :  { %v7482_v36 = vsel %vm1460_vm2, %v16156_v46, 0.0 }
0x1268   :  { %v16160_v0 = vpop.eup %11782 }
0x1269   :  { %v7485_v17 = vsel %vm1460_vm2, %v16160_v0, 0.0 }
0x1270   :  { %7477 = vadd.xlane.f32.xlu0 %v7476_v59 }
0x1272   :  { %7480 = vadd.xlane.f32.xlu1 %v7479_v58 }
0x1274   :  { %7471 = vadd.xlane.f32.xlu0 %v7470_v57 }
0x1276   :  { %7474 = vadd.xlane.f32.xlu1 %v7473_v32 }
0x1278   :  { %7489 = vadd.xlane.f32.xlu0 %v7488_v51 }
0x127a   :  { %7492 = vadd.xlane.f32.xlu1 %v7491_v6 }
0x127c   :  { %7483 = vadd.xlane.f32.xlu0 %v7482_v36 }
0x127e   :  { %7486 = vadd.xlane.f32.xlu1 %v7485_v17 }
0x129c   :  { %v7310_v54 = vpop.xlane.xlu0 %7309 }
0x129d   :  { %v7384_v27 = vsub.f32 %v16020_v43, %v7310_v54 }
0x129e   :  { %v7313_v63 = vpop.xlane.xlu1 %7312 }
0x129f   :  { %v7426_v52 = vmul.f32 1.442695, %v7384_v27  ;;  %v7385_v10 = vsub.f32 %v16026_v42, %v7313_v63 }
0x12a0   :  { %v7334_v16 = vpop.xlane.xlu0 %7333 }
0x12a1   :  { %11784 = vpow2.f32 %v7426_v52  ;;  %v7392_v41 = vsub.f32 %v16032_v48, %v7334_v16  ;;  %v7428_v33 = vmul.f32 1.442695, %v7385_v10 }
0x12a2   :  { %v7337_v24 = vpop.xlane.xlu1 %7336 }
0x12a3   :  { %v7442_v29 = vmul.f32 1.442695, %v7392_v41  ;;  %v7393_v28 = vsub.f32 %v16038_v45, %v7337_v24 }
0x12a4   :  { %v7304_v62 = vpop.xlane.xlu0 %7303 }
0x12a5   :  { %11786 = vpow2.f32 %v7442_v29  ;;  %v7382_v47 = vsub.f32 %v16022_v1, %v7304_v62  ;;  %v7444_v48 = vmul.f32 1.442695, %v7393_v28 }
0x12a6   :  { %v7307_v25 = vpop.xlane.xlu1 %7306 }
0x12a7   :  { %v7422_v11 = vmul.f32 1.442695, %v7382_v47  ;;  %v7383_v43 = vsub.f32 %v16028_v20, %v7307_v25 }
0x12a8   :  { %v7328_v38 = vpop.xlane.xlu0 %7327 }
0x12a9   :  { %11788 = vpow2.f32 %v7422_v11  ;;  %v7390_v3 = vsub.f32 %v16034_v7, %v7328_v38  ;;  %v7424_v42 = vmul.f32 1.442695, %v7383_v43 }
0x12aa   :  { %v7331_v61 = vpop.xlane.xlu1 %7330  ;;  %11790 = vpow2.f32 %v7428_v33 }
0x12ab   :  { %v16173_v59 = vpop.eup %11784  ;;  %v7438_v58 = vmul.f32 1.442695, %v7390_v3  ;;  %v7391_v1 = vsub.f32 %v16040_v37, %v7331_v61 }
0x12ac   :  { %v7322_v57 = vpop.xlane.xlu0 %7321  ;;  %v7500_v45 = vsel %vm1460_vm2, %v16173_v59, 0.0 }
0x12ad   :  { %11792 = vpow2.f32 %v7438_v58  ;;  %v7388_v20 = vsub.f32 %v16044_v22, %v7322_v57  ;;  %7501 = vadd.xlane.f32.xlu1 %v7500_v45  ;;  %v7440_v32 = vmul.f32 1.442695, %v7391_v1 }
0x12ae   :  { %11794 = vpow2.f32 %v7444_v48  ;;  %v7325_v7 = vpop.xlane.xlu1 %7324 }
0x12af   :  { %v16179_v51 = vpop.eup %11786  ;;  %11796 = vpow2.f32 %v7424_v42  ;;  %v7434_v6 = vmul.f32 1.442695, %v7388_v20  ;;  %v7389_v22 = vsub.f32 %v16050_v8, %v7325_v7 }
0x12b0   :  { %v7346_v36 = vpop.xlane.xlu0 %7345  ;;  %v7524_v17 = vsel %vm1460_vm2, %v16179_v51, 0.0  ;;  %11798 = vpow2.f32 %v7440_v32 }
0x12b1   :  { %v7396_v37 = vsub.f32 %v16056_v30, %v7346_v36  ;;  %7525 = vadd.xlane.f32.xlu0 %v7524_v17  ;;  %11800 = vpow2.f32 %v7434_v6  ;;  %v7436_v62 = vmul.f32 1.442695, %v7389_v22 }
0x12b2   :  { %v7349_v54 = vpop.xlane.xlu1 %7348 }
0x12b3   :  { %v16184_v27 = vpop.eup %11788  ;;  %v7450_v63 = vmul.f32 1.442695, %v7396_v37  ;;  %v7397_v30 = vsub.f32 %v16062_v56, %v7349_v54 }
0x12b4   :  { %v7316_v52 = vpop.xlane.xlu0 %7315  ;;  %v7494_v16 = vsel %vm1460_vm2, %v16184_v27, 0.0  ;;  %v16189_v41 = vpop.eup %11790 }
0x12b5   :  { %v7386_v24 = vsub.f32 %v16046_v34, %v7316_v52  ;;  %7495 = vadd.xlane.f32.xlu1 %v7494_v16  ;;  %11802 = vpow2.f32 %v7450_v63  ;;  %v7503_v33 = vsel %vm1460_vm2, %v16189_v41, 0.0  ;;  %v7452_v43 = vmul.f32 1.442695, %v7397_v30 }
0x12b6   :  { %v7319_v10 = vpop.xlane.xlu1 %7318 }
0x12b7   :  { %v16193_v29 = vpop.eup %11792  ;;  %v7430_v47 = vmul.f32 1.442695, %v7386_v24  ;;  %v7387_v8 = vsub.f32 %v16052_v4, %v7319_v10 }
0x12b8   :  { %v16196_v28 = vpop.eup %11794  ;;  %v7340_v25 = vpop.xlane.xlu0 %7339  ;;  %v7518_v34 = vsel %vm1460_vm2, %v16193_v29, 0.0 }
0x12b9   :  { %v16202_v11 = vpop.eup %11796  ;;  %11804 = vpow2.f32 %v7430_v47  ;;  %v7394_v56 = vsub.f32 %v16058_v5, %v7340_v25  ;;  %7504 = vadd.xlane.f32.xlu1 %v7503_v33  ;;  %7519 = vadd.xlane.f32.xlu0 %v7518_v34  ;;  %v7432_v4 = vmul.f32 1.442695, %v7387_v8  ;;  %v7527_v1 = vsel %vm1460_vm2, %v16196_v28, 0.0 }
0x12ba   :  { %v7343_v38 = vpop.xlane.xlu1 %7342  ;;  %11806 = vpow2.f32 %v7436_v62  ;;  %v16206_v61 = vpop.eup %11798  ;;  %v7497_v58 = vsel %vm1460_vm2, %v16202_v11, 0.0 }
0x12bb   :  { %v7446_v3 = vmul.f32 1.442695, %v7394_v56  ;;  %v7395_v48 = vsub.f32 %v16064_v50, %v7343_v38  ;;  %v16212_v57 = vpop.eup %11800  ;;  %v7521_v6 = vsel %vm1460_vm2, %v16206_v61, 0.0 }
0x12bc   :  { %v7358_v42 = vpop.xlane.xlu0 %7357  ;;  %v7512_v36 = vsel %vm1460_vm2, %v16212_v57, 0.0 }
0x12bd   :  { %11808 = vpow2.f32 %v7446_v3  ;;  %v7400_v5 = vsub.f32 %v16084_v60, %v7358_v42  ;;  %7498 = vadd.xlane.f32.xlu1 %v7497_v58  ;;  %7528 = vadd.xlane.f32.xlu0 %v7527_v1  ;;  %v7448_v45 = vmul.f32 1.442695, %v7395_v48 }
0x12be   :  { %11810 = vpow2.f32 %v7452_v43  ;;  %v7361_v20 = vpop.xlane.xlu1 %7360 }
0x12bf   :  { %11812 = vpow2.f32 %v7432_v4  ;;  %v7458_v50 = vmul.f32 1.442695, %v7400_v5  ;;  %v7401_v32 = vsub.f32 %v16090_v9, %v7361_v20  ;;  %v16220_v17 = vpop.eup %11802 }
0x12c0   :  { %v7352_v7 = vpop.xlane.xlu0 %7351  ;;  %11814 = vpow2.f32 %v7448_v45  ;;  %v7536_v16 = vsel %vm1460_vm2, %v16220_v17, 0.0 }
0x12c1   :  { %v7398_v60 = vsub.f32 %v16086_v31, %v7352_v7  ;;  %7522 = vadd.xlane.f32.xlu1 %v7521_v6  ;;  %7513 = vadd.xlane.f32.xlu0 %v7512_v36  ;;  %v7460_v37 = vmul.f32 1.442695, %v7401_v32  ;;  %11816 = vpow2.f32 %v7458_v50 }
0x12c2   :  { %v7355_v54 = vpop.xlane.xlu1 %7354 }
0x12c3   :  { %v16223_v22 = vpop.eup %11804  ;;  %v7454_v9 = vmul.f32 1.442695, %v7398_v60  ;;  %v7399_v63 = vsub.f32 %v16092_v26, %v7355_v54  ;;  %11818 = vpow2.f32 %v7460_v37 }
0x12c4   :  { %v7370_v52 = vpop.xlane.xlu0 %7369  ;;  %v7506_v24 = vsel %vm1460_vm2, %v16223_v22, 0.0  ;;  %v16230_v30 = vpop.eup %11806 }
0x12c5   :  { %v7404_v31 = vsub.f32 %v16100_v53, %v7370_v52  ;;  %7537 = vadd.xlane.f32.xlu1 %v7536_v16  ;;  %7507 = vadd.xlane.f32.xlu0 %v7506_v24  ;;  %v7456_v10 = vmul.f32 1.442695, %v7399_v63  ;;  %11820 = vpow2.f32 %v7454_v9  ;;  %v7515_v34 = vsel %vm1460_vm2, %v16230_v30, 0.0 }
0x12c6   :  { %v7373_v62 = vpop.xlane.xlu1 %7372 }
0x12c7   :  { %v16233_v47 = vpop.eup %11808  ;;  %v7466_v26 = vmul.f32 1.442695, %v7404_v31  ;;  %v7405_v8 = vsub.f32 %v16106_v23, %v7373_v62  ;;  %11822 = vpow2.f32 %v7456_v10 }
0x12c8   :  { %v16236_v25 = vpop.eup %11810  ;;  %v7364_v33 = vpop.xlane.xlu0 %7363  ;;  %v7530_v53 = vsel %vm1460_vm2, %v16233_v47, 0.0 }
0x12c9   :  { %v16242_v56 = vpop.eup %11812  ;;  %v7402_v43 = vsub.f32 %v16102_v19, %v7364_v33  ;;  %7516 = vadd.xlane.f32.xlu0 %v7515_v34  ;;  %7531 = vadd.xlane.f32.xlu1 %v7530_v53  ;;  %v7468_v38 = vmul.f32 1.442695, %v7405_v8  ;;  %11824 = vpow2.f32 %v7466_v26  ;;  %v7539_v58 = vsel %vm1460_vm2, %v16236_v25, 0.0 }
0x12ca   :  { %v7367_v4 = vpop.xlane.xlu1 %7366  ;;  %v16246_v48 = vpop.eup %11814  ;;  %v7509_v1 = vsel %vm1460_vm2, %v16242_v56, 0.0 }
0x12cb   :  { %v7462_v23 = vmul.f32 1.442695, %v7402_v43  ;;  %v7403_v3 = vsub.f32 %v16108_v15, %v7367_v4  ;;  %v16254_v19 = vpop.eup %11816  ;;  %11826 = vpow2.f32 %v7468_v38  ;;  %v7533_v45 = vsel %vm1460_vm2, %v16246_v48, 0.0 }
0x12cc   :  { %v16248_v42 = vpop.permute.xlu0 %7913  ;;  %v7548_v20 = vsel %vm1460_vm2, %v16254_v19, 0.0 }
0x12cd   :  { %7540 = vadd.xlane.f32.xlu0 %v7539_v58  ;;  %7510 = vadd.xlane.f32.xlu1 %v7509_v1  ;;  %11828 = vpow2.f32 %v7462_v23  ;;  %v7464_v5 = vmul.f32 1.442695, %v7403_v3  ;;  %v16257_v15 = vpop.eup %11818 }
0x12ce   :  { %10950 = vmatprep.subr.bf16.mxu1 %v16248_v42  ;;  %v7551_v7 = vsel %vm1460_vm2, %v16257_v15, 0.0  ;;  %v16293_v31 = vpop.permute.xlu1 %7915 }
0x12cf   :  { %v16263_v50 = vpop.eup %11820  ;;  %11830 = vpow2.f32 %v7464_v5 }
0x12d0   :  { %v7542_v6 = vsel %vm1460_vm2, %v16263_v50, 0.0 }
0x12d1   :  { %7534 = vadd.xlane.f32.xlu0 %v7533_v45  ;;  %7549 = vadd.xlane.f32.xlu1 %v7548_v20  ;;  %v16265_v32 = vpop.eup %11822 }
0x12d2   :  { %v7545_v37 = vsel %vm1460_vm2, %v16265_v32, 0.0 }
0x12d3   :  { %v16271_v36 = vpop.eup %11824 }
0x12d4   :  { %v7560_v54 = vsel %vm1460_vm2, %v16271_v36, 0.0 }
0x12d5   :  { %7552 = vadd.xlane.f32.xlu0 %v7551_v7  ;;  %7543 = vadd.xlane.f32.xlu1 %v7542_v6  ;;  %v16273_v60 = vpop.eup %11826 }
0x12d6   :  { %v7563_v63 = vsel %vm1460_vm2, %v16273_v60, 0.0 }
0x12d7   :  { %v16279_v9 = vpop.eup %11828 }
0x12d8   :  { %v7554_v52 = vsel %vm1460_vm2, %v16279_v9, 0.0 }
0x12d9   :  { %7546 = vadd.xlane.f32.xlu0 %v7545_v37  ;;  %7561 = vadd.xlane.f32.xlu1 %v7560_v54  ;;  %v16285_v16 = vpop.eup %11830 }
0x12da   :  { %v7557_v24 = vsel %vm1460_vm2, %v16285_v16, 0.0 }
0x12dd   :  { %7564 = vadd.xlane.f32.xlu0 %v7563_v63  ;;  %7555 = vadd.xlane.f32.xlu1 %v7554_v52 }
0x12e1   :  { %7558 = vadd.xlane.f32.xlu0 %v7557_v24 }
0x12ee   :  { %7917 = vrot.lane.b32.xlu1 %v15314_v44, %s12061_s3 }
0x12f7   :  { %7919 = vrot.lane.b32.xlu0 %v17590_v40, %s12061_s3 }
0x12fd   :  { %v7478_v10 = vpop.xlane.xlu0 %7477 }
0x12ff   :  { %v7481_v62 = vpop.xlane.xlu1 %7480 }
0x1300   :  { %11832 = vrcp.f32 %v7481_v62 }
0x1301   :  { %v7472_v26 = vpop.xlane.xlu0 %7471 }
0x1302   :  { %11834 = vrcp.f32 %v7472_v26 }
0x1303   :  { %11836 = vrcp.f32 %v7478_v10  ;;  %v7475_v8 = vpop.xlane.xlu1 %7474 }
0x1304   :  { %11838 = vrcp.f32 %v7475_v8 }
0x1305   :  { %v7490_v33 = vpop.xlane.xlu0 %7489 }
0x1307   :  { %v7493_v34 = vpop.xlane.xlu1 %7492 }
0x1308   :  { %11840 = vrcp.f32 %v7493_v34 }
0x1309   :  { %v7484_v53 = vpop.xlane.xlu0 %7483 }
0x130a   :  { %11842 = vrcp.f32 %v7484_v53  ;;  %v11833_v43 = vpop.eup %11832 }
0x130b   :  { %11844 = vrcp.f32 %v7490_v33  ;;  %v7487_v44 = vpop.xlane.xlu1 %7486  ;;  %v7601_v23 = vmul.f32 %v11833_v43, %v16136_v55 }
0x130c   :  { %v11835_v38 = vpop.eup %11834  ;;  %11846 = vrcp.f32 %v7487_v44 }
0x130d   :  { %v11837_v40 = vpop.eup %11836  ;;  %v7598_v3 = vmul.f32 %v11835_v38, %v16140_v39 }
0x130e   :  { %v11839_v4 = vpop.eup %11838  ;;  %v7600_v1 = vmul.f32 %v11837_v40, %v16134_v35 }
0x130f   :  { %v7599_v58 = vmul.f32 %v11839_v4, %v16144_v2 }
0x1310   :  { %v7631_v45 = vpack.c.bf16 %v7601_v23, %v7600_v1 }
0x1311   :  { %v7630_v5 = vpack.c.bf16 %v7599_v58, %v7598_v3 }
0x1312   :  { %v11841_v20 = vpop.eup %11840 }
0x1313   :  { %10910 = vmatprep.mubr.msk.bf16.mxu0 %vm1460_vm2, %v7630_v5  ;;  %v7605_v55 = vmul.f32 %v11841_v20, %v16152_v21 }
0x1314   :  { %v11843_v7 = vpop.eup %11842  ;;  %10911 = vmatmul.mubr.msk.bf16.vlgmr.msra.gmra.mrb[200].mxu0 %vm1460_vm2, %v7631_v45 }
0x1315   :  { %v11845_v6 = vpop.eup %11844  ;;  %10935 = vmatpush3.bf16.msra.mxu0 %v15952_v49  ;;  %v7602_v39 = vmul.f32 %v11843_v7, %v16156_v46 }
0x1316   :  { %v11847_v37 = vpop.eup %11846  ;;  %10936 = vmatprep.subr.bf16.mxu0 %v16116_v14  ;;  %v7604_v2 = vmul.f32 %v11845_v6, %v16148_v13 }
0x1317   :  { %v7603_v35 = vmul.f32 %v11847_v37, %v16160_v0 }
0x1318   :  { %v7633_v63 = vpack.c.bf16 %v7605_v55, %v7604_v2 }
0x1319   :  { %10937 = vmatpush3.bf16.msra.mxu0 %v16116_v14  ;;  %v7632_v54 = vpack.c.bf16 %v7603_v35, %v7602_v39 }
0x131a   :  { %10938 = vmatprep.subr.bf16.mxu0 %v16122_v18 }
0x131b   :  { %10914 = vmatprep.mubr.msk.bf16.mxu0 %vm1460_vm2, %v7632_v54 }
0x131c   :  { %10915 = vmatmul.mubr.msk.bf16.gmra.mrb[204].mxu0 %vm1460_vm2, %v7633_v63 }
0x131d   :  { %10939 = vmatpush3.bf16.msra.mxu0 %v16122_v18 }
0x131e   :  { %10940 = vmatprep.subr.bf16.mxu0 %v16120_v12 }
0x1321   :  { %10941 = vmatpush3.bf16.msra.mxu0 %v16120_v12 }
0x133a   :  { %v7502_v49 = vpop.xlane.xlu1 %7501 }
0x133e   :  { %v7526_v21 = vpop.xlane.xlu0 %7525 }
0x1342   :  { %v7496_v46 = vpop.xlane.xlu1 %7495 }
0x1346   :  { %v7505_v13 = vpop.xlane.xlu1 %7504  ;;  %v7520_v0 = vpop.xlane.xlu0 %7519 }
0x1347   :  { %11848 = vrcp.f32 %v7505_v13 }
0x1348   :  { %11850 = vrcp.f32 %v7496_v46 }
0x1349   :  { %11852 = vrcp.f32 %v7502_v49 }
0x134a   :  { %v7499_v14 = vpop.xlane.xlu1 %7498  ;;  %v7529_v52 = vpop.xlane.xlu0 %7528 }
0x134b   :  { %11854 = vrcp.f32 %v7499_v14 }
0x134c   :  { %11856 = vrcp.f32 %v7529_v52 }
0x134d   :  { %11858 = vrcp.f32 %v7520_v0 }
0x134e   :  { %11860 = vrcp.f32 %v7526_v21  ;;  %v7523_v24 = vpop.xlane.xlu1 %7522  ;;  %v7514_v18 = vpop.xlane.xlu0 %7513 }
0x134f   :  { %11862 = vrcp.f32 %v7523_v24 }
0x1351   :  { %v11849_v10 = vpop.eup %11848 }
0x1352   :  { %v7538_v62 = vpop.xlane.xlu1 %7537  ;;  %v7508_v12 = vpop.xlane.xlu0 %7507  ;;  %v7609_v34 = vmul.f32 %v11849_v10, %v16189_v41 }
0x1353   :  { %v11851_v26 = vpop.eup %11850 }
0x1354   :  { %v11853_v8 = vpop.eup %11852  ;;  %v7606_v38 = vmul.f32 %v11851_v26, %v16184_v27 }
0x1355   :  { %v11855_v33 = vpop.eup %11854  ;;  %v7608_v23 = vmul.f32 %v11853_v8, %v16173_v59 }
0x1356   :  { %v11857_v53 = vpop.eup %11856  ;;  %v7532_v43 = vpop.xlane.xlu1 %7531  ;;  %v7607_v40 = vmul.f32 %v11855_v33, %v16202_v11 }
0x1357   :  { %v7517_v44 = vpop.xlane.xlu0 %7516  ;;  %v11859_v4 = vpop.eup %11858  ;;  %v7635_v5 = vpack.c.bf16 %v7609_v34, %v7608_v23  ;;  %v7617_v45 = vmul.f32 %v11857_v53, %v16196_v28 }
0x1358   :  { %v11861_v3 = vpop.eup %11860  ;;  %11864 = vrcp.f32 %v7517_v44  ;;  %v7634_v58 = vpack.c.bf16 %v7607_v40, %v7606_v38  ;;  %v7614_v27 = vmul.f32 %v11859_v4, %v16193_v29 }
0x1359   :  { %v11863_v1 = vpop.eup %11862  ;;  %11866 = vrcp.f32 %v7508_v12  ;;  %v7616_v7 = vmul.f32 %v11861_v3, %v16179_v51 }
0x135a   :  { %11868 = vrcp.f32 %v7514_v18  ;;  %10926 = vmatprep.mubr.msk.bf16.mxu1 %vm1460_vm2, %v7634_v58  ;;  %v7511_v41 = vpop.xlane.xlu1 %7510  ;;  %v7615_v11 = vmul.f32 %v11863_v1, %v16206_v61 }
0x135b   :  { %v7541_v20 = vpop.xlane.xlu0 %7540  ;;  %11870 = vrcp.f32 %v7511_v41  ;;  %10927 = vmatmul.mubr.msk.bf16.vlgmr.msra.gmra.mrb[184].mxu1 %vm1460_vm2, %v7635_v5  ;;  %v7639_v6 = vpack.c.bf16 %v7617_v45, %v7616_v7 }
0x135c   :  { %10951 = vmatpush3.bf16.msra.mxu1 %v16248_v42  ;;  %v7638_v59 = vpack.c.bf16 %v7615_v11, %v7614_v27  ;;  %11872 = vrcp.f32 %v7541_v20 }
0x135d   :  { %10952 = vmatprep.subr.bf16.mxu1 %v16293_v31  ;;  %11874 = vrcp.f32 %v7532_v43 }
0x135e   :  { %v7550_v28 = vpop.xlane.xlu1 %7549  ;;  %10942 = vmatprep.mubr.msk.bf16.mxu0 %vm1460_vm2, %v7638_v59  ;;  %11876 = vrcp.f32 %v7538_v62 }
0x135f   :  { %v7535_v37 = vpop.xlane.xlu0 %7534  ;;  %10943 = vmatmul.mubr.msk.bf16.vlgmr.msra.gmra.mrb[208].mxu0 %vm1460_vm2, %v7639_v6 }
0x1360   :  { %11878 = vrcp.f32 %v7535_v37  ;;  %10953 = vmatpush3.bf16.msra.mxu1 %v16293_v31 }
0x1362   :  { %v11865_v51 = vpop.eup %11864  ;;  %v7544_v29 = vpop.xlane.xlu1 %7543 }
0x1363   :  { %v7553_v61 = vpop.xlane.xlu0 %7552  ;;  %v11867_v42 = vpop.eup %11866  ;;  %v7613_v35 = vmul.f32 %v11865_v51, %v16230_v30 }
0x1364   :  { %v11869_v55 = vpop.eup %11868  ;;  %11880 = vrcp.f32 %v7553_v61  ;;  %v7610_v63 = vmul.f32 %v11867_v42, %v16223_v22 }
0x1365   :  { %v11871_v39 = vpop.eup %11870  ;;  %11882 = vrcp.f32 %v7544_v29  ;;  %v7612_v31 = vmul.f32 %v11869_v55, %v16212_v57 }
0x1366   :  { %v7562_v2 = vpop.xlane.xlu1 %7561  ;;  %v7611_v49 = vmul.f32 %v11871_v39, %v16242_v56  ;;  %v11873_v21 = vpop.eup %11872  ;;  %11884 = vrcp.f32 %v7550_v28 }
0x1367   :  { %v7547_v54 = vpop.xlane.xlu0 %7546  ;;  %v11875_v46 = vpop.eup %11874  ;;  %v7637_v14 = vpack.c.bf16 %v7613_v35, %v7612_v31  ;;  %v7621_v18 = vmul.f32 %v11873_v21, %v16236_v25 }
0x1368   :  { %11886 = vrcp.f32 %v7547_v54  ;;  %v7636_v13 = vpack.c.bf16 %v7611_v49, %v7610_v63  ;;  %v11877_v0 = vpop.eup %11876  ;;  %v7618_v22 = vmul.f32 %v11875_v46, %v16233_v47 }
0x1369   :  { %v7620_v57 = vmul.f32 %v11877_v0, %v16220_v17 }
0x136a   :  { %v11879_v52 = vpop.eup %11878  ;;  %v7556_v24 = vpop.xlane.xlu1 %7555  ;;  %10930 = vmatprep.mubr.msk.bf16.mxu1 %vm1460_vm2, %v7636_v13 }
0x136b   :  { %v7565_v30 = vpop.xlane.xlu0 %7564  ;;  %10931 = vmatmul.mubr.msk.bf16.gmra.mrb[188].mxu1 %vm1460_vm2, %v7637_v14  ;;  %v7619_v56 = vmul.f32 %v11879_v52, %v16246_v48  ;;  %11888 = vrcp.f32 %v7556_v24  ;;  %v7641_v26 = vpack.c.bf16 %v7621_v18, %v7620_v57 }
0x136c   :  { %11890 = vrcp.f32 %v7565_v30 }
0x136d   :  { %v7640_v10 = vpack.c.bf16 %v7619_v56, %v7618_v22  ;;  %11892 = vrcp.f32 %v7562_v2 }
0x136e   :  { %v7918_v62 = vpop.permute.xlu1 %7917  ;;  %v11881_v8 = vpop.eup %11880 }
0x136f   :  { %v7559_v12 = vpop.xlane.xlu0 %7558  ;;  %10946 = vmatprep.mubr.msk.bf16.mxu0 %vm1460_vm2, %v7640_v10  ;;  %10954 = vmatprep.subr.bf16.mxu1 %v7918_v62  ;;  %v11883_v25 = vpop.eup %11882  ;;  %v7625_v33 = vmul.f32 %v11881_v8, %v16257_v15 }
0x1370   :  { %11894 = vrcp.f32 %v7559_v12  ;;  %10947 = vmatmul.mubr.msk.bf16.gmra.mrb[212].mxu0 %vm1460_vm2, %v7641_v26  ;;  %10955 = vmatpush3.bf16.msra.mxu1 %v7918_v62  ;;  %v11885_v47 = vpop.eup %11884  ;;  %v7622_v34 = vmul.f32 %v11883_v25, %v16263_v50  ;;  %v17598_v12 = vld [vmem:[#allocation12_spill] sm:$0xff] }
0x1371   :  { %v7624_v43 = vmul.f32 %v11885_v47, %v16254_v19 }
0x1372   :  { %v11887_v48 = vpop.eup %11886 }
0x1373   :  { %v7920_v17 = vpop.permute.xlu0 %7919  ;;  %v7623_v53 = vmul.f32 %v11887_v48, %v16265_v32  ;;  %v7643_v40 = vpack.c.bf16 %v7625_v33, %v7624_v43  ;;  %v17599_v48 = vld [vmem:[#allocation28_spill] sm:$0xff] }
0x1374   :  { %10956 = vmatprep.subr.bf16.mxu1 %v7920_v17 }
0x1375   :  { %10957 = vmatpush3.bf16.msra.mxu1 %v7920_v17  ;;  %v7642_v44 = vpack.c.bf16 %v7623_v53, %v7622_v34  ;;  %v11889_v38 = vpop.eup %11888  ;;  %v17600_v34 = vld [vmem:[#allocation27_spill] sm:$0xff] }
0x1376   :  { %v11891_v4 = vpop.eup %11890  ;;  %v7626_v15 = vmul.f32 %v11889_v38, %v16279_v9  ;;  %v17601_v38 = vld [vmem:[#allocation14_spill] sm:$0xff] }
0x1377   :  { %10958 = vmatprep.mubr.msk.bf16.mxu1 %vm1460_vm2, %v7642_v44  ;;  %v11893_v23 = vpop.eup %11892  ;;  %v7629_v50 = vmul.f32 %v11891_v4, %v16273_v60 }
0x1378   :  { %10959 = vmatmul.mubr.msk.bf16.vlgmr.msra.gmra.mrb[192].mxu1 %vm1460_vm2, %v7643_v40  ;;  %v7628_v19 = vmul.f32 %v11893_v23, %v16271_v36 }
0x137a   :  { %v11895_v3 = vpop.eup %11894  ;;  %v7645_v1 = vpack.c.bf16 %v7629_v50, %v7628_v19 }
0x137b   :  { %v7627_v58 = vmul.f32 %v11895_v3, %v16285_v16  ;;  %v17602_v3 = vld [vmem:[#allocation25_spill] sm:$0xff] }
0x137d   :  { %v7644_v32 = vpack.c.bf16 %v7627_v58, %v7626_v15 }
0x137f   :  { %10962 = vmatprep.mubr.msk.bf16.mxu1 %vm1460_vm2, %v7644_v32  ;;  %v17603_v32 = vld [vmem:[#allocation16_spill] sm:$0xff] }
0x1380   :  { %10963 = vmatmul.mubr.msk.bf16.gmra.mrb[196].mxu1 %vm1460_vm2, %v7645_v1 }
0x13e7   :  { %v10912_v5 = vpop.f32.mrb[200].mxu0 }
0x13e8   :  { %8038 = vrot.lane.b32.xlu1 %v10912_v5, %s12059_s26  ;;  %v7704_v45 = vpop.f32.mrb[201].mxu0  ;;  %v17604_v5 = vld [vmem:[#allocation21_spill] sm:$0xff] }
0x13e9   :  { %v10913_v41 = vpop.f32.mrb[202].mxu0 }
0x13ea   :  { %8040 = vrot.lane.b32.xlu0 %v10913_v41, %s12059_s26  ;;  %v7707_v9 = vpop.f32.mrb[203].mxu0 }
0x13ec   :  { %8034 = vrot.lane.b32.xlu1 %v7704_v45, %s12059_s26 }
0x13ee   :  { %8036 = vrot.lane.b32.xlu0 %v7707_v9, %s12059_s26 }
0x13ef   :  { %v10916_v60 = vpop.f32.mrb[204].mxu0 }
0x13f0   :  { %8046 = vrot.lane.b32.xlu1 %v10916_v60, %s12059_s26  ;;  %v7720_v36 = vpop.f32.mrb[205].mxu0 }
0x13f1   :  { %v10917_v16 = vpop.f32.mrb[206].mxu0 }
0x13f2   :  { %8048 = vrot.lane.b32.xlu0 %v10917_v16, %s12059_s26  ;;  %v7723_v20 = vpop.f32.mrb[207].mxu0 }
0x13f4   :  { %8042 = vrot.lane.b32.xlu1 %v7720_v36, %s12059_s26  ;;  %v17605_v36 = vld [vmem:[#allocation26_spill] sm:$0xff] }
0x13f6   :  { %8044 = vrot.lane.b32.xlu0 %v7723_v20, %s12059_s26 }
0x142e   :  { %v10928_v27 = vpop.f32.mrb[184].mxu1 }
0x142f   :  { %v7793_v11 = vpop.f32.mrb[185].mxu1  ;;  %8054 = vrot.lane.b32.xlu1 %v10928_v27, %s12059_s26 }
0x1430   :  { %v10929_v7 = vpop.f32.mrb[186].mxu1 }
0x1431   :  { %v7796_v59 = vpop.f32.mrb[187].mxu1  ;;  %8056 = vrot.lane.b32.xlu0 %v10929_v7, %s12059_s26 }
0x1432   :  { %v10944_v6 = vpop.f32.mrb[208].mxu0 }
0x1433   :  { %8050 = vrot.lane.b32.xlu1 %v7793_v11, %s12059_s26  ;;  %v7882_v28 = vpop.f32.mrb[209].mxu0 }
0x1434   :  { %v10945_v37 = vpop.f32.mrb[210].mxu0 }
0x1435   :  { %8052 = vrot.lane.b32.xlu0 %v7796_v59, %s12059_s26  ;;  %v7885_v51 = vpop.f32.mrb[211].mxu0 }
0x1437   :  { %8066 = vrot.lane.b32.xlu1 %v7882_v28, %s12059_s26 }
0x1439   :  { %8068 = vrot.lane.b32.xlu0 %v7885_v51, %s12059_s26 }
0x143d   :  { %8072 = vrot.lane.b32.xlu0 %v10945_v37, %s12059_s26 }
0x143e   :  { %v10932_v29 = vpop.f32.mrb[188].mxu1 }
0x143f   :  { %8062 = vrot.lane.b32.xlu1 %v10932_v29, %s12059_s26  ;;  %v7809_v61 = vpop.f32.mrb[189].mxu1  ;;  %v17606_v29 = vld [vmem:[#allocation30_spill] sm:$0xff] }
0x1440   :  { %v10933_v42 = vpop.f32.mrb[190].mxu1 }
0x1441   :  { %8064 = vrot.lane.b32.xlu0 %v10933_v42, %s12059_s26  ;;  %v7812_v55 = vpop.f32.mrb[191].mxu1 }
0x1443   :  { %v10948_v39 = vpop.f32.mrb[212].mxu0  ;;  %8058 = vrot.lane.b32.xlu1 %v7809_v61, %s12059_s26 }
0x1444   :  { %v7898_v35 = vpop.f32.mrb[213].mxu0 }
0x1445   :  { %v10949_v2 = vpop.f32.mrb[214].mxu0 }
0x1446   :  { %8080 = vrot.lane.b32.xlu0 %v10949_v2, %s12059_s26  ;;  %v7901_v54 = vpop.f32.mrb[215].mxu0  ;;  %v17607_v2 = vld [vmem:[#allocation32_spill] sm:$0xff] }
0x1447   :  { %8070 = vrot.lane.b32.xlu1 %v10944_v6, %s12059_s26 }
0x144a   :  { %8060 = vrot.lane.b32.xlu0 %v7812_v55, %s12059_s26 }
0x144b   :  { %v10960_v63 = vpop.f32.mrb[192].mxu1  ;;  %8078 = vrot.lane.b32.xlu1 %v10948_v39, %s12059_s26 }
0x144c   :  { %v7971_v49 = vpop.f32.mrb[193].mxu1 }
0x144d   :  { %v10961_v21 = vpop.f32.mrb[194].mxu1 }
0x144e   :  { %8076 = vrot.lane.b32.xlu0 %v7901_v54, %s12059_s26  ;;  %v7974_v31 = vpop.f32.mrb[195].mxu1 }
0x144f   :  { %8074 = vrot.lane.b32.xlu1 %v7898_v35, %s12059_s26 }
0x1452   :  { %8088 = vrot.lane.b32.xlu0 %v10961_v21, %s12059_s26 }
0x1453   :  { %v10964_v46 = vpop.f32.mrb[196].mxu1  ;;  %8086 = vrot.lane.b32.xlu1 %v10960_v63, %s12059_s26  ;;  %v17608_v63 = vld [vmem:[#allocation29_spill] sm:$0xff] }
0x1454   :  { %v7987_v13 = vpop.f32.mrb[197].mxu1 }
0x1455   :  { %v10965_v0 = vpop.f32.mrb[198].mxu1 }
0x1456   :  { %8084 = vrot.lane.b32.xlu0 %v7974_v31, %s12059_s26  ;;  %v7990_v14 = vpop.f32.mrb[199].mxu1 }
0x1457   :  { %8082 = vrot.lane.b32.xlu1 %v7971_v49, %s12059_s26 }
0x145a   :  { %8096 = vrot.lane.b32.xlu0 %v10965_v0, %s12059_s26  ;;  %v8039_v52 = vpop.permute.xlu1 %8038 }
0x145b   :  { %8132 = vst.msk [vmem:[#allocation2 + $0x10] sm:$0xff] %vm3521_vm3, %v8039_v52  ;;  %8094 = vrot.lane.b32.xlu1 %v10964_v46, %s12059_s26  ;;  %v17609_v46 = vld [vmem:[#allocation34_spill] sm:$0xff] }
0x145c   :  { %v8041_v24 = vpop.permute.xlu0 %8040 }
0x145d   :  { %8133 = vst.msk [vmem:[#allocation2 + $0x18] sm:$0xff] %vm3521_vm3, %v8041_v24 }
0x145e   :  { %8092 = vrot.lane.b32.xlu0 %v7990_v14, %s12059_s26  ;;  %v8035_v30 = vpop.permute.xlu1 %8034 }
0x145f   :  { %8130 = vst.msk [vmem:[#allocation2] sm:$0xff] %vm3521_vm3, %v8035_v30  ;;  %8090 = vrot.lane.b32.xlu1 %v7987_v13, %s12059_s26 }
0x1460   :  { %v8037_v18 = vpop.permute.xlu0 %8036 }
0x1461   :  { %8131 = vst.msk [vmem:[#allocation2 + $0x8] sm:$0xff] %vm3521_vm3, %v8037_v18 }
0x1462   :  { %v8047_v22 = vpop.permute.xlu1 %8046  ;;  %v8164_v8 = vld [vmem:[#allocation2 + $0x10] sm:$0xff] }
0x1463   :  { %8136 = vst.msk [vmem:[#allocation2 + $0x30] sm:$0xff] %vm3521_vm3, %v8047_v22  ;;  %v16399_v33 = vadd.f32 %v8164_v8, %v17599_v48 }
0x1464   :  { %v8049_v56 = vpop.permute.xlu0 %8048  ;;  %v8165_v43 = vld [vmem:[#allocation2 + $0x18] sm:$0xff] }
0x1465   :  { %8137 = vst.msk [vmem:[#allocation2 + $0x38] sm:$0xff] %vm3521_vm3, %v8049_v56  ;;  %v8236_v44 = vsel %vm73_vm0, %v16399_v33, 0.0  ;;  %v16412_v15 = vadd.f32 %v8165_v43, %v17602_v3 }
0x1466   :  { %v8043_v57 = vpop.permute.xlu1 %8042  ;;  %v8162_v25 = vld [vmem:[#allocation2] sm:$0xff] }
0x1467   :  { %8134 = vst.msk [vmem:[#allocation2 + $0x20] sm:$0xff] %vm3521_vm3, %v8043_v57  ;;  %v16402_v53 = vadd.f32 %v8162_v25, %v17600_v34  ;;  %v8239_v1 = vsel %vm73_vm0, %v16412_v15, 0.0 }
0x1468   :  { %v8045_v10 = vpop.permute.xlu0 %8044  ;;  %v8163_v62 = vld [vmem:[#allocation2 + $0x8] sm:$0xff] }
0x1469   :  { %8135 = vst.msk [vmem:[#allocation2 + $0x28] sm:$0xff] %vm3521_vm3, %v8045_v10  ;;  %v16394_v26 = vadd.f32 %v8163_v62, %v17598_v12  ;;  %v8230_v23 = vsel %vm73_vm0, %v16402_v53, 0.0  ;;  %v17610_v62 = vld [vmem:[#allocation31_spill] sm:$0xff] }
0x146a   :  { %v8168_v4 = vld [vmem:[#allocation2 + $0x30] sm:$0xff] }
0x146b   :  { %v8233_v47 = vsel %vm73_vm0, %v16394_v26, 0.0  ;;  %v16417_v19 = vadd.f32 %v8168_v4, %v17603_v32  ;;  %v17612_v4 = vld [vmem:[#allocation9_spill] sm:$0xff] }
0x146c   :  { %v8169_v41 = vld [vmem:[#allocation2 + $0x38] sm:$0xff] }
0x146d   :  { %v8248_v9 = vsel %vm73_vm0, %v16417_v19, 0.0  ;;  %v16429_v16 = vadd.f32 %v8169_v41, %v17605_v36  ;;  %v17616_v41 = vld [vmem:[#allocation22_spill] sm:$0xff] }
0x146e   :  { %v8166_v17 = vld [vmem:[#allocation2 + $0x20] sm:$0xff] }
0x146f   :  { %v16407_v40 = vadd.f32 %v8166_v17, %v17601_v38  ;;  %v8251_v20 = vsel %vm73_vm0, %v16429_v16, 0.0 }
0x1470   :  { %v8167_v58 = vld [vmem:[#allocation2 + $0x28] sm:$0xff] }
0x1471   :  { %v8242_v50 = vsel %vm73_vm0, %v16407_v40, 0.0  ;;  %v16422_v45 = vadd.f32 %v8167_v58, %v17604_v5 }
0x1473   :  { %v8245_v60 = vsel %vm73_vm0, %v16422_v45, 0.0 }
0x147d   :  { %8234 = vadd.xlane.f32.xlu0 %v8233_v47  ;;  %v17611_v47 = vld [vmem:[#allocation33_spill] sm:$0xff] }
0x1481   :  { %8237 = vadd.xlane.f32.xlu0 %v8236_v44 }
0x1483   :  { %8231 = vadd.xlane.f32.xlu1 %v8230_v23 }
0x1485   :  { %8243 = vadd.xlane.f32.xlu0 %v8242_v50  ;;  %v17614_v50 = vld [vmem:[#allocation13_spill] sm:$0xff] }
0x1487   :  { %8240 = vadd.xlane.f32.xlu1 %v8239_v1 }
0x1489   :  { %8249 = vadd.xlane.f32.xlu0 %v8248_v9 }
0x148b   :  { %8246 = vadd.xlane.f32.xlu1 %v8245_v60 }
0x148f   :  { %8252 = vadd.xlane.f32.xlu1 %v8251_v20  ;;  %v17617_v20 = vld [vmem:[#allocation15_spill] sm:$0xff] }
0x14a1   :  { %v8055_v27 = vpop.permute.xlu1 %8054 }
0x14a2   :  { %8140 = vst.msk [vmem:[#allocation2 + $0x50] sm:$0xff] %vm3521_vm3, %v8055_v27 }
0x14a3   :  { %v8057_v11 = vpop.permute.xlu0 %8056 }
0x14a4   :  { %8141 = vst.msk [vmem:[#allocation2 + $0x58] sm:$0xff] %vm3521_vm3, %v8057_v11 }
0x14a5   :  { %v8051_v7 = vpop.permute.xlu1 %8050 }
0x14a6   :  { %8138 = vst.msk [vmem:[#allocation2 + $0x40] sm:$0xff] %vm3521_vm3, %v8051_v7 }
0x14a7   :  { %v8053_v59 = vpop.permute.xlu0 %8052 }
0x14a8   :  { %8139 = vst.msk [vmem:[#allocation2 + $0x48] sm:$0xff] %vm3521_vm3, %v8053_v59 }
0x14a9   :  { %v8067_v6 = vpop.permute.xlu1 %8066  ;;  %v8172_v51 = vld [vmem:[#allocation2 + $0x50] sm:$0xff] }
0x14aa   :  { %8146 = vst.msk [vmem:[#allocation2 + $0x80] sm:$0xff] %vm3521_vm3, %v8067_v6  ;;  %v16449_v49 = vadd.f32 %v8172_v51, %v17608_v63 }
0x14ab   :  { %v8069_v28 = vpop.permute.xlu0 %8068  ;;  %v8173_v39 = vld [vmem:[#allocation2 + $0x58] sm:$0xff] }
0x14ac   :  { %8147 = vst.msk [vmem:[#allocation2 + $0x88] sm:$0xff] %vm3521_vm3, %v8069_v28  ;;  %v16455_v13 = vadd.f32 %v8173_v39, %v17609_v46  ;;  %v8260_v14 = vsel %vm73_vm0, %v16449_v49, 0.0  ;;  %v17619_v28 = vld [vmem:[#allocation18_spill] sm:$0xff] }
0x14ad   :  { %v8170_v37 = vld [vmem:[#allocation2 + $0x40] sm:$0xff] }
0x14ae   :  { %v16440_v61 = vadd.f32 %v8170_v37, %v17606_v29  ;;  %v8263_v24 = vsel %vm73_vm0, %v16455_v13, 0.0 }
0x14af   :  { %v8073_v42 = vpop.permute.xlu0 %8072  ;;  %v8171_v55 = vld [vmem:[#allocation2 + $0x48] sm:$0xff] }
0x14b0   :  { %8149 = vst.msk [vmem:[#allocation2 + $0x98] sm:$0xff] %vm3521_vm3, %v8073_v42  ;;  %v8254_v35 = vsel %vm73_vm0, %v16440_v61, 0.0  ;;  %v16446_v54 = vadd.f32 %v8171_v55, %v17607_v2  ;;  %v17621_v42 = vld [vmem:[#allocation11_spill] sm:$0xff] }
0x14b1   :  { %v8063_v21 = vpop.permute.xlu1 %8062  ;;  %8255 = vadd.xlane.f32.xlu0 %v8254_v35  ;;  %v8178_v34 = vld [vmem:[#allocation2 + $0x80] sm:$0xff] }
0x14b2   :  { %8144 = vst.msk [vmem:[#allocation2 + $0x70] sm:$0xff] %vm3521_vm3, %v8063_v21  ;;  %v8257_v31 = vsel %vm73_vm0, %v16446_v54, 0.0  ;;  %v16480_v23 = vadd.f32 %v8178_v34, %v17612_v4  ;;  %v17623_v21 = vld [vmem:[#allocation10_spill] sm:$0xff]  ;;  %v17631_v34 = vld [vmem:[#allocation23_spill] sm:$0xff] }
0x14b3   :  { %8258 = vadd.xlane.f32.xlu1 %v8257_v31  ;;  %v8065_v0 = vpop.permute.xlu0 %8064  ;;  %v8179_v11 = vld [vmem:[#allocation2 + $0x88] sm:$0xff] }
0x14b4   :  { %8145 = vst.msk [vmem:[#allocation2 + $0x78] sm:$0xff] %vm3521_vm3, %v8065_v0  ;;  %17613 = vst [vmem:[#allocation43_spill] sm:$0xff] %v16480_v23  ;;  %v8278_v36 = vsel %vm73_vm0, %v16480_v23, 0.0  ;;  %v16502_v37 = vadd.f32 %v8179_v11, %v17619_v28 }
0x14b5   :  { %v8059_v52 = vpop.permute.xlu1 %8058  ;;  %8261 = vadd.xlane.f32.xlu0 %v8260_v14  ;;  %v17625_v14 = vld [vmem:[#allocation17_spill] sm:$0xff] }
0x14b6   :  { %8142 = vst.msk [vmem:[#allocation2 + $0x60] sm:$0xff] %vm3521_vm3, %v8059_v52  ;;  %17620 = vst [vmem:[#allocation41_spill] sm:$0xff] %v16502_v37  ;;  %v8281_v63 = vsel %vm73_vm0, %v16502_v37, 0.0 }
0x14b7   :  { %8264 = vadd.xlane.f32.xlu1 %v8263_v24  ;;  %v8181_v39 = vld [vmem:[#allocation2 + $0x98] sm:$0xff] }
0x14b8   :  { %v8081_v30 = vpop.permute.xlu0 %8080  ;;  %v16514_v31 = vadd.f32 %v8181_v39, %v17623_v21 }
0x14b9   :  { %8153 = vst.msk [vmem:[#allocation2 + $0xb8] sm:$0xff] %vm3521_vm3, %v8081_v30  ;;  %v8071_v18 = vpop.permute.xlu1 %8070  ;;  %v8176_v10 = vld [vmem:[#allocation2 + $0x70] sm:$0xff] }
0x14ba   :  { %8148 = vst.msk [vmem:[#allocation2 + $0x90] sm:$0xff] %vm3521_vm3, %v8071_v18  ;;  %v16473_v48 = vadd.f32 %v8176_v10, %v17611_v47  ;;  %17624 = vst [vmem:[#allocation51_spill] sm:$0xff] %v16514_v31 }
0x14bb   :  { %v8177_v3 = vld [vmem:[#allocation2 + $0x78] sm:$0xff] }
0x14bc   :  { %v8061_v22 = vpop.permute.xlu0 %8060  ;;  %v8272_v44 = vsel %vm73_vm0, %v16473_v48, 0.0  ;;  %v16490_v9 = vadd.f32 %v8177_v3, %v17616_v41 }
0x14bd   :  { %8143 = vst.msk [vmem:[#allocation2 + $0x68] sm:$0xff] %vm3521_vm3, %v8061_v22  ;;  %v8079_v56 = vpop.permute.xlu1 %8078  ;;  %v8174_v57 = vld [vmem:[#allocation2 + $0x60] sm:$0xff]  ;;  %v8287_v22 = vsel %vm73_vm0, %v16514_v31, 0.0 }
0x14be   :  { %8152 = vst.msk [vmem:[#allocation2 + $0xb0] sm:$0xff] %vm3521_vm3, %v8079_v56  ;;  %v16468_v12 = vadd.f32 %v8174_v57, %v17610_v62  ;;  %v8275_v6 = vsel %vm73_vm0, %v16490_v9, 0.0  ;;  %v17627_v56 = vld [vmem:[#allocation19_spill] sm:$0xff]  ;;  %v17629_v62 = vld [vmem:[#allocation20_spill] sm:$0xff] }
0x14c0   :  { %v8077_v8 = vpop.permute.xlu0 %8076  ;;  %v8266_v25 = vsel %vm73_vm0, %v16468_v12, 0.0 }
0x14c1   :  { %8151 = vst.msk [vmem:[#allocation2 + $0xa8] sm:$0xff] %vm3521_vm3, %v8077_v8  ;;  %v8075_v17 = vpop.permute.xlu1 %8074  ;;  %8267 = vadd.xlane.f32.xlu0 %v8266_v25  ;;  %v8180_v1 = vld [vmem:[#allocation2 + $0x90] sm:$0xff]  ;;  %v8185_v25 = vld [vmem:[#allocation2 + $0xb8] sm:$0xff] }
0x14c2   :  { %8150 = vst.msk [vmem:[#allocation2 + $0xa0] sm:$0xff] %vm3521_vm3, %v8075_v17  ;;  %v16495_v27 = vadd.f32 %v8180_v1, %v17617_v20  ;;  %v17635_v1 = vld [vmem:[#allocation3_spill] sm:$0xff] }
0x14c4   :  { %v8089_v43 = vpop.permute.xlu0 %8088  ;;  %v8175_v38 = vld [vmem:[#allocation2 + $0x68] sm:$0xff]  ;;  %17618 = vst [vmem:[#allocation40_spill] sm:$0xff] %v16495_v27  ;;  %v8284_v29 = vsel %vm73_vm0, %v16495_v27, 0.0 }
0x14c5   :  { %8157 = vst.msk [vmem:[#allocation2 + $0xd8] sm:$0xff] %vm3521_vm3, %v8089_v43  ;;  %v8087_v58 = vpop.permute.xlu1 %8086  ;;  %8273 = vadd.xlane.f32.xlu0 %v8272_v44  ;;  %v16484_v32 = vadd.f32 %v8175_v38, %v17614_v50  ;;  %v8184_v2 = vld [vmem:[#allocation2 + $0xb0] sm:$0xff]  ;;  %v16536_v43 = vadd.f32 %v8185_v25, %v17631_v34  ;;  %v17633_v38 = vld [vmem:[#allocation24_spill] sm:$0xff] }
0x14c6   :  { %8156 = vst.msk [vmem:[#allocation2 + $0xd0] sm:$0xff] %vm3521_vm3, %v8087_v58  ;;  %v16519_v52 = vadd.f32 %v8184_v2, %v17625_v14 }
0x14c7   :  { %17615 = vst [vmem:[#allocation38_spill] sm:$0xff] %v16484_v32  ;;  %v8269_v5 = vsel %vm73_vm0, %v16484_v32, 0.0  ;;  %17632 = vst [vmem:[#allocation39_spill] sm:$0xff] %v16536_v43  ;;  %v8299_v50 = vsel %vm73_vm0, %v16536_v43, 0.0 }
0x14c8   :  { %8270 = vadd.xlane.f32.xlu1 %v8269_v5  ;;  %v8085_v60 = vpop.permute.xlu0 %8084  ;;  %17626 = vst [vmem:[#allocation35_spill] sm:$0xff] %v16519_v52  ;;  %v8183_v24 = vld [vmem:[#allocation2 + $0xa8] sm:$0xff]  ;;  %v8296_v10 = vsel %vm73_vm0, %v16519_v52, 0.0 }
0x14c9   :  { %8155 = vst.msk [vmem:[#allocation2 + $0xc8] sm:$0xff] %vm3521_vm3, %v8085_v60  ;;  %v8083_v7 = vpop.permute.xlu1 %8082  ;;  %8279 = vadd.xlane.f32.xlu0 %v8278_v36  ;;  %v8182_v59 = vld [vmem:[#allocation2 + $0xa0] sm:$0xff]  ;;  %v16526_v57 = vadd.f32 %v8183_v24, %v17627_v56  ;;  %v17637_v60 = vld [vmem:[#allocation6_spill] sm:$0xff] }
0x14ca   :  { %8154 = vst.msk [vmem:[#allocation2 + $0xc0] sm:$0xff] %vm3521_vm3, %v8083_v7  ;;  %v16507_v55 = vadd.f32 %v8182_v59, %v17621_v42  ;;  %v17639_v59 = vld [vmem:[#allocation7_spill] sm:$0xff] }
0x14cb   :  { %17628 = vst [vmem:[#allocation42_spill] sm:$0xff] %v16526_v57  ;;  %v8293_v17 = vsel %vm73_vm0, %v16526_v57, 0.0 }
0x14cc   :  { %8276 = vadd.xlane.f32.xlu1 %v8275_v6  ;;  %v8097_v51 = vpop.permute.xlu0 %8096  ;;  %17622 = vst [vmem:[#allocation46_spill] sm:$0xff] %v16507_v55  ;;  %v8290_v0 = vsel %vm73_vm0, %v16507_v55, 0.0  ;;  %v8189_v20 = vld [vmem:[#allocation2 + $0xd8] sm:$0xff] }
0x14cd   :  { %8161 = vst.msk [vmem:[#allocation2 + $0xf8] sm:$0xff] %vm3521_vm3, %v8097_v51  ;;  %v8095_v35 = vpop.permute.xlu1 %8094  ;;  %8285 = vadd.xlane.f32.xlu0 %v8284_v29  ;;  %v8188_v47 = vld [vmem:[#allocation2 + $0xd0] sm:$0xff]  ;;  %v16556_v6 = vadd.f32 %v8189_v20, %v17639_v59  ;;  %v17641_v51 = vld [vmem:[#allocation8_spill] sm:$0xff] }
0x14ce   :  { %8160 = vst.msk [vmem:[#allocation2 + $0xf0] sm:$0xff] %vm3521_vm3, %v8095_v35  ;;  %v16541_v4 = vadd.f32 %v8188_v47, %v17633_v38  ;;  %v17643_v35 = vld [vmem:[#allocation4_spill] sm:$0xff] }
0x14cf   :  { %17640 = vst [vmem:[#allocation50_spill] sm:$0xff] %v16556_v6  ;;  %v8311_v39 = vsel %vm73_vm0, %v16556_v6, 0.0 }
0x14d0   :  { %8282 = vadd.xlane.f32.xlu1 %v8281_v63  ;;  %v8093_v46 = vpop.permute.xlu0 %8092  ;;  %17634 = vst [vmem:[#allocation44_spill] sm:$0xff] %v16541_v4  ;;  %v8187_v3 = vld [vmem:[#allocation2 + $0xc8] sm:$0xff]  ;;  %v8308_v41 = vsel %vm73_vm0, %v16541_v4, 0.0 }
0x14d1   :  { %8159 = vst.msk [vmem:[#allocation2 + $0xe8] sm:$0xff] %vm3521_vm3, %v8093_v46  ;;  %v8091_v30 = vpop.permute.xlu1 %8090  ;;  %8291 = vadd.xlane.f32.xlu0 %v8290_v0  ;;  %v8186_v18 = vld [vmem:[#allocation2 + $0xc0] sm:$0xff]  ;;  %v16546_v5 = vadd.f32 %v8187_v3, %v17635_v1  ;;  %v17645_v0 = vld [vmem:[#allocation5_spill] sm:$0xff] }
0x14d2   :  { %8158 = vst.msk [vmem:[#allocation2 + $0xe0] sm:$0xff] %vm3521_vm3, %v8091_v30  ;;  %v16531_v8 = vadd.f32 %v8186_v18, %v17629_v62 }
0x14d3   :  { %17636 = vst [vmem:[#allocation47_spill] sm:$0xff] %v16546_v5  ;;  %v8305_v7 = vsel %vm73_vm0, %v16546_v5, 0.0 }
0x14d4   :  { %8288 = vadd.xlane.f32.xlu1 %v8287_v22  ;;  %17630 = vst [vmem:[#allocation45_spill] sm:$0xff] %v16531_v8  ;;  %v8302_v44 = vsel %vm73_vm0, %v16531_v8, 0.0  ;;  %v8193_v21 = vld [vmem:[#allocation2 + $0xf8] sm:$0xff] }
0x14d5   :  { %8297 = vadd.xlane.f32.xlu0 %v8296_v10  ;;  %v8192_v11 = vld [vmem:[#allocation2 + $0xf0] sm:$0xff]  ;;  %v16573_v14 = vadd.f32 %v8193_v21, %v17645_v0 }
0x14d6   :  { %v16561_v29 = vadd.f32 %v8192_v11, %v17641_v51 }
0x14d7   :  { %17646 = vst [vmem:[#allocation49_spill] sm:$0xff] %v16573_v14  ;;  %v8323_v24 = vsel %vm73_vm0, %v16573_v14, 0.0 }
0x14d8   :  { %8294 = vadd.xlane.f32.xlu1 %v8293_v17  ;;  %17642 = vst [vmem:[#allocation37_spill] sm:$0xff] %v16561_v29  ;;  %v8191_v42 = vld [vmem:[#allocation2 + $0xe8] sm:$0xff]  ;;  %v8320_v63 = vsel %vm73_vm0, %v16561_v29, 0.0 }
0x14d9   :  { %8303 = vadd.xlane.f32.xlu0 %v8302_v44  ;;  %v8190_v58 = vld [vmem:[#allocation2 + $0xe0] sm:$0xff]  ;;  %v16566_v2 = vadd.f32 %v8191_v42, %v17643_v35 }
0x14da   :  { %v16551_v36 = vadd.f32 %v8190_v58, %v17637_v60 }
0x14db   :  { %17644 = vst [vmem:[#allocation48_spill] sm:$0xff] %v16566_v2  ;;  %v8317_v46 = vsel %vm73_vm0, %v16566_v2, 0.0 }
0x14dc   :  { %8300 = vadd.xlane.f32.xlu1 %v8299_v50  ;;  %17638 = vst [vmem:[#allocation36_spill] sm:$0xff] %v16551_v36  ;;  %v8314_v28 = vsel %vm73_vm0, %v16551_v36, 0.0 }
0x14dd   :  { %8309 = vadd.xlane.f32.xlu0 %v8308_v41 }
0x14e0   :  { %8306 = vadd.xlane.f32.xlu1 %v8305_v7 }
0x14e1   :  { %8315 = vadd.xlane.f32.xlu0 %v8314_v28 }
0x14e4   :  { %8312 = vadd.xlane.f32.xlu1 %v8311_v39 }
0x14e5   :  { %8321 = vadd.xlane.f32.xlu0 %v8320_v63 }
0x14e8   :  { %8318 = vadd.xlane.f32.xlu1 %v8317_v46 }
0x14ec   :  { %8324 = vadd.xlane.f32.xlu1 %v8323_v24 }
0x150a   :  { %v8235_v30 = vpop.xlane.xlu0 %8234 }
0x150b   :  { %v8327_v18 = vmul.f32 0.03125, %v8235_v30 }
0x150d   :  { %v16578_v22 = vsub.f32 %v16394_v26, %v8327_v18 }
0x150e   :  { %v8238_v56 = vpop.xlane.xlu0 %8237 }
0x150f   :  { %v8328_v10 = vmul.f32 0.03125, %v8238_v56  ;;  %v8391_v62 = vmul.f32 %v16578_v22, %v16578_v22 }
0x1510   :  { %v8232_v25 = vpop.xlane.xlu1 %8231 }
0x1511   :  { %v8326_v47 = vmul.f32 0.03125, %v8232_v25  ;;  %v8425_v17 = vsel %vm73_vm0, %v8391_v62, 0.0  ;;  %v16584_v34 = vsub.f32 %v16399_v33, %v8328_v10 }
0x1512   :  { %8426 = vadd.xlane.f32.xlu1 %v8425_v17  ;;  %v8244_v44 = vpop.xlane.xlu0 %8243 }
0x1513   :  { %v16587_v38 = vsub.f32 %v16402_v53, %v8326_v47  ;;  %v8330_v3 = vmul.f32 0.03125, %v8244_v44  ;;  %v8392_v60 = vmul.f32 %v16584_v34, %v16584_v34 }
0x1514   :  { %v8241_v58 = vpop.xlane.xlu1 %8240 }
0x1515   :  { %v8329_v50 = vmul.f32 0.03125, %v8241_v58  ;;  %v8390_v1 = vmul.f32 %v16587_v38, %v16587_v38  ;;  %v16594_v20 = vsub.f32 %v16407_v40, %v8330_v3  ;;  %v8428_v39 = vsel %vm73_vm0, %v8392_v60, 0.0  ;;  %v11122_v60 = vld [vmem:[%s17310_s7 + $0x10] sm:$0xff]  }
0x1516   :  { %v8250_v41 = vpop.xlane.xlu0 %8249  ;;  %10966 = vmatprep.subr.bf16.mxu0 %v11122_v60 }
0x1517   :  { %v16597_v11 = vsub.f32 %v16412_v15, %v8329_v50  ;;  %v8332_v7 = vmul.f32 0.03125, %v8250_v41  ;;  %v8422_v59 = vsel %vm73_vm0, %v8390_v1, 0.0  ;;  %v8394_v46 = vmul.f32 %v16594_v20, %v16594_v20  ;;  %10967 = vmatpush3.bf16.msra.mxu0 %v11122_v60 }
0x1518   :  { %8423 = vadd.xlane.f32.xlu0 %v8422_v59  ;;  %v8247_v28 = vpop.xlane.xlu1 %8246 }
0x1519   :  { %v8331_v51 = vmul.f32 0.03125, %v8247_v28  ;;  %v8393_v42 = vmul.f32 %v16597_v11, %v16597_v11  ;;  %v16604_v35 = vsub.f32 %v16417_v19, %v8332_v7  ;;  %v8434_v10 = vsel %vm73_vm0, %v8394_v46, 0.0  ;;  %v11123_v7 = vld [vmem:[%s17310_s7 + $0x18] sm:$0xff]  }
0x151a   :  { %10968 = vmatprep.subr.bf16.mxu0 %v11123_v7 }
0x151b   :  { %v16607_v63 = vsub.f32 %v16422_v45, %v8331_v51  ;;  %v8431_v21 = vsel %vm73_vm0, %v8393_v42, 0.0  ;;  %v8396_v62 = vmul.f32 %v16604_v35, %v16604_v35  ;;  %10969 = vmatpush3.bf16.msra.mxu0 %v11123_v7 }
0x151c   :  { %v8253_v0 = vpop.xlane.xlu1 %8252  ;;  %8432 = vadd.xlane.f32.xlu1 %v8431_v21  ;;  %8429 = vadd.xlane.f32.xlu0 %v8428_v39 }
0x151d   :  { %v8333_v24 = vmul.f32 0.03125, %v8253_v0  ;;  %v8395_v30 = vmul.f32 %v16607_v63, %v16607_v63  ;;  %v8440_v17 = vsel %vm73_vm0, %v8396_v62, 0.0 }
0x151f   :  { %v16615_v18 = vsub.f32 %v16429_v16, %v8333_v24  ;;  %v8437_v56 = vsel %vm73_vm0, %v8395_v30, 0.0 }
0x1520   :  { %8438 = vadd.xlane.f32.xlu1 %v8437_v56  ;;  %8435 = vadd.xlane.f32.xlu0 %v8434_v10 }
0x1521   :  { %v8397_v25 = vmul.f32 %v16615_v18, %v16615_v18 }
0x1523   :  { %v8443_v47 = vsel %vm73_vm0, %v8397_v25, 0.0 }
0x1524   :  { %8444 = vadd.xlane.f32.xlu1 %v8443_v47  ;;  %8441 = vadd.xlane.f32.xlu0 %v8440_v17 }
0x153e   :  { %v8256_v44 = vpop.xlane.xlu0 %8255 }
0x153f   :  { %v8334_v3 = vmul.f32 0.03125, %v8256_v44 }
0x1540   :  { %v8259_v58 = vpop.xlane.xlu1 %8258 }
0x1541   :  { %v16626_v50 = vsub.f32 %v16440_v61, %v8334_v3  ;;  %v8335_v1 = vmul.f32 0.03125, %v8259_v58 }
0x1542   :  { %v8262_v41 = vpop.xlane.xlu0 %8261 }
0x1543   :  { %v16635_v59 = vsub.f32 %v16446_v54, %v8335_v1  ;;  %v8336_v28 = vmul.f32 0.03125, %v8262_v41  ;;  %v8398_v51 = vmul.f32 %v16626_v50, %v16626_v50 }
0x1544   :  { %v8265_v42 = vpop.xlane.xlu1 %8264 }
0x1545   :  { %v16640_v39 = vsub.f32 %v16449_v49, %v8336_v28  ;;  %v8337_v21 = vmul.f32 0.03125, %v8265_v42  ;;  %v8446_v46 = vsel %vm73_vm0, %v8398_v51, 0.0  ;;  %v8399_v0 = vmul.f32 %v16635_v59, %v16635_v59 }
0x1546   :  { %8447 = vadd.xlane.f32.xlu0 %v8446_v46 }
0x1547   :  { %v16646_v24 = vsub.f32 %v16455_v13, %v8337_v21  ;;  %v8449_v30 = vsel %vm73_vm0, %v8399_v0, 0.0  ;;  %v8400_v56 = vmul.f32 %v16640_v39, %v16640_v39 }
0x1548   :  { %8450 = vadd.xlane.f32.xlu1 %v8449_v30 }
0x1549   :  { %v8452_v10 = vsel %vm73_vm0, %v8400_v56, 0.0  ;;  %v8401_v62 = vmul.f32 %v16646_v24, %v16646_v24 }
0x154a   :  { %8453 = vadd.xlane.f32.xlu0 %v8452_v10 }
0x154b   :  { %v8455_v25 = vsel %vm73_vm0, %v8401_v62, 0.0 }
0x154c   :  { %8456 = vadd.xlane.f32.xlu1 %v8455_v25 }
0x154e   :  { %v8268_v47 = vpop.xlane.xlu0 %8267 }
0x154f   :  { %v8338_v17 = vmul.f32 0.03125, %v8268_v47 }
0x1551   :  { %v16656_v44 = vsub.f32 %v16468_v12, %v8338_v17 }
0x1552   :  { %v8274_v3 = vpop.xlane.xlu0 %8273 }
0x1553   :  { %v8340_v58 = vmul.f32 0.03125, %v8274_v3  ;;  %v8402_v1 = vmul.f32 %v16656_v44, %v16656_v44 }
0x1555   :  { %v16661_v41 = vsub.f32 %v16473_v48, %v8340_v58  ;;  %v8271_v60 = vpop.xlane.xlu1 %8270  ;;  %v8458_v7 = vsel %vm73_vm0, %v8402_v1, 0.0 }
0x1556   :  { %v8339_v28 = vmul.f32 0.03125, %v8271_v60  ;;  %8459 = vadd.xlane.f32.xlu0 %v8458_v7  ;;  %v8280_v51 = vpop.xlane.xlu0 %8279 }
0x1557   :  { %v8342_v42 = vmul.f32 0.03125, %v8280_v51  ;;  %v8404_v21 = vmul.f32 %v16661_v41, %v16661_v41 }
0x1558   :  { %v16667_v46 = vsub.f32 %v16484_v32, %v8339_v28 }
0x1559   :  { %v16670_v0 = vsub.f32 %v16480_v23, %v8342_v42  ;;  %v8277_v30 = vpop.xlane.xlu1 %8276  ;;  %v8464_v56 = vsel %vm73_vm0, %v8404_v21, 0.0 }
0x155a   :  { %v8341_v10 = vmul.f32 0.03125, %v8277_v30  ;;  %8465 = vadd.xlane.f32.xlu0 %v8464_v56  ;;  %v8286_v62 = vpop.xlane.xlu0 %8285  ;;  %v8403_v25 = vmul.f32 %v16667_v46, %v16667_v46 }
0x155b   :  { %v8344_v47 = vmul.f32 0.03125, %v8286_v62  ;;  %v8406_v17 = vmul.f32 %v16670_v0, %v16670_v0 }
0x155c   :  { %v16678_v3 = vsub.f32 %v16490_v9, %v8341_v10  ;;  %v8461_v58 = vsel %vm73_vm0, %v8403_v25, 0.0 }
0x155d   :  { %v16682_v1 = vsub.f32 %v16495_v27, %v8344_v47  ;;  %v8283_v60 = vpop.xlane.xlu1 %8282  ;;  %8462 = vadd.xlane.f32.xlu1 %v8461_v58  ;;  %v8470_v7 = vsel %vm73_vm0, %v8406_v17, 0.0 }
0x155e   :  { %v8343_v28 = vmul.f32 0.03125, %v8283_v60  ;;  %8471 = vadd.xlane.f32.xlu0 %v8470_v7  ;;  %v8292_v51 = vpop.xlane.xlu0 %8291  ;;  %v8405_v42 = vmul.f32 %v16678_v3, %v16678_v3 }
0x155f   :  { %v8346_v21 = vmul.f32 0.03125, %v8292_v51  ;;  %v8408_v30 = vmul.f32 %v16682_v1, %v16682_v1 }
0x1560   :  { %v16690_v56 = vsub.f32 %v16502_v37, %v8343_v28  ;;  %v8467_v10 = vsel %vm73_vm0, %v8405_v42, 0.0 }
0x1561   :  { %v16694_v62 = vsub.f32 %v16507_v55, %v8346_v21  ;;  %v8289_v25 = vpop.xlane.xlu1 %8288  ;;  %8468 = vadd.xlane.f32.xlu1 %v8467_v10  ;;  %v8476_v47 = vsel %vm73_vm0, %v8408_v30, 0.0 }
0x1562   :  { %v8345_v17 = vmul.f32 0.03125, %v8289_v25  ;;  %8477 = vadd.xlane.f32.xlu0 %v8476_v47  ;;  %v8298_v58 = vpop.xlane.xlu0 %8297  ;;  %v8407_v60 = vmul.f32 %v16690_v56, %v16690_v56 }
0x1563   :  { %v8348_v7 = vmul.f32 0.03125, %v8298_v58  ;;  %v8410_v28 = vmul.f32 %v16694_v62, %v16694_v62 }
0x1564   :  { %v16702_v51 = vsub.f32 %v16514_v31, %v8345_v17  ;;  %v8473_v42 = vsel %vm73_vm0, %v8407_v60, 0.0 }
0x1565   :  { %v16706_v21 = vsub.f32 %v16519_v52, %v8348_v7  ;;  %v8295_v10 = vpop.xlane.xlu1 %8294  ;;  %8474 = vadd.xlane.f32.xlu1 %v8473_v42  ;;  %v8482_v30 = vsel %vm73_vm0, %v8410_v28, 0.0 }
0x1566   :  { %v8347_v25 = vmul.f32 0.03125, %v8295_v10  ;;  %8483 = vadd.xlane.f32.xlu0 %v8482_v30  ;;  %v8304_v47 = vpop.xlane.xlu0 %8303  ;;  %v8409_v58 = vmul.f32 %v16702_v51, %v16702_v51 }
0x1567   :  { %v8350_v55 = vmul.f32 0.03125, %v8304_v47  ;;  %v8412_v17 = vmul.f32 %v16706_v21, %v16706_v21 }
0x1568   :  { %v16714_v37 = vsub.f32 %v16526_v57, %v8347_v25  ;;  %v8479_v60 = vsel %vm73_vm0, %v8409_v58, 0.0 }
0x1569   :  { %v16718_v7 = vsub.f32 %v16531_v8, %v8350_v55  ;;  %v8301_v42 = vpop.xlane.xlu1 %8300  ;;  %8480 = vadd.xlane.f32.xlu1 %v8479_v60  ;;  %v8488_v28 = vsel %vm73_vm0, %v8412_v17, 0.0 }
0x156a   :  { %v8349_v10 = vmul.f32 0.03125, %v8301_v42  ;;  %8489 = vadd.xlane.f32.xlu0 %v8488_v28  ;;  %v8310_v30 = vpop.xlane.xlu0 %8309  ;;  %v8411_v47 = vmul.f32 %v16714_v37, %v16714_v37 }
0x156b   :  { %v8352_v52 = vmul.f32 0.03125, %v8310_v30  ;;  %v8414_v25 = vmul.f32 %v16718_v7, %v16718_v7 }
0x156c   :  { %v16726_v57 = vsub.f32 %v16536_v43, %v8349_v10  ;;  %v8485_v55 = vsel %vm73_vm0, %v8411_v47, 0.0 }
0x156d   :  { %v16730_v58 = vsub.f32 %v16541_v4, %v8352_v52  ;;  %v8307_v60 = vpop.xlane.xlu1 %8306  ;;  %8486 = vadd.xlane.f32.xlu1 %v8485_v55  ;;  %v8494_v17 = vsel %vm73_vm0, %v8414_v25, 0.0 }
0x156e   :  { %v8351_v42 = vmul.f32 0.03125, %v8307_v60  ;;  %8495 = vadd.xlane.f32.xlu0 %v8494_v17  ;;  %v8316_v28 = vpop.xlane.xlu0 %8315  ;;  %v8413_v30 = vmul.f32 %v16726_v57, %v16726_v57 }
0x156f   :  { %v8354_v8 = vmul.f32 0.03125, %v8316_v28  ;;  %v8416_v10 = vmul.f32 %v16730_v58, %v16730_v58 }
0x1570   :  { %v16738_v43 = vsub.f32 %v16546_v5, %v8351_v42  ;;  %v8491_v52 = vsel %vm73_vm0, %v8413_v30, 0.0 }
0x1571   :  { %v16742_v47 = vsub.f32 %v16551_v36, %v8354_v8  ;;  %v8313_v55 = vpop.xlane.xlu1 %8312  ;;  %8492 = vadd.xlane.f32.xlu1 %v8491_v52  ;;  %v8500_v25 = vsel %vm73_vm0, %v8416_v10, 0.0 }
0x1572   :  { %v8353_v60 = vmul.f32 0.03125, %v8313_v55  ;;  %8501 = vadd.xlane.f32.xlu0 %v8500_v25  ;;  %v8322_v17 = vpop.xlane.xlu0 %8321  ;;  %v8415_v28 = vmul.f32 %v16738_v43, %v16738_v43 }
0x1573   :  { %v8356_v4 = vmul.f32 0.03125, %v8322_v17  ;;  %v8418_v42 = vmul.f32 %v16742_v47, %v16742_v47 }
0x1574   :  { %v16750_v5 = vsub.f32 %v16556_v6, %v8353_v60  ;;  %v8497_v8 = vsel %vm73_vm0, %v8415_v28, 0.0 }
0x1575   :  { %v16754_v30 = vsub.f32 %v16561_v29, %v8356_v4  ;;  %v8319_v52 = vpop.xlane.xlu1 %8318  ;;  %8498 = vadd.xlane.f32.xlu1 %v8497_v8  ;;  %v8506_v10 = vsel %vm73_vm0, %v8418_v42, 0.0 }
0x1576   :  { %v8355_v55 = vmul.f32 0.03125, %v8319_v52  ;;  %8507 = vadd.xlane.f32.xlu0 %v8506_v10  ;;  %v8417_v25 = vmul.f32 %v16750_v5, %v16750_v5 }
0x1577   :  { %v8420_v17 = vmul.f32 %v16754_v30, %v16754_v30 }
0x1578   :  { %v16762_v60 = vsub.f32 %v16566_v2, %v8355_v55  ;;  %v8503_v28 = vsel %vm73_vm0, %v8417_v25, 0.0 }
0x1579   :  { %v8325_v36 = vpop.xlane.xlu1 %8324  ;;  %8504 = vadd.xlane.f32.xlu1 %v8503_v28  ;;  %v8512_v4 = vsel %vm73_vm0, %v8420_v17, 0.0 }
0x157a   :  { %v8357_v8 = vmul.f32 0.03125, %v8325_v36  ;;  %8513 = vadd.xlane.f32.xlu0 %v8512_v4  ;;  %v8419_v42 = vmul.f32 %v16762_v60, %v16762_v60 }
0x157c   :  { %v16769_v52 = vsub.f32 %v16573_v14, %v8357_v8  ;;  %v8509_v10 = vsel %vm73_vm0, %v8419_v42, 0.0 }
0x157d   :  { %8510 = vadd.xlane.f32.xlu1 %v8509_v10 }
0x157e   :  { %v8421_v55 = vmul.f32 %v16769_v52, %v16769_v52 }
0x1580   :  { %v8515_v25 = vsel %vm73_vm0, %v8421_v55, 0.0 }
0x1581   :  { %8516 = vadd.xlane.f32.xlu1 %v8515_v25 }
0x159f   :  { %v8427_v28 = vpop.xlane.xlu1 %8426 }
0x15a0   :  { %v8519_v2 = vmul.f32 0.03125, %v8427_v28 }
0x15a2   :  { %v8551_v17 = vadd.f32 1e-05, %v8519_v2 }
0x15a4   :  { %11896 = vrsqrt.f32 %v8551_v17 }
0x15a5   :  { %v8424_v36 = vpop.xlane.xlu0 %8423 }
0x15a6   :  { %v8518_v4 = vmul.f32 0.03125, %v8424_v36 }
0x15a8   :  { %v8550_v29 = vadd.f32 1e-05, %v8518_v4 }
0x15a9   :  { %v8433_v6 = vpop.xlane.xlu1 %8432  ;;  %v8430_v31 = vpop.xlane.xlu0 %8429 }
0x15aa   :  { %11898 = vrsqrt.f32 %v8550_v29  ;;  %v8521_v8 = vmul.f32 0.03125, %v8433_v6  ;;  %v8520_v14 = vmul.f32 0.03125, %v8430_v31  ;;  %v16779_v6 = vld [vmem:[%s17311_s5 + $0x1] ss:$0 sm:$0xff] }
0x15ac   :  { %v8553_v42 = vadd.f32 1e-05, %v8521_v8  ;;  %v8552_v10 = vadd.f32 1e-05, %v8520_v14 }
0x15ad   :  { %v8439_v23 = vpop.xlane.xlu1 %8438  ;;  %v8436_v27 = vpop.xlane.xlu0 %8435 }
0x15ae   :  { %v11897_v32 = vpop.eup %11896  ;;  %11900 = vrsqrt.f32 %v8553_v42  ;;  %v8523_v55 = vmul.f32 0.03125, %v8439_v23  ;;  %v8522_v25 = vmul.f32 0.03125, %v8436_v27 }
0x15af   :  { %11902 = vrsqrt.f32 %v8552_v10  ;;  %v8615_v17 = vmul.f32 %v11897_v32, %v16578_v22  ;;  %v16786_v32 = vld [vmem:[%s17312_s6 + $0x1] ss:$0 sm:$0xff] }
0x15b0   :  { %v8555_v28 = vadd.f32 1e-05, %v8523_v55  ;;  %v8554_v2 = vadd.f32 1e-05, %v8522_v25 }
0x15b1   :  { %v8445_v36 = vpop.xlane.xlu1 %8444  ;;  %v8442_v4 = vpop.xlane.xlu0 %8441  ;;  %v8653_v42 = vmul.f32 %v16779_v6, %v8615_v17 }
0x15b2   :  { %11904 = vrsqrt.f32 %v8555_v28  ;;  %v8525_v31 = vmul.f32 0.03125, %v8445_v36  ;;  %v8524_v29 = vmul.f32 0.03125, %v8442_v4 }
0x15b3   :  { %11906 = vrsqrt.f32 %v8554_v2  ;;  %v8691_v2 = vadd.f32 %v16786_v32, %v8653_v42 }
0x15b4   :  { %v11899_v14 = vpop.eup %11898  ;;  %v8557_v8 = vadd.f32 1e-05, %v8525_v31  ;;  %v8556_v23 = vadd.f32 1e-05, %v8524_v29 }
0x15b5   :  { %v8614_v27 = vmul.f32 %v11899_v14, %v16587_v38 }
0x15b6   :  { %11908 = vrsqrt.f32 %v8557_v8 }
0x15b7   :  { %11910 = vrsqrt.f32 %v8556_v23  ;;  %v8652_v22 = vmul.f32 %v16779_v6, %v8614_v27 }
0x15b8   :  { %v11901_v10 = vpop.eup %11900 }
0x15b9   :  { %v11903_v55 = vpop.eup %11902  ;;  %v8617_v25 = vmul.f32 %v11901_v10, %v16597_v11  ;;  %v8690_v28 = vadd.f32 %v16786_v32, %v8652_v22 }
0x15ba   :  { %v8616_v38 = vmul.f32 %v11903_v55, %v16584_v34 }
0x15bb   :  { %v8655_v17 = vmul.f32 %v16779_v6, %v8617_v25  ;;  %v8722_v36 = vpack.c.bf16 %v8691_v2, %v8690_v28 }
0x15bc   :  { %v11905_v4 = vpop.eup %11904  ;;  %v8654_v31 = vmul.f32 %v16779_v6, %v8616_v38 }
0x15bd   :  { %v11907_v29 = vpop.eup %11906  ;;  %v8693_v14 = vadd.f32 %v16786_v32, %v8655_v17  ;;  %v8619_v8 = vmul.f32 %v11905_v4, %v16607_v63  ;;  %10970 = vmatprep.mubr.msk.bf16.mxu0 %vm73_vm0, %v8722_v36 }
0x15be   :  { %v8692_v11 = vadd.f32 %v16786_v32, %v8654_v31  ;;  %v8618_v23 = vmul.f32 %v11907_v29, %v16594_v20 }
0x15bf   :  { %v8657_v27 = vmul.f32 %v16779_v6, %v8619_v8 }
0x15c0   :  { %v11909_v34 = vpop.eup %11908  ;;  %v8723_v42 = vpack.c.bf16 %v8693_v14, %v8692_v11  ;;  %v8656_v22 = vmul.f32 %v16779_v6, %v8618_v23 }
0x15c1   :  { %v11911_v10 = vpop.eup %11910  ;;  %v8621_v55 = vmul.f32 %v11909_v34, %v16615_v18  ;;  %v8695_v25 = vadd.f32 %v16786_v32, %v8657_v27 }
0x15c2   :  { %v8620_v28 = vmul.f32 %v11911_v10, %v16604_v35  ;;  %10971 = vmatmul.mubr.msk.bf16.vlgmr.msra.gmra.mrb[216].mxu0 %vm73_vm0, %v8723_v42  ;;  %v8694_v63 = vadd.f32 %v16786_v32, %v8656_v22 }
0x15c3   :  { %v8659_v2 = vmul.f32 %v16779_v6, %v8621_v55 }
0x15c4   :  { %v8724_v20 = vpack.c.bf16 %v8695_v25, %v8694_v63  ;;  %v8658_v38 = vmul.f32 %v16779_v6, %v8620_v28 }
0x15c5   :  { %v8697_v17 = vadd.f32 %v16786_v32, %v8659_v2 }
0x15c6   :  { %10974 = vmatprep.mubr.msk.bf16.mxu0 %vm73_vm0, %v8724_v20  ;;  %v8696_v36 = vadd.f32 %v16786_v32, %v8658_v38 }
0x15c8   :  { %v8725_v18 = vpack.c.bf16 %v8697_v17, %v8696_v36 }
0x15ca   :  { %10975 = vmatmul.mubr.msk.bf16.gmra.mrb[220].mxu0 %vm73_vm0, %v8725_v18 }
0x15d3   :  { %v8448_v4 = vpop.xlane.xlu0 %8447 }
0x15d4   :  { %v8526_v35 = vmul.f32 0.03125, %v8448_v4 }
0x15d5   :  { %v8451_v31 = vpop.xlane.xlu1 %8450 }
0x15d6   :  { %v8558_v29 = vadd.f32 1e-05, %v8526_v35  ;;  %v8527_v14 = vmul.f32 0.03125, %v8451_v31 }
0x15d7   :  { %v8454_v8 = vpop.xlane.xlu0 %8453 }
0x15d8   :  { %11912 = vrsqrt.f32 %v8558_v29  ;;  %v8559_v11 = vadd.f32 1e-05, %v8527_v14  ;;  %v8528_v23 = vmul.f32 0.03125, %v8454_v8 }
0x15d9   :  { %v8457_v27 = vpop.xlane.xlu1 %8456 }
0x15da   :  { %11914 = vrsqrt.f32 %v8559_v11  ;;  %v8560_v34 = vadd.f32 1e-05, %v8528_v23  ;;  %v8529_v42 = vmul.f32 0.03125, %v8457_v27 }
0x15dc   :  { %11916 = vrsqrt.f32 %v8560_v34  ;;  %v8561_v22 = vadd.f32 1e-05, %v8529_v42 }
0x15de   :  { %11918 = vrsqrt.f32 %v8561_v22 }
0x15e2   :  { %v11913_v10 = vpop.eup %11912 }
0x15e3   :  { %v8622_v55 = vmul.f32 %v11913_v10, %v16626_v50  ;;  %v8460_v25 = vpop.xlane.xlu0 %8459 }
0x15e4   :  { %v11915_v28 = vpop.eup %11914  ;;  %v8530_v63 = vmul.f32 0.03125, %v8460_v25 }
0x15e5   :  { %v8623_v2 = vmul.f32 %v11915_v28, %v16635_v59  ;;  %v8660_v20 = vmul.f32 %v16779_v6, %v8622_v55 }
0x15e6   :  { %v11917_v38 = vpop.eup %11916  ;;  %v8562_v17 = vadd.f32 1e-05, %v8530_v63 }
0x15e7   :  { %v8624_v36 = vmul.f32 %v11917_v38, %v16640_v39  ;;  %v8466_v18 = vpop.xlane.xlu0 %8465  ;;  %v8661_v4 = vmul.f32 %v16779_v6, %v8623_v2  ;;  %v8698_v50 = vadd.f32 %v16786_v32, %v8660_v20 }
0x15e8   :  { %v11919_v35 = vpop.eup %11918  ;;  %11920 = vrsqrt.f32 %v8562_v17  ;;  %v8532_v31 = vmul.f32 0.03125, %v8466_v18 }
0x15e9   :  { %v8625_v29 = vmul.f32 %v11919_v35, %v16646_v24  ;;  %v8699_v14 = vadd.f32 %v16786_v32, %v8661_v4  ;;  %v8662_v59 = vmul.f32 %v16779_v6, %v8624_v36 }
0x15ea   :  { %v8564_v8 = vadd.f32 1e-05, %v8532_v31  ;;  %v8463_v11 = vpop.xlane.xlu1 %8462 }
0x15eb   :  { %v8531_v23 = vmul.f32 0.03125, %v8463_v11  ;;  %v8472_v27 = vpop.xlane.xlu0 %8471  ;;  %v8726_v34 = vpack.c.bf16 %v8699_v14, %v8698_v50  ;;  %v8663_v39 = vmul.f32 %v16779_v6, %v8625_v29  ;;  %v8700_v24 = vadd.f32 %v16786_v32, %v8662_v59 }
0x15ec   :  { %11922 = vrsqrt.f32 %v8564_v8  ;;  %v8534_v42 = vmul.f32 0.03125, %v8472_v27 }
0x15ed   :  { %v8563_v22 = vadd.f32 1e-05, %v8531_v23  ;;  %10978 = vmatprep.mubr.msk.bf16.mxu0 %vm73_vm0, %v8726_v34  ;;  %v8701_v10 = vadd.f32 %v16786_v32, %v8663_v39 }
0x15ee   :  { %v8566_v55 = vadd.f32 1e-05, %v8534_v42  ;;  %v8469_v25 = vpop.xlane.xlu1 %8468 }
0x15ef   :  { %11924 = vrsqrt.f32 %v8563_v22  ;;  %v8533_v28 = vmul.f32 0.03125, %v8469_v25  ;;  %v8478_v63 = vpop.xlane.xlu0 %8477  ;;  %v8727_v2 = vpack.c.bf16 %v8701_v10, %v8700_v24 }
0x15f0   :  { %v8536_v20 = vmul.f32 0.03125, %v8478_v63  ;;  %11926 = vrsqrt.f32 %v8566_v55 }
0x15f1   :  { %v8565_v38 = vadd.f32 1e-05, %v8533_v28  ;;  %10979 = vmatmul.mubr.msk.bf16.gmra.mrb[224].mxu0 %vm73_vm0, %v8727_v2 }
0x15f2   :  { %v11921_v17 = vpop.eup %11920  ;;  %v8568_v36 = vadd.f32 1e-05, %v8536_v20  ;;  %v8475_v18 = vpop.xlane.xlu1 %8474 }
0x15f3   :  { %11928 = vrsqrt.f32 %v8565_v38  ;;  %v8535_v4 = vmul.f32 0.03125, %v8475_v18  ;;  %v8484_v35 = vpop.xlane.xlu0 %8483  ;;  %v8626_v29 = vmul.f32 %v11921_v17, %v16656_v44 }
0x15f4   :  { %11930 = vrsqrt.f32 %v8568_v36  ;;  %v8538_v31 = vmul.f32 0.03125, %v8484_v35 }
0x15f5   :  { %v8567_v50 = vadd.f32 1e-05, %v8535_v4  ;;  %v8664_v22 = vmul.f32 %v16779_v6, %v8626_v29 }
0x15f6   :  { %v11923_v14 = vpop.eup %11922  ;;  %v8570_v59 = vadd.f32 1e-05, %v8538_v31  ;;  %v8481_v8 = vpop.xlane.xlu1 %8480 }
0x15f7   :  { %11932 = vrsqrt.f32 %v8567_v50  ;;  %v8537_v11 = vmul.f32 0.03125, %v8481_v8  ;;  %v8490_v23 = vpop.xlane.xlu0 %8489  ;;  %v8628_v39 = vmul.f32 %v11923_v14, %v16661_v41  ;;  %v8702_v17 = vadd.f32 %v16786_v32, %v8664_v22 }
0x15f8   :  { %11934 = vrsqrt.f32 %v8570_v59  ;;  %v8540_v27 = vmul.f32 0.03125, %v8490_v23 }
0x15f9   :  { %v11925_v34 = vpop.eup %11924  ;;  %v8569_v42 = vadd.f32 1e-05, %v8537_v11  ;;  %v8666_v41 = vmul.f32 %v16779_v6, %v8628_v39 }
0x15fa   :  { %v8627_v24 = vmul.f32 %v11925_v34, %v16667_v46  ;;  %v8572_v10 = vadd.f32 1e-05, %v8540_v27  ;;  %v8487_v55 = vpop.xlane.xlu1 %8486  ;;  %v11927_v44 = vpop.eup %11926 }
0x15fb   :  { %11936 = vrsqrt.f32 %v8569_v42  ;;  %v8539_v25 = vmul.f32 0.03125, %v8487_v55  ;;  %v8496_v28 = vpop.xlane.xlu0 %8495  ;;  %v8630_v18 = vmul.f32 %v11927_v44, %v16670_v0  ;;  %v8704_v0 = vadd.f32 %v16786_v32, %v8666_v41 }
0x15fc   :  { %v8542_v63 = vmul.f32 0.03125, %v8496_v28  ;;  %v8665_v2 = vmul.f32 %v16779_v6, %v8627_v24  ;;  %11938 = vrsqrt.f32 %v8572_v10 }
0x15fd   :  { %v11929_v20 = vpop.eup %11928  ;;  %v8571_v38 = vadd.f32 1e-05, %v8539_v25  ;;  %v8668_v24 = vmul.f32 %v16779_v6, %v8630_v18 }
0x15fe   :  { %v11931_v36 = vpop.eup %11930  ;;  %v8629_v46 = vmul.f32 %v11929_v20, %v16678_v3  ;;  %v8574_v4 = vadd.f32 1e-05, %v8542_v63  ;;  %v8493_v35 = vpop.xlane.xlu1 %8492  ;;  %v8703_v31 = vadd.f32 %v16786_v32, %v8665_v2 }
0x15ff   :  { %11940 = vrsqrt.f32 %v8571_v38  ;;  %v8541_v29 = vmul.f32 0.03125, %v8493_v35  ;;  %v8502_v50 = vpop.xlane.xlu0 %8501  ;;  %v8632_v23 = vmul.f32 %v11931_v36, %v16682_v1  ;;  %v8706_v41 = vadd.f32 %v16786_v32, %v8668_v24 }
0x1600   :  { %v8544_v14 = vmul.f32 0.03125, %v8502_v50  ;;  %v8728_v59 = vpack.c.bf16 %v8703_v31, %v8702_v17  ;;  %v8667_v8 = vmul.f32 %v16779_v6, %v8629_v46  ;;  %11942 = vrsqrt.f32 %v8574_v4 }
0x1601   :  { %v11933_v11 = vpop.eup %11932  ;;  %v8573_v27 = vadd.f32 1e-05, %v8541_v29  ;;  %v8670_v2 = vmul.f32 %v16779_v6, %v8632_v23 }
0x1602   :  { %v11935_v34 = vpop.eup %11934  ;;  %v8631_v3 = vmul.f32 %v11933_v11, %v16690_v56  ;;  %v8576_v39 = vadd.f32 1e-05, %v8544_v14  ;;  %v8499_v42 = vpop.xlane.xlu1 %8498  ;;  %10982 = vmatprep.mubr.msk.bf16.mxu0 %vm73_vm0, %v8728_v59  ;;  %v8705_v22 = vadd.f32 %v16786_v32, %v8667_v8 }
0x1603   :  { %11944 = vrsqrt.f32 %v8573_v27  ;;  %v8543_v10 = vmul.f32 0.03125, %v8499_v42  ;;  %v8508_v55 = vpop.xlane.xlu0 %8507  ;;  %v8634_v63 = vmul.f32 %v11935_v34, %v16694_v62 }
0x1604   :  { %11946 = vrsqrt.f32 %v8576_v39  ;;  %v8546_v1 = vmul.f32 0.03125, %v8508_v55  ;;  %v8729_v44 = vpack.c.bf16 %v8705_v22, %v8704_v0  ;;  %v8669_v25 = vmul.f32 %v16779_v6, %v8631_v3 }
0x1605   :  { %v11937_v28 = vpop.eup %11936  ;;  %v8575_v56 = vadd.f32 1e-05, %v8543_v10  ;;  %v8672_v14 = vmul.f32 %v16779_v6, %v8634_v63 }
0x1606   :  { %v8633_v20 = vmul.f32 %v11937_v28, %v16702_v51  ;;  %v8578_v38 = vadd.f32 1e-05, %v8546_v1  ;;  %v8505_v17 = vpop.xlane.xlu1 %8504  ;;  %10983 = vmatmul.mubr.msk.bf16.gmra.mrb[228].mxu0 %vm73_vm0, %v8729_v44  ;;  %v8707_v36 = vadd.f32 %v16786_v32, %v8669_v25  ;;  %v11939_v18 = vpop.eup %11938  ;;  %v8708_v51 = vadd.f32 %v16786_v32, %v8670_v2 }
0x1607   :  { %11948 = vrsqrt.f32 %v8575_v56  ;;  %v8545_v46 = vmul.f32 0.03125, %v8505_v17  ;;  %v8514_v4 = vpop.xlane.xlu0 %8513  ;;  %v8636_v59 = vmul.f32 %v11939_v18, %v16706_v21  ;;  %v8710_v24 = vadd.f32 %v16786_v32, %v8672_v14 }
0x1608   :  { %v8548_v35 = vmul.f32 0.03125, %v8514_v4  ;;  %v8730_v31 = vpack.c.bf16 %v8707_v36, %v8706_v41  ;;  %v8671_v62 = vmul.f32 %v16779_v6, %v8633_v20  ;;  %11950 = vrsqrt.f32 %v8578_v38 }
0x1609   :  { %v11941_v29 = vpop.eup %11940  ;;  %v8577_v50 = vadd.f32 1e-05, %v8545_v46  ;;  %v8674_v44 = vmul.f32 %v16779_v6, %v8636_v59 }
0x160a   :  { %v8635_v8 = vmul.f32 %v11941_v29, %v16714_v37  ;;  %v8580_v11 = vadd.f32 1e-05, %v8548_v35  ;;  %v8511_v23 = vpop.xlane.xlu1 %8510  ;;  %10986 = vmatprep.mubr.msk.bf16.mxu0 %vm73_vm0, %v8730_v31  ;;  %v8709_v27 = vadd.f32 %v16786_v32, %v8671_v62  ;;  %v11943_v0 = vpop.eup %11942 }
0x160b   :  { %11952 = vrsqrt.f32 %v8577_v50  ;;  %v8547_v34 = vmul.f32 0.03125, %v8511_v23  ;;  %v8638_v37 = vmul.f32 %v11943_v0, %v16718_v7 }
0x160c   :  { %v8731_v3 = vpack.c.bf16 %v8709_v27, %v8708_v51  ;;  %v8673_v39 = vmul.f32 %v16779_v6, %v8635_v8  ;;  %11954 = vrsqrt.f32 %v8580_v11 }
0x160d   :  { %v11945_v42 = vpop.eup %11944  ;;  %v8579_v22 = vadd.f32 1e-05, %v8547_v34  ;;  %v8676_v17 = vmul.f32 %v16779_v6, %v8638_v37  ;;  %v16912_v37 = vld [vmem:[%s17314_s8 + $0x1] ss:$0 sm:$0xff] }
0x160e   :  { %v11947_v21 = vpop.eup %11946  ;;  %v8637_v10 = vmul.f32 %v11945_v42, %v16726_v57  ;;  %v8517_v55 = vpop.xlane.xlu1 %8516  ;;  %10987 = vmatmul.mubr.msk.bf16.gmra.mrb[232].mxu0 %vm73_vm0, %v8731_v3  ;;  %v8711_v1 = vadd.f32 %v16786_v32, %v8673_v39  ;;  %v8712_v57 = vadd.f32 %v16786_v32, %v8674_v44 }
0x160f   :  { %11956 = vrsqrt.f32 %v8579_v22  ;;  %v8549_v25 = vmul.f32 0.03125, %v8517_v55  ;;  %v8640_v2 = vmul.f32 %v11947_v21, %v16730_v58  ;;  %v8714_v35 = vadd.f32 %v16786_v32, %v8676_v17  ;;  %v11125_v21 = vld [vmem:[%s17313_s9 + $0x28] sm:$0xff]  }
0x1610   :  { %v8732_v28 = vpack.c.bf16 %v8711_v1, %v8710_v24  ;;  %v8675_v63 = vmul.f32 %v16779_v6, %v8637_v10 }
0x1611   :  { %v11949_v56 = vpop.eup %11948  ;;  %v8581_v20 = vadd.f32 1e-05, %v8549_v25  ;;  %v8678_v4 = vmul.f32 %v16779_v6, %v8640_v2 }
0x1612   :  { %v8639_v7 = vmul.f32 %v11949_v56, %v16738_v43  ;;  %10990 = vmatprep.mubr.msk.bf16.mxu0 %vm73_vm0, %v8732_v28  ;;  %v8713_v38 = vadd.f32 %v16786_v32, %v8675_v63  ;;  %v11951_v41 = vpop.eup %11950 }
0x1613   :  { %11958 = vrsqrt.f32 %v8581_v20  ;;  %v8642_v58 = vmul.f32 %v11951_v41, %v16742_v47  ;;  %v8716_v14 = vadd.f32 %v16786_v32, %v8678_v4 }
0x1614   :  { %v8733_v36 = vpack.c.bf16 %v8713_v38, %v8712_v57  ;;  %v8677_v18 = vmul.f32 %v16779_v6, %v8639_v7 }
0x1615   :  { %v11953_v46 = vpop.eup %11952  ;;  %v8680_v47 = vmul.f32 %v16779_v6, %v8642_v58 }
0x1616   :  { %v8641_v43 = vmul.f32 %v11953_v46, %v16750_v5  ;;  %10991 = vmatmul.mubr.msk.bf16.gmra.mrb[236].mxu0 %vm73_vm0, %v8733_v36  ;;  %v8715_v31 = vadd.f32 %v16786_v32, %v8677_v18  ;;  %v11955_v62 = vpop.eup %11954 }
0x1617   :  { %v8644_v59 = vmul.f32 %v11955_v62, %v16754_v30  ;;  %v8718_v34 = vadd.f32 %v16786_v32, %v8680_v47 }
0x1618   :  { %v8734_v29 = vpack.c.bf16 %v8715_v31, %v8714_v35  ;;  %v8679_v50 = vmul.f32 %v16779_v6, %v8641_v43 }
0x1619   :  { %v11957_v51 = vpop.eup %11956 }
0x161a   :  { %v8643_v8 = vmul.f32 %v11957_v51, %v16762_v60  ;;  %10994 = vmatprep.mubr.msk.bf16.mxu0 %vm73_vm0, %v8734_v29  ;;  %v8717_v5 = vadd.f32 %v16786_v32, %v8679_v50  ;;  %v8682_v60 = vmul.f32 %v16779_v6, %v8644_v59 }
0x161c   :  { %v8735_v11 = vpack.c.bf16 %v8717_v5, %v8716_v14  ;;  %v8681_v23 = vmul.f32 %v16779_v6, %v8643_v8  ;;  %v8720_v42 = vadd.f32 %v16786_v32, %v8682_v60 }
0x161d   :  { %v11959_v27 = vpop.eup %11958 }
0x161e   :  { %v8645_v0 = vmul.f32 %v11959_v27, %v16769_v52  ;;  %10995 = vmatmul.mubr.msk.bf16.gmra.mrb[240].mxu0 %vm73_vm0, %v8735_v11  ;;  %v8719_v30 = vadd.f32 %v16786_v32, %v8681_v23  ;;  %v11124_v52 = vld [vmem:[%s17313_s9 + $0x20] sm:$0xff]  }
0x161f   :  { %11002 = vmatprep.subr.bf16.mxu1 %v11124_v52 }
0x1620   :  { %v8736_v3 = vpack.c.bf16 %v8719_v30, %v8718_v34  ;;  %v8683_v39 = vmul.f32 %v16779_v6, %v8645_v0  ;;  %11003 = vmatpush3.bf16.msra.mxu1 %v11124_v52  ;;  %v11126_v6 = vld [vmem:[%s17313_s9 + $0x30] sm:$0xff]  }
0x1621   :  { %11004 = vmatprep.subr.bf16.mxu1 %v11125_v21 }
0x1622   :  { %10998 = vmatprep.mubr.msk.bf16.mxu0 %vm73_vm0, %v8736_v3  ;;  %v8721_v22 = vadd.f32 %v16786_v32, %v8683_v39  ;;  %v11127_v32 = vld [vmem:[%s17313_s9 + $0x38] sm:$0xff]  }
0x1624   :  { %v8737_v24 = vpack.c.bf16 %v8721_v22, %v8720_v42  ;;  %11005 = vmatpush3.bf16.msra.mxu1 %v11125_v21 }
0x1625   :  { %11006 = vmatprep.subr.bf16.mxu1 %v11126_v6 }
0x1626   :  { %10999 = vmatmul.mubr.msk.bf16.gmra.mrb[244].mxu0 %vm73_vm0, %v8737_v24 }
0x1628   :  { %11007 = vmatpush3.bf16.msra.mxu1 %v11126_v6 }
0x1629   :  { %11008 = vmatprep.subr.bf16.mxu1 %v11127_v32 }
0x162c   :  { %11009 = vmatpush3.bf16.msra.mxu1 %v11127_v32 }
0x1695   :  { %v10972_v10 = vpop.f32.mrb[216].mxu0 }
0x1696   :  { %v16915_v55 = vadd.f32 %v10972_v10, %v16912_v37  ;;  %v8845_v1 = vpop.f32.mrb[217].mxu0 }
0x1697   :  { %v16918_v44 = vadd.f32 %v16912_v37, %v8845_v1  ;;  %v10973_v25 = vpop.f32.mrb[218].mxu0 }
0x1698   :  { %v9006_v28 = vmul.f32 0.044715, %v16915_v55  ;;  %v16922_v63 = vadd.f32 %v10973_v25, %v16912_v37  ;;  %v8848_v56 = vpop.f32.mrb[219].mxu0 }
0x1699   :  { %v9004_v2 = vmul.f32 0.044715, %v16918_v44  ;;  %v16926_v20 = vadd.f32 %v16912_v37, %v8848_v56 }
0x169a   :  { %v9038_v7 = vmul.f32 %v9006_v28, %v16915_v55  ;;  %v9007_v57 = vmul.f32 0.044715, %v16922_v63 }
0x169b   :  { %v9036_v38 = vmul.f32 %v9004_v2, %v16918_v44  ;;  %v9005_v17 = vmul.f32 0.044715, %v16926_v20 }
0x169c   :  { %v9070_v41 = vmul.f32 %v9038_v7, %v16915_v55  ;;  %v9039_v36 = vmul.f32 %v9007_v57, %v16922_v63 }
0x169d   :  { %v9068_v18 = vmul.f32 %v9036_v38, %v16918_v44  ;;  %v9037_v46 = vmul.f32 %v9005_v17, %v16926_v20  ;;  %v10976_v4 = vpop.f32.mrb[220].mxu0 }
0x169e   :  { %v9102_v58 = vadd.f32 %v9070_v41, %v16915_v55  ;;  %v9071_v43 = vmul.f32 %v9039_v36, %v16922_v63  ;;  %v16939_v35 = vadd.f32 %v10976_v4, %v16912_v37  ;;  %v8861_v31 = vpop.f32.mrb[221].mxu0  ;;  %v8974_v4 = vmul.f32 0.5, %v16915_v55 }
0x169f   :  { %v9100_v62 = vadd.f32 %v9068_v18, %v16918_v44  ;;  %v9069_v29 = vmul.f32 %v9037_v46, %v16926_v20  ;;  %v16944_v50 = vadd.f32 %v16912_v37, %v8861_v31  ;;  %v10977_v51 = vpop.f32.mrb[222].mxu0  ;;  %v8972_v31 = vmul.f32 0.5, %v16918_v44 }
0x16a0   :  { %v9134_v14 = vmul.f32 0.7978846, %v9102_v58  ;;  %v9103_v59 = vadd.f32 %v9071_v43, %v16922_v63  ;;  %v9010_v8 = vmul.f32 0.044715, %v16939_v35  ;;  %v8873_v5 = vadd.f32 %v10977_v51, %v16912_v37  ;;  %v8864_v47 = vpop.f32.mrb[223].mxu0 }
0x16a1   :  { %v9132_v11 = vmul.f32 0.7978846, %v9100_v62  ;;  %v9101_v23 = vadd.f32 %v9069_v29, %v16926_v20  ;;  %v9008_v27 = vmul.f32 0.044715, %v16944_v50  ;;  %v8865_v0 = vadd.f32 %v16912_v37, %v8864_v47 }
0x16a2   :  { %11960 = vtanh.f32 %v9134_v14  ;;  %v9135_v34 = vmul.f32 0.7978846, %v9103_v59  ;;  %v9042_v30 = vmul.f32 %v9010_v8, %v16939_v35  ;;  %v9011_v60 = vmul.f32 0.044715, %v8873_v5 }
0x16a3   :  { %11962 = vtanh.f32 %v9132_v11  ;;  %v9133_v3 = vmul.f32 0.7978846, %v9101_v23  ;;  %v9040_v39 = vmul.f32 %v9008_v27, %v16944_v50  ;;  %v9009_v42 = vmul.f32 0.044715, %v8865_v0 }
0x16a4   :  { %11964 = vtanh.f32 %v9135_v34  ;;  %v9074_v22 = vmul.f32 %v9042_v30, %v16939_v35  ;;  %v9043_v24 = vmul.f32 %v9011_v60, %v8873_v5  ;;  %v8975_v58 = vmul.f32 0.5, %v16922_v63 }
0x16a5   :  { %11966 = vtanh.f32 %v9133_v3  ;;  %v9072_v52 = vmul.f32 %v9040_v39, %v16944_v50  ;;  %v9041_v21 = vmul.f32 %v9009_v42, %v8865_v0  ;;  %v8973_v62 = vmul.f32 0.5, %v16926_v20 }
0x16a6   :  { %v9106_v6 = vadd.f32 %v9074_v22, %v16939_v35  ;;  %v9075_v32 = vmul.f32 %v9043_v24, %v8873_v5  ;;  %v8978_v44 = vmul.f32 0.5, %v16939_v35  ;;  %v8979_v20 = vmul.f32 0.5, %v8873_v5 }
0x16a7   :  { %v9104_v10 = vadd.f32 %v9072_v52, %v16944_v50  ;;  %v9073_v1 = vmul.f32 %v9041_v21, %v8865_v0  ;;  %v8976_v3 = vmul.f32 0.5, %v16944_v50  ;;  %v8977_v39 = vmul.f32 0.5, %v8865_v0 }
0x16a8   :  { %v9138_v25 = vmul.f32 0.7978846, %v9106_v6  ;;  %v9107_v28 = vadd.f32 %v9075_v32, %v8873_v5 }
0x16a9   :  { %v9136_v56 = vmul.f32 0.7978846, %v9104_v10  ;;  %v9105_v2 = vadd.f32 %v9073_v1, %v8865_v0 }
0x16aa   :  { %11968 = vtanh.f32 %v9138_v25  ;;  %v9139_v7 = vmul.f32 0.7978846, %v9107_v28 }
0x16ab   :  { %11970 = vtanh.f32 %v9136_v56  ;;  %v9137_v57 = vmul.f32 0.7978846, %v9105_v2 }
0x16ac   :  { %v11961_v38 = vpop.eup %11960  ;;  %11972 = vtanh.f32 %v9139_v7 }
0x16ad   :  { %v11963_v17 = vpop.eup %11962  ;;  %v9198_v41 = vadd.f32 1.0, %v11961_v38  ;;  %11974 = vtanh.f32 %v9137_v57 }
0x16ae   :  { %v11965_v36 = vpop.eup %11964  ;;  %v9196_v18 = vadd.f32 1.0, %v11963_v17 }
0x16af   :  { %v11967_v46 = vpop.eup %11966  ;;  %v9199_v43 = vadd.f32 1.0, %v11965_v36  ;;  %v9230_v51 = vmul.f32 %v9198_v41, %v8974_v4 }
0x16b0   :  { %v9197_v29 = vadd.f32 1.0, %v11967_v46  ;;  %v9228_v59 = vmul.f32 %v9196_v18, %v8972_v31 }
0x16b1   :  { %v9231_v14 = vmul.f32 %v9199_v43, %v8975_v58 }
0x16b2   :  { %v9229_v8 = vmul.f32 %v9197_v29, %v8973_v62 }
0x16b3   :  { %v9261_v47 = vpack.c.bf16 %v9231_v14, %v9230_v51 }
0x16b4   :  { %v11969_v11 = vpop.eup %11968  ;;  %v9260_v23 = vpack.c.bf16 %v9229_v8, %v9228_v59 }
0x16b5   :  { %v11971_v27 = vpop.eup %11970  ;;  %v9202_v34 = vadd.f32 1.0, %v11969_v11 }
0x16b6   :  { %v11973_v30 = vpop.eup %11972  ;;  %11010 = vmatprep.mubr.msk.bf16.mxu1 %vm1460_vm2, %v9260_v23  ;;  %v9200_v55 = vadd.f32 1.0, %v11971_v27 }
0x16b7   :  { %v11975_v63 = vpop.eup %11974  ;;  %11011 = vmatmul.mubr.msk.bf16.vlgmr.msra.gmra.mrb[200].mxu1 %vm1460_vm2, %v9261_v47  ;;  %v9203_v60 = vadd.f32 1.0, %v11973_v30  ;;  %v9234_v22 = vmul.f32 %v9202_v34, %v8978_v44 }
0x16b8   :  { %v9201_v42 = vadd.f32 1.0, %v11975_v63  ;;  %v9232_v52 = vmul.f32 %v9200_v55, %v8976_v3 }
0x16b9   :  { %v9235_v24 = vmul.f32 %v9203_v60, %v8979_v20 }
0x16ba   :  { %v9233_v21 = vmul.f32 %v9201_v42, %v8977_v39 }
0x16bb   :  { %v9263_v6 = vpack.c.bf16 %v9235_v24, %v9234_v22 }
0x16bc   :  { %v9262_v32 = vpack.c.bf16 %v9233_v21, %v9232_v52 }
0x16be   :  { %11014 = vmatprep.mubr.msk.bf16.mxu1 %vm1460_vm2, %v9262_v32 }
0x16bf   :  { %11015 = vmatmul.mubr.msk.bf16.gmra.mrb[204].mxu1 %vm1460_vm2, %v9263_v6 }
0x16c4   :  { %v10980_v10 = vpop.f32.mrb[224].mxu0 }
0x16c5   :  { %v8886_v1 = vadd.f32 %v10980_v10, %v16912_v37  ;;  %v8877_v35 = vpop.f32.mrb[225].mxu0 }
0x16c6   :  { %v8878_v5 = vadd.f32 %v16912_v37, %v8877_v35  ;;  %v10981_v25 = vpop.f32.mrb[226].mxu0 }
0x16c7   :  { %v9014_v50 = vmul.f32 0.044715, %v8886_v1  ;;  %v8889_v0 = vadd.f32 %v10981_v25, %v16912_v37  ;;  %v8880_v28 = vpop.f32.mrb[227].mxu0  ;;  %v8982_v27 = vmul.f32 0.5, %v8886_v1 }
0x16c8   :  { %v9012_v56 = vmul.f32 0.044715, %v8878_v5  ;;  %v8881_v2 = vadd.f32 %v16912_v37, %v8880_v28  ;;  %v8980_v63 = vmul.f32 0.5, %v8878_v5 }
0x16c9   :  { %v9046_v7 = vmul.f32 %v9014_v50, %v8886_v1  ;;  %v9015_v57 = vmul.f32 0.044715, %v8889_v0  ;;  %v8983_v20 = vmul.f32 0.5, %v8889_v0 }
0x16ca   :  { %v9044_v38 = vmul.f32 %v9012_v56, %v8878_v5  ;;  %v9013_v17 = vmul.f32 0.044715, %v8881_v2  ;;  %v8981_v44 = vmul.f32 0.5, %v8881_v2 }
0x16cb   :  { %v9078_v41 = vmul.f32 %v9046_v7, %v8886_v1  ;;  %v9047_v36 = vmul.f32 %v9015_v57, %v8889_v0 }
0x16cc   :  { %v9076_v18 = vmul.f32 %v9044_v38, %v8878_v5  ;;  %v9045_v46 = vmul.f32 %v9013_v17, %v8881_v2 }
0x16cd   :  { %v9110_v4 = vadd.f32 %v9078_v41, %v8886_v1  ;;  %v9079_v58 = vmul.f32 %v9047_v36, %v8889_v0 }
0x16ce   :  { %v9108_v43 = vadd.f32 %v9076_v18, %v8878_v5  ;;  %v9077_v31 = vmul.f32 %v9045_v46, %v8881_v2 }
0x16cf   :  { %v9142_v62 = vmul.f32 0.7978846, %v9110_v4  ;;  %v9111_v29 = vadd.f32 %v9079_v58, %v8889_v0 }
0x16d0   :  { %v9140_v51 = vmul.f32 0.7978846, %v9108_v43  ;;  %v9109_v14 = vadd.f32 %v9077_v31, %v8881_v2 }
0x16d1   :  { %11976 = vtanh.f32 %v9142_v62  ;;  %v9143_v59 = vmul.f32 0.7978846, %v9111_v29 }
0x16d2   :  { %11978 = vtanh.f32 %v9140_v51  ;;  %v9141_v8 = vmul.f32 0.7978846, %v9109_v14 }
0x16d3   :  { %11980 = vtanh.f32 %v9143_v59 }
0x16d4   :  { %11982 = vtanh.f32 %v9141_v8 }
0x16d9   :  { %v10984_v47 = vpop.f32.mrb[228].mxu0 }
0x16da   :  { %v8902_v11 = vadd.f32 %v10984_v47, %v16912_v37  ;;  %v8893_v23 = vpop.f32.mrb[229].mxu0 }
0x16db   :  { %v11977_v34 = vpop.eup %11976  ;;  %v8894_v30 = vadd.f32 %v16912_v37, %v8893_v23  ;;  %v10985_v55 = vpop.f32.mrb[230].mxu0 }
0x16dc   :  { %v11979_v60 = vpop.eup %11978  ;;  %v9018_v3 = vmul.f32 0.044715, %v8902_v11  ;;  %v8905_v39 = vadd.f32 %v10985_v55, %v16912_v37  ;;  %v8896_v42 = vpop.f32.mrb[231].mxu0  ;;  %v9206_v22 = vadd.f32 1.0, %v11977_v34  ;;  %v16975_v24 = vmul.f32 0.5, %v8902_v11 }
0x16dd   :  { %v11981_v52 = vpop.eup %11980  ;;  %v9016_v21 = vmul.f32 0.044715, %v8894_v30  ;;  %v8897_v6 = vadd.f32 %v16912_v37, %v8896_v42  ;;  %v9204_v32 = vadd.f32 1.0, %v11979_v60  ;;  %v16978_v10 = vmul.f32 0.5, %v8894_v30 }
0x16de   :  { %v11983_v1 = vpop.eup %11982  ;;  %v9050_v35 = vmul.f32 %v9018_v3, %v8902_v11  ;;  %v9019_v5 = vmul.f32 0.044715, %v8905_v39  ;;  %v9207_v25 = vadd.f32 1.0, %v11981_v52  ;;  %v9238_v50 = vmul.f32 %v9206_v22, %v8982_v27 }
0x16df   :  { %v9048_v0 = vmul.f32 %v9016_v21, %v8894_v30  ;;  %v9017_v28 = vmul.f32 0.044715, %v8897_v6  ;;  %v9205_v56 = vadd.f32 1.0, %v11983_v1  ;;  %v9236_v2 = vmul.f32 %v9204_v32, %v8980_v63 }
0x16e0   :  { %v9082_v7 = vmul.f32 %v9050_v35, %v8902_v11  ;;  %v9051_v57 = vmul.f32 %v9019_v5, %v8905_v39  ;;  %v9239_v38 = vmul.f32 %v9207_v25, %v8983_v20  ;;  %v16980_v17 = vmul.f32 0.5, %v8897_v6 }
0x16e1   :  { %v9080_v41 = vmul.f32 %v9048_v0, %v8894_v30  ;;  %v9049_v36 = vmul.f32 %v9017_v28, %v8897_v6  ;;  %v10988_v18 = vpop.f32.mrb[232].mxu0  ;;  %v9237_v46 = vmul.f32 %v9205_v56, %v8981_v44  ;;  %v16982_v4 = vmul.f32 0.5, %v8905_v39 }
0x16e2   :  { %v9114_v58 = vadd.f32 %v9082_v7, %v8902_v11  ;;  %v9083_v43 = vmul.f32 %v9051_v57, %v8905_v39  ;;  %v8918_v31 = vadd.f32 %v10988_v18, %v16912_v37  ;;  %v8909_v62 = vpop.f32.mrb[233].mxu0  ;;  %v9265_v29 = vpack.c.bf16 %v9239_v38, %v9238_v50 }
0x16e3   :  { %v9112_v51 = vadd.f32 %v9080_v41, %v8894_v30  ;;  %v9081_v14 = vmul.f32 %v9049_v36, %v8897_v6  ;;  %v8910_v59 = vadd.f32 %v16912_v37, %v8909_v62  ;;  %v10989_v8 = vpop.f32.mrb[234].mxu0  ;;  %v9264_v47 = vpack.c.bf16 %v9237_v46, %v9236_v2 }
0x16e4   :  { %v9146_v23 = vmul.f32 0.7978846, %v9114_v58  ;;  %v9115_v27 = vadd.f32 %v9083_v43, %v8905_v39  ;;  %v9022_v34 = vmul.f32 0.044715, %v8918_v31  ;;  %v8921_v55 = vadd.f32 %v10989_v8, %v16912_v37  ;;  %v8912_v63 = vpop.f32.mrb[235].mxu0 }
0x16e5   :  { %v9144_v44 = vmul.f32 0.7978846, %v9112_v51  ;;  %v9113_v20 = vadd.f32 %v9081_v14, %v8897_v6  ;;  %v9020_v11 = vmul.f32 0.044715, %v8910_v59  ;;  %v8913_v60 = vadd.f32 %v16912_v37, %v8912_v63  ;;  %11018 = vmatprep.mubr.msk.bf16.mxu1 %vm1460_vm2, %v9264_v47 }
0x16e6   :  { %11984 = vtanh.f32 %v9146_v23  ;;  %v9147_v30 = vmul.f32 0.7978846, %v9115_v27  ;;  %v9054_v3 = vmul.f32 %v9022_v34, %v8918_v31  ;;  %v9023_v42 = vmul.f32 0.044715, %v8921_v55  ;;  %11019 = vmatmul.mubr.msk.bf16.gmra.mrb[208].mxu1 %vm1460_vm2, %v9265_v29 }
0x16e7   :  { %11986 = vtanh.f32 %v9144_v44  ;;  %v9145_v22 = vmul.f32 0.7978846, %v9113_v20  ;;  %v9052_v39 = vmul.f32 %v9020_v11, %v8910_v59  ;;  %v9021_v52 = vmul.f32 0.044715, %v8913_v60 }
0x16e8   :  { %11988 = vtanh.f32 %v9147_v30  ;;  %v9086_v21 = vmul.f32 %v9054_v3, %v8918_v31  ;;  %v9055_v32 = vmul.f32 %v9023_v42, %v8921_v55  ;;  %v16990_v1 = vmul.f32 0.5, %v8910_v59 }
0x16e9   :  { %11990 = vtanh.f32 %v9145_v22  ;;  %v9084_v6 = vmul.f32 %v9052_v39, %v8910_v59  ;;  %v9053_v35 = vmul.f32 %v9021_v52, %v8913_v60  ;;  %v10992_v5 = vpop.f32.mrb[236].mxu0  ;;  %v16992_v25 = vmul.f32 0.5, %v8913_v60 }
0x16ea   :  { %v9118_v50 = vadd.f32 %v9086_v21, %v8918_v31  ;;  %v9087_v0 = vmul.f32 %v9055_v32, %v8921_v55  ;;  %v16995_v28 = vadd.f32 %v10992_v5, %v16912_v37  ;;  %v8925_v56 = vpop.f32.mrb[237].mxu0  ;;  %v16997_v2 = vmul.f32 0.5, %v8918_v31 }
0x16eb   :  { %v9116_v7 = vadd.f32 %v9084_v6, %v8910_v59  ;;  %v9085_v57 = vmul.f32 %v9053_v35, %v8913_v60  ;;  %v8926_v38 = vadd.f32 %v16912_v37, %v8925_v56  ;;  %v10993_v41 = vpop.f32.mrb[238].mxu0  ;;  %v17000_v36 = vmul.f32 0.5, %v8921_v55 }
0x16ec   :  { %v9150_v18 = vmul.f32 0.7978846, %v9118_v50  ;;  %v9119_v46 = vadd.f32 %v9087_v0, %v8921_v55  ;;  %v9026_v58 = vmul.f32 0.044715, %v16995_v28  ;;  %v17004_v43 = vadd.f32 %v10993_v41, %v16912_v37  ;;  %v8928_v62 = vpop.f32.mrb[239].mxu0 }
0x16ed   :  { %v9148_v29 = vmul.f32 0.7978846, %v9116_v7  ;;  %v9117_v51 = vadd.f32 %v9085_v57, %v8913_v60  ;;  %v9024_v14 = vmul.f32 0.044715, %v8926_v38  ;;  %v17007_v31 = vadd.f32 %v16912_v37, %v8928_v62 }
0x16ee   :  { %11992 = vtanh.f32 %v9150_v18  ;;  %v9151_v59 = vmul.f32 0.7978846, %v9119_v46  ;;  %v9058_v8 = vmul.f32 %v9026_v58, %v16995_v28  ;;  %v9027_v47 = vmul.f32 0.044715, %v17004_v43 }
0x16ef   :  { %11994 = vtanh.f32 %v9148_v29  ;;  %v9149_v23 = vmul.f32 0.7978846, %v9117_v51  ;;  %v9056_v27 = vmul.f32 %v9024_v14, %v8926_v38  ;;  %v9025_v34 = vmul.f32 0.044715, %v17007_v31 }
0x16f0   :  { %v11985_v55 = vpop.eup %11984  ;;  %11996 = vtanh.f32 %v9151_v59  ;;  %v9090_v63 = vmul.f32 %v9058_v8, %v16995_v28  ;;  %v9059_v44 = vmul.f32 %v9027_v47, %v17004_v43  ;;  %v17014_v20 = vmul.f32 0.5, %v8926_v38 }
0x16f1   :  { %v11987_v11 = vpop.eup %11986  ;;  %11998 = vtanh.f32 %v9149_v23  ;;  %v9088_v60 = vmul.f32 %v9056_v27, %v8926_v38  ;;  %v9057_v30 = vmul.f32 %v9025_v34, %v17007_v31  ;;  %v10996_v3 = vpop.f32.mrb[240].mxu0  ;;  %v9210_v42 = vadd.f32 1.0, %v11985_v55 }
0x16f2   :  { %v11989_v22 = vpop.eup %11988  ;;  %v9122_v39 = vadd.f32 %v9090_v63, %v16995_v28  ;;  %v9091_v52 = vmul.f32 %v9059_v44, %v17004_v43  ;;  %v17020_v21 = vadd.f32 %v10996_v3, %v16912_v37  ;;  %v8941_v32 = vpop.f32.mrb[241].mxu0  ;;  %v9208_v6 = vadd.f32 1.0, %v11987_v11 }
0x16f3   :  { %v11991_v35 = vpop.eup %11990  ;;  %v9120_v5 = vadd.f32 %v9088_v60, %v8926_v38  ;;  %v9089_v50 = vmul.f32 %v9057_v30, %v17007_v31  ;;  %v17024_v0 = vadd.f32 %v16912_v37, %v8941_v32  ;;  %v10997_v56 = vpop.f32.mrb[242].mxu0  ;;  %v9211_v7 = vadd.f32 1.0, %v11989_v22 }
0x16f4   :  { %v9154_v57 = vmul.f32 0.7978846, %v9122_v39  ;;  %v9123_v41 = vadd.f32 %v9091_v52, %v17004_v43  ;;  %v9030_v18 = vmul.f32 0.044715, %v17020_v21  ;;  %v17029_v46 = vadd.f32 %v10997_v56, %v16912_v37  ;;  %v8944_v58 = vpop.f32.mrb[243].mxu0 }
0x16f5   :  { %v9152_v62 = vmul.f32 0.7978846, %v9120_v5  ;;  %v9121_v29 = vadd.f32 %v9089_v50, %v17007_v31  ;;  %v9028_v38 = vmul.f32 0.044715, %v17024_v0  ;;  %v17034_v51 = vadd.f32 %v16912_v37, %v8944_v58 }
0x16f6   :  { %12000 = vtanh.f32 %v9154_v57  ;;  %v9155_v14 = vmul.f32 0.7978846, %v9123_v41  ;;  %v9062_v59 = vmul.f32 %v9030_v18, %v17020_v21  ;;  %v9031_v8 = vmul.f32 0.044715, %v17029_v46 }
0x16f7   :  { %12002 = vtanh.f32 %v9152_v62  ;;  %v9153_v47 = vmul.f32 0.7978846, %v9121_v29  ;;  %v9060_v23 = vmul.f32 %v9028_v38, %v17024_v0  ;;  %v9029_v27 = vmul.f32 0.044715, %v17034_v51 }
0x16f8   :  { %v11993_v34 = vpop.eup %11992  ;;  %12004 = vtanh.f32 %v9155_v14  ;;  %v9094_v55 = vmul.f32 %v9062_v59, %v17020_v21  ;;  %v9063_v63 = vmul.f32 %v9031_v8, %v17029_v46  ;;  %v9209_v44 = vadd.f32 1.0, %v11991_v35 }
0x16f9   :  { %v11995_v11 = vpop.eup %11994  ;;  %12006 = vtanh.f32 %v9153_v47  ;;  %v9092_v60 = vmul.f32 %v9060_v23, %v17024_v0  ;;  %v9061_v30 = vmul.f32 %v9029_v27, %v17034_v51  ;;  %v11000_v3 = vpop.f32.mrb[244].mxu0  ;;  %v9240_v22 = vmul.f32 %v9208_v6, %v16978_v10 }
0x16fa   :  { %v11997_v39 = vpop.eup %11996  ;;  %v9126_v52 = vadd.f32 %v9094_v55, %v17020_v21  ;;  %v9095_v32 = vmul.f32 %v9063_v63, %v17029_v46  ;;  %v17048_v5 = vadd.f32 %v11000_v3, %v16912_v37  ;;  %v8957_v50 = vpop.f32.mrb[245].mxu0  ;;  %v9241_v35 = vmul.f32 %v9209_v44, %v16980_v17 }
0x16fb   :  { %v11999_v56 = vpop.eup %11998  ;;  %v9124_v57 = vadd.f32 %v9092_v60, %v17024_v0  ;;  %v9093_v41 = vmul.f32 %v9061_v30, %v17034_v51  ;;  %v17054_v18 = vadd.f32 %v16912_v37, %v8957_v50  ;;  %v11001_v10 = vpop.f32.mrb[246].mxu0  ;;  %v9242_v6 = vmul.f32 %v9210_v42, %v16975_v24 }
0x16fc   :  { %v9158_v58 = vmul.f32 0.7978846, %v9126_v52  ;;  %v9127_v62 = vadd.f32 %v9095_v32, %v17029_v46  ;;  %v9034_v29 = vmul.f32 0.044715, %v17048_v5  ;;  %v9266_v38 = vpack.c.bf16 %v9241_v35, %v9240_v22  ;;  %v8960_v14 = vpop.f32.mrb[247].mxu0 }
0x16fd   :  { %v9156_v59 = vmul.f32 0.7978846, %v9124_v57  ;;  %v9125_v17 = vadd.f32 %v9093_v41, %v17034_v51  ;;  %v9032_v8 = vmul.f32 0.044715, %v17054_v18  ;;  %v17062_v47 = vadd.f32 %v11001_v10, %v16912_v37 }
0x16fe   :  { %12008 = vtanh.f32 %v9158_v58  ;;  %v9159_v23 = vmul.f32 0.7978846, %v9127_v62  ;;  %v9066_v27 = vmul.f32 %v9034_v29, %v17048_v5  ;;  %11022 = vmatprep.mubr.msk.bf16.mxu1 %vm1460_vm2, %v9266_v38  ;;  %v9243_v24 = vmul.f32 %v9211_v7, %v16982_v4 }
0x16ff   :  { %12010 = vtanh.f32 %v9156_v59  ;;  %v9157_v42 = vmul.f32 0.7978846, %v9125_v17  ;;  %v9064_v55 = vmul.f32 %v9032_v8, %v17054_v18  ;;  %v9035_v63 = vmul.f32 0.044715, %v17062_v47 }
0x1700   :  { %v12001_v44 = vpop.eup %12000  ;;  %12012 = vtanh.f32 %v9159_v23  ;;  %v9098_v60 = vmul.f32 %v9066_v27, %v17048_v5  ;;  %v9267_v30 = vpack.c.bf16 %v9243_v24, %v9242_v6  ;;  %v17071_v3 = vadd.f32 %v16912_v37, %v8960_v14 }
0x1701   :  { %v12003_v22 = vpop.eup %12002  ;;  %12014 = vtanh.f32 %v9157_v42  ;;  %v9096_v52 = vmul.f32 %v9064_v55, %v17054_v18  ;;  %v9067_v4 = vmul.f32 %v9035_v63, %v17062_v47  ;;  %v9212_v7 = vadd.f32 1.0, %v11995_v11 }
0x1702   :  { %v12005_v32 = vpop.eup %12004  ;;  %v9130_v50 = vadd.f32 %v9098_v60, %v17048_v5  ;;  %11023 = vmatmul.mubr.msk.bf16.gmra.mrb[212].mxu1 %vm1460_vm2, %v9267_v30  ;;  %v9033_v35 = vmul.f32 0.044715, %v17071_v3  ;;  %v9213_v57 = vadd.f32 1.0, %v11999_v56  ;;  %v9214_v41 = vadd.f32 1.0, %v11993_v34 }
0x1703   :  { %v12007_v10 = vpop.eup %12006  ;;  %v9128_v37 = vadd.f32 %v9096_v52, %v17054_v18  ;;  %v9099_v6 = vmul.f32 %v9067_v4, %v17062_v47  ;;  %v9244_v58 = vmul.f32 %v9212_v7, %v16990_v1  ;;  %v9215_v62 = vadd.f32 1.0, %v11997_v39 }
0x1704   :  { %v9162_v29 = vmul.f32 0.7978846, %v9130_v50  ;;  %v9065_v11 = vmul.f32 %v9033_v35, %v17071_v3  ;;  %v9245_v38 = vmul.f32 %v9213_v57, %v16992_v25  ;;  %v9246_v14 = vmul.f32 %v9214_v41, %v16997_v2 }
0x1705   :  { %v9160_v59 = vmul.f32 0.7978846, %v9128_v37  ;;  %v9131_v17 = vadd.f32 %v9099_v6, %v17062_v47  ;;  %v9247_v34 = vmul.f32 %v9215_v62, %v17000_v36  ;;  %v8993_v56 = vmul.f32 0.5, %v17007_v31 }
0x1706   :  { %12016 = vtanh.f32 %v9162_v29  ;;  %v9097_v8 = vmul.f32 %v9065_v11, %v17071_v3  ;;  %v9268_v23 = vpack.c.bf16 %v9245_v38, %v9244_v58  ;;  %v9216_v1 = vadd.f32 1.0, %v12003_v22 }
0x1707   :  { %12018 = vtanh.f32 %v9160_v59  ;;  %v9163_v39 = vmul.f32 0.7978846, %v9131_v17  ;;  %v9269_v27 = vpack.c.bf16 %v9247_v34, %v9246_v14  ;;  %v9217_v24 = vadd.f32 1.0, %v12007_v10 }
0x1708   :  { %v12009_v42 = vpop.eup %12008  ;;  %v9129_v25 = vadd.f32 %v9097_v8, %v17071_v3  ;;  %11026 = vmatprep.mubr.msk.bf16.mxu1 %vm1460_vm2, %v9268_v23  ;;  %v9248_v2 = vmul.f32 %v9216_v1, %v17014_v20  ;;  %v8994_v36 = vmul.f32 0.5, %v16995_v28  ;;  %v8995_v31 = vmul.f32 0.5, %v17004_v43 }
0x1709   :  { %v12011_v55 = vpop.eup %12010  ;;  %12020 = vtanh.f32 %v9163_v39  ;;  %v9249_v63 = vmul.f32 %v9217_v24, %v8993_v56  ;;  %v9218_v60 = vadd.f32 1.0, %v12001_v44  ;;  %v9219_v30 = vadd.f32 1.0, %v12005_v32 }
0x170a   :  { %v12013_v22 = vpop.eup %12012  ;;  %v9161_v52 = vmul.f32 0.7978846, %v9129_v25  ;;  %11027 = vmatmul.mubr.msk.bf16.gmra.mrb[216].mxu1 %vm1460_vm2, %v9269_v27  ;;  %v9220_v4 = vadd.f32 1.0, %v12011_v55  ;;  %v8996_v20 = vmul.f32 0.5, %v17024_v0  ;;  %v8997_v28 = vmul.f32 0.5, %v17034_v51 }
0x170b   :  { %v12015_v7 = vpop.eup %12014  ;;  %v9270_v50 = vpack.c.bf16 %v9249_v63, %v9248_v2  ;;  %v9250_v35 = vmul.f32 %v9218_v60, %v8994_v36  ;;  %v9251_v57 = vmul.f32 %v9219_v30, %v8995_v31  ;;  %v8998_v41 = vmul.f32 0.5, %v17020_v21 }
0x170c   :  { %12022 = vtanh.f32 %v9161_v52  ;;  %v9221_v43 = vadd.f32 1.0, %v12015_v7  ;;  %v8999_v32 = vmul.f32 0.5, %v17029_v46  ;;  %v9222_v10 = vadd.f32 1.0, %v12009_v42 }
0x170d   :  { %11030 = vmatprep.mubr.msk.bf16.mxu1 %vm1460_vm2, %v9270_v50  ;;  %v9271_v44 = vpack.c.bf16 %v9251_v57, %v9250_v35  ;;  %v9223_v37 = vadd.f32 1.0, %v12013_v22  ;;  %v9252_v6 = vmul.f32 %v9220_v4, %v8996_v20  ;;  %v9002_v21 = vmul.f32 0.5, %v17048_v5  ;;  %v17111_v5 = vld [vmem:[%s17315_s10 + $0x1] ss:$0 sm:$0xff] }
0x170e   :  { %v9253_v58 = vmul.f32 %v9221_v43, %v8997_v28  ;;  %v9254_v62 = vmul.f32 %v9222_v10, %v8998_v41  ;;  %v9003_v46 = vmul.f32 0.5, %v17062_v47  ;;  %v9000_v1 = vmul.f32 0.5, %v17054_v18 }
0x170f   :  { %v9255_v29 = vmul.f32 %v9223_v37, %v8999_v32  ;;  %v9001_v39 = vmul.f32 0.5, %v17071_v3 }
0x1710   :  { %v12017_v11 = vpop.eup %12016  ;;  %v9272_v38 = vpack.c.bf16 %v9253_v58, %v9252_v6 }
0x1711   :  { %v12019_v0 = vpop.eup %12018  ;;  %v9273_v14 = vpack.c.bf16 %v9255_v29, %v9254_v62  ;;  %v9226_v51 = vadd.f32 1.0, %v12017_v11 }
0x1712   :  { %11031 = vmatmul.mubr.msk.bf16.gmra.mrb[220].mxu1 %vm1460_vm2, %v9271_v44  ;;  %v9224_v34 = vadd.f32 1.0, %v12019_v0 }
0x1713   :  { %v12021_v59 = vpop.eup %12020  ;;  %11034 = vmatprep.mubr.msk.bf16.mxu1 %vm1460_vm2, %v9272_v38  ;;  %v9258_v8 = vmul.f32 %v9226_v51, %v9002_v21 }
0x1714   :  { %v9227_v17 = vadd.f32 1.0, %v12021_v59  ;;  %v9256_v42 = vmul.f32 %v9224_v34, %v9000_v1 }
0x1716   :  { %v12023_v56 = vpop.eup %12022  ;;  %v9259_v23 = vmul.f32 %v9227_v17, %v9003_v46 }
0x1717   :  { %v9225_v27 = vadd.f32 1.0, %v12023_v56 }
0x1718   :  { %v9275_v24 = vpack.c.bf16 %v9259_v23, %v9258_v8  ;;  %v17648_v8 = vld [vmem:[#allocation40_spill] sm:$0xff] }
0x1719   :  { %v9257_v25 = vmul.f32 %v9225_v27, %v9001_v39  ;;  %v17649_v27 = vld [vmem:[#allocation43_spill] sm:$0xff] }
0x171a   :  { %11035 = vmatmul.mubr.msk.bf16.gmra.mrb[224].mxu1 %vm1460_vm2, %v9273_v14 }
0x171b   :  { %v9274_v2 = vpack.c.bf16 %v9257_v25, %v9256_v42  ;;  %v17650_v25 = vld [vmem:[#allocation51_spill] sm:$0xff] }
0x171d   :  { %11038 = vmatprep.mubr.msk.bf16.mxu1 %vm1460_vm2, %v9274_v2 }
0x1722   :  { %11039 = vmatmul.mubr.msk.bf16.gmra.mrb[228].mxu1 %vm1460_vm2, %v9275_v24 }
0x178a   :  { %v11012_v47 = vpop.f32.mrb[200].mxu1 }
0x178b   :  { %v9408_v18 = vadd.f32 %v11012_v47, %v17111_v5  ;;  %v9399_v3 = vpop.f32.mrb[201].mxu1  ;;  %v17651_v47 = vld [vmem:[#allocation41_spill] sm:$0xff] }
0x178c   :  { %v9400_v36 = vadd.f32 %v17111_v5, %v9399_v3  ;;  %v11013_v31 = vpop.f32.mrb[202].mxu1 }
0x178d   :  { %v9528_v55 = vadd.f32 %v9408_v18, %v16399_v33  ;;  %v9411_v63 = vadd.f32 %v11013_v31, %v17111_v5  ;;  %v9402_v60 = vpop.f32.mrb[203].mxu1 }
0x178e   :  { %v9526_v30 = vadd.f32 %v9400_v36, %v16402_v53  ;;  %v9403_v22 = vadd.f32 %v17111_v5, %v9402_v60  ;;  %v17652_v60 = vld [vmem:[#allocation35_spill] sm:$0xff] }
0x178f   :  { %9560 = vst.msk [vmem:[%s17316_s11 + $0x10] sm:$0xff] %vm73_vm0, %v9528_v55  ;;  %v9529_v52 = vadd.f32 %v9411_v63, %v16412_v15 }
0x1790   :  { %9558 = vst.msk [vmem:[%s17316_s11] sm:$0xff] %vm73_vm0, %v9526_v30  ;;  %v9527_v33 = vadd.f32 %v9403_v22, %v16394_v26 }
0x1791   :  { %9561 = vst.msk [vmem:[%s17316_s11 + $0x18] sm:$0xff] %vm73_vm0, %v9529_v52 }
0x1792   :  { %9559 = vst.msk [vmem:[%s17316_s11 + $0x8] sm:$0xff] %vm73_vm0, %v9527_v33  ;;  %v11016_v53 = vpop.f32.mrb[204].mxu1  ;;  %v17653_v33 = vld [vmem:[#allocation46_spill] sm:$0xff] }
0x1793   :  { %v9424_v15 = vadd.f32 %v11016_v53, %v17111_v5  ;;  %v9415_v4 = vpop.f32.mrb[205].mxu1 }
0x1794   :  { %v9416_v7 = vadd.f32 %v17111_v5, %v9415_v4  ;;  %v11017_v50 = vpop.f32.mrb[206].mxu1  ;;  %v17654_v4 = vld [vmem:[#allocation39_spill] sm:$0xff] }
0x1795   :  { %v9532_v35 = vadd.f32 %v9424_v15, %v16417_v19  ;;  %v9427_v26 = vadd.f32 %v11017_v50, %v17111_v5  ;;  %v9418_v57 = vpop.f32.mrb[207].mxu1  ;;  %v17655_v50 = vld [vmem:[#allocation42_spill] sm:$0xff] }
0x1796   :  { %v9530_v20 = vadd.f32 %v9416_v7, %v16407_v40  ;;  %v9419_v28 = vadd.f32 %v17111_v5, %v9418_v57 }
0x1797   :  { %9564 = vst.msk [vmem:[%s17316_s11 + $0x30] sm:$0xff] %vm73_vm0, %v9532_v35  ;;  %v9533_v43 = vadd.f32 %v9427_v26, %v16429_v16 }
0x1798   :  { %9562 = vst.msk [vmem:[%s17316_s11 + $0x20] sm:$0xff] %vm73_vm0, %v9530_v20  ;;  %v9531_v19 = vadd.f32 %v9419_v28, %v16422_v45 }
0x1799   :  { %9565 = vst.msk [vmem:[%s17316_s11 + $0x38] sm:$0xff] %vm73_vm0, %v9533_v43 }
0x179a   :  { %9563 = vst.msk [vmem:[%s17316_s11 + $0x28] sm:$0xff] %vm73_vm0, %v9531_v19  ;;  %v17656_v19 = vld [vmem:[#allocation44_spill] sm:$0xff] }
0x17b9   :  { %v11020_v40 = vpop.f32.mrb[208].mxu1 }
0x17ba   :  { %v9440_v16 = vadd.f32 %v11020_v40, %v17111_v5  ;;  %v9431_v41 = vpop.f32.mrb[209].mxu1 }
0x17bb   :  { %v9432_v44 = vadd.f32 %v17111_v5, %v9431_v41  ;;  %v11021_v32 = vpop.f32.mrb[210].mxu1 }
0x17bc   :  { %v9536_v10 = vadd.f32 %v9440_v16, %v16449_v49  ;;  %v9443_v45 = vadd.f32 %v11021_v32, %v17111_v5  ;;  %v9434_v37 = vpop.f32.mrb[211].mxu1 }
0x17bd   :  { %v9534_v6 = vadd.f32 %v9432_v44, %v16440_v61  ;;  %v9435_v58 = vadd.f32 %v17111_v5, %v9434_v37  ;;  %v17657_v44 = vld [vmem:[#allocation45_spill] sm:$0xff] }
0x17be   :  { %9568 = vst.msk [vmem:[%s17316_s11 + $0x50] sm:$0xff] %vm73_vm0, %v9536_v10  ;;  %v9537_v62 = vadd.f32 %v9443_v45, %v16455_v13  ;;  %v17658_v45 = vld [vmem:[#allocation50_spill] sm:$0xff] }
0x17bf   :  { %9566 = vst.msk [vmem:[%s17316_s11 + $0x40] sm:$0xff] %vm73_vm0, %v9534_v6  ;;  %v9535_v49 = vadd.f32 %v9435_v58, %v16446_v54  ;;  %v17659_v6 = vld [vmem:[#allocation47_spill] sm:$0xff] }
0x17c0   :  { %9569 = vst.msk [vmem:[%s17316_s11 + $0x58] sm:$0xff] %vm73_vm0, %v9537_v62 }
0x17c1   :  { %9567 = vst.msk [vmem:[%s17316_s11 + $0x48] sm:$0xff] %vm73_vm0, %v9535_v49 }
0x17d5   :  { %v11024_v61 = vpop.f32.mrb[212].mxu1 }
0x17d6   :  { %v9456_v13 = vadd.f32 %v11024_v61, %v17111_v5  ;;  %v9447_v29 = vpop.f32.mrb[213].mxu1 }
0x17d7   :  { %v9448_v11 = vadd.f32 %v17111_v5, %v9447_v29  ;;  %v11025_v38 = vpop.f32.mrb[214].mxu1 }
0x17d8   :  { %v9540_v0 = vadd.f32 %v9456_v13, %v16473_v48  ;;  %v9459_v54 = vadd.f32 %v11025_v38, %v17111_v5  ;;  %v9450_v14 = vpop.f32.mrb[215].mxu1  ;;  %v17647_v48 = vld [vmem:[#allocation38_spill] sm:$0xff] }
0x17d9   :  { %v9538_v51 = vadd.f32 %v9448_v11, %v16468_v12  ;;  %v9451_v59 = vadd.f32 %v17111_v5, %v9450_v14  ;;  %v17660_v11 = vld [vmem:[#allocation37_spill] sm:$0xff]  ;;  %v17661_v14 = vld [vmem:[#allocation36_spill] sm:$0xff] }
0x17da   :  { %9572 = vst.msk [vmem:[%s17316_s11 + $0x70] sm:$0xff] %vm73_vm0, %v9540_v0  ;;  %v9541_v21 = vadd.f32 %v9459_v54, %v16490_v9 }
0x17db   :  { %9570 = vst.msk [vmem:[%s17316_s11 + $0x60] sm:$0xff] %vm73_vm0, %v9538_v51  ;;  %v9539_v46 = vadd.f32 %v9451_v59, %v17647_v48 }
0x17dc   :  { %9573 = vst.msk [vmem:[%s17316_s11 + $0x78] sm:$0xff] %vm73_vm0, %v9541_v21  ;;  %v17662_v21 = vld [vmem:[#allocation49_spill] sm:$0xff] }
0x17dd   :  { %9571 = vst.msk [vmem:[%s17316_s11 + $0x68] sm:$0xff] %vm73_vm0, %v9539_v46  ;;  %v11028_v12 = vpop.f32.mrb[216].mxu1  ;;  %v17663_v46 = vld [vmem:[#allocation48_spill] sm:$0xff] }
0x17de   :  { %v9472_v9 = vadd.f32 %v11028_v12, %v17111_v5  ;;  %v9463_v17 = vpop.f32.mrb[217].mxu1 }
0x17df   :  { %v9464_v34 = vadd.f32 %v17111_v5, %v9463_v17  ;;  %v11029_v56 = vpop.f32.mrb[218].mxu1 }
0x17e0   :  { %v9544_v23 = vadd.f32 %v9472_v9, %v17648_v8  ;;  %v9475_v1 = vadd.f32 %v11029_v56, %v17111_v5  ;;  %v9466_v39 = vpop.f32.mrb[219].mxu1 }
0x17e1   :  { %v9542_v24 = vadd.f32 %v9464_v34, %v17649_v27  ;;  %v9467_v42 = vadd.f32 %v17111_v5, %v9466_v39 }
0x17e2   :  { %9576 = vst.msk [vmem:[%s17316_s11 + $0x90] sm:$0xff] %vm73_vm0, %v9544_v23  ;;  %v9545_v2 = vadd.f32 %v9475_v1, %v17650_v25 }
0x17e3   :  { %9574 = vst.msk [vmem:[%s17316_s11 + $0x80] sm:$0xff] %vm73_vm0, %v9542_v24  ;;  %v9543_v18 = vadd.f32 %v9467_v42, %v17651_v47 }
0x17e4   :  { %9577 = vst.msk [vmem:[%s17316_s11 + $0x98] sm:$0xff] %vm73_vm0, %v9545_v2 }
0x17e5   :  { %9575 = vst.msk [vmem:[%s17316_s11 + $0x88] sm:$0xff] %vm73_vm0, %v9543_v18  ;;  %v11032_v3 = vpop.f32.mrb[220].mxu1 }
0x17e6   :  { %v9488_v36 = vadd.f32 %v11032_v3, %v17111_v5  ;;  %v9479_v31 = vpop.f32.mrb[221].mxu1 }
0x17e7   :  { %v9480_v55 = vadd.f32 %v17111_v5, %v9479_v31  ;;  %v11033_v63 = vpop.f32.mrb[222].mxu1 }
0x17e8   :  { %v9548_v30 = vadd.f32 %v9488_v36, %v17652_v60  ;;  %v9491_v22 = vadd.f32 %v11033_v63, %v17111_v5  ;;  %v9482_v52 = vpop.f32.mrb[223].mxu1 }
0x17e9   :  { %v9546_v53 = vadd.f32 %v9480_v55, %v17653_v33  ;;  %v9483_v15 = vadd.f32 %v17111_v5, %v9482_v52 }
0x17ea   :  { %9580 = vst.msk [vmem:[%s17316_s11 + $0xb0] sm:$0xff] %vm73_vm0, %v9548_v30  ;;  %v9549_v7 = vadd.f32 %v9491_v22, %v17654_v4 }
0x17eb   :  { %9578 = vst.msk [vmem:[%s17316_s11 + $0xa0] sm:$0xff] %vm73_vm0, %v9546_v53  ;;  %v9547_v35 = vadd.f32 %v9483_v15, %v17655_v50 }
0x17ec   :  { %9581 = vst.msk [vmem:[%s17316_s11 + $0xb8] sm:$0xff] %vm73_vm0, %v9549_v7 }
0x17ed   :  { %9579 = vst.msk [vmem:[%s17316_s11 + $0xa8] sm:$0xff] %vm73_vm0, %v9547_v35  ;;  %v11036_v26 = vpop.f32.mrb[224].mxu1 }
0x17ee   :  { %v9504_v57 = vadd.f32 %v11036_v26, %v17111_v5  ;;  %v9495_v20 = vpop.f32.mrb[225].mxu1 }
0x17ef   :  { %v9496_v28 = vadd.f32 %v17111_v5, %v9495_v20  ;;  %v11037_v43 = vpop.f32.mrb[226].mxu1 }
0x17f0   :  { %v9552_v40 = vadd.f32 %v9504_v57, %v17656_v19  ;;  %v9507_v16 = vadd.f32 %v11037_v43, %v17111_v5  ;;  %v9498_v41 = vpop.f32.mrb[227].mxu1 }
0x17f1   :  { %v9550_v32 = vadd.f32 %v9496_v28, %v17657_v44  ;;  %v9499_v10 = vadd.f32 %v17111_v5, %v9498_v41 }
0x17f2   :  { %9584 = vst.msk [vmem:[%s17316_s11 + $0xd0] sm:$0xff] %vm73_vm0, %v9552_v40  ;;  %v9553_v37 = vadd.f32 %v9507_v16, %v17658_v45 }
0x17f3   :  { %9582 = vst.msk [vmem:[%s17316_s11 + $0xc0] sm:$0xff] %vm73_vm0, %v9550_v32  ;;  %v9551_v58 = vadd.f32 %v9499_v10, %v17659_v6 }
0x17f4   :  { %9585 = vst.msk [vmem:[%s17316_s11 + $0xd8] sm:$0xff] %vm73_vm0, %v9553_v37 }
0x17f5   :  { %9583 = vst.msk [vmem:[%s17316_s11 + $0xc8] sm:$0xff] %vm73_vm0, %v9551_v58  ;;  %v11040_v62 = vpop.f32.mrb[228].mxu1 }
0x17f6   :  { %v9520_v49 = vadd.f32 %v11040_v62, %v17111_v5  ;;  %v9511_v61 = vpop.f32.mrb[229].mxu1 }
0x17f7   :  { %v9512_v13 = vadd.f32 %v17111_v5, %v9511_v61  ;;  %v11041_v29 = vpop.f32.mrb[230].mxu1 }
0x17f8   :  { %v9556_v38 = vadd.f32 %v9520_v49, %v17660_v11  ;;  %v9523_v0 = vadd.f32 %v11041_v29, %v17111_v5  ;;  %v9514_v54 = vpop.f32.mrb[231].mxu1 }
0x17f9   :  { %v9554_v51 = vadd.f32 %v9512_v13, %v17661_v14  ;;  %v9515_v59 = vadd.f32 %v17111_v5, %v9514_v54 }
0x17fa   :  { %9588 = vst.msk [vmem:[%s17316_s11 + $0xf0] sm:$0xff] %vm73_vm0, %v9556_v38  ;;  %v9557_v48 = vadd.f32 %v9523_v0, %v17662_v21 }
0x17fb   :  { %9586 = vst.msk [vmem:[%s17316_s11 + $0xe0] sm:$0xff] %vm73_vm0, %v9554_v51  ;;  %v9555_v12 = vadd.f32 %v9515_v59, %v17663_v46 }
0x17fc   :  { %9589 = vst.msk [vmem:[%s17316_s11 + $0xf8] sm:$0xff] %vm73_vm0, %v9557_v48 }
0x17fd   :  { %9587 = vst.msk [vmem:[%s17316_s11 + $0xe8] sm:$0xff] %vm73_vm0, %v9555_v12 }

</bundles_post_ra>
